<compile_context>
chip_gen: v5e
topology: v5e:2x2
jax: 0.10.0
libtpu: 0.0.40
codegen_flags: <defaults>
</compile_context>

<pallas_src>
import functools

import jax
import jax.numpy as jnp
import numpy as np
from jax import lax
from jax.experimental import pallas as pl
from jax.experimental.pallas import tpu as pltpu


# ---------------------------------------------------------------------------
# pltpu.roll convention probe (run once, in bf16 with an odd shift — the exact
# case the kernel uses) + flat-roll helper.
# ---------------------------------------------------------------------------
_ROLL_MODE = None  # "jnp" | "reversed" | "fallback"


def _probe_roll_mode():
    """Detect pltpu.roll's rotation convention once; fall back to slices if unavailable."""
    global _ROLL_MODE
    if _ROLL_MODE is not None:
        return _ROLL_MODE

    def kern(x_ref, o_ref):
        o_ref[...] = pltpu.roll(x_ref[...], 3, axis=0)

    # Row p holds the value p (exact in bf16 for p < 256).
    x = (jnp.arange(256, dtype=jnp.float32)[:, None]
         * jnp.ones((1, 128), jnp.float32)).astype(jnp.bfloat16)
    try:
        y = pl.pallas_call(
            kern, out_shape=jax.ShapeDtypeStruct((256, 128), jnp.bfloat16))(x)
        probe = float(jax.device_get(y)[3, 0])
        if probe == 0.0:        # y[3] == x[0]  -> jnp.roll convention
            _ROLL_MODE = "jnp"
        elif probe == 6.0:      # y[3] == x[6]  -> reversed convention
            _ROLL_MODE = "reversed"
        else:
            _ROLL_MODE = "fallback"
    except Exception:
        _ROLL_MODE = "fallback"
    return _ROLL_MODE


def _make_roll_flat(mode):
    """Return roll_flat(x, s) with roll_flat(x, s)[p] == x[(p + s) % x.shape[0]] (axis 0)."""
    if mode == "jnp":
        def roll_flat(x, s):
            n = x.shape[0]
            s = s % n
            return x if s == 0 else pltpu.roll(x, (n - s) % n, axis=0)
    elif mode == "reversed":
        def roll_flat(x, s):
            n = x.shape[0]
            s = s % n
            return x if s == 0 else pltpu.roll(x, s, axis=0)
    else:  # slice + concat fallback: always correct, may add relayout copies.
        def roll_flat(x, s):
            n = x.shape[0]
            s = s % n
            return x if s == 0 else jnp.concatenate([x[s:], x[:s]], axis=0)
    return roll_flat


# ---------------------------------------------------------------------------
# Fused Pallas kernel: all branches for one batch element per grid step.
# ---------------------------------------------------------------------------
def _trident_kernel(x_ref, w1_ref, b1_ref, w2_ref, b2_ref, w3_ref, b3_ref,
                    o_ref, *, dilations, H, W, roll_flat):
    B = len(dilations)
    HW = H * W
    Cin = x_ref.shape[-1]
    Cout = o_ref.shape[-1]

    # Branches stacked along M for the 1x1 convs (one MXU issue each).
    # NOTE: reshape is tile-aligned when W % 8 == 0 (true for typical stages and demo).
    x_all = x_ref[...].reshape(B * HW, Cin)               # f32; also the residual

    # --- conv1x1 (+ folded bn1) + relu ----------------------- bf16 MXU, f32 acc
    t1 = jnp.dot(x_all.astype(jnp.bfloat16), w1_ref[...],
                 preferred_element_type=jnp.float32)
    t1 = jnp.maximum(t1 + b1_ref[...], 0.0)               # (B*HW, width) f32
    t1_bf = t1.astype(jnp.bfloat16)                        # cast once, before tap loops

    # Spatial coordinates for border masking, (HW, 1), computed once per grid step.
    row = lax.broadcasted_iota(jnp.int32, (H, W, 1), 0).reshape(HW, 1)
    col = lax.broadcasted_iota(jnp.int32, (H, W, 1), 1).reshape(HW, 1)

    t2_parts = []
    for b, d in enumerate(dilations):                      # static unroll over branches
        t1_b = t1_bf[b * HW:(b + 1) * HW]                  # (HW, width) bf16, 8-aligned slice

        # Hoisted per-offset border masks (3 row + 3 col instead of 9x recompute).
        rmask = [jnp.logical_and(row + (ki - 1) * d >= 0,
                                 row + (ki - 1) * d < H) for ki in range(3)]
        cmask = [jnp.logical_and(col + (kj - 1) * d >= 0,
                                 col + (kj - 1) * d < W) for kj in range(3)]

        # --- dilated 3x3 conv (+ folded bn2) + relu --------------------------
        # Nine accumulating matmuls: no im2col buffer, no lane-offset concat;
        # on v7x the MRB accumulates the partials in place.
        acc = None
        for ki in range(3):
            for kj in range(3):
                shift = (ki - 1) * d * W + (kj - 1) * d
                tap = roll_flat(t1_b, shift)               # tap[p] == t1_b[p + shift] (valid p)
                mask = jnp.logical_and(rmask[ki], cmask[kj])
                tap = jnp.where(mask, tap, jnp.zeros_like(tap))
                part = jnp.dot(tap, w2_ref[ki * 3 + kj],
                               preferred_element_type=jnp.float32)
                acc = part if acc is None else acc + part
        t2_parts.append(
            jnp.maximum(acc + b2_ref[...], 0.0).astype(jnp.bfloat16))  # (HW, width)

    # Re-stack branches along M (sublane concat at 8-aligned offsets).
    t2 = jnp.concatenate(t2_parts, axis=0)                 # (B*HW, width) bf16

    # --- conv1x1 (+ folded bn3) + residual + relu ------------------------------
    t3 = jnp.dot(t2, w3_ref[...], preferred_element_type=jnp.float32)
    out = jnp.maximum(t3 + b3_ref[...] + x_all, 0.0)
    o_ref[...] = out.reshape(B, 1, H, W, Cout).astype(o_ref.dtype)


def _vmem_limit_bytes(est_bytes):
    """Generation-aware scoped-VMEM request (~0.78x physical, never below 32 MiB/cap)."""
    try:
        info = pltpu.get_tpu_info()
        phys = int(getattr(info, "vmem_capacity_bytes", 0)) or (64 << 20)
    except Exception:
        phys = 64 << 20   # conservative: v7x physical VMEM per TC
    cap = int(0.78 * phys)
    return int(max(min(est_bytes, cap), min(32 << 20, cap)))


@functools.lru_cache(maxsize=None)
def _build_trident_call(B, N, H, W, Cin, width, Cout, dilations, roll_mode):
    roll_flat = _make_roll_flat(roll_mode)
    kern = functools.partial(_trident_kernel, dilations=dilations, H=H, W=W,
                             roll_flat=roll_flat)

    hw = H * W
    # Double-buffered I/O blocks + resident (double-buffered) weights + an allowance
    # for in-kernel temporaries (x_all, t1 f32+bf16, per-branch acc/tap, t2, t3).
    io_bytes = 2 * B * hw * (Cin + Cout) * 4
    w_bytes = 2 * ((Cin * width + 9 * width * width + width * Cout) * 2
                   + (2 * width + Cout) * 4)
    tmp_bytes = B * hw * (Cin * 4 + width * 12 + Cout * 8) + hw * width * 8
    vmem_limit = _vmem_limit_bytes(io_bytes + w_bytes + tmp_bytes + (8 << 20))

    return pl.pallas_call(
        kern,
        out_shape=jax.ShapeDtypeStruct((B, N, H, W, Cout), jnp.float32),
        grid=(N,),
        in_specs=[
            pl.BlockSpec((B, 1, H, W, Cin), lambda n: (0, n, 0, 0, 0)),   # stacked branch inputs
            pl.BlockSpec((Cin, width), lambda n: (0, 0)),                 # w1 (bf16, bn1 folded)
            pl.BlockSpec((1, width), lambda n: (0, 0)),                   # bias1 (f32)
            pl.BlockSpec((9, width, width), lambda n: (0, 0, 0)),         # w2 per-tap (bf16, bn2 folded)
            pl.BlockSpec((1, width), lambda n: (0, 0)),                   # bias2 (f32)
            pl.BlockSpec((width, Cout), lambda n: (0, 0)),                # w3 (bf16, bn3 folded)
            pl.BlockSpec((1, Cout), lambda n: (0, 0)),                    # bias3 (f32)
        ],
        out_specs=pl.BlockSpec((B, 1, H, W, Cout), lambda n: (0, n, 0, 0, 0)),
        compiler_params=pltpu.CompilerParams(
            dimension_semantics=("parallel",),
            vmem_limit_bytes=vmem_limit,
        ),
    )


# ---------------------------------------------------------------------------
# Parameter container / wrapper glue
# ---------------------------------------------------------------------------
def init_params(key, inplanes, planes, base_width=64, groups=1):
    width = int(planes * (base_width / 64.0)) * groups
    cout = planes * 4  # expansion = 4
    ks = jax.random.split(key, 16)
    p = {}
    # PyTorch-format conv weights (OIHW), bias=False.
    p["W1"] = 0.1 * jax.random.normal(ks[0], (width, inplanes, 1, 1), jnp.float32)
    p["W2"] = 0.1 * jax.random.normal(ks[1], (width, width, 3, 3), jnp.float32)
    p["W3"] = 0.1 * jax.random.normal(ks[2], (cout, width, 1, 1), jnp.float32)
    # BatchNorm (inference): gamma, beta, running_mean, running_var.
    for i, c in zip((1, 2, 3), (width, width, cout)):
        p[f"g{i}"] = 1.0 + 0.1 * jax.random.normal(ks[3 * i], (c,), jnp.float32)
        p[f"b{i}"] = 0.1 * jax.random.normal(ks[3 * i + 1], (c,), jnp.float32)
        p[f"m{i}"] = 0.1 * jax.random.normal(ks[3 * i + 2], (c,), jnp.float32)
        p[f"v{i}"] = 1.0 + 0.5 * jax.random.uniform(ks[12 + i], (c,), jnp.float32)
    return p


def _fold_bn(g, b, m, v, eps=1e-5):
    scale = g / jnp.sqrt(v + eps)
    return scale, b - m * scale


def _prepare_weights(params, eps):
    width = params["W1"].shape[0]
    s1, b1 = _fold_bn(params["g1"], params["b1"], params["m1"], params["v1"], eps)
    s2, b2 = _fold_bn(params["g2"], params["b2"], params["m2"], params["v2"], eps)
    s3, b3 = _fold_bn(params["g3"], params["b3"], params["m3"], params["v3"], eps)

    # Fold BN scales into the conv weights (in f32), then cast to bf16 for the MXU.
    w1 = (params["W1"][:, :, 0, 0].T * s1[None, :]).astype(jnp.bfloat16)       # (Cin, width)
    w2 = jnp.transpose(params["W2"], (2, 3, 1, 0)).reshape(9, width, width)    # (tap, ci, co)
    w2 = (w2 * s2[None, None, :]).astype(jnp.bfloat16)
    w3 = (params["W3"][:, :, 0, 0].T * s3[None, :]).astype(jnp.bfloat16)       # (width, Cout)
    b1 = b1[None, :].astype(jnp.float32)
    b2 = b2[None, :].astype(jnp.float32)
    b3 = b3[None, :].astype(jnp.float32)
    return w1, b1, w2, b2, w3, b3


def trident_block_forward_stacked(x_stacked, params, eps=1e-5):
    """Transpose-free entry point: x_stacked is (branches, N, H, W, Cin) NHWC f32.
    Returns (branches, N, H, W, Cout) NHWC f32. Use this when the surrounding model is NHWC."""
    B, N, H, W, Cin = x_stacked.shape
    width = params["W1"].shape[0]
    Cout = params["W3"].shape[0]
    assert Cin == Cout, "residual add requires inplanes == planes * expansion (downsample=None)"

    w1, b1, w2, b2, w3, b3 = _prepare_weights(params, eps)
    call = _build_trident_call(B, N, H, W, Cin, width, Cout,
                               tuple(range(1, B + 1)), _probe_roll_mode())
    return call(x_stacked, w1, b1, w2, b2, w3, b3)


def trident_block_forward(xs, params, eps=1e-5):
    """xs: list (len == branches) of NCHW f32 tensors. Returns list of NCHW outputs.
    NOTE: the NCHW<->NHWC transposes here cost ~1x the kernel's own HBM traffic; keep the
    surrounding model NHWC and call trident_block_forward_stacked to avoid them."""
    x_stacked = jnp.stack([jnp.transpose(x, (0, 2, 3, 1)) for x in xs], axis=0)
    y = trident_block_forward_stacked(x_stacked, params, eps)   # (B, N, H, W, Cout)
    return [jnp.transpose(y[i], (0, 3, 1, 2)) for i in range(len(xs))]


# ---------------------------------------------------------------------------
# Pure-JAX f32 reference (PyTorch forward semantics) for correctness check.
# ---------------------------------------------------------------------------
def _ref_branch(x, params, idx, eps=1e-5):
    dn = ("NCHW", "OIHW", "NCHW")

    def bn(y, i):
        g, b, m, v = params[f"g{i}"], params[f"b{i}"], params[f"m{i}"], params[f"v{i}"]
        return (y - m[None, :, None, None]) / jnp.sqrt(v[None, :, None, None] + eps) \
            * g[None, :, None, None] + b[None, :, None, None]

    d = idx + 1
    y = lax.conv_general_dilated(x, params["W1"], (1, 1), [(0, 0), (0, 0)],
                                 dimension_numbers=dn)
    y = jnp.maximum(bn(y, 1), 0.0)
    y = lax.conv_general_dilated(y, params["W2"], (1, 1), [(d, d), (d, d)],
                                 rhs_dilation=(d, d), dimension_numbers=dn)
    y = jnp.maximum(bn(y, 2), 0.0)
    y = lax.conv_general_dilated(y, params["W3"], (1, 1), [(0, 0), (0, 0)],
                                 dimension_numbers=dn)
    y = bn(y, 3)
    return jnp.maximum(y + x, 0.0)


# ---------------------------------------------------------------------------
if __name__ == "__main__":
    # Small config: planes=4 -> width=4, Cout=inplanes=16 (residual add works without a
    # downsample, exactly like the torch module with downsample=None).
    # NOTE: for production tuning use width/Cout multiples of 128 (lane-dense stores, full MXU).
    N, H, W = 2, 16, 16
    planes, branches = 4, 3
    inplanes = planes * 4  # expansion

    key = jax.random.PRNGKey(0)
    pkey, *xkeys = jax.random.split(key, 1 + branches)
    params = init_params(pkey, inplanes, planes)

    xs = [jax.random.normal(xkeys[i], (N, inplanes, H, W), jnp.float32)
          for i in range(branches)]

    outs = trident_block_forward(xs, params)
    outs = [jax.block_until_ready(o) for o in outs]

    # Validate against a pure-JAX f32 reference of the PyTorch forward.
    # (bf16 MXU operands in the kernel -> loosened tolerance vs the f32 reference.)
    for idx in range(branches):
        ref = _ref_branch(xs[idx], params, idx)
        np.testing.assert_allclose(np.asarray(outs[idx]), np.asarray(ref),
                                   rtol=5e-2, atol=5e-2)

    print("KERNEL_OK")
</pallas_src>

<mosaic_0001>
module attributes {stable_mosaic.version = 11 : i64} {
  func.func @kern(%arg0: memref<256x128xbf16, #tpu.memory_space<vmem>>, %arg1: memref<256x128xbf16, #tpu.memory_space<vmem>>) attributes {dimension_semantics = [], scalar_prefetch = 0 : i64, scratch_operands = 0 : i64, tpu.core_type = #tpu.core_type<tc>} {
    %c0 = arith.constant 0 : index
    %c0_0 = arith.constant 0 : index
    %0 = vector.load %arg0[%c0, %c0_0] : memref<256x128xbf16, #tpu.memory_space<vmem>>, vector<256x128xbf16>
    %c3_i32 = arith.constant 3 : i32
    %1 = tpu.dynamic_rotate %0 by %c3_i32 dim 0 : vector<256x128xbf16>, i32 -> vector<256x128xbf16>
    %c0_1 = arith.constant 0 : index
    %c0_2 = arith.constant 0 : index
    %2 = vector.load %arg1[%c0_1, %c0_2] : memref<256x128xbf16, #tpu.memory_space<vmem>>, vector<256x128xbf16>
    tpu.vector_store %arg1[%c0_1, %c0_2], %1 {strides = array<i32>} : memref<256x128xbf16, #tpu.memory_space<vmem>>, vector<256x128xbf16>,
    return
  }
}

module attributes {stable_mosaic.version = 11 : i64} {
  func.func @_trident_kernel(%arg0: i32, %arg1: memref<3x1x16x16x16xf32, #tpu.memory_space<vmem>>, %arg2: memref<16x4xbf16, #tpu.memory_space<vmem>>, %arg3: memref<1x4xf32, #tpu.memory_space<vmem>>, %arg4: memref<9x4x4xbf16, #tpu.memory_space<vmem>>, %arg5: memref<1x4xf32, #tpu.memory_space<vmem>>, %arg6: memref<4x16xbf16, #tpu.memory_space<vmem>>, %arg7: memref<1x16xf32, #tpu.memory_space<vmem>>, %arg8: memref<3x1x16x16x16xf32, #tpu.memory_space<vmem>>) attributes {dimension_semantics = [#tpu.dimension_semantics<parallel>], iteration_bounds = array<i64: 2>, scalar_prefetch = 0 : i64, scratch_operands = 0 : i64, tpu.core_type = #tpu.core_type<tc>, window_params = [{transform_indices = @transform_0, window_bounds = array<i64: 3, 1, 16, 16, 16>}, {pipeline_mode = #tpu.pipeline_mode<synchronous>, transform_indices = @transform_1, window_bounds = array<i64: 16, 4>}, {pipeline_mode = #tpu.pipeline_mode<synchronous>, transform_indices = @transform_2, window_bounds = array<i64: 1, 4>}, {pipeline_mode = #tpu.pipeline_mode<synchronous>, transform_indices = @transform_3, window_bounds = array<i64: 9, 4, 4>}, {pipeline_mode = #tpu.pipeline_mode<synchronous>, transform_indices = @transform_4, window_bounds = array<i64: 1, 4>}, {pipeline_mode = #tpu.pipeline_mode<synchronous>, transform_indices = @transform_5, window_bounds = array<i64: 4, 16>}, {pipeline_mode = #tpu.pipeline_mode<synchronous>, transform_indices = @transform_6, window_bounds = array<i64: 1, 16>}, {transform_indices = @transform_7, window_bounds = array<i64: 3, 1, 16, 16, 16>}]} {
    %c0 = arith.constant 0 : index
    %c0_0 = arith.constant 0 : index
    %c0_1 = arith.constant 0 : index
    %c0_2 = arith.constant 0 : index
    %c0_3 = arith.constant 0 : index
    %0 = vector.load %arg1[%c0, %c0_0, %c0_1, %c0_2, %c0_3] : memref<3x1x16x16x16xf32, #tpu.memory_space<vmem>>, vector<3x1x16x16x16xf32>
    %1 = vector.shape_cast %0 : vector<3x1x16x16x16xf32> to vector<768x16xf32>
    %2 = arith.truncf %1 : vector<768x16xf32> to vector<768x16xbf16>
    %c0_4 = arith.constant 0 : index
    %c0_5 = arith.constant 0 : index
    %3 = vector.load %arg2[%c0_4, %c0_5] : memref<16x4xbf16, #tpu.memory_space<vmem>>, vector<16x4xbf16>
    %cst = arith.constant dense<0.000000e+00> : vector<768x4xf32>
    %4 = tpu.matmul %2, %3, %cst {dimension_numbers = #tpu.dot_dimension_numbers<[1], [0], [0], [1], [0, 0, 1, 1], [], []>} : vector<768x16xbf16>, vector<16x4xbf16>, vector<768x4xf32> -> vector<768x4xf32>
    %c0_6 = arith.constant 0 : index
    %c0_7 = arith.constant 0 : index
    %5 = vector.load %arg3[%c0_6, %c0_7] : memref<1x4xf32, #tpu.memory_space<vmem>>, vector<1x4xf32>
    %6 = vector.broadcast %5 : vector<1x4xf32> to vector<768x4xf32>
    %7 = arith.addf %4, %6 : vector<768x4xf32>
    %cst_8 = arith.constant 0.000000e+00 : f32
    %8 = vector.broadcast %cst_8 : f32 to vector<768x4xf32>
    %9 = arith.maximumf %7, %8 : vector<768x4xf32>
    %10 = arith.truncf %9 : vector<768x4xf32> to vector<768x4xbf16>
    %11 = tpu.iota {dimensions = array<i32: 0>} : vector<16x16x1xi32>
    %12 = vector.shape_cast %11 : vector<16x16x1xi32> to vector<256x1xi32>
    %13 = tpu.iota {dimensions = array<i32: 1>} : vector<16x16x1xi32>
    %14 = vector.shape_cast %13 : vector<16x16x1xi32> to vector<256x1xi32>
    %15 = vector.extract_strided_slice %10 {offsets = [0, 0], sizes = [256, 4], strides = [1, 1]} : vector<768x4xbf16> to vector<256x4xbf16>
    %c-1_i32 = arith.constant -1 : i32
    %16 = vector.broadcast %c-1_i32 : i32 to vector<256x1xi32>
    %17 = arith.addi %12, %16 : vector<256x1xi32>
    %c0_i32 = arith.constant 0 : i32
    %18 = vector.broadcast %c0_i32 : i32 to vector<256x1xi32>
    %19 = arith.cmpi sge, %17, %18 : vector<256x1xi32>
    %c-1_i32_9 = arith.constant -1 : i32
    %20 = vector.broadcast %c-1_i32_9 : i32 to vector<256x1xi32>
    %21 = arith.addi %12, %20 : vector<256x1xi32>
    %c16_i32 = arith.constant 16 : i32
    %22 = vector.broadcast %c16_i32 : i32 to vector<256x1xi32>
    %23 = arith.cmpi slt, %21, %22 : vector<256x1xi32>
    %24 = arith.andi %19, %23 : vector<256x1xi1>
    %c0_i32_10 = arith.constant 0 : i32
    %25 = vector.broadcast %c0_i32_10 : i32 to vector<256x1xi32>
    %26 = arith.addi %12, %25 : vector<256x1xi32>
    %c0_i32_11 = arith.constant 0 : i32
    %27 = vector.broadcast %c0_i32_11 : i32 to vector<256x1xi32>
    %28 = arith.cmpi sge, %26, %27 : vector<256x1xi32>
    %c0_i32_12 = arith.constant 0 : i32
    %29 = vector.broadcast %c0_i32_12 : i32 to vector<256x1xi32>
    %30 = arith.addi %12, %29 : vector<256x1xi32>
    %c16_i32_13 = arith.constant 16 : i32
    %31 = vector.broadcast %c16_i32_13 : i32 to vector<256x1xi32>
    %32 = arith.cmpi slt, %30, %31 : vector<256x1xi32>
    %33 = arith.andi %28, %32 : vector<256x1xi1>
    %c1_i32 = arith.constant 1 : i32
    %34 = vector.broadcast %c1_i32 : i32 to vector<256x1xi32>
    %35 = arith.addi %12, %34 : vector<256x1xi32>
    %c0_i32_14 = arith.constant 0 : i32
    %36 = vector.broadcast %c0_i32_14 : i32 to vector<256x1xi32>
    %37 = arith.cmpi sge, %35, %36 : vector<256x1xi32>
    %c1_i32_15 = arith.constant 1 : i32
    %38 = vector.broadcast %c1_i32_15 : i32 to vector<256x1xi32>
    %39 = arith.addi %12, %38 : vector<256x1xi32>
    %c16_i32_16 = arith.constant 16 : i32
    %40 = vector.broadcast %c16_i32_16 : i32 to vector<256x1xi32>
    %41 = arith.cmpi slt, %39, %40 : vector<256x1xi32>
    %42 = arith.andi %37, %41 : vector<256x1xi1>
    %c-1_i32_17 = arith.constant -1 : i32
    %43 = vector.broadcast %c-1_i32_17 : i32 to vector<256x1xi32>
    %44 = arith.addi %14, %43 : vector<256x1xi32>
    %c0_i32_18 = arith.constant 0 : i32
    %45 = vector.broadcast %c0_i32_18 : i32 to vector<256x1xi32>
    %46 = arith.cmpi sge, %44, %45 : vector<256x1xi32>
    %c-1_i32_19 = arith.constant -1 : i32
    %47 = vector.broadcast %c-1_i32_19 : i32 to vector<256x1xi32>
    %48 = arith.addi %14, %47 : vector<256x1xi32>
    %c16_i32_20 = arith.constant 16 : i32
    %49 = vector.broadcast %c16_i32_20 : i32 to vector<256x1xi32>
    %50 = arith.cmpi slt, %48, %49 : vector<256x1xi32>
    %51 = arith.andi %46, %50 : vector<256x1xi1>
    %c0_i32_21 = arith.constant 0 : i32
    %52 = vector.broadcast %c0_i32_21 : i32 to vector<256x1xi32>
    %53 = arith.addi %14, %52 : vector<256x1xi32>
    %c0_i32_22 = arith.constant 0 : i32
    %54 = vector.broadcast %c0_i32_22 : i32 to vector<256x1xi32>
    %55 = arith.cmpi sge, %53, %54 : vector<256x1xi32>
    %c0_i32_23 = arith.constant 0 : i32
    %56 = vector.broadcast %c0_i32_23 : i32 to vector<256x1xi32>
    %57 = arith.addi %14, %56 : vector<256x1xi32>
    %c16_i32_24 = arith.constant 16 : i32
    %58 = vector.broadcast %c16_i32_24 : i32 to vector<256x1xi32>
    %59 = arith.cmpi slt, %57, %58 : vector<256x1xi32>
    %60 = arith.andi %55, %59 : vector<256x1xi1>
    %c1_i32_25 = arith.constant 1 : i32
    %61 = vector.broadcast %c1_i32_25 : i32 to vector<256x1xi32>
    %62 = arith.addi %14, %61 : vector<256x1xi32>
    %c0_i32_26 = arith.constant 0 : i32
    %63 = vector.broadcast %c0_i32_26 : i32 to vector<256x1xi32>
    %64 = arith.cmpi sge, %62, %63 : vector<256x1xi32>
    %c1_i32_27 = arith.constant 1 : i32
    %65 = vector.broadcast %c1_i32_27 : i32 to vector<256x1xi32>
    %66 = arith.addi %14, %65 : vector<256x1xi32>
    %c16_i32_28 = arith.constant 16 : i32
    %67 = vector.broadcast %c16_i32_28 : i32 to vector<256x1xi32>
    %68 = arith.cmpi slt, %66, %67 : vector<256x1xi32>
    %69 = arith.andi %64, %68 : vector<256x1xi1>
    %70 = vector.extract_strided_slice %15 {offsets = [239, 0], sizes = [17, 4], strides = [1, 1]} : vector<256x4xbf16> to vector<17x4xbf16>
    %71 = vector.extract_strided_slice %15 {offsets = [0, 0], sizes = [239, 4], strides = [1, 1]} : vector<256x4xbf16> to vector<239x4xbf16>
    %72 = tpu.concatenate %70, %71 in 0 : vector<17x4xbf16>, vector<239x4xbf16> -> vector<256x4xbf16>
    %73 = arith.andi %24, %51 : vector<256x1xi1>
    %cst_29 = arith.constant 0.000000e+00 : bf16
    %74 = vector.broadcast %cst_29 : bf16 to vector<256x4xbf16>
    %75 = vector.shape_cast %73 : vector<256x1xi1> to vector<256x1xi1>
    %76 = vector.broadcast %75 : vector<256x1xi1> to vector<256x4xi1>
    %77 = arith.select %76, %72, %74 : vector<256x4xi1>, vector<256x4xbf16>
    %c0_30 = arith.constant 0 : index
    %c0_31 = arith.constant 0 : index
    %c0_32 = arith.constant 0 : index
    %78 = vector.load %arg4[%c0_30, %c0_31, %c0_32] : memref<9x4x4xbf16, #tpu.memory_space<vmem>>, vector<1x4x4xbf16>
    %79 = vector.shape_cast %78 : vector<1x4x4xbf16> to vector<4x4xbf16>
    %cst_33 = arith.constant dense<0.000000e+00> : vector<256x4xf32>
    %80 = tpu.matmul %77, %79, %cst_33 {dimension_numbers = #tpu.dot_dimension_numbers<[1], [0], [0], [1], [0, 0, 1, 1], [], []>} : vector<256x4xbf16>, vector<4x4xbf16>, vector<256x4xf32> -> vector<256x4xf32>
    %81 = vector.extract_strided_slice %15 {offsets = [240, 0], sizes = [16, 4], strides = [1, 1]} : vector<256x4xbf16> to vector<16x4xbf16>
    %82 = vector.extract_strided_slice %15 {offsets = [0, 0], sizes = [240, 4], strides = [1, 1]} : vector<256x4xbf16> to vector<240x4xbf16>
    %83 = tpu.concatenate %81, %82 in 0 : vector<16x4xbf16>, vector<240x4xbf16> -> vector<256x4xbf16>
    %84 = arith.andi %24, %60 : vector<256x1xi1>
    %cst_34 = arith.constant 0.000000e+00 : bf16
    %85 = vector.broadcast %cst_34 : bf16 to vector<256x4xbf16>
    %86 = vector.shape_cast %84 : vector<256x1xi1> to vector<256x1xi1>
    %87 = vector.broadcast %86 : vector<256x1xi1> to vector<256x4xi1>
    %88 = arith.select %87, %83, %85 : vector<256x4xi1>, vector<256x4xbf16>
    %c1 = arith.constant 1 : index
    %c0_35 = arith.constant 0 : index
    %c0_36 = arith.constant 0 : index
    %89 = vector.load %arg4[%c1, %c0_35, %c0_36] : memref<9x4x4xbf16, #tpu.memory_space<vmem>>, vector<1x4x4xbf16>
    %90 = vector.shape_cast %89 : vector<1x4x4xbf16> to vector<4x4xbf16>
    %cst_37 = arith.constant dense<0.000000e+00> : vector<256x4xf32>
    %91 = tpu.matmul %88, %90, %cst_37 {dimension_numbers = #tpu.dot_dimension_numbers<[1], [0], [0], [1], [0, 0, 1, 1], [], []>} : vector<256x4xbf16>, vector<4x4xbf16>, vector<256x4xf32> -> vector<256x4xf32>
    %92 = arith.addf %80, %91 : vector<256x4xf32>
    %93 = vector.extract_strided_slice %15 {offsets = [241, 0], sizes = [15, 4], strides = [1, 1]} : vector<256x4xbf16> to vector<15x4xbf16>
    %94 = vector.extract_strided_slice %15 {offsets = [0, 0], sizes = [241, 4], strides = [1, 1]} : vector<256x4xbf16> to vector<241x4xbf16>
    %95 = tpu.concatenate %93, %94 in 0 : vector<15x4xbf16>, vector<241x4xbf16> -> vector<256x4xbf16>
    %96 = arith.andi %24, %69 : vector<256x1xi1>
    %cst_38 = arith.constant 0.000000e+00 : bf16
    %97 = vector.broadcast %cst_38 : bf16 to vector<256x4xbf16>
    %98 = vector.shape_cast %96 : vector<256x1xi1> to vector<256x1xi1>
    %99 = vector.broadcast %98 : vector<256x1xi1> to vector<256x4xi1>
    %100 = arith.select %99, %95, %97 : vector<256x4xi1>, vector<256x4xbf16>
    %c2 = arith.constant 2 : index
    %c0_39 = arith.constant 0 : index
    %c0_40 = arith.constant 0 : index
    %101 = vector.load %arg4[%c2, %c0_39, %c0_40] : memref<9x4x4xbf16, #tpu.memory_space<vmem>>, vector<1x4x4xbf16>
    %102 = vector.shape_cast %101 : vector<1x4x4xbf16> to vector<4x4xbf16>
    %cst_41 = arith.constant dense<0.000000e+00> : vector<256x4xf32>
    %103 = tpu.matmul %100, %102, %cst_41 {dimension_numbers = #tpu.dot_dimension_numbers<[1], [0], [0], [1], [0, 0, 1, 1], [], []>} : vector<256x4xbf16>, vector<4x4xbf16>, vector<256x4xf32> -> vector<256x4xf32>
    %104 = arith.addf %92, %103 : vector<256x4xf32>
    %105 = vector.extract_strided_slice %15 {offsets = [255, 0], sizes = [1, 4], strides = [1, 1]} : vector<256x4xbf16> to vector<1x4xbf16>
    %106 = vector.extract_strided_slice %15 {offsets = [0, 0], sizes = [255, 4], strides = [1, 1]} : vector<256x4xbf16> to vector<255x4xbf16>
    %107 = tpu.concatenate %105, %106 in 0 : vector<1x4xbf16>, vector<255x4xbf16> -> vector<256x4xbf16>
    %108 = arith.andi %33, %51 : vector<256x1xi1>
    %cst_42 = arith.constant 0.000000e+00 : bf16
    %109 = vector.broadcast %cst_42 : bf16 to vector<256x4xbf16>
    %110 = vector.shape_cast %108 : vector<256x1xi1> to vector<256x1xi1>
    %111 = vector.broadcast %110 : vector<256x1xi1> to vector<256x4xi1>
    %112 = arith.select %111, %107, %109 : vector<256x4xi1>, vector<256x4xbf16>
    %c3 = arith.constant 3 : index
    %c0_43 = arith.constant 0 : index
    %c0_44 = arith.constant 0 : index
    %113 = vector.load %arg4[%c3, %c0_43, %c0_44] : memref<9x4x4xbf16, #tpu.memory_space<vmem>>, vector<1x4x4xbf16>
    %114 = vector.shape_cast %113 : vector<1x4x4xbf16> to vector<4x4xbf16>
    %cst_45 = arith.constant dense<0.000000e+00> : vector<256x4xf32>
    %115 = tpu.matmul %112, %114, %cst_45 {dimension_numbers = #tpu.dot_dimension_numbers<[1], [0], [0], [1], [0, 0, 1, 1], [], []>} : vector<256x4xbf16>, vector<4x4xbf16>, vector<256x4xf32> -> vector<256x4xf32>
    %116 = arith.addf %104, %115 : vector<256x4xf32>
    %117 = arith.andi %33, %60 : vector<256x1xi1>
    %cst_46 = arith.constant 0.000000e+00 : bf16
    %118 = vector.broadcast %cst_46 : bf16 to vector<256x4xbf16>
    %119 = vector.shape_cast %117 : vector<256x1xi1> to vector<256x1xi1>
    %120 = vector.broadcast %119 : vector<256x1xi1> to vector<256x4xi1>
    %121 = arith.select %120, %15, %118 : vector<256x4xi1>, vector<256x4xbf16>
    %c4 = arith.constant 4 : index
    %c0_47 = arith.constant 0 : index
    %c0_48 = arith.constant 0 : index
    %122 = vector.load %arg4[%c4, %c0_47, %c0_48] : memref<9x4x4xbf16, #tpu.memory_space<vmem>>, vector<1x4x4xbf16>
    %123 = vector.shape_cast %122 : vector<1x4x4xbf16> to vector<4x4xbf16>
    %cst_49 = arith.constant dense<0.000000e+00> : vector<256x4xf32>
    %124 = tpu.matmul %121, %123, %cst_49 {dimension_numbers = #tpu.dot_dimension_numbers<[1], [0], [0], [1], [0, 0, 1, 1], [], []>} : vector<256x4xbf16>, vector<4x4xbf16>, vector<256x4xf32> -> vector<256x4xf32>
    %125 = arith.addf %116, %124 : vector<256x4xf32>
    %126 = vector.extract_strided_slice %15 {offsets = [1, 0], sizes = [255, 4], strides = [1, 1]} : vector<256x4xbf16> to vector<255x4xbf16>
    %127 = vector.extract_strided_slice %15 {offsets = [0, 0], sizes = [1, 4], strides = [1, 1]} : vector<256x4xbf16> to vector<1x4xbf16>
    %128 = tpu.concatenate %126, %127 in 0 : vector<255x4xbf16>, vector<1x4xbf16> -> vector<256x4xbf16>
    %129 = arith.andi %33, %69 : vector<256x1xi1>
    %cst_50 = arith.constant 0.000000e+00 : bf16
    %130 = vector.broadcast %cst_50 : bf16 to vector<256x4xbf16>
    %131 = vector.shape_cast %129 : vector<256x1xi1> to vector<256x1xi1>
    %132 = vector.broadcast %131 : vector<256x1xi1> to vector<256x4xi1>
    %133 = arith.select %132, %128, %130 : vector<256x4xi1>, vector<256x4xbf16>
    %c5 = arith.constant 5 : index
    %c0_51 = arith.constant 0 : index
    %c0_52 = arith.constant 0 : index
    %134 = vector.load %arg4[%c5, %c0_51, %c0_52] : memref<9x4x4xbf16, #tpu.memory_space<vmem>>, vector<1x4x4xbf16>
    %135 = vector.shape_cast %134 : vector<1x4x4xbf16> to vector<4x4xbf16>
    %cst_53 = arith.constant dense<0.000000e+00> : vector<256x4xf32>
    %136 = tpu.matmul %133, %135, %cst_53 {dimension_numbers = #tpu.dot_dimension_numbers<[1], [0], [0], [1], [0, 0, 1, 1], [], []>} : vector<256x4xbf16>, vector<4x4xbf16>, vector<256x4xf32> -> vector<256x4xf32>
    %137 = arith.addf %125, %136 : vector<256x4xf32>
    %138 = vector.extract_strided_slice %15 {offsets = [15, 0], sizes = [241, 4], strides = [1, 1]} : vector<256x4xbf16> to vector<241x4xbf16>
    %139 = vector.extract_strided_slice %15 {offsets = [0, 0], sizes = [15, 4], strides = [1, 1]} : vector<256x4xbf16> to vector<15x4xbf16>
    %140 = tpu.concatenate %138, %139 in 0 : vector<241x4xbf16>, vector<15x4xbf16> -> vector<256x4xbf16>
    %141 = arith.andi %42, %51 : vector<256x1xi1>
    %cst_54 = arith.constant 0.000000e+00 : bf16
    %142 = vector.broadcast %cst_54 : bf16 to vector<256x4xbf16>
    %143 = vector.shape_cast %141 : vector<256x1xi1> to vector<256x1xi1>
    %144 = vector.broadcast %143 : vector<256x1xi1> to vector<256x4xi1>
    %145 = arith.select %144, %140, %142 : vector<256x4xi1>, vector<256x4xbf16>
    %c6 = arith.constant 6 : index
    %c0_55 = arith.constant 0 : index
    %c0_56 = arith.constant 0 : index
    %146 = vector.load %arg4[%c6, %c0_55, %c0_56] : memref<9x4x4xbf16, #tpu.memory_space<vmem>>, vector<1x4x4xbf16>
    %147 = vector.shape_cast %146 : vector<1x4x4xbf16> to vector<4x4xbf16>
    %cst_57 = arith.constant dense<0.000000e+00> : vector<256x4xf32>
    %148 = tpu.matmul %145, %147, %cst_57 {dimension_numbers = #tpu.dot_dimension_numbers<[1], [0], [0], [1], [0, 0, 1, 1], [], []>} : vector<256x4xbf16>, vector<4x4xbf16>, vector<256x4xf32> -> vector<256x4xf32>
    %149 = arith.addf %137, %148 : vector<256x4xf32>
    %150 = vector.extract_strided_slice %15 {offsets = [16, 0], sizes = [240, 4], strides = [1, 1]} : vector<256x4xbf16> to vector<240x4xbf16>
    %151 = vector.extract_strided_slice %15 {offsets = [0, 0], sizes = [16, 4], strides = [1, 1]} : vector<256x4xbf16> to vector<16x4xbf16>
    %152 = tpu.concatenate %150, %151 in 0 : vector<240x4xbf16>, vector<16x4xbf16> -> vector<256x4xbf16>
    %153 = arith.andi %42, %60 : vector<256x1xi1>
    %cst_58 = arith.constant 0.000000e+00 : bf16
    %154 = vector.broadcast %cst_58 : bf16 to vector<256x4xbf16>
    %155 = vector.shape_cast %153 : vector<256x1xi1> to vector<256x1xi1>
    %156 = vector.broadcast %155 : vector<256x1xi1> to vector<256x4xi1>
    %157 = arith.select %156, %152, %154 : vector<256x4xi1>, vector<256x4xbf16>
    %c7 = arith.constant 7 : index
    %c0_59 = arith.constant 0 : index
    %c0_60 = arith.constant 0 : index
    %158 = vector.load %arg4[%c7, %c0_59, %c0_60] : memref<9x4x4xbf16, #tpu.memory_space<vmem>>, vector<1x4x4xbf16>
    %159 = vector.shape_cast %158 : vector<1x4x4xbf16> to vector<4x4xbf16>
    %cst_61 = arith.constant dense<0.000000e+00> : vector<256x4xf32>
    %160 = tpu.matmul %157, %159, %cst_61 {dimension_numbers = #tpu.dot_dimension_numbers<[1], [0], [0], [1], [0, 0, 1, 1], [], []>} : vector<256x4xbf16>, vector<4x4xbf16>, vector<256x4xf32> -> vector<256x4xf32>
    %161 = arith.addf %149, %160 : vector<256x4xf32>
    %162 = vector.extract_strided_slice %15 {offsets = [17, 0], sizes = [239, 4], strides = [1, 1]} : vector<256x4xbf16> to vector<239x4xbf16>
    %163 = vector.extract_strided_slice %15 {offsets = [0, 0], sizes = [17, 4], strides = [1, 1]} : vector<256x4xbf16> to vector<17x4xbf16>
    %164 = tpu.concatenate %162, %163 in 0 : vector<239x4xbf16>, vector<17x4xbf16> -> vector<256x4xbf16>
    %165 = arith.andi %42, %69 : vector<256x1xi1>
    %cst_62 = arith.constant 0.000000e+00 : bf16
    %166 = vector.broadcast %cst_62 : bf16 to vector<256x4xbf16>
    %167 = vector.shape_cast %165 : vector<256x1xi1> to vector<256x1xi1>
    %168 = vector.broadcast %167 : vector<256x1xi1> to vector<256x4xi1>
    %169 = arith.select %168, %164, %166 : vector<256x4xi1>, vector<256x4xbf16>
    %c8 = arith.constant 8 : index
    %c0_63 = arith.constant 0 : index
    %c0_64 = arith.constant 0 : index
    %170 = vector.load %arg4[%c8, %c0_63, %c0_64] : memref<9x4x4xbf16, #tpu.memory_space<vmem>>, vector<1x4x4xbf16>
    %171 = vector.shape_cast %170 : vector<1x4x4xbf16> to vector<4x4xbf16>
    %cst_65 = arith.constant dense<0.000000e+00> : vector<256x4xf32>
    %172 = tpu.matmul %169, %171, %cst_65 {dimension_numbers = #tpu.dot_dimension_numbers<[1], [0], [0], [1], [0, 0, 1, 1], [], []>} : vector<256x4xbf16>, vector<4x4xbf16>, vector<256x4xf32> -> vector<256x4xf32>
    %173 = arith.addf %161, %172 : vector<256x4xf32>
    %c0_66 = arith.constant 0 : index
    %c0_67 = arith.constant 0 : index
    %174 = vector.load %arg5[%c0_66, %c0_67] : memref<1x4xf32, #tpu.memory_space<vmem>>, vector<1x4xf32>
    %175 = vector.broadcast %174 : vector<1x4xf32> to vector<256x4xf32>
    %176 = arith.addf %173, %175 : vector<256x4xf32>
    %cst_68 = arith.constant 0.000000e+00 : f32
    %177 = vector.broadcast %cst_68 : f32 to vector<256x4xf32>
    %178 = arith.maximumf %176, %177 : vector<256x4xf32>
    %179 = arith.truncf %178 : vector<256x4xf32> to vector<256x4xbf16>
    %180 = vector.extract_strided_slice %10 {offsets = [256, 0], sizes = [256, 4], strides = [1, 1]} : vector<768x4xbf16> to vector<256x4xbf16>
    %c-2_i32 = arith.constant -2 : i32
    %181 = vector.broadcast %c-2_i32 : i32 to vector<256x1xi32>
    %182 = arith.addi %12, %181 : vector<256x1xi32>
    %c0_i32_69 = arith.constant 0 : i32
    %183 = vector.broadcast %c0_i32_69 : i32 to vector<256x1xi32>
    %184 = arith.cmpi sge, %182, %183 : vector<256x1xi32>
    %c-2_i32_70 = arith.constant -2 : i32
    %185 = vector.broadcast %c-2_i32_70 : i32 to vector<256x1xi32>
    %186 = arith.addi %12, %185 : vector<256x1xi32>
    %c16_i32_71 = arith.constant 16 : i32
    %187 = vector.broadcast %c16_i32_71 : i32 to vector<256x1xi32>
    %188 = arith.cmpi slt, %186, %187 : vector<256x1xi32>
    %189 = arith.andi %184, %188 : vector<256x1xi1>
    %c0_i32_72 = arith.constant 0 : i32
    %190 = vector.broadcast %c0_i32_72 : i32 to vector<256x1xi32>
    %191 = arith.addi %12, %190 : vector<256x1xi32>
    %c0_i32_73 = arith.constant 0 : i32
    %192 = vector.broadcast %c0_i32_73 : i32 to vector<256x1xi32>
    %193 = arith.cmpi sge, %191, %192 : vector<256x1xi32>
    %c0_i32_74 = arith.constant 0 : i32
    %194 = vector.broadcast %c0_i32_74 : i32 to vector<256x1xi32>
    %195 = arith.addi %12, %194 : vector<256x1xi32>
    %c16_i32_75 = arith.constant 16 : i32
    %196 = vector.broadcast %c16_i32_75 : i32 to vector<256x1xi32>
    %197 = arith.cmpi slt, %195, %196 : vector<256x1xi32>
    %198 = arith.andi %193, %197 : vector<256x1xi1>
    %c2_i32 = arith.constant 2 : i32
    %199 = vector.broadcast %c2_i32 : i32 to vector<256x1xi32>
    %200 = arith.addi %12, %199 : vector<256x1xi32>
    %c0_i32_76 = arith.constant 0 : i32
    %201 = vector.broadcast %c0_i32_76 : i32 to vector<256x1xi32>
    %202 = arith.cmpi sge, %200, %201 : vector<256x1xi32>
    %c2_i32_77 = arith.constant 2 : i32
    %203 = vector.broadcast %c2_i32_77 : i32 to vector<256x1xi32>
    %204 = arith.addi %12, %203 : vector<256x1xi32>
    %c16_i32_78 = arith.constant 16 : i32
    %205 = vector.broadcast %c16_i32_78 : i32 to vector<256x1xi32>
    %206 = arith.cmpi slt, %204, %205 : vector<256x1xi32>
    %207 = arith.andi %202, %206 : vector<256x1xi1>
    %c-2_i32_79 = arith.constant -2 : i32
    %208 = vector.broadcast %c-2_i32_79 : i32 to vector<256x1xi32>
    %209 = arith.addi %14, %208 : vector<256x1xi32>
    %c0_i32_80 = arith.constant 0 : i32
    %210 = vector.broadcast %c0_i32_80 : i32 to vector<256x1xi32>
    %211 = arith.cmpi sge, %209, %210 : vector<256x1xi32>
    %c-2_i32_81 = arith.constant -2 : i32
    %212 = vector.broadcast %c-2_i32_81 : i32 to vector<256x1xi32>
    %213 = arith.addi %14, %212 : vector<256x1xi32>
    %c16_i32_82 = arith.constant 16 : i32
    %214 = vector.broadcast %c16_i32_82 : i32 to vector<256x1xi32>
    %215 = arith.cmpi slt, %213, %214 : vector<256x1xi32>
    %216 = arith.andi %211, %215 : vector<256x1xi1>
    %c0_i32_83 = arith.constant 0 : i32
    %217 = vector.broadcast %c0_i32_83 : i32 to vector<256x1xi32>
    %218 = arith.addi %14, %217 : vector<256x1xi32>
    %c0_i32_84 = arith.constant 0 : i32
    %219 = vector.broadcast %c0_i32_84 : i32 to vector<256x1xi32>
    %220 = arith.cmpi sge, %218, %219 : vector<256x1xi32>
    %c0_i32_85 = arith.constant 0 : i32
    %221 = vector.broadcast %c0_i32_85 : i32 to vector<256x1xi32>
    %222 = arith.addi %14, %221 : vector<256x1xi32>
    %c16_i32_86 = arith.constant 16 : i32
    %223 = vector.broadcast %c16_i32_86 : i32 to vector<256x1xi32>
    %224 = arith.cmpi slt, %222, %223 : vector<256x1xi32>
    %225 = arith.andi %220, %224 : vector<256x1xi1>
    %c2_i32_87 = arith.constant 2 : i32
    %226 = vector.broadcast %c2_i32_87 : i32 to vector<256x1xi32>
    %227 = arith.addi %14, %226 : vector<256x1xi32>
    %c0_i32_88 = arith.constant 0 : i32
    %228 = vector.broadcast %c0_i32_88 : i32 to vector<256x1xi32>
    %229 = arith.cmpi sge, %227, %228 : vector<256x1xi32>
    %c2_i32_89 = arith.constant 2 : i32
    %230 = vector.broadcast %c2_i32_89 : i32 to vector<256x1xi32>
    %231 = arith.addi %14, %230 : vector<256x1xi32>
    %c16_i32_90 = arith.constant 16 : i32
    %232 = vector.broadcast %c16_i32_90 : i32 to vector<256x1xi32>
    %233 = arith.cmpi slt, %231, %232 : vector<256x1xi32>
    %234 = arith.andi %229, %233 : vector<256x1xi1>
    %235 = vector.extract_strided_slice %180 {offsets = [222, 0], sizes = [34, 4], strides = [1, 1]} : vector<256x4xbf16> to vector<34x4xbf16>
    %236 = vector.extract_strided_slice %180 {offsets = [0, 0], sizes = [222, 4], strides = [1, 1]} : vector<256x4xbf16> to vector<222x4xbf16>
    %237 = tpu.concatenate %235, %236 in 0 : vector<34x4xbf16>, vector<222x4xbf16> -> vector<256x4xbf16>
    %238 = arith.andi %189, %216 : vector<256x1xi1>
    %cst_91 = arith.constant 0.000000e+00 : bf16
    %239 = vector.broadcast %cst_91 : bf16 to vector<256x4xbf16>
    %240 = vector.shape_cast %238 : vector<256x1xi1> to vector<256x1xi1>
    %241 = vector.broadcast %240 : vector<256x1xi1> to vector<256x4xi1>
    %242 = arith.select %241, %237, %239 : vector<256x4xi1>, vector<256x4xbf16>
    %c0_92 = arith.constant 0 : index
    %c0_93 = arith.constant 0 : index
    %c0_94 = arith.constant 0 : index
    %243 = vector.load %arg4[%c0_92, %c0_93, %c0_94] : memref<9x4x4xbf16, #tpu.memory_space<vmem>>, vector<1x4x4xbf16>
    %244 = vector.shape_cast %243 : vector<1x4x4xbf16> to vector<4x4xbf16>
    %cst_95 = arith.constant dense<0.000000e+00> : vector<256x4xf32>
    %245 = tpu.matmul %242, %244, %cst_95 {dimension_numbers = #tpu.dot_dimension_numbers<[1], [0], [0], [1], [0, 0, 1, 1], [], []>} : vector<256x4xbf16>, vector<4x4xbf16>, vector<256x4xf32> -> vector<256x4xf32>
    %246 = vector.extract_strided_slice %180 {offsets = [224, 0], sizes = [32, 4], strides = [1, 1]} : vector<256x4xbf16> to vector<32x4xbf16>
    %247 = vector.extract_strided_slice %180 {offsets = [0, 0], sizes = [224, 4], strides = [1, 1]} : vector<256x4xbf16> to vector<224x4xbf16>
    %248 = tpu.concatenate %246, %247 in 0 : vector<32x4xbf16>, vector<224x4xbf16> -> vector<256x4xbf16>
    %249 = arith.andi %189, %225 : vector<256x1xi1>
    %cst_96 = arith.constant 0.000000e+00 : bf16
    %250 = vector.broadcast %cst_96 : bf16 to vector<256x4xbf16>
    %251 = vector.shape_cast %249 : vector<256x1xi1> to vector<256x1xi1>
    %252 = vector.broadcast %251 : vector<256x1xi1> to vector<256x4xi1>
    %253 = arith.select %252, %248, %250 : vector<256x4xi1>, vector<256x4xbf16>
    %c1_97 = arith.constant 1 : index
    %c0_98 = arith.constant 0 : index
    %c0_99 = arith.constant 0 : index
    %254 = vector.load %arg4[%c1_97, %c0_98, %c0_99] : memref<9x4x4xbf16, #tpu.memory_space<vmem>>, vector<1x4x4xbf16>
    %255 = vector.shape_cast %254 : vector<1x4x4xbf16> to vector<4x4xbf16>
    %cst_100 = arith.constant dense<0.000000e+00> : vector<256x4xf32>
    %256 = tpu.matmul %253, %255, %cst_100 {dimension_numbers = #tpu.dot_dimension_numbers<[1], [0], [0], [1], [0, 0, 1, 1], [], []>} : vector<256x4xbf16>, vector<4x4xbf16>, vector<256x4xf32> -> vector<256x4xf32>
    %257 = arith.addf %245, %256 : vector<256x4xf32>
    %258 = vector.extract_strided_slice %180 {offsets = [226, 0], sizes = [30, 4], strides = [1, 1]} : vector<256x4xbf16> to vector<30x4xbf16>
    %259 = vector.extract_strided_slice %180 {offsets = [0, 0], sizes = [226, 4], strides = [1, 1]} : vector<256x4xbf16> to vector<226x4xbf16>
    %260 = tpu.concatenate %258, %259 in 0 : vector<30x4xbf16>, vector<226x4xbf16> -> vector<256x4xbf16>
    %261 = arith.andi %189, %234 : vector<256x1xi1>
    %cst_101 = arith.constant 0.000000e+00 : bf16
    %262 = vector.broadcast %cst_101 : bf16 to vector<256x4xbf16>
    %263 = vector.shape_cast %261 : vector<256x1xi1> to vector<256x1xi1>
    %264 = vector.broadcast %263 : vector<256x1xi1> to vector<256x4xi1>
    %265 = arith.select %264, %260, %262 : vector<256x4xi1>, vector<256x4xbf16>
    %c2_102 = arith.constant 2 : index
    %c0_103 = arith.constant 0 : index
    %c0_104 = arith.constant 0 : index
    %266 = vector.load %arg4[%c2_102, %c0_103, %c0_104] : memref<9x4x4xbf16, #tpu.memory_space<vmem>>, vector<1x4x4xbf16>
    %267 = vector.shape_cast %266 : vector<1x4x4xbf16> to vector<4x4xbf16>
    %cst_105 = arith.constant dense<0.000000e+00> : vector<256x4xf32>
    %268 = tpu.matmul %265, %267, %cst_105 {dimension_numbers = #tpu.dot_dimension_numbers<[1], [0], [0], [1], [0, 0, 1, 1], [], []>} : vector<256x4xbf16>, vector<4x4xbf16>, vector<256x4xf32> -> vector<256x4xf32>
    %269 = arith.addf %257, %268 : vector<256x4xf32>
    %270 = vector.extract_strided_slice %180 {offsets = [254, 0], sizes = [2, 4], strides = [1, 1]} : vector<256x4xbf16> to vector<2x4xbf16>
    %271 = vector.extract_strided_slice %180 {offsets = [0, 0], sizes = [254, 4], strides = [1, 1]} : vector<256x4xbf16> to vector<254x4xbf16>
    %272 = tpu.concatenate %270, %271 in 0 : vector<2x4xbf16>, vector<254x4xbf16> -> vector<256x4xbf16>
    %273 = arith.andi %198, %216 : vector<256x1xi1>
    %cst_106 = arith.constant 0.000000e+00 : bf16
    %274 = vector.broadcast %cst_106 : bf16 to vector<256x4xbf16>
    %275 = vector.shape_cast %273 : vector<256x1xi1> to vector<256x1xi1>
    %276 = vector.broadcast %275 : vector<256x1xi1> to vector<256x4xi1>
    %277 = arith.select %276, %272, %274 : vector<256x4xi1>, vector<256x4xbf16>
    %c3_107 = arith.constant 3 : index
    %c0_108 = arith.constant 0 : index
    %c0_109 = arith.constant 0 : index
    %278 = vector.load %arg4[%c3_107, %c0_108, %c0_109] : memref<9x4x4xbf16, #tpu.memory_space<vmem>>, vector<1x4x4xbf16>
    %279 = vector.shape_cast %278 : vector<1x4x4xbf16> to vector<4x4xbf16>
    %cst_110 = arith.constant dense<0.000000e+00> : vector<256x4xf32>
    %280 = tpu.matmul %277, %279, %cst_110 {dimension_numbers = #tpu.dot_dimension_numbers<[1], [0], [0], [1], [0, 0, 1, 1], [], []>} : vector<256x4xbf16>, vector<4x4xbf16>, vector<256x4xf32> -> vector<256x4xf32>
    %281 = arith.addf %269, %280 : vector<256x4xf32>
    %282 = arith.andi %198, %225 : vector<256x1xi1>
    %cst_111 = arith.constant 0.000000e+00 : bf16
    %283 = vector.broadcast %cst_111 : bf16 to vector<256x4xbf16>
    %284 = vector.shape_cast %282 : vector<256x1xi1> to vector<256x1xi1>
    %285 = vector.broadcast %284 : vector<256x1xi1> to vector<256x4xi1>
    %286 = arith.select %285, %180, %283 : vector<256x4xi1>, vector<256x4xbf16>
    %c4_112 = arith.constant 4 : index
    %c0_113 = arith.constant 0 : index
    %c0_114 = arith.constant 0 : index
    %287 = vector.load %arg4[%c4_112, %c0_113, %c0_114] : memref<9x4x4xbf16, #tpu.memory_space<vmem>>, vector<1x4x4xbf16>
    %288 = vector.shape_cast %287 : vector<1x4x4xbf16> to vector<4x4xbf16>
    %cst_115 = arith.constant dense<0.000000e+00> : vector<256x4xf32>
    %289 = tpu.matmul %286, %288, %cst_115 {dimension_numbers = #tpu.dot_dimension_numbers<[1], [0], [0], [1], [0, 0, 1, 1], [], []>} : vector<256x4xbf16>, vector<4x4xbf16>, vector<256x4xf32> -> vector<256x4xf32>
    %290 = arith.addf %281, %289 : vector<256x4xf32>
    %291 = vector.extract_strided_slice %180 {offsets = [2, 0], sizes = [254, 4], strides = [1, 1]} : vector<256x4xbf16> to vector<254x4xbf16>
    %292 = vector.extract_strided_slice %180 {offsets = [0, 0], sizes = [2, 4], strides = [1, 1]} : vector<256x4xbf16> to vector<2x4xbf16>
    %293 = tpu.concatenate %291, %292 in 0 : vector<254x4xbf16>, vector<2x4xbf16> -> vector<256x4xbf16>
    %294 = arith.andi %198, %234 : vector<256x1xi1>
    %cst_116 = arith.constant 0.000000e+00 : bf16
    %295 = vector.broadcast %cst_116 : bf16 to vector<256x4xbf16>
    %296 = vector.shape_cast %294 : vector<256x1xi1> to vector<256x1xi1>
    %297 = vector.broadcast %296 : vector<256x1xi1> to vector<256x4xi1>
    %298 = arith.select %297, %293, %295 : vector<256x4xi1>, vector<256x4xbf16>
    %c5_117 = arith.constant 5 : index
    %c0_118 = arith.constant 0 : index
    %c0_119 = arith.constant 0 : index
    %299 = vector.load %arg4[%c5_117, %c0_118, %c0_119] : memref<9x4x4xbf16, #tpu.memory_space<vmem>>, vector<1x4x4xbf16>
    %300 = vector.shape_cast %299 : vector<1x4x4xbf16> to vector<4x4xbf16>
    %cst_120 = arith.constant dense<0.000000e+00> : vector<256x4xf32>
    %301 = tpu.matmul %298, %300, %cst_120 {dimension_numbers = #tpu.dot_dimension_numbers<[1], [0], [0], [1], [0, 0, 1, 1], [], []>} : vector<256x4xbf16>, vector<4x4xbf16>, vector<256x4xf32> -> vector<256x4xf32>
    %302 = arith.addf %290, %301 : vector<256x4xf32>
    %303 = vector.extract_strided_slice %180 {offsets = [30, 0], sizes = [226, 4], strides = [1, 1]} : vector<256x4xbf16> to vector<226x4xbf16>
    %304 = vector.extract_strided_slice %180 {offsets = [0, 0], sizes = [30, 4], strides = [1, 1]} : vector<256x4xbf16> to vector<30x4xbf16>
    %305 = tpu.concatenate %303, %304 in 0 : vector<226x4xbf16>, vector<30x4xbf16> -> vector<256x4xbf16>
    %306 = arith.andi %207, %216 : vector<256x1xi1>
    %cst_121 = arith.constant 0.000000e+00 : bf16
    %307 = vector.broadcast %cst_121 : bf16 to vector<256x4xbf16>
    %308 = vector.shape_cast %306 : vector<256x1xi1> to vector<256x1xi1>
    %309 = vector.broadcast %308 : vector<256x1xi1> to vector<256x4xi1>
    %310 = arith.select %309, %305, %307 : vector<256x4xi1>, vector<256x4xbf16>
    %c6_122 = arith.constant 6 : index
    %c0_123 = arith.constant 0 : index
    %c0_124 = arith.constant 0 : index
    %311 = vector.load %arg4[%c6_122, %c0_123, %c0_124] : memref<9x4x4xbf16, #tpu.memory_space<vmem>>, vector<1x4x4xbf16>
    %312 = vector.shape_cast %311 : vector<1x4x4xbf16> to vector<4x4xbf16>
    %cst_125 = arith.constant dense<0.000000e+00> : vector<256x4xf32>
    %313 = tpu.matmul %310, %312, %cst_125 {dimension_numbers = #tpu.dot_dimension_numbers<[1], [0], [0], [1], [0, 0, 1, 1], [], []>} : vector<256x4xbf16>, vector<4x4xbf16>, vector<256x4xf32> -> vector<256x4xf32>
    %314 = arith.addf %302, %313 : vector<256x4xf32>
    %315 = vector.extract_strided_slice %180 {offsets = [32, 0], sizes = [224, 4], strides = [1, 1]} : vector<256x4xbf16> to vector<224x4xbf16>
    %316 = vector.extract_strided_slice %180 {offsets = [0, 0], sizes = [32, 4], strides = [1, 1]} : vector<256x4xbf16> to vector<32x4xbf16>
    %317 = tpu.concatenate %315, %316 in 0 : vector<224x4xbf16>, vector<32x4xbf16> -> vector<256x4xbf16>
    %318 = arith.andi %207, %225 : vector<256x1xi1>
    %cst_126 = arith.constant 0.000000e+00 : bf16
    %319 = vector.broadcast %cst_126 : bf16 to vector<256x4xbf16>
    %320 = vector.shape_cast %318 : vector<256x1xi1> to vector<256x1xi1>
    %321 = vector.broadcast %320 : vector<256x1xi1> to vector<256x4xi1>
    %322 = arith.select %321, %317, %319 : vector<256x4xi1>, vector<256x4xbf16>
    %c7_127 = arith.constant 7 : index
    %c0_128 = arith.constant 0 : index
    %c0_129 = arith.constant 0 : index
    %323 = vector.load %arg4[%c7_127, %c0_128, %c0_129] : memref<9x4x4xbf16, #tpu.memory_space<vmem>>, vector<1x4x4xbf16>
    %324 = vector.shape_cast %323 : vector<1x4x4xbf16> to vector<4x4xbf16>
    %cst_130 = arith.constant dense<0.000000e+00> : vector<256x4xf32>
    %325 = tpu.matmul %322, %324, %cst_130 {dimension_numbers = #tpu.dot_dimension_numbers<[1], [0], [0], [1], [0, 0, 1, 1], [], []>} : vector<256x4xbf16>, vector<4x4xbf16>, vector<256x4xf32> -> vector<256x4xf32>
    %326 = arith.addf %314, %325 : vector<256x4xf32>
    %327 = vector.extract_strided_slice %180 {offsets = [34, 0], sizes = [222, 4], strides = [1, 1]} : vector<256x4xbf16> to vector<222x4xbf16>
    %328 = vector.extract_strided_slice %180 {offsets = [0, 0], sizes = [34, 4], strides = [1, 1]} : vector<256x4xbf16> to vector<34x4xbf16>
    %329 = tpu.concatenate %327, %328 in 0 : vector<222x4xbf16>, vector<34x4xbf16> -> vector<256x4xbf16>
    %330 = arith.andi %207, %234 : vector<256x1xi1>
    %cst_131 = arith.constant 0.000000e+00 : bf16
    %331 = vector.broadcast %cst_131 : bf16 to vector<256x4xbf16>
    %332 = vector.shape_cast %330 : vector<256x1xi1> to vector<256x1xi1>
    %333 = vector.broadcast %332 : vector<256x1xi1> to vector<256x4xi1>
    %334 = arith.select %333, %329, %331 : vector<256x4xi1>, vector<256x4xbf16>
    %c8_132 = arith.constant 8 : index
    %c0_133 = arith.constant 0 : index
    %c0_134 = arith.constant 0 : index
    %335 = vector.load %arg4[%c8_132, %c0_133, %c0_134] : memref<9x4x4xbf16, #tpu.memory_space<vmem>>, vector<1x4x4xbf16>
    %336 = vector.shape_cast %335 : vector<1x4x4xbf16> to vector<4x4xbf16>
    %cst_135 = arith.constant dense<0.000000e+00> : vector<256x4xf32>
    %337 = tpu.matmul %334, %336, %cst_135 {dimension_numbers = #tpu.dot_dimension_numbers<[1], [0], [0], [1], [0, 0, 1, 1], [], []>} : vector<256x4xbf16>, vector<4x4xbf16>, vector<256x4xf32> -> vector<256x4xf32>
    %338 = arith.addf %326, %337 : vector<256x4xf32>
    %c0_136 = arith.constant 0 : index
    %c0_137 = arith.constant 0 : index
    %339 = vector.load %arg5[%c0_136, %c0_137] : memref<1x4xf32, #tpu.memory_space<vmem>>, vector<1x4xf32>
    %340 = vector.broadcast %339 : vector<1x4xf32> to vector<256x4xf32>
    %341 = arith.addf %338, %340 : vector<256x4xf32>
    %cst_138 = arith.constant 0.000000e+00 : f32
    %342 = vector.broadcast %cst_138 : f32 to vector<256x4xf32>
    %343 = arith.maximumf %341, %342 : vector<256x4xf32>
    %344 = arith.truncf %343 : vector<256x4xf32> to vector<256x4xbf16>
    %345 = vector.extract_strided_slice %10 {offsets = [512, 0], sizes = [256, 4], strides = [1, 1]} : vector<768x4xbf16> to vector<256x4xbf16>
    %c-3_i32 = arith.constant -3 : i32
    %346 = vector.broadcast %c-3_i32 : i32 to vector<256x1xi32>
    %347 = arith.addi %12, %346 : vector<256x1xi32>
    %c0_i32_139 = arith.constant 0 : i32
    %348 = vector.broadcast %c0_i32_139 : i32 to vector<256x1xi32>
    %349 = arith.cmpi sge, %347, %348 : vector<256x1xi32>
    %c-3_i32_140 = arith.constant -3 : i32
    %350 = vector.broadcast %c-3_i32_140 : i32 to vector<256x1xi32>
    %351 = arith.addi %12, %350 : vector<256x1xi32>
    %c16_i32_141 = arith.constant 16 : i32
    %352 = vector.broadcast %c16_i32_141 : i32 to vector<256x1xi32>
    %353 = arith.cmpi slt, %351, %352 : vector<256x1xi32>
    %354 = arith.andi %349, %353 : vector<256x1xi1>
    %c0_i32_142 = arith.constant 0 : i32
    %355 = vector.broadcast %c0_i32_142 : i32 to vector<256x1xi32>
    %356 = arith.addi %12, %355 : vector<256x1xi32>
    %c0_i32_143 = arith.constant 0 : i32
    %357 = vector.broadcast %c0_i32_143 : i32 to vector<256x1xi32>
    %358 = arith.cmpi sge, %356, %357 : vector<256x1xi32>
    %c0_i32_144 = arith.constant 0 : i32
    %359 = vector.broadcast %c0_i32_144 : i32 to vector<256x1xi32>
    %360 = arith.addi %12, %359 : vector<256x1xi32>
    %c16_i32_145 = arith.constant 16 : i32
    %361 = vector.broadcast %c16_i32_145 : i32 to vector<256x1xi32>
    %362 = arith.cmpi slt, %360, %361 : vector<256x1xi32>
    %363 = arith.andi %358, %362 : vector<256x1xi1>
    %c3_i32 = arith.constant 3 : i32
    %364 = vector.broadcast %c3_i32 : i32 to vector<256x1xi32>
    %365 = arith.addi %12, %364 : vector<256x1xi32>
    %c0_i32_146 = arith.constant 0 : i32
    %366 = vector.broadcast %c0_i32_146 : i32 to vector<256x1xi32>
    %367 = arith.cmpi sge, %365, %366 : vector<256x1xi32>
    %c3_i32_147 = arith.constant 3 : i32
    %368 = vector.broadcast %c3_i32_147 : i32 to vector<256x1xi32>
    %369 = arith.addi %12, %368 : vector<256x1xi32>
    %c16_i32_148 = arith.constant 16 : i32
    %370 = vector.broadcast %c16_i32_148 : i32 to vector<256x1xi32>
    %371 = arith.cmpi slt, %369, %370 : vector<256x1xi32>
    %372 = arith.andi %367, %371 : vector<256x1xi1>
    %c-3_i32_149 = arith.constant -3 : i32
    %373 = vector.broadcast %c-3_i32_149 : i32 to vector<256x1xi32>
    %374 = arith.addi %14, %373 : vector<256x1xi32>
    %c0_i32_150 = arith.constant 0 : i32
    %375 = vector.broadcast %c0_i32_150 : i32 to vector<256x1xi32>
    %376 = arith.cmpi sge, %374, %375 : vector<256x1xi32>
    %c-3_i32_151 = arith.constant -3 : i32
    %377 = vector.broadcast %c-3_i32_151 : i32 to vector<256x1xi32>
    %378 = arith.addi %14, %377 : vector<256x1xi32>
    %c16_i32_152 = arith.constant 16 : i32
    %379 = vector.broadcast %c16_i32_152 : i32 to vector<256x1xi32>
    %380 = arith.cmpi slt, %378, %379 : vector<256x1xi32>
    %381 = arith.andi %376, %380 : vector<256x1xi1>
    %c0_i32_153 = arith.constant 0 : i32
    %382 = vector.broadcast %c0_i32_153 : i32 to vector<256x1xi32>
    %383 = arith.addi %14, %382 : vector<256x1xi32>
    %c0_i32_154 = arith.constant 0 : i32
    %384 = vector.broadcast %c0_i32_154 : i32 to vector<256x1xi32>
    %385 = arith.cmpi sge, %383, %384 : vector<256x1xi32>
    %c0_i32_155 = arith.constant 0 : i32
    %386 = vector.broadcast %c0_i32_155 : i32 to vector<256x1xi32>
    %387 = arith.addi %14, %386 : vector<256x1xi32>
    %c16_i32_156 = arith.constant 16 : i32
    %388 = vector.broadcast %c16_i32_156 : i32 to vector<256x1xi32>
    %389 = arith.cmpi slt, %387, %388 : vector<256x1xi32>
    %390 = arith.andi %385, %389 : vector<256x1xi1>
    %c3_i32_157 = arith.constant 3 : i32
    %391 = vector.broadcast %c3_i32_157 : i32 to vector<256x1xi32>
    %392 = arith.addi %14, %391 : vector<256x1xi32>
    %c0_i32_158 = arith.constant 0 : i32
    %393 = vector.broadcast %c0_i32_158 : i32 to vector<256x1xi32>
    %394 = arith.cmpi sge, %392, %393 : vector<256x1xi32>
    %c3_i32_159 = arith.constant 3 : i32
    %395 = vector.broadcast %c3_i32_159 : i32 to vector<256x1xi32>
    %396 = arith.addi %14, %395 : vector<256x1xi32>
    %c16_i32_160 = arith.constant 16 : i32
    %397 = vector.broadcast %c16_i32_160 : i32 to vector<256x1xi32>
    %398 = arith.cmpi slt, %396, %397 : vector<256x1xi32>
    %399 = arith.andi %394, %398 : vector<256x1xi1>
    %400 = vector.extract_strided_slice %345 {offsets = [205, 0], sizes = [51, 4], strides = [1, 1]} : vector<256x4xbf16> to vector<51x4xbf16>
    %401 = vector.extract_strided_slice %345 {offsets = [0, 0], sizes = [205, 4], strides = [1, 1]} : vector<256x4xbf16> to vector<205x4xbf16>
    %402 = tpu.concatenate %400, %401 in 0 : vector<51x4xbf16>, vector<205x4xbf16> -> vector<256x4xbf16>
    %403 = arith.andi %354, %381 : vector<256x1xi1>
    %cst_161 = arith.constant 0.000000e+00 : bf16
    %404 = vector.broadcast %cst_161 : bf16 to vector<256x4xbf16>
    %405 = vector.shape_cast %403 : vector<256x1xi1> to vector<256x1xi1>
    %406 = vector.broadcast %405 : vector<256x1xi1> to vector<256x4xi1>
    %407 = arith.select %406, %402, %404 : vector<256x4xi1>, vector<256x4xbf16>
    %c0_162 = arith.constant 0 : index
    %c0_163 = arith.constant 0 : index
    %c0_164 = arith.constant 0 : index
    %408 = vector.load %arg4[%c0_162, %c0_163, %c0_164] : memref<9x4x4xbf16, #tpu.memory_space<vmem>>, vector<1x4x4xbf16>
    %409 = vector.shape_cast %408 : vector<1x4x4xbf16> to vector<4x4xbf16>
    %cst_165 = arith.constant dense<0.000000e+00> : vector<256x4xf32>
    %410 = tpu.matmul %407, %409, %cst_165 {dimension_numbers = #tpu.dot_dimension_numbers<[1], [0], [0], [1], [0, 0, 1, 1], [], []>} : vector<256x4xbf16>, vector<4x4xbf16>, vector<256x4xf32> -> vector<256x4xf32>
    %411 = vector.extract_strided_slice %345 {offsets = [208, 0], sizes = [48, 4], strides = [1, 1]} : vector<256x4xbf16> to vector<48x4xbf16>
    %412 = vector.extract_strided_slice %345 {offsets = [0, 0], sizes = [208, 4], strides = [1, 1]} : vector<256x4xbf16> to vector<208x4xbf16>
    %413 = tpu.concatenate %411, %412 in 0 : vector<48x4xbf16>, vector<208x4xbf16> -> vector<256x4xbf16>
    %414 = arith.andi %354, %390 : vector<256x1xi1>
    %cst_166 = arith.constant 0.000000e+00 : bf16
    %415 = vector.broadcast %cst_166 : bf16 to vector<256x4xbf16>
    %416 = vector.shape_cast %414 : vector<256x1xi1> to vector<256x1xi1>
    %417 = vector.broadcast %416 : vector<256x1xi1> to vector<256x4xi1>
    %418 = arith.select %417, %413, %415 : vector<256x4xi1>, vector<256x4xbf16>
    %c1_167 = arith.constant 1 : index
    %c0_168 = arith.constant 0 : index
    %c0_169 = arith.constant 0 : index
    %419 = vector.load %arg4[%c1_167, %c0_168, %c0_169] : memref<9x4x4xbf16, #tpu.memory_space<vmem>>, vector<1x4x4xbf16>
    %420 = vector.shape_cast %419 : vector<1x4x4xbf16> to vector<4x4xbf16>
    %cst_170 = arith.constant dense<0.000000e+00> : vector<256x4xf32>
    %421 = tpu.matmul %418, %420, %cst_170 {dimension_numbers = #tpu.dot_dimension_numbers<[1], [0], [0], [1], [0, 0, 1, 1], [], []>} : vector<256x4xbf16>, vector<4x4xbf16>, vector<256x4xf32> -> vector<256x4xf32>
    %422 = arith.addf %410, %421 : vector<256x4xf32>
    %423 = vector.extract_strided_slice %345 {offsets = [211, 0], sizes = [45, 4], strides = [1, 1]} : vector<256x4xbf16> to vector<45x4xbf16>
    %424 = vector.extract_strided_slice %345 {offsets = [0, 0], sizes = [211, 4], strides = [1, 1]} : vector<256x4xbf16> to vector<211x4xbf16>
    %425 = tpu.concatenate %423, %424 in 0 : vector<45x4xbf16>, vector<211x4xbf16> -> vector<256x4xbf16>
    %426 = arith.andi %354, %399 : vector<256x1xi1>
    %cst_171 = arith.constant 0.000000e+00 : bf16
    %427 = vector.broadcast %cst_171 : bf16 to vector<256x4xbf16>
    %428 = vector.shape_cast %426 : vector<256x1xi1> to vector<256x1xi1>
    %429 = vector.broadcast %428 : vector<256x1xi1> to vector<256x4xi1>
    %430 = arith.select %429, %425, %427 : vector<256x4xi1>, vector<256x4xbf16>
    %c2_172 = arith.constant 2 : index
    %c0_173 = arith.constant 0 : index
    %c0_174 = arith.constant 0 : index
    %431 = vector.load %arg4[%c2_172, %c0_173, %c0_174] : memref<9x4x4xbf16, #tpu.memory_space<vmem>>, vector<1x4x4xbf16>
    %432 = vector.shape_cast %431 : vector<1x4x4xbf16> to vector<4x4xbf16>
    %cst_175 = arith.constant dense<0.000000e+00> : vector<256x4xf32>
    %433 = tpu.matmul %430, %432, %cst_175 {dimension_numbers = #tpu.dot_dimension_numbers<[1], [0], [0], [1], [0, 0, 1, 1], [], []>} : vector<256x4xbf16>, vector<4x4xbf16>, vector<256x4xf32> -> vector<256x4xf32>
    %434 = arith.addf %422, %433 : vector<256x4xf32>
    %435 = vector.extract_strided_slice %345 {offsets = [253, 0], sizes = [3, 4], strides = [1, 1]} : vector<256x4xbf16> to vector<3x4xbf16>
    %436 = vector.extract_strided_slice %345 {offsets = [0, 0], sizes = [253, 4], strides = [1, 1]} : vector<256x4xbf16> to vector<253x4xbf16>
    %437 = tpu.concatenate %435, %436 in 0 : vector<3x4xbf16>, vector<253x4xbf16> -> vector<256x4xbf16>
    %438 = arith.andi %363, %381 : vector<256x1xi1>
    %cst_176 = arith.constant 0.000000e+00 : bf16
    %439 = vector.broadcast %cst_176 : bf16 to vector<256x4xbf16>
    %440 = vector.shape_cast %438 : vector<256x1xi1> to vector<256x1xi1>
    %441 = vector.broadcast %440 : vector<256x1xi1> to vector<256x4xi1>
    %442 = arith.select %441, %437, %439 : vector<256x4xi1>, vector<256x4xbf16>
    %c3_177 = arith.constant 3 : index
    %c0_178 = arith.constant 0 : index
    %c0_179 = arith.constant 0 : index
    %443 = vector.load %arg4[%c3_177, %c0_178, %c0_179] : memref<9x4x4xbf16, #tpu.memory_space<vmem>>, vector<1x4x4xbf16>
    %444 = vector.shape_cast %443 : vector<1x4x4xbf16> to vector<4x4xbf16>
    %cst_180 = arith.constant dense<0.000000e+00> : vector<256x4xf32>
    %445 = tpu.matmul %442, %444, %cst_180 {dimension_numbers = #tpu.dot_dimension_numbers<[1], [0], [0], [1], [0, 0, 1, 1], [], []>} : vector<256x4xbf16>, vector<4x4xbf16>, vector<256x4xf32> -> vector<256x4xf32>
    %446 = arith.addf %434, %445 : vector<256x4xf32>
    %447 = arith.andi %363, %390 : vector<256x1xi1>
    %cst_181 = arith.constant 0.000000e+00 : bf16
    %448 = vector.broadcast %cst_181 : bf16 to vector<256x4xbf16>
    %449 = vector.shape_cast %447 : vector<256x1xi1> to vector<256x1xi1>
    %450 = vector.broadcast %449 : vector<256x1xi1> to vector<256x4xi1>
    %451 = arith.select %450, %345, %448 : vector<256x4xi1>, vector<256x4xbf16>
    %c4_182 = arith.constant 4 : index
    %c0_183 = arith.constant 0 : index
    %c0_184 = arith.constant 0 : index
    %452 = vector.load %arg4[%c4_182, %c0_183, %c0_184] : memref<9x4x4xbf16, #tpu.memory_space<vmem>>, vector<1x4x4xbf16>
    %453 = vector.shape_cast %452 : vector<1x4x4xbf16> to vector<4x4xbf16>
    %cst_185 = arith.constant dense<0.000000e+00> : vector<256x4xf32>
    %454 = tpu.matmul %451, %453, %cst_185 {dimension_numbers = #tpu.dot_dimension_numbers<[1], [0], [0], [1], [0, 0, 1, 1], [], []>} : vector<256x4xbf16>, vector<4x4xbf16>, vector<256x4xf32> -> vector<256x4xf32>
    %455 = arith.addf %446, %454 : vector<256x4xf32>
    %456 = vector.extract_strided_slice %345 {offsets = [3, 0], sizes = [253, 4], strides = [1, 1]} : vector<256x4xbf16> to vector<253x4xbf16>
    %457 = vector.extract_strided_slice %345 {offsets = [0, 0], sizes = [3, 4], strides = [1, 1]} : vector<256x4xbf16> to vector<3x4xbf16>
    %458 = tpu.concatenate %456, %457 in 0 : vector<253x4xbf16>, vector<3x4xbf16> -> vector<256x4xbf16>
    %459 = arith.andi %363, %399 : vector<256x1xi1>
    %cst_186 = arith.constant 0.000000e+00 : bf16
    %460 = vector.broadcast %cst_186 : bf16 to vector<256x4xbf16>
    %461 = vector.shape_cast %459 : vector<256x1xi1> to vector<256x1xi1>
    %462 = vector.broadcast %461 : vector<256x1xi1> to vector<256x4xi1>
    %463 = arith.select %462, %458, %460 : vector<256x4xi1>, vector<256x4xbf16>
    %c5_187 = arith.constant 5 : index
    %c0_188 = arith.constant 0 : index
    %c0_189 = arith.constant 0 : index
    %464 = vector.load %arg4[%c5_187, %c0_188, %c0_189] : memref<9x4x4xbf16, #tpu.memory_space<vmem>>, vector<1x4x4xbf16>
    %465 = vector.shape_cast %464 : vector<1x4x4xbf16> to vector<4x4xbf16>
    %cst_190 = arith.constant dense<0.000000e+00> : vector<256x4xf32>
    %466 = tpu.matmul %463, %465, %cst_190 {dimension_numbers = #tpu.dot_dimension_numbers<[1], [0], [0], [1], [0, 0, 1, 1], [], []>} : vector<256x4xbf16>, vector<4x4xbf16>, vector<256x4xf32> -> vector<256x4xf32>
    %467 = arith.addf %455, %466 : vector<256x4xf32>
    %468 = vector.extract_strided_slice %345 {offsets = [45, 0], sizes = [211, 4], strides = [1, 1]} : vector<256x4xbf16> to vector<211x4xbf16>
    %469 = vector.extract_strided_slice %345 {offsets = [0, 0], sizes = [45, 4], strides = [1, 1]} : vector<256x4xbf16> to vector<45x4xbf16>
    %470 = tpu.concatenate %468, %469 in 0 : vector<211x4xbf16>, vector<45x4xbf16> -> vector<256x4xbf16>
    %471 = arith.andi %372, %381 : vector<256x1xi1>
    %cst_191 = arith.constant 0.000000e+00 : bf16
    %472 = vector.broadcast %cst_191 : bf16 to vector<256x4xbf16>
    %473 = vector.shape_cast %471 : vector<256x1xi1> to vector<256x1xi1>
    %474 = vector.broadcast %473 : vector<256x1xi1> to vector<256x4xi1>
    %475 = arith.select %474, %470, %472 : vector<256x4xi1>, vector<256x4xbf16>
    %c6_192 = arith.constant 6 : index
    %c0_193 = arith.constant 0 : index
    %c0_194 = arith.constant 0 : index
    %476 = vector.load %arg4[%c6_192, %c0_193, %c0_194] : memref<9x4x4xbf16, #tpu.memory_space<vmem>>, vector<1x4x4xbf16>
    %477 = vector.shape_cast %476 : vector<1x4x4xbf16> to vector<4x4xbf16>
    %cst_195 = arith.constant dense<0.000000e+00> : vector<256x4xf32>
    %478 = tpu.matmul %475, %477, %cst_195 {dimension_numbers = #tpu.dot_dimension_numbers<[1], [0], [0], [1], [0, 0, 1, 1], [], []>} : vector<256x4xbf16>, vector<4x4xbf16>, vector<256x4xf32> -> vector<256x4xf32>
    %479 = arith.addf %467, %478 : vector<256x4xf32>
    %480 = vector.extract_strided_slice %345 {offsets = [48, 0], sizes = [208, 4], strides = [1, 1]} : vector<256x4xbf16> to vector<208x4xbf16>
    %481 = vector.extract_strided_slice %345 {offsets = [0, 0], sizes = [48, 4], strides = [1, 1]} : vector<256x4xbf16> to vector<48x4xbf16>
    %482 = tpu.concatenate %480, %481 in 0 : vector<208x4xbf16>, vector<48x4xbf16> -> vector<256x4xbf16>
    %483 = arith.andi %372, %390 : vector<256x1xi1>
    %cst_196 = arith.constant 0.000000e+00 : bf16
    %484 = vector.broadcast %cst_196 : bf16 to vector<256x4xbf16>
    %485 = vector.shape_cast %483 : vector<256x1xi1> to vector<256x1xi1>
    %486 = vector.broadcast %485 : vector<256x1xi1> to vector<256x4xi1>
    %487 = arith.select %486, %482, %484 : vector<256x4xi1>, vector<256x4xbf16>
    %c7_197 = arith.constant 7 : index
    %c0_198 = arith.constant 0 : index
    %c0_199 = arith.constant 0 : index
    %488 = vector.load %arg4[%c7_197, %c0_198, %c0_199] : memref<9x4x4xbf16, #tpu.memory_space<vmem>>, vector<1x4x4xbf16>
    %489 = vector.shape_cast %488 : vector<1x4x4xbf16> to vector<4x4xbf16>
    %cst_200 = arith.constant dense<0.000000e+00> : vector<256x4xf32>
    %490 = tpu.matmul %487, %489, %cst_200 {dimension_numbers = #tpu.dot_dimension_numbers<[1], [0], [0], [1], [0, 0, 1, 1], [], []>} : vector<256x4xbf16>, vector<4x4xbf16>, vector<256x4xf32> -> vector<256x4xf32>
    %491 = arith.addf %479, %490 : vector<256x4xf32>
    %492 = vector.extract_strided_slice %345 {offsets = [51, 0], sizes = [205, 4], strides = [1, 1]} : vector<256x4xbf16> to vector<205x4xbf16>
    %493 = vector.extract_strided_slice %345 {offsets = [0, 0], sizes = [51, 4], strides = [1, 1]} : vector<256x4xbf16> to vector<51x4xbf16>
    %494 = tpu.concatenate %492, %493 in 0 : vector<205x4xbf16>, vector<51x4xbf16> -> vector<256x4xbf16>
    %495 = arith.andi %372, %399 : vector<256x1xi1>
    %cst_201 = arith.constant 0.000000e+00 : bf16
    %496 = vector.broadcast %cst_201 : bf16 to vector<256x4xbf16>
    %497 = vector.shape_cast %495 : vector<256x1xi1> to vector<256x1xi1>
    %498 = vector.broadcast %497 : vector<256x1xi1> to vector<256x4xi1>
    %499 = arith.select %498, %494, %496 : vector<256x4xi1>, vector<256x4xbf16>
    %c8_202 = arith.constant 8 : index
    %c0_203 = arith.constant 0 : index
    %c0_204 = arith.constant 0 : index
    %500 = vector.load %arg4[%c8_202, %c0_203, %c0_204] : memref<9x4x4xbf16, #tpu.memory_space<vmem>>, vector<1x4x4xbf16>
    %501 = vector.shape_cast %500 : vector<1x4x4xbf16> to vector<4x4xbf16>
    %cst_205 = arith.constant dense<0.000000e+00> : vector<256x4xf32>
    %502 = tpu.matmul %499, %501, %cst_205 {dimension_numbers = #tpu.dot_dimension_numbers<[1], [0], [0], [1], [0, 0, 1, 1], [], []>} : vector<256x4xbf16>, vector<4x4xbf16>, vector<256x4xf32> -> vector<256x4xf32>
    %503 = arith.addf %491, %502 : vector<256x4xf32>
    %c0_206 = arith.constant 0 : index
    %c0_207 = arith.constant 0 : index
    %504 = vector.load %arg5[%c0_206, %c0_207] : memref<1x4xf32, #tpu.memory_space<vmem>>, vector<1x4xf32>
    %505 = vector.broadcast %504 : vector<1x4xf32> to vector<256x4xf32>
    %506 = arith.addf %503, %505 : vector<256x4xf32>
    %cst_208 = arith.constant 0.000000e+00 : f32
    %507 = vector.broadcast %cst_208 : f32 to vector<256x4xf32>
    %508 = arith.maximumf %506, %507 : vector<256x4xf32>
    %509 = arith.truncf %508 : vector<256x4xf32> to vector<256x4xbf16>
    %510 = tpu.concatenate %179, %344, %509 in 0 : vector<256x4xbf16>, vector<256x4xbf16>, vector<256x4xbf16> -> vector<768x4xbf16>
    %c0_209 = arith.constant 0 : index
    %c0_210 = arith.constant 0 : index
    %511 = vector.load %arg6[%c0_209, %c0_210] : memref<4x16xbf16, #tpu.memory_space<vmem>>, vector<4x16xbf16>
    %cst_211 = arith.constant dense<0.000000e+00> : vector<768x16xf32>
    %512 = tpu.matmul %510, %511, %cst_211 {dimension_numbers = #tpu.dot_dimension_numbers<[1], [0], [0], [1], [0, 0, 1, 1], [], []>} : vector<768x4xbf16>, vector<4x16xbf16>, vector<768x16xf32> -> vector<768x16xf32>
    %c0_212 = arith.constant 0 : index
    %c0_213 = arith.constant 0 : index
    %513 = vector.load %arg7[%c0_212, %c0_213] : memref<1x16xf32, #tpu.memory_space<vmem>>, vector<1x16xf32>
    %514 = vector.broadcast %513 : vector<1x16xf32> to vector<768x16xf32>
    %515 = arith.addf %512, %514 : vector<768x16xf32>
    %516 = arith.addf %515, %1 : vector<768x16xf32>
    %cst_214 = arith.constant 0.000000e+00 : f32
    %517 = vector.broadcast %cst_214 : f32 to vector<768x16xf32>
    %518 = arith.maximumf %516, %517 : vector<768x16xf32>
    %519 = vector.shape_cast %518 : vector<768x16xf32> to vector<3x1x16x16x16xf32>
    %c0_215 = arith.constant 0 : index
    %c0_216 = arith.constant 0 : index
    %c0_217 = arith.constant 0 : index
    %c0_218 = arith.constant 0 : index
    %c0_219 = arith.constant 0 : index
    %520 = vector.load %arg8[%c0_215, %c0_216, %c0_217, %c0_218, %c0_219] : memref<3x1x16x16x16xf32, #tpu.memory_space<vmem>>, vector<3x1x16x16x16xf32>
    tpu.vector_store %arg8[%c0_215, %c0_216, %c0_217, %c0_218, %c0_219], %519 {strides = array<i32>} : memref<3x1x16x16x16xf32, #tpu.memory_space<vmem>>, vector<3x1x16x16x16xf32>,
    return
  }
  func.func @transform_0(%arg0: i32) -> (i32, i32, i32, i32, i32) {
    %c0_i32 = arith.constant 0 : i32
    %c0_i32_0 = arith.constant 0 : i32
    %c0_i32_1 = arith.constant 0 : i32
    %c0_i32_2 = arith.constant 0 : i32
    %c0_i32_3 = arith.constant 0 : i32
    return %c0_i32, %arg0, %c0_i32_0, %c0_i32_1, %c0_i32_2 : i32, i32, i32, i32, i32
  }
  func.func @transform_1(%arg0: i32) -> (i32, i32) {
    %c0_i32 = arith.constant 0 : i32
    %c0_i32_0 = arith.constant 0 : i32
    %c0_i32_1 = arith.constant 0 : i32
    return %c0_i32, %c0_i32_0 : i32, i32
  }
  func.func @transform_2(%arg0: i32) -> (i32, i32) {
    %c0_i32 = arith.constant 0 : i32
    %c0_i32_0 = arith.constant 0 : i32
    %c0_i32_1 = arith.constant 0 : i32
    return %c0_i32, %c0_i32_0 : i32, i32
  }
  func.func @transform_3(%arg0: i32) -> (i32, i32, i32) {
    %c0_i32 = arith.constant 0 : i32
    %c0_i32_0 = arith.constant 0 : i32
    %c0_i32_1 = arith.constant 0 : i32
    %c0_i32_2 = arith.constant 0 : i32
    return %c0_i32, %c0_i32_0, %c0_i32_1 : i32, i32, i32
  }
  func.func @transform_4(%arg0: i32) -> (i32, i32) {
    %c0_i32 = arith.constant 0 : i32
    %c0_i32_0 = arith.constant 0 : i32
    %c0_i32_1 = arith.constant 0 : i32
    return %c0_i32, %c0_i32_0 : i32, i32
  }
  func.func @transform_5(%arg0: i32) -> (i32, i32) {
    %c0_i32 = arith.constant 0 : i32
    %c0_i32_0 = arith.constant 0 : i32
    %c0_i32_1 = arith.constant 0 : i32
    return %c0_i32, %c0_i32_0 : i32, i32
  }
  func.func @transform_6(%arg0: i32) -> (i32, i32) {
    %c0_i32 = arith.constant 0 : i32
    %c0_i32_0 = arith.constant 0 : i32
    %c0_i32_1 = arith.constant 0 : i32
    return %c0_i32, %c0_i32_0 : i32, i32
  }
  func.func @transform_7(%arg0: i32) -> (i32, i32, i32, i32, i32) {
    %c0_i32 = arith.constant 0 : i32
    %c0_i32_0 = arith.constant 0 : i32
    %c0_i32_1 = arith.constant 0 : i32
    %c0_i32_2 = arith.constant 0 : i32
    %c0_i32_3 = arith.constant 0 : i32
    return %c0_i32, %arg0, %c0_i32_0, %c0_i32_1, %c0_i32_2 : i32, i32, i32, i32, i32
  }
}

</mosaic_0001>

<bundles_post_ra>
// kernel: tpu_custom_call.1
= control target key start
LH: loop header
LB: loop body
LE: loop exit
PB: predicated region body
PF: predicated region fallthrough
CT: control target
= control target key end

     0   :  { %12 = vsyncpa [#allocation3], 0  ;;  %s15366_s0 = inlined_call_operand.hbm [shape: f32[3,2,16,16,16], index: 0, kind: input, shape index: {}]   ;;  %s15367_s1 = inlined_call_operand.vmem [shape: bf16[16,4], index: 1, kind: input, shape index: {}]   ;;  %s15368_s2 = inlined_call_operand.vmem [shape: f32[1,4], index: 2, kind: input, shape index: {}]   ;;  %s15369_s3 = inlined_call_operand.vmem [shape: bf16[9,4,4], index: 3, kind: input, shape index: {}]   ;;  %s15370_s4 = inlined_call_operand.vmem [shape: f32[1,4], index: 4, kind: input, shape index: {}]   ;;  %s15371_s5 = inlined_call_operand.vmem [shape: bf16[4,16], index: 5, kind: input, shape index: {}]   ;;  %s15372_s6 = inlined_call_operand.vmem [shape: f32[1,16], index: 6, kind: input, shape index: {}]   ;;  %s15373_s7 = inlined_call_operand.hbm [shape: f32[3,2,16,16,16], index: 7, kind: output, shape index: {}]  }
   0x1   :  { %14 = vsyncpa [#allocation3 + $0x1], 0 }
   0x2   :  { %15 = vsyncpa [#allocation4], 0 }
   0x3   :  { %17 = vsyncpa [#allocation4 + $0x1], 0  ;;  %s9267_s24 = smov 0   ;;  %s9269_s25 = smov 0  }
   0x4   :  { %s9271_s26 = smov 0   ;;  %s9273_s27 = smov 0  }
   0x5 LB: > { %s9288_s28 = sadd.s32 4294967295, %s9209_s27   ;;  %s8417_s29 = sadd.s32 4294967294, %s9209_s27   ;;  %s9209_s27 = sphi %s9273_s27, %s17257_s27   ;;  %s9205_s26 = sphi %s9271_s26, %s17256_s26   ;;  %s9201_s25 = sphi %s9269_s25, %s17255_s25   ;;  %s9197_s24 = sphi %s9267_s24, %s17254_s24  }
   0x6   : > { %s9292_s30 = sadd.s32 1, %s9209_s27   ;;  %s30_s8 = sadd.s32 1, %s9205_s26 }
   0x7   : > { %s27_s9 = ssub.s32 %s9209_s27, %s9292_s30  ;;  %p37_p0 = scmp.ne.s32.totalorder %s9205_s26, %s9201_s25 }
   0x8   : > { %p28_p1 = scmp.eq.s32.totalorder %s27_s9, 0  ;;  %p38_p2 = scmp.eq.s32.totalorder %s9209_s27, 0 }
   0x9   : > { %p43_p3 = scmp.ne.s32.totalorder %s9201_s25, %s9197_s24  ;;  %p44_p4 = scmp.eq.s32.totalorder %s9288_s28, 0 }
   0xa   : > { %s9304_s10 = scalar_select %p28_p1, %s9205_s26, %s30_s8  }
   0xb   : > { %p9306_p5 = por %p38_p2, %p37_p0  ;;  %p9310_p6 = por %p44_p4, %p43_p3 }
   0xc   : > { %15715 = sst [smem:[#allocation13_spill]] %s9304_s10  ;;  %p193_p7 = scmp.eq.s32.totalorder %s9288_s28, 1 }
   0xd   : > { %p199_p8 = scmp.eq.s32.totalorder %s8417_s29, 1  ;;  %p8419_p11 = scmp.ge.s32.totalorder %s9209_s27, 2 }
   0xe   : > { %p9315_p9 = por %p193_p7, %p37_p0 }
   0xf   : > { %p9319_p10 = por %p199_p8, %p43_p3  ;;  %233 = sbr.rel (%p8419_p11) target bundleno = 34 (0x22), region = 40 }
  0x14   : > { %s237_s15 = sand.u32 1, %s9205_s26   ;;  %s8985_s16 = sshll.u32 %s9209_s27, 8 }
  0x15   : > { %s8991_s17 = smul.u32 768, %s237_s15  ;;  %s246_s20 = scalar_lea.hbm %s15366_s0, %s8985_s16 }
  0x16   : > { %s259_s21 = sshll.u32 %s246_s20, 4  ;;  %s9211_s9 = smov 8192   ;;  %s260_s21 = int_to_ptr.hbm [resolvable:$true] %s259_s21 }
  0x17   : > { %s8993_s22 = scalar_select %p9306_p5, [#allocation0], [#allocation10] }
  0x18   : > { %s241_s23 = scalar_lea.vmem [#allocation2], %s8991_s17  ;;  %8994 = sst [smem:[#allocation7]] (%p9306_p5), %s9211_s9 }
  0x19   : > { %s261_s29 = sshll.u32 %s241_s23, 4  ;;  %s251_s8 = sld [smem:[%s8993_s22]]   ;;  %s262_s29 = int_to_ptr.vmem [resolvable:$true] %s261_s29 }
  0x1a   : > { %s9212_s10 = smov 4096   ;;  %s9213_s18 = smov 32  }
  0x1b   : > { %8995 = sst [smem:[#allocation7 + $0x1]] (%p9306_p5), %s9212_s10  ;;  %s9214_s16 = smov 128  }
  0x1c   : > { %8996 = sst [smem:[#allocation7 + $0x2]] (%p9306_p5), %s9213_s18  ;;  %s9215_s17 = smov 8  }
  0x1d   : > { %8997 = sst [smem:[#allocation7 + $0x3]] (%p9306_p5), %s9214_s16  ;;  %s238_s22 = scalar_lea.sflag [#allocation3], %s237_s15 }
  0x1e   : > { %8998 = sst [smem:[#allocation7 + $0x4]] (%p9306_p5), %s9214_s16  ;;  %s9216_s23 = smov [#allocation6]  }
  0x1f   : > { %s8422_s19 = sshll.u32 %s251_s8, 26  ;;  %8999 = sst [smem:[#allocation7 + $0x5]] (%p9306_p5), %s9215_s17 }
  0x20   : > { %s8423_s20 = sadd.s32 134217728, %s8422_s19 }
  0x21   : > { %9000 = dma.general (%p9306_p5), %s260_s21, 12288, %s262_s29, %s238_s22, %s9216_s23, [#allocation7], %s8423_s20, 0  }
  0x22 PF: > { %p8424_p12 = scmp.ge.s32.totalorder %s9209_s27, 1  ;;  %p282_p13 = scmp.lt.s32.totalorder %s9209_s27, 3 }
  0x24   : > { %p283_p0 = pnand %p8424_p12, %p282_p13 }
  0x26   : > { %286 = sbr.rel (%p283_p0) target bundleno = 2772 (0xad4), region = 48 }
  0x2b   : > { %s9350_s10 = sand.u32 1, %s9201_s25  }
  0x2c   : > { %s8992_s8 = smul.u32 768, %s9350_s10  ;;  %s289_s9 = scalar_lea.sflag [#allocation3], %s9350_s10 }
  0x2e   : > { %s9356_s15 = scalar_lea.vmem [#allocation2], %s8992_s8 }
  0x2f   : > { %9188 = dma.done.wait (%p9310_p6), %s289_s9, 12288  }
  0x30   : > { %9190 = vsyncadd (%p9310_p6), %s289_s9, 4294955008  ;;  %v8986_v0 = vld [vmem:[%s15367_s1] sm:$0xff]  ;;  %v328_v2 = vld [vmem:[%s9356_s15 + $0x8] sm:$0xff]  ;;  %vm483_vm0 = vcmask 130048   ;;  %vm9217_vm1 = vmmov 1   ;;  %vm1481_vm6 = vcmask 1041408  }
  0x31   : > { %v327_v1 = vld [vmem:[%s9356_s15] sm:$0xff]  ;;  %635 = vmatpush.bf16.msra.mxu0 %v8986_v0  ;;  %8988 = vmatpush.bf16.msra.mxu1 %v8986_v0  ;;  %v329_v4 = vld [vmem:[%s9356_s15 + $0x10] sm:$0xff]  ;;  %v330_v5 = vld [vmem:[%s9356_s15 + $0x18] sm:$0xff]  ;;  %vm1723_vm3 = vsmask.f32 7424  ;;  %vm1432_vm11 = vcmask 31744  }
  0x32   : > { %v423_v3 = vpack.c.bf16 %v328_v2, %v327_v1  ;;  %v424_v6 = vpack.c.bf16 %v330_v5, %v329_v4  ;;  %v331_v7 = vld [vmem:[%s9356_s15 + $0x20] sm:$0xff]  ;;  %v332_v8 = vld [vmem:[%s9356_s15 + $0x28] sm:$0xff]  ;;  %v333_v10 = vld [vmem:[%s9356_s15 + $0x30] sm:$0xff]  ;;  %vm1195_vm4 = vsmask.f32 256  ;;  %vm9219_vm13 = vmmov 0  }
  0x33   : > { %v425_v9 = vpack.c.bf16 %v332_v8, %v331_v7  ;;  %v334_v11 = vld [vmem:[%s9356_s15 + $0x38] sm:$0xff]  ;;  %v335_v13 = vld [vmem:[%s9356_s15 + $0x40] sm:$0xff]  ;;  %v336_v14 = vld [vmem:[%s9356_s15 + $0x48] sm:$0xff]  ;;  %vm1102_vm5 = vsmask.f32 4352  ;;  %s14492_s12 = scalar_lea.vmem [#allocation5], %s8992_s8 }
  0x34   : > { %8429 = vmatmul.msk.bf16.vlgmr.msra.gmra.mxu0 %vm483_vm0, %v423_v3  ;;  %v426_v12 = vpack.c.bf16 %v334_v11, %v333_v10  ;;  %v427_v15 = vpack.c.bf16 %v336_v14, %v335_v13  ;;  %v337_v16 = vld [vmem:[%s9356_s15 + $0x50] sm:$0xff]  ;;  %v338_v17 = vld [vmem:[%s9356_s15 + $0x58] sm:$0xff]  ;;  %v339_v19 = vld [vmem:[%s9356_s15 + $0x60] sm:$0xff]  ;;  %s8306_s23 = scalar_lea.sflag [#allocation4], %s9350_s10 }
  0x35   : > { %v428_v18 = vpack.c.bf16 %v338_v17, %v337_v16  ;;  %v340_v20 = vld [vmem:[%s9356_s15 + $0x68] sm:$0xff]  ;;  %v341_v22 = vld [vmem:[%s9356_s15 + $0x70] sm:$0xff]  ;;  %v342_v23 = vld [vmem:[%s9356_s15 + $0x78] sm:$0xff] }
  0x36   : > { %v429_v21 = vpack.c.bf16 %v340_v20, %v339_v19  ;;  %v430_v24 = vpack.c.bf16 %v342_v23, %v341_v22  ;;  %v343_v25 = vld [vmem:[%s9356_s15 + $0x80] sm:$0xff]  ;;  %v344_v26 = vld [vmem:[%s9356_s15 + $0x88] sm:$0xff]  ;;  %vm9399_vm2 = vmpackc.low %vm9217_vm1, %vm9217_vm1 }
  0x37   : > { %v9394_v27 = vld [vmem:[%s15368_s2] ss:$0 sm:$0xff]  ;;  %v431_v28 = vpack.c.bf16 %v344_v26, %v343_v25  ;;  %v345_v37 = vld [vmem:[%s9356_s15 + $0x90] sm:$0xff]  ;;  %v346_v38 = vld [vmem:[%s9356_s15 + $0x98] sm:$0xff] }
  0x38   : > { %v432_v44 = vpack.c.bf16 %v346_v38, %v345_v37  ;;  %v347_v63 = vld [vmem:[%s9356_s15 + $0xa0] sm:$0xff]  ;;  %v348_v0 = vld [vmem:[%s9356_s15 + $0xa8] sm:$0xff]  ;;  %v349_v38 = vld [vmem:[%s9356_s15 + $0xb0] sm:$0xff] }
  0x39   : > { %v433_v7 = vpack.c.bf16 %v348_v0, %v347_v63  ;;  %vm1337_vm14 = vmpackc.low %vm9219_vm13, %vm9219_vm13 }
  0x44   : > { %8430 = vmatmul.msk.bf16.gmra.mxu0 %vm483_vm0, %v424_v6 }
  0x54   : > { %8431 = vmatmul.msk.bf16.gmra.mxu0 %vm483_vm0, %v425_v9 }
  0x64   : > { %8432 = vmatmul.msk.bf16.gmra.mxu0 %vm483_vm0, %v426_v12 }
  0x74   : > { %8433 = vmatmul.msk.bf16.gmra.mxu0 %vm483_vm0, %v427_v15 }
  0x84   : > { %8434 = vmatmul.msk.bf16.gmra.mxu0 %vm483_vm0, %v428_v18 }
  0x94   : > { %8435 = vmatmul.msk.bf16.gmra.mxu0 %vm483_vm0, %v429_v21 }
  0xa4   : > { %8436 = vmatmul.msk.bf16.gmra.mxu0 %vm483_vm0, %v430_v24 }
  0xb1   : > { %v637_v29 = vpop.f32.mrf.mxu0 }
  0xb2   : > { %v638_v30 = vadd.f32 %v9394_v27, %v637_v29 }
  0xb4   : > { %8437 = vmatmul.msk.bf16.gmra.mxu0 %vm483_vm0, %v431_v28  ;;  %v877_v31 = vmax.f32 %v638_v30, 0.0 }
  0xb6   : > { %v973_v33 = vpack.c.bf16 %v877_v31, %v877_v31 }
  0xb8   : > { %v2134_v39 = vsel %vm9399_vm2, %v973_v33, 0  ;;  %v9407_v41 = vunpack.c.l.b16 %v973_v33 }
  0xb9   : > { %v639_v32 = vpop.f32.mrf.mxu0  ;;  %v9411_v45 = vunpack.c.l.b16 %v2134_v39  ;;  %v350_v39 = vld [vmem:[%s9356_s15 + $0xb8] sm:$0xff] }
  0xba   : > { %v640_v34 = vadd.f32 %v9394_v27, %v639_v32 }
  0xbb   : > { %15722 = vst [vmem:[#allocation14_spill] sm:$0xff] %v9411_v45 }
  0xbc   : > { %v878_v36 = vmax.f32 %v640_v34, 0.0 }
  0xbe   : > { %v974_v40 = vpack.c.bf16 %v878_v36, %v878_v36 }
  0xc0   : > { %v1152_v42 = vunpack.c.l.b16 %v974_v40  ;;  %v2135_v43 = vsel %vm9399_vm2, %v974_v40, 0 }
  0xc1   : > { %v9413_v46 = vunpack.c.l.b16 %v2135_v43  ;;  %v642_v47 = vpop.f32.mrf.mxu0 }
  0xc2   : > { %v9416_v48 = vpack.c.b16 %v1152_v42, %v9407_v41  ;;  %v643_v49 = vadd.f32 %v9394_v27, %v642_v47  ;;  %v434_v47 = vpack.c.bf16 %v350_v39, %v349_v38 }
  0xc3   : > { %15723 = vst [vmem:[#allocation15_spill] sm:$0xff] %v9413_v46 }
  0xc4   : > { %15724 = vst [vmem:[#allocation16_spill] sm:$0xff] %v9416_v48  ;;  %v879_v51 = vmax.f32 %v643_v49, 0.0  ;;  %8438 = vmatmul.msk.bf16.gmra.mxu0 %vm483_vm0, %v432_v44  ;;  %v15374_v53 = vshll.u32 %v9416_v48, 16  ;;  %v1197_v62 = vshrl.u32 %v9416_v48, 16 }
  0xc6   : > { %v975_v52 = vpack.c.bf16 %v879_v51, %v879_v51  ;;  %v9426_v59 = vrot.slane %v15374_v53, 1  ;;  %v9454_v26 = vrot.slane %v1197_v62, 7 }
  0xc8   : > { %v1153_v54 = vunpack.c.l.b16 %v975_v52  ;;  %15725 = vst [vmem:[#allocation17_spill] sm:$0xff] %v9426_v59  ;;  %v2136_v1 = vsel %vm9399_vm2, %v975_v52, 0  ;;  %v1725_v3 = vor.u32 %v9426_v59, %v1197_v62 }
  0xc9   : > { %v644_v55 = vpop.f32.mrf.mxu0  ;;  %v9439_v9 = vunpack.c.l.b16 %v2136_v1 }
  0xca   : > { %v2563_v56 = vpack.c.b16 %v1153_v54, %v1152_v42  ;;  %v3041_v57 = vpack.c.b16 %v1153_v54, %v1153_v54  ;;  %v645_v58 = vadd.f32 %v9394_v27, %v644_v55 }
  0xcb   : > { %15727 = vst [vmem:[#allocation19_spill] sm:$0xff] %v9439_v9  ;;  %v422_v9 = vld [vmem:[%s9356_s15 + $0x2f8] sm:$0xff] }
  0xcc   : > { %v3043_v60 = vshll.u32 %v3041_v57, 16  ;;  %v880_v61 = vmax.f32 %v645_v58, 0.0  ;;  %v2578_v21 = vshrl.u32 %v2563_v56, 16  ;;  %v2581_v22 = vshll.u32 %v2563_v56, 16 }
  0xce   : > { %v976_v2 = vpack.c.bf16 %v880_v61, %v880_v61  ;;  %v3045_v4 = vrot.slane %v3043_v60, 1  ;;  %v2580_v31 = vrot.slane %v2578_v21, 3  ;;  %v2583_v33 = vrot.slane %v2581_v22, 4 }
  0xd0   : > { %v1154_v5 = vunpack.c.l.b16 %v976_v2  ;;  %v2137_v6 = vsel %vm9399_vm2, %v976_v2, 0  ;;  %v9437_v8 = vsel %vm1723_vm3, %v1725_v3, %v3045_v4  ;;  %v2584_v49 = vor.u32 %v2583_v33, %v2580_v31 }
  0xd1   : > { %15726 = vst [vmem:[#allocation18_spill] sm:$0xff] %v9437_v8  ;;  %v9441_v10 = vunpack.c.l.b16 %v2137_v6  ;;  %v647_v11 = vpop.f32.mrf.mxu0 }
  0xd2   : > { %v9443_v12 = vpack.c.b16 %v1154_v5, %v1153_v54  ;;  %v648_v13 = vadd.f32 %v9394_v27, %v647_v11 }
  0xd3   : > { %15728 = vst [vmem:[#allocation20_spill] sm:$0xff] %v9441_v10 }
  0xd4   : > { %v881_v15 = vmax.f32 %v648_v13, 0.0  ;;  %8439 = vmatmul.msk.bf16.gmra.mxu0 %vm483_vm0, %v433_v7  ;;  %v1207_v16 = vshll.u32 %v9443_v12, 16  ;;  %v1204_v17 = vshrl.u32 %v9443_v12, 16 }
  0xd6   : > { %v977_v18 = vpack.c.bf16 %v881_v15, %v881_v15  ;;  %v1726_v19 = vrot.slane %v1207_v16, 1  ;;  %v1206_v20 = vrot.slane %v1204_v17, 7 }
  0xd8   : > { %v1155_v23 = vunpack.c.l.b16 %v977_v18  ;;  %v9452_v24 = vsel %vm1723_vm3, %v1725_v3, %v1726_v19  ;;  %v1209_v28 = vor.u32 %v1207_v16, %v1206_v20  ;;  %v2138_v40 = vsel %vm9399_vm2, %v977_v18, 0 }
  0xd9   : > { %v649_v25 = vpop.f32.mrf.mxu0  ;;  %v9467_v55 = vunpack.c.l.b16 %v2138_v40  ;;  %v1728_v3 = vor.u32 %v1726_v19, %v1204_v17 }
  0xda   : > { %v2564_v29 = vpack.c.b16 %v1155_v23, %v1154_v5  ;;  %v650_v30 = vadd.f32 %v9394_v27, %v649_v25  ;;  %v9459_v32 = vsel %vm1195_vm4, %v9454_v26, %v1209_v28  ;;  %v351_v25 = vld [vmem:[%s9356_s15 + $0xc0] sm:$0xff]  ;;  %v352_v28 = vld [vmem:[%s9356_s15 + $0xc8] sm:$0xff] }
  0xdb   : > { %15729 = vst [vmem:[#allocation21_spill] sm:$0xff] %v9467_v55 }
  0xdc   : > { %v2586_v34 = vshrl.u32 %v2564_v29, 16  ;;  %v2589_v36 = vshll.u32 %v2564_v29, 16  ;;  %v882_v37 = vmax.f32 %v650_v30, 0.0 }
  0xde   : > { %v2588_v42 = vrot.slane %v2586_v34, 3  ;;  %v2591_v43 = vrot.slane %v2589_v36, 4  ;;  %v978_v44 = vpack.c.bf16 %v882_v37, %v882_v37  ;;  %v435_v34 = vpack.c.bf16 %v352_v28, %v351_v25 }
  0xe0   : > { %v2592_v51 = vor.u32 %v2591_v43, %v2588_v42  ;;  %v1156_v52 = vunpack.c.l.b16 %v978_v44  ;;  %v2139_v54 = vsel %vm9399_vm2, %v978_v44, 0 }
  0xe1   : > { %v9469_v56 = vunpack.c.l.b16 %v2139_v54  ;;  %v652_v57 = vpop.f32.mrf.mxu0 }
  0xe2   : > { %v9471_v58 = vpack.c.b16 %v1156_v52, %v1155_v23  ;;  %v653_v60 = vadd.f32 %v9394_v27, %v652_v57  ;;  %v9475_v61 = vsel %vm1102_vm5, %v2584_v49, %v2592_v51 }
  0xe3   : > { %15730 = vst [vmem:[#allocation22_spill] sm:$0xff] %v9469_v56  ;;  %v419_v56 = vld [vmem:[%s9356_s15 + $0x2e0] sm:$0xff] }
  0xe4   : > { %15731 = vst [vmem:[#allocation23_spill] sm:$0xff] %v9475_v61  ;;  %v883_v63 = vmax.f32 %v653_v60, 0.0  ;;  %8440 = vmatmul.msk.bf16.gmra.mxu0 %vm483_vm0, %v434_v47  ;;  %v1215_v0 = vshll.u32 %v9471_v58, 16  ;;  %v1212_v1 = vshrl.u32 %v9471_v58, 16 }
  0xe6   : > { %v979_v2 = vpack.c.bf16 %v883_v63, %v883_v63  ;;  %v1729_v4 = vrot.slane %v1215_v0, 1  ;;  %v1214_v5 = vrot.slane %v1212_v1, 7 }
  0xe8   : > { %v1157_v6 = vunpack.c.l.b16 %v979_v2  ;;  %v9483_v7 = vsel %vm1723_vm3, %v1728_v3, %v1729_v4  ;;  %v1217_v13 = vor.u32 %v1215_v0, %v1214_v5  ;;  %v2140_v17 = vsel %vm9399_vm2, %v979_v2, 0 }
  0xe9   : > { %v654_v11 = vpop.f32.mrf.mxu0  ;;  %v9495_v37 = vunpack.c.l.b16 %v2140_v17  ;;  %v1731_v54 = vor.u32 %v1729_v4, %v1212_v1 }
  0xea   : > { %v2565_v15 = vpack.c.b16 %v1157_v6, %v1156_v52  ;;  %v655_v16 = vadd.f32 %v9394_v27, %v654_v11  ;;  %v9487_v18 = vsel %vm1195_vm4, %v1206_v20, %v1217_v13 }
  0xeb   : > { %15732 = vst [vmem:[#allocation24_spill] sm:$0xff] %v9495_v37 }
  0xec   : > { %v2595_v21 = vshrl.u32 %v2565_v15, 16  ;;  %v2598_v22 = vshll.u32 %v2565_v15, 16  ;;  %v884_v23 = vmax.f32 %v655_v16, 0.0 }
  0xee   : > { %v2597_v19 = vrot.slane %v2595_v21, 3  ;;  %v2600_v29 = vrot.slane %v2598_v22, 4  ;;  %v980_v30 = vpack.c.bf16 %v884_v23, %v884_v23  ;;  %v353_v21 = vld [vmem:[%s9356_s15 + $0xd0] sm:$0xff]  ;;  %v354_v22 = vld [vmem:[%s9356_s15 + $0xd8] sm:$0xff] }
  0xf0   : > { %v1158_v31 = vunpack.c.l.b16 %v980_v30  ;;  %v2141_v33 = vsel %vm9399_vm2, %v980_v30, 0  ;;  %v2601_v36 = vor.u32 %v2600_v29, %v2597_v19  ;;  %v436_v19 = vpack.c.bf16 %v354_v22, %v353_v21 }
  0xf1   : > { %v9497_v20 = vunpack.c.l.b16 %v2141_v33  ;;  %v657_v38 = vpop.f32.mrf.mxu0 }
  0xf2   : > { %v9499_v39 = vpack.c.b16 %v1158_v31, %v1157_v6  ;;  %v658_v40 = vadd.f32 %v9394_v27, %v657_v38  ;;  %v9503_v42 = vsel %vm1102_vm5, %v2592_v51, %v2601_v36 }
  0xf3   : > { %15733 = vst [vmem:[#allocation25_spill] sm:$0xff] %v9497_v20 }
  0xf4   : > { %15734 = vst [vmem:[#allocation26_spill] sm:$0xff] %v9503_v42  ;;  %v885_v44 = vmax.f32 %v658_v40, 0.0  ;;  %8441 = vmatmul.msk.bf16.gmra.mxu0 %vm483_vm0, %v435_v34  ;;  %v1223_v47 = vshll.u32 %v9499_v39, 16  ;;  %v1220_v49 = vshrl.u32 %v9499_v39, 16  ;;  %v357_v40 = vld [vmem:[%s9356_s15 + $0xf0] sm:$0xff] }
  0xf6   : > { %v981_v52 = vpack.c.bf16 %v885_v44, %v885_v44  ;;  %v1732_v57 = vrot.slane %v1223_v47, 1  ;;  %v1222_v60 = vrot.slane %v1220_v49, 7 }
  0xf8   : > { %v1159_v63 = vunpack.c.l.b16 %v981_v52  ;;  %v9511_v51 = vsel %vm1723_vm3, %v1731_v54, %v1732_v57  ;;  %v1225_v2 = vor.u32 %v1223_v47, %v1222_v60  ;;  %v2142_v1 = vsel %vm9399_vm2, %v981_v52, 0 }
  0xf9   : > { %v659_v0 = vpop.f32.mrf.mxu0  ;;  %v9523_v30 = vunpack.c.l.b16 %v2142_v1 }
  0xfa   : > { %v2566_v3 = vpack.c.b16 %v1159_v63, %v1158_v31  ;;  %v660_v6 = vadd.f32 %v9394_v27, %v659_v0  ;;  %v9515_v11 = vsel %vm1195_vm4, %v1214_v5, %v1225_v2 }
  0xfb   : > { %15735 = vst [vmem:[#allocation27_spill] sm:$0xff] %v9523_v30 }
  0xfc   : > { %v2604_v13 = vshrl.u32 %v2566_v3, 16  ;;  %v2607_v15 = vshll.u32 %v2566_v3, 16  ;;  %v886_v16 = vmax.f32 %v660_v6, 0.0 }
  0xfe   : > { %v2606_v4 = vrot.slane %v2604_v13, 3  ;;  %v2609_v23 = vrot.slane %v2607_v15, 4  ;;  %v982_v25 = vpack.c.bf16 %v886_v16, %v886_v16 }
 0x100   : > { %v1160_v28 = vunpack.c.l.b16 %v982_v25  ;;  %v2143_v17 = vsel %vm9399_vm2, %v982_v25, 0  ;;  %v2610_v29 = vor.u32 %v2609_v23, %v2606_v4  ;;  %v355_v23 = vld [vmem:[%s9356_s15 + $0xe0] sm:$0xff]  ;;  %v356_v25 = vld [vmem:[%s9356_s15 + $0xe8] sm:$0xff] }
 0x101   : > { %v9525_v5 = vunpack.c.l.b16 %v2143_v17  ;;  %v662_v31 = vpop.f32.mrf.mxu0 }
 0x102   : > { %v9527_v33 = vpack.c.b16 %v1160_v28, %v1159_v63  ;;  %v663_v34 = vadd.f32 %v9394_v27, %v662_v31  ;;  %v9531_v38 = vsel %vm1102_vm5, %v2601_v36, %v2610_v29  ;;  %v1734_v63 = vor.u32 %v1732_v57, %v1220_v49 }
 0x103   : > { %15736 = vst [vmem:[#allocation28_spill] sm:$0xff] %v9525_v5 }
 0x104   : > { %15737 = vst [vmem:[#allocation29_spill] sm:$0xff] %v9531_v38  ;;  %v887_v44 = vmax.f32 %v663_v34, 0.0  ;;  %8442 = vmatmul.msk.bf16.gmra.mxu0 %vm483_vm0, %v436_v19  ;;  %v1231_v47 = vshll.u32 %v9527_v33, 16  ;;  %v1228_v52 = vshrl.u32 %v9527_v33, 16  ;;  %v437_v34 = vpack.c.bf16 %v356_v25, %v355_v23 }
 0x106   : > { %v983_v54 = vpack.c.bf16 %v887_v44, %v887_v44  ;;  %v1735_v0 = vrot.slane %v1231_v47, 1  ;;  %v1230_v2 = vrot.slane %v1228_v52, 7 }
 0x108   : > { %v1161_v3 = vunpack.c.l.b16 %v983_v54  ;;  %v9539_v36 = vsel %vm1723_vm3, %v1734_v63, %v1735_v0  ;;  %v1233_v13 = vor.u32 %v1231_v47, %v1230_v2  ;;  %v2144_v49 = vsel %vm9399_vm2, %v983_v54, 0 }
 0x109   : > { %v664_v6 = vpop.f32.mrf.mxu0  ;;  %v9551_v47 = vunpack.c.l.b16 %v2144_v49 }
 0x10a   : > { %v2567_v15 = vpack.c.b16 %v1161_v3, %v1160_v28  ;;  %v665_v16 = vadd.f32 %v9394_v27, %v664_v6  ;;  %v9543_v21 = vsel %vm1195_vm4, %v1222_v60, %v1233_v13 }
 0x10b   : > { %15738 = vst [vmem:[#allocation30_spill] sm:$0xff] %v9551_v47 }
 0x10c   : > { %v2613_v22 = vshrl.u32 %v2567_v15, 16  ;;  %v2616_v1 = vshll.u32 %v2567_v15, 16  ;;  %v888_v4 = vmax.f32 %v665_v16, 0.0 }
 0x10e   : > { %v2615_v57 = vrot.slane %v2613_v22, 3  ;;  %v2618_v17 = vrot.slane %v2616_v1, 4  ;;  %v984_v19 = vpack.c.bf16 %v888_v4, %v888_v4 }
 0x110   : > { %v1162_v31 = vunpack.c.l.b16 %v984_v19  ;;  %v2145_v28 = vsel %vm9399_vm2, %v984_v19, 0  ;;  %v2619_v44 = vor.u32 %v2618_v17, %v2615_v57 }
 0x111   : > { %v9553_v60 = vunpack.c.l.b16 %v2145_v28  ;;  %v667_v63 = vpop.f32.mrf.mxu0 }
 0x112   : > { %v9555_v6 = vpack.c.b16 %v1162_v31, %v1161_v3  ;;  %v668_v13 = vadd.f32 %v9394_v27, %v667_v63  ;;  %v9559_v54 = vsel %vm1102_vm5, %v2610_v29, %v2619_v44  ;;  %v1737_v3 = vor.u32 %v1735_v0, %v1228_v52 }
 0x113   : > { %15739 = vst [vmem:[#allocation31_spill] sm:$0xff] %v9553_v60 }
 0x114   : > { %15740 = vst [vmem:[#allocation32_spill] sm:$0xff] %v9559_v54  ;;  %v889_v16 = vmax.f32 %v668_v13, 0.0  ;;  %8443 = vmatmul.msk.bf16.gmra.mxu0 %vm483_vm0, %v437_v34  ;;  %v1239_v22 = vshll.u32 %v9555_v6, 16  ;;  %v1236_v1 = vshrl.u32 %v9555_v6, 16  ;;  %v360_v54 = vld [vmem:[%s9356_s15 + $0x108] sm:$0xff] }
 0x116   : > { %v985_v4 = vpack.c.bf16 %v889_v16, %v889_v16  ;;  %v1738_v23 = vrot.slane %v1239_v22, 1  ;;  %v1238_v25 = vrot.slane %v1236_v1, 7  ;;  %v358_v16 = vld [vmem:[%s9356_s15 + $0xf8] sm:$0xff] }
 0x118   : > { %v1163_v49 = vunpack.c.l.b16 %v985_v4  ;;  %v9567_v29 = vsel %vm1723_vm3, %v1737_v3, %v1738_v23  ;;  %v1241_v17 = vor.u32 %v1239_v22, %v1238_v25  ;;  %v2146_v52 = vsel %vm9399_vm2, %v985_v4, 0 }
 0x119   : > { %v669_v57 = vpop.f32.mrf.mxu0  ;;  %v438_v22 = vpack.c.bf16 %v358_v16, %v357_v40  ;;  %v9579_v14 = vunpack.c.l.b16 %v2146_v52  ;;  %v1740_v16 = vor.u32 %v1738_v23, %v1236_v1 }
 0x11a   : > { %v2568_v19 = vpack.c.b16 %v1163_v49, %v1162_v31  ;;  %v670_v28 = vadd.f32 %v9394_v27, %v669_v57  ;;  %v9571_v34 = vsel %vm1195_vm4, %v1230_v2, %v1241_v17 }
 0x11b   : > { %15741 = vst [vmem:[#allocation33_spill] sm:$0xff] %v9579_v14 }
 0x11c   : > { %v2622_v63 = vshrl.u32 %v2568_v19, 16  ;;  %v2625_v13 = vshll.u32 %v2568_v19, 16  ;;  %v890_v15 = vmax.f32 %v670_v28, 0.0 }
 0x11e   : > { %v2624_v0 = vrot.slane %v2622_v63, 3  ;;  %v2627_v43 = vrot.slane %v2625_v13, 4  ;;  %v986_v3 = vpack.c.bf16 %v890_v15, %v890_v15  ;;  %v1069_v63 = vlaneseq }
 0x120   : > { %v1164_v62 = vunpack.c.l.b16 %v986_v3  ;;  %v2147_v31 = vsel %vm9399_vm2, %v986_v3, 0  ;;  %v2628_v57 = vor.u32 %v2627_v43, %v2624_v0 }
 0x121   : > { %v9581_v2 = vunpack.c.l.b16 %v2147_v31  ;;  %v672_v17 = vpop.f32.mrf.mxu0  ;;  %v9601_v31 = vshrl.u32 %v1069_v63, 7 }
 0x122   : > { %v9583_v19 = vpack.c.b16 %v1164_v62, %v1163_v49  ;;  %v673_v28 = vadd.f32 %v9394_v27, %v672_v17  ;;  %v9587_v4 = vsel %vm1102_vm5, %v2619_v44, %v2628_v57  ;;  %v8518_v49 = vld [vmem:[%s15369_s3 + $0x4] sm:$0x3] }
 0x123   : > { %15742 = vst [vmem:[#allocation34_spill] sm:$0xff] %v9581_v2  ;;  %v9598_v44 = vsel %vm1481_vm6, %v8518_v49, 0  ;;  %v9609_v49 = vadd.s32 8, %v9601_v31 }
 0x124   : > { %15743 = vst [vmem:[#allocation35_spill] sm:$0xff] %v9587_v4  ;;  %v891_v13 = vmax.f32 %v673_v28, 0.0  ;;  %8444 = vmatmul.msk.bf16.gmra.mxu0 %vm483_vm0, %v438_v22  ;;  %v1247_v43 = vshll.u32 %v9583_v19, 16  ;;  %v1244_v40 = vshrl.u32 %v9583_v19, 16  ;;  %8989 = vmatpush.bf16.msra.mxu3 %v9598_v44  ;;  %v359_v4 = vld [vmem:[%s9356_s15 + $0x100] sm:$0xff] }
 0x125   : > { %15744 = vst [vmem:[#allocation36_spill] sm:$0xff] %v9598_v44  ;;  %1886 = vmatpush.bf16.msrb.mxu0 %v9598_v44 }
 0x126   : > { %v987_v52 = vpack.c.bf16 %v891_v13, %v891_v13  ;;  %v1741_v0 = vrot.slane %v1247_v43, 1  ;;  %v1246_v3 = vrot.slane %v1244_v40, 7  ;;  %15745 = vst [vmem:[#allocation37_spill] sm:$0xff] %v9601_v31 }
 0x127   : > { %15746 = vst [vmem:[#allocation38_spill] sm:$0xff] %v9609_v49 }
 0x128   : > { %v1165_v22 = vunpack.c.l.b16 %v987_v52  ;;  %v9605_v17 = vsel %vm1723_vm3, %v1740_v16, %v1741_v0  ;;  %v1249_v1 = vor.u32 %v1247_v43, %v1246_v3  ;;  %v2148_v16 = vsel %vm9399_vm2, %v987_v52, 0 }
 0x129   : > { %v674_v28 = vpop.f32.mrf.mxu0 }
 0x12a   : > { %v2569_v23 = vpack.c.b16 %v1165_v22, %v1164_v62  ;;  %v675_v13 = vadd.f32 %v9394_v27, %v674_v28  ;;  %v9612_v15 = vsel %vm1195_vm4, %v1238_v25, %v1249_v1  ;;  %v1087_v28 = vadd.s32 1, %v9609_v49 }
 0x12b   : > { %v439_v1 = vpack.c.bf16 %v360_v54, %v359_v4 }
 0x12c   : > { %v2631_v50 = vshrl.u32 %v2569_v23, 16  ;;  %v2634_v63 = vshll.u32 %v2569_v23, 16  ;;  %v892_v53 = vmax.f32 %v675_v13, 0.0  ;;  %v9621_v23 = vunpack.c.l.b16 %v2148_v16 }
 0x12d   : > { %vm1091_vm7 = vcmp.lt.s32.totalorder %v1087_v28, 16 }
 0x12e   : > { %v2633_v43 = vrot.slane %v2631_v50, 3  ;;  %v2636_v62 = vrot.slane %v2634_v63, 4  ;;  %v988_v38 = vpack.c.bf16 %v892_v53, %v892_v53  ;;  %15747 = vst [vmem:[#allocation39_spill] sm:$0xff] %v9621_v23  ;;  %v415_v50 = vld [vmem:[%s9356_s15 + $0x2c0] sm:$0xff]  ;;  %v416_v63 = vld [vmem:[%s9356_s15 + $0x2c8] sm:$0xff]  ;;  %vm1797_vm8 = vmpackc.low %vm1091_vm7, %vm1091_vm7 }
 0x130   : > { %v1166_v42 = vunpack.c.l.b16 %v988_v38  ;;  %v2149_v25 = vsel %vm9399_vm2, %v988_v38, 0  ;;  %v2637_v8 = vor.u32 %v2636_v62, %v2633_v43  ;;  %v467_v38 = vpack.c.bf16 %v416_v63, %v415_v50 }
 0x131   : > { %v9623_v13 = vunpack.c.l.b16 %v2149_v25  ;;  %v677_v61 = vpop.f32.mrf.mxu0  ;;  %v15383_v63 = vmov 0  }
 0x132   : > { %v9625_v14 = vpack.c.b16 %v1166_v42, %v1165_v22  ;;  %v678_v52 = vadd.f32 %v9394_v27, %v677_v61  ;;  %v9631_v53 = vsel %vm1102_vm5, %v2628_v57, %v2637_v8  ;;  %8473 = vmatmul.msk.bf16.vlgmr.msra.gmra.mxu1 %vm483_vm0, %v467_v38  ;;  %v1743_v57 = vor.u32 %v1741_v0, %v1244_v40  ;;  %v361_v0 = vld [vmem:[%s9356_s15 + $0x110] sm:$0xff] }
 0x133   : > { %15748 = vst [vmem:[#allocation40_spill] sm:$0xff] %v9623_v13  ;;  %v1799_v38 = vsel %vm1797_vm8, 65537, %v15383_v63  ;;  %v1342_v40 = vsel %vm9399_vm2, 65537, %v15383_v63  ;;  %vm1789_vm8 = vcmask 1047552  }
 0x134   : > { %15749 = vst [vmem:[#allocation41_spill] sm:$0xff] %v9631_v53  ;;  %v893_v54 = vmax.f32 %v678_v52, 0.0  ;;  %8445 = vmatmul.msk.bf16.gmra.mxu0 %vm483_vm0, %v439_v1  ;;  %v1252_v4 = vshrl.u32 %v9625_v14, 16  ;;  %v1255_v22 = vshll.u32 %v9625_v14, 16  ;;  %v1801_v13 = vunpack.c.l.b16 %v1799_v38  ;;  %vm9987_vm13 = vmand %vm1789_vm8, %vm1723_vm3 }
 0x136   : > { %v989_v61 = vpack.c.bf16 %v893_v54, %v893_v54  ;;  %v1744_v16 = vrot.slane %v1255_v22, 1  ;;  %v9639_v43 = vrot.slane %v1252_v4, 7  ;;  %v8517_v30 = vunpack.i.l.s16 %v1801_v13 }
 0x138   : > { %v1167_v62 = vunpack.c.l.b16 %v989_v61  ;;  %v9642_v52 = vsel %vm1723_vm3, %v1743_v57, %v1744_v16  ;;  %v1257_v28 = vor.u32 %v1255_v22, %v9639_v43  ;;  %v362_v57 = vld [vmem:[%s9356_s15 + $0x118] sm:$0xff] }
 0x139   : > { %v679_v25 = vpop.f32.mrf.mxu0 }
 0x13a   : > { %v2570_v1 = vpack.c.b16 %v1167_v62, %v1166_v42  ;;  %v680_v50 = vadd.f32 %v9394_v27, %v679_v25  ;;  %v9648_v54 = vsel %vm1195_vm4, %v1246_v3, %v1257_v28  ;;  %v2150_v42 = vsel %vm9399_vm2, %v989_v61, 0 }
 0x13b   : > { %v1345_v3 = vunpack.c.l.b16 %v1342_v40  ;;  %v9659_v60 = vunpack.c.l.b16 %v2150_v42  ;;  %v15752_v61 = vmov 0   ;;  %v418_v40 = vld [vmem:[%s9356_s15 + $0x2d8] sm:$0xff] }
 0x13c   : > { %v2640_v49 = vshrl.u32 %v2570_v1, 16  ;;  %v2643_v53 = vshll.u32 %v2570_v1, 16  ;;  %v894_v23 = vmax.f32 %v680_v50, 0.0  ;;  %v440_v50 = vpack.c.bf16 %v362_v57, %v361_v0 }
 0x13d   : > { %15750 = vst [vmem:[#allocation42_spill] sm:$0xff] %v9659_v60  ;;  %v9677_v0 = vunpack.c.h.b16 %v15752_v61  ;;  %v9679_v57 = vunpack.i.l.s16 %v1345_v3  ;;  %v364_v60 = vld [vmem:[%s9356_s15 + $0x128] sm:$0xff] }
 0x13e   : > { %v2642_v22 = vrot.slane %v2640_v49, 3  ;;  %v2645_v25 = vrot.slane %v2643_v53, 4  ;;  %v990_v2 = vpack.c.bf16 %v894_v23, %v894_v23  ;;  %v9667_v53 = vunpack.c.l.b16 %v15752_v61  ;;  %v417_v23 = vld [vmem:[%s9356_s15 + $0x2d0] sm:$0xff] }
 0x13f   : > { %15755 = vst [vmem:[#allocation46_spill] sm:$0xff] %v9677_v0  ;;  %v468_v13 = vpack.c.bf16 %v418_v40, %v417_v23  ;;  %vm1808_vm9 = vcmp.ne.s32.totalorder %v8517_v30, %v9677_v0  ;;  %v15757_v30 = vmov 0 }
 0x140   : > { %v1168_v28 = vunpack.c.l.b16 %v990_v2  ;;  %v2151_v1 = vsel %vm9399_vm2, %v990_v2, 0  ;;  %v2646_v47 = vor.u32 %v2645_v25, %v2642_v22  ;;  %15753 = vst [vmem:[#allocation44_spill] sm:$0xff] %v9667_v53  ;;  %v1746_v25 = vor.u32 %v1744_v16, %v1252_v4 }
 0x141   : > { %v9661_v63 = vunpack.c.l.b16 %v2151_v1  ;;  %v682_v38 = vpop.f32.mrf.mxu0  ;;  %15756 = vst [vmem:[#allocation47_spill] sm:$0xff] %v9679_v57  ;;  %vm15556_vm10 = vcmp.ne.s32.totalorder %v9679_v57, %v9667_v53 }
 0x142   : > { %v9663_v5 = vpack.c.b16 %v1168_v28, %v1167_v62  ;;  %v683_v49 = vadd.f32 %v9394_v27, %v682_v38  ;;  %v9672_v44 = vsel %vm1102_vm5, %v2637_v8, %v2646_v47  ;;  %8474 = vmatmul.msk.bf16.gmra.mxu1 %vm483_vm0, %v468_v13  ;;  %vm9692_vm12 = vmpackc.low %vm1808_vm9, %vm15556_vm10 }
 0x143   : > { %15751 = vst [vmem:[#allocation43_spill] sm:$0xff] %v9661_v63  ;;  %v15758_v30 = vsel %vm9692_vm12, 4294967295, %v15757_v30 }
 0x144   : > { %15754 = vst [vmem:[#allocation45_spill] sm:$0xff] %v9672_v44  ;;  %v895_v62 = vmax.f32 %v683_v49, 0.0  ;;  %8446 = vmatmul.msk.bf16.gmra.mxu0 %vm483_vm0, %v440_v50  ;;  %v1263_v42 = vshll.u32 %v9663_v5, 16  ;;  %v1260_v22 = vshrl.u32 %v9663_v5, 16  ;;  %v363_v44 = vld [vmem:[%s9356_s15 + $0x120] sm:$0xff] }
 0x145   : > { %15759 = vst [vmem:[#allocation48_spill] sm:$0xff] %v15758_v30  ;;  %v441_v37 = vpack.c.bf16 %v364_v60, %v363_v44 }
 0x146   : > { %v991_v8 = vpack.c.bf16 %v895_v62, %v895_v62  ;;  %v1747_v1 = vrot.slane %v1263_v42, 1  ;;  %v1262_v38 = vrot.slane %v1260_v22, 7 }
 0x148   : > { %v1169_v3 = vunpack.c.l.b16 %v991_v8  ;;  %v1748_v50 = vsel %vm1723_vm3, %v1746_v25, %v1747_v1  ;;  %v1265_v16 = vor.u32 %v1263_v42, %v1262_v38  ;;  %v2152_v42 = vsel %vm9399_vm2, %v991_v8, 0  ;;  %v420_v8 = vld [vmem:[%s9356_s15 + $0x2e8] sm:$0xff] }
 0x149   : > { %v684_v49 = vpop.f32.mrf.mxu0  ;;  %v9698_v4 = vsel %vm9692_vm12, %v1748_v50, 0 }
 0x14a   : > { %v2571_v23 = vpack.c.b16 %v1169_v3, %v1168_v28  ;;  %v685_v40 = vadd.f32 %v9394_v27, %v684_v49  ;;  %8527 = vmatmul.msk.bf16.vlgmr.msra.gmra.mxu3 %vm1432_vm11, %v9698_v4  ;;  %v9705_v13 = vsel %vm1195_vm4, %v9639_v43, %v1265_v16  ;;  %v9713_v16 = vunpack.c.l.b16 %v2152_v42 }
 0x14b   : > { %v1749_v42 = vor.u32 %v1747_v1, %v1260_v22 }
 0x14c   : > { %v2649_v62 = vshrl.u32 %v2571_v23, 16  ;;  %v2652_v25 = vshll.u32 %v2571_v23, 16  ;;  %v896_v2 = vmax.f32 %v685_v40, 0.0  ;;  %15760 = vst [vmem:[#allocation49_spill] sm:$0xff] %v9713_v16 }
 0x14e   : > { %v2651_v28 = vrot.slane %v2649_v62, 3  ;;  %v2654_v50 = vrot.slane %v2652_v25, 4  ;;  %v992_v49 = vpack.c.bf16 %v896_v2, %v896_v2  ;;  %v469_v25 = vpack.c.bf16 %v420_v8, %v419_v56  ;;  %v365_v2 = vld [vmem:[%s9356_s15 + $0x130] sm:$0xff] }
 0x150   : > { %v1170_v63 = vunpack.c.l.b16 %v992_v49  ;;  %v2153_v59 = vsel %vm9399_vm2, %v992_v49, 0  ;;  %v2655_v43 = vor.u32 %v2654_v50, %v2651_v28 }
 0x151   : > { %v9715_v23 = vunpack.c.l.b16 %v2153_v59  ;;  %v687_v40 = vpop.f32.mrf.mxu0 }
 0x152   : > { %v9717_v20 = vpack.c.b16 %v1170_v63, %v1169_v3  ;;  %v688_v55 = vadd.f32 %v9394_v27, %v687_v40  ;;  %v9723_v62 = vsel %vm1102_vm5, %v2646_v47, %v2655_v43  ;;  %8475 = vmatmul.msk.bf16.gmra.mxu1 %vm483_vm0, %v469_v25 }
 0x153   : > { %15761 = vst [vmem:[#allocation50_spill] sm:$0xff] %v9715_v23  ;;  %v421_v23 = vld [vmem:[%s9356_s15 + $0x2f0] sm:$0xff] }
 0x154   : > { %15762 = vst [vmem:[#allocation51_spill] sm:$0xff] %v9723_v62  ;;  %v897_v60 = vmax.f32 %v688_v55, 0.0  ;;  %8447 = vmatmul.msk.bf16.gmra.mxu0 %vm483_vm0, %v441_v37  ;;  %v1271_v59 = vshll.u32 %v9717_v20, 16  ;;  %v1268_v44 = vshrl.u32 %v9717_v20, 16 }
 0x156   : > { %v993_v3 = vpack.c.bf16 %v897_v60, %v897_v60  ;;  %v1750_v28 = vrot.slane %v1271_v59, 1  ;;  %v1270_v47 = vrot.slane %v1268_v44, 7 }
 0x158   : > { %v1171_v50 = vunpack.c.l.b16 %v993_v3  ;;  %v1751_v49 = vsel %vm1723_vm3, %v1749_v42, %v1750_v28  ;;  %v1273_v56 = vor.u32 %v1271_v59, %v1270_v47  ;;  %v366_v42 = vld [vmem:[%s9356_s15 + $0x138] sm:$0xff]  ;;  %v2154_v62 = vsel %vm9399_vm2, %v993_v3, 0 }
 0x159   : > { %v689_v40 = vpop.f32.mrf.mxu0  ;;  %v9734_v55 = vsel %vm9692_vm12, %v1751_v49, 0 }
 0x15a   : > { %v2572_v37 = vpack.c.b16 %v1171_v50, %v1170_v63  ;;  %v690_v8 = vadd.f32 %v9394_v27, %v689_v40  ;;  %8528 = vmatmul.msk.bf16.gmra.mxu3 %vm1432_vm11, %v9734_v55  ;;  %v9740_v22 = vsel %vm1195_vm4, %v1262_v38, %v1273_v56  ;;  %v8483_v40 = vld [vmem:[%s15369_s3 + $0x2] sm:$0x3] }
 0x15b   : > { %15763 = vst [vmem:[#allocation52_spill] sm:$0xff] %v9740_v22  ;;  %v9750_v38 = vsel %vm1481_vm6, %v8483_v40, 0 }
 0x15c   : > { %v2658_v1 = vshrl.u32 %v2572_v37, 16  ;;  %v2661_v25 = vshll.u32 %v2572_v37, 16  ;;  %v898_v60 = vmax.f32 %v690_v8, 0.0  ;;  %15764 = vst [vmem:[#allocation53_spill] sm:$0xff] %v9750_v38  ;;  %v442_v8 = vpack.c.bf16 %v366_v42, %v365_v2  ;;  %1492 = vmatpush.bf16.msrb.mxu1 %v9750_v38  ;;  %3555 = vmatpush.bf16.msra.mxu0 %v9750_v38 }
 0x15d   : > { %v470_v42 = vpack.c.bf16 %v422_v9, %v421_v23 }
 0x15e   : > { %v2660_v49 = vrot.slane %v2658_v1, 3  ;;  %v2663_v59 = vrot.slane %v2661_v25, 4  ;;  %v994_v63 = vpack.c.bf16 %v898_v60, %v898_v60  ;;  %v9756_v1 = vunpack.c.l.b16 %v2154_v62 }
 0x160   : > { %v1172_v56 = vunpack.c.l.b16 %v994_v63  ;;  %v2155_v37 = vsel %vm9399_vm2, %v994_v63, 0  ;;  %v2664_v3 = vor.u32 %v2663_v59, %v2660_v49  ;;  %15765 = vst [vmem:[#allocation54_spill] sm:$0xff] %v9756_v1  ;;  %v1752_v59 = vor.u32 %v1750_v28, %v1268_v44 }
 0x161   : > { %v9758_v25 = vunpack.c.l.b16 %v2155_v37  ;;  %v692_v60 = vpop.f32.mrf.mxu0 }
 0x162   : > { %v9760_v16 = vpack.c.b16 %v1172_v56, %v1171_v50  ;;  %v693_v40 = vadd.f32 %v9394_v27, %v692_v60  ;;  %v9766_v10 = vsel %vm1102_vm5, %v2655_v43, %v2664_v3  ;;  %8476 = vmatmul.msk.bf16.gmra.mxu1 %vm483_vm0, %v470_v42 }
 0x163   : > { %15766 = vst [vmem:[#allocation55_spill] sm:$0xff] %v9758_v25 }
 0x164   : > { %15767 = vst [vmem:[#allocation56_spill] sm:$0xff] %v9760_v16  ;;  %v899_v63 = vmax.f32 %v693_v40, 0.0  ;;  %8448 = vmatmul.msk.bf16.gmra.mxu0 %vm483_vm0, %v442_v8  ;;  %v1279_v62 = vshll.u32 %v9760_v16, 16  ;;  %v1276_v49 = vshrl.u32 %v9760_v16, 16 }
 0x165   : > { %15768 = vst [vmem:[#allocation57_spill] sm:$0xff] %v9766_v10  ;;  %v367_v10 = vld [vmem:[%s9356_s15 + $0x140] sm:$0xff] }
 0x166   : > { %v995_v50 = vpack.c.bf16 %v899_v63, %v899_v63  ;;  %v1753_v37 = vrot.slane %v1279_v62, 1  ;;  %v1278_v43 = vrot.slane %v1276_v49, 7 }
 0x168   : > { %v1173_v60 = vunpack.c.l.b16 %v995_v50  ;;  %v1754_v38 = vsel %vm1723_vm3, %v1752_v59, %v1753_v37  ;;  %v1281_v23 = vor.u32 %v1279_v62, %v1278_v43  ;;  %v368_v59 = vld [vmem:[%s9356_s15 + $0x148] sm:$0xff]  ;;  %v2156_v1 = vsel %vm9399_vm2, %v995_v50, 0 }
 0x169   : > { %v694_v2 = vpop.f32.mrf.mxu0  ;;  %v9777_v9 = vsel %vm9692_vm12, %v1754_v38, 0  ;;  %v443_v45 = vpack.c.bf16 %v368_v59, %v367_v10  ;;  %v9791_v16 = vunpack.c.l.b16 %v2156_v1 }
 0x16a   : > { %15769 = vst [vmem:[#allocation58_spill] sm:$0xff] %v9777_v9  ;;  %v2573_v8 = vpack.c.b16 %v1173_v60, %v1172_v56  ;;  %v695_v40 = vadd.f32 %v9394_v27, %v694_v2  ;;  %8529 = vmatmul.msk.bf16.gmra.mxu3 %vm1432_vm11, %v9777_v9  ;;  %v9783_v44 = vsel %vm1195_vm4, %v1270_v47, %v1281_v23 }
 0x16b   : > { %15770 = vst [vmem:[#allocation59_spill] sm:$0xff] %v9783_v44 }
 0x16c   : > { %v2667_v28 = vshrl.u32 %v2573_v8, 16  ;;  %v2670_v42 = vshll.u32 %v2573_v8, 16  ;;  %v900_v63 = vmax.f32 %v695_v40, 0.0  ;;  %15771 = vst [vmem:[#allocation60_spill] sm:$0xff] %v9791_v16 }
 0x16e   : > { %v2669_v38 = vrot.slane %v2667_v28, 3  ;;  %v2672_v25 = vrot.slane %v2670_v42, 4  ;;  %v996_v62 = vpack.c.bf16 %v900_v63, %v900_v63  ;;  %v1755_v63 = vor.u32 %v1753_v37, %v1276_v49 }
 0x170   : > { %v1174_v56 = vunpack.c.l.b16 %v996_v62  ;;  %v2157_v2 = vsel %vm9399_vm2, %v996_v62, 0  ;;  %v2673_v46 = vor.u32 %v2672_v25, %v2669_v38 }
 0x171   : > { %v9793_v47 = vunpack.c.l.b16 %v2157_v2  ;;  %v697_v23 = vpop.f32.mrf.mxu0 }
 0x172   : > { %v9795_v8 = vpack.c.b16 %v1174_v56, %v1173_v60  ;;  %v698_v40 = vadd.f32 %v9394_v27, %v697_v23  ;;  %v9799_v50 = vsel %vm1102_vm5, %v2664_v3, %v2673_v46 }
 0x173   : > { %15772 = vst [vmem:[#allocation61_spill] sm:$0xff] %v9793_v47 }
 0x174   : > { %15773 = vst [vmem:[#allocation62_spill] sm:$0xff] %v9795_v8  ;;  %v901_v42 = vmax.f32 %v698_v40, 0.0  ;;  %8449 = vmatmul.msk.bf16.gmra.mxu0 %vm483_vm0, %v443_v45  ;;  %v1287_v10 = vshll.u32 %v9795_v8, 16  ;;  %v1284_v1 = vshrl.u32 %v9795_v8, 16 }
 0x175   : > { %15774 = vst [vmem:[#allocation63_spill] sm:$0xff] %v9799_v50  ;;  %v369_v50 = vld [vmem:[%s9356_s15 + $0x150] sm:$0xff] }
 0x176   : > { %v997_v25 = vpack.c.bf16 %v901_v42, %v901_v42  ;;  %v1756_v60 = vrot.slane %v1287_v10, 1  ;;  %v1286_v59 = vrot.slane %v1284_v1, 7 }
 0x178   : > { %v1175_v38 = vunpack.c.l.b16 %v997_v25  ;;  %v1757_v3 = vsel %vm1723_vm3, %v1755_v63, %v1756_v60  ;;  %v1289_v23 = vor.u32 %v1287_v10, %v1286_v59  ;;  %v370_v63 = vld [vmem:[%s9356_s15 + $0x158] sm:$0xff]  ;;  %v2158_v16 = vsel %vm9399_vm2, %v997_v25, 0 }
 0x179   : > { %v699_v62 = vpop.f32.mrf.mxu0  ;;  %v9809_v2 = vsel %vm9692_vm12, %v1757_v3, 0  ;;  %v444_v8 = vpack.c.bf16 %v370_v63, %v369_v50 }
 0x17a   : > { %15775 = vst [vmem:[#allocation64_spill] sm:$0xff] %v9809_v2  ;;  %v2574_v45 = vpack.c.b16 %v1175_v38, %v1174_v56  ;;  %v700_v40 = vadd.f32 %v9394_v27, %v699_v62  ;;  %8530 = vmatmul.msk.bf16.gmra.mxu3 %vm1432_vm11, %v9809_v2  ;;  %v9815_v49 = vsel %vm1195_vm4, %v1278_v43, %v1289_v23  ;;  %v9823_v2 = vunpack.c.l.b16 %v2158_v16 }
 0x17b   : > { %15776 = vst [vmem:[#allocation65_spill] sm:$0xff] %v9815_v49 }
 0x17c   : > { %v2676_v37 = vshrl.u32 %v2574_v45, 16  ;;  %v2679_v42 = vshll.u32 %v2574_v45, 16  ;;  %v902_v28 = vmax.f32 %v700_v40, 0.0  ;;  %15777 = vst [vmem:[#allocation66_spill] sm:$0xff] %v9823_v2 }
 0x17e   : > { %v2678_v3 = vrot.slane %v2676_v37, 3  ;;  %v2681_v47 = vrot.slane %v2679_v42, 4  ;;  %v998_v10 = vpack.c.bf16 %v902_v28, %v902_v28  ;;  %v1758_v42 = vor.u32 %v1756_v60, %v1284_v1  ;;  %v372_v28 = vld [vmem:[%s9356_s15 + $0x168] sm:$0xff] }
 0x180   : > { %v1176_v56 = vunpack.c.l.b16 %v998_v10  ;;  %v2159_v62 = vsel %vm9399_vm2, %v998_v10, 0  ;;  %v2682_v44 = vor.u32 %v2681_v47, %v2678_v3 }
 0x181   : > { %v9825_v43 = vunpack.c.l.b16 %v2159_v62  ;;  %v702_v23 = vpop.f32.mrf.mxu0 }
 0x182   : > { %v9827_v45 = vpack.c.b16 %v1176_v56, %v1175_v38  ;;  %v703_v40 = vadd.f32 %v9394_v27, %v702_v23  ;;  %v9831_v25 = vsel %vm1102_vm5, %v2673_v46, %v2682_v44  ;;  %v9846_v23 = vld [vmem:[%s15368_s2] ss:$0 sm:$0xff] }
 0x183   : > { %15778 = vst [vmem:[#allocation67_spill] sm:$0xff] %v9825_v43 }
 0x184   : > { %15779 = vst [vmem:[#allocation68_spill] sm:$0xff] %v9827_v45  ;;  %v903_v37 = vmax.f32 %v703_v40, 0.0  ;;  %8450 = vmatmul.msk.bf16.gmra.mxu0 %vm483_vm0, %v444_v8  ;;  %v1295_v47 = vshll.u32 %v9827_v45, 16  ;;  %v1292_v16 = vshrl.u32 %v9827_v45, 16 }
 0x185   : > { %15780 = vst [vmem:[#allocation69_spill] sm:$0xff] %v9831_v25 }
 0x186   : > { %v999_v50 = vpack.c.bf16 %v903_v37, %v903_v37  ;;  %v1759_v38 = vrot.slane %v1295_v47, 1  ;;  %v1294_v63 = vrot.slane %v1292_v16, 7 }
 0x188   : > { %v1177_v27 = vunpack.c.l.b16 %v999_v50  ;;  %v1760_v46 = vsel %vm1723_vm3, %v1758_v42, %v1759_v38  ;;  %v1297_v62 = vor.u32 %v1295_v47, %v1294_v63 }
 0x189   : > { %v704_v3 = vpop.f32.mrf.mxu0  ;;  %v9841_v10 = vsel %vm9692_vm12, %v1760_v46, 0  ;;  %v371_v46 = vld [vmem:[%s9356_s15 + $0x160] sm:$0xff] }
 0x18a   : > { %15781 = vst [vmem:[#allocation70_spill] sm:$0xff] %v9841_v10  ;;  %v2575_v8 = vpack.c.b16 %v1177_v27, %v1176_v56  ;;  %v705_v1 = vadd.f32 %v9846_v23, %v704_v3  ;;  %8531 = vmatmul.msk.bf16.gmra.mxu3 %vm1432_vm11, %v9841_v10  ;;  %v9852_v60 = vsel %vm1195_vm4, %v1286_v59, %v1297_v62  ;;  %v2160_v56 = vsel %vm9399_vm2, %v999_v50, 0 }
 0x18b   : > { %15782 = vst [vmem:[#allocation71_spill] sm:$0xff] %v9852_v60  ;;  %v445_v45 = vpack.c.bf16 %v372_v28, %v371_v46  ;;  %v9860_v10 = vunpack.c.l.b16 %v2160_v56  ;;  %v1378_v56 = vld [vmem:[%s15369_s3] sm:$0x3] }
 0x18c   : > { %v2685_v40 = vshrl.u32 %v2575_v8, 16  ;;  %v2688_v37 = vshll.u32 %v2575_v8, 16  ;;  %v904_v42 = vmax.f32 %v705_v1, 0.0  ;;  %v375_v60 = vld [vmem:[%s9356_s15 + $0x180] sm:$0xff] }
 0x18d   : > { %15783 = vst [vmem:[#allocation72_spill] sm:$0xff] %v9860_v10 }
 0x18e   : > { %v2687_v47 = vrot.slane %v2685_v40, 3  ;;  %v2690_v25 = vrot.slane %v2688_v37, 4  ;;  %v1000_v2 = vpack.c.bf16 %v904_v42, %v904_v42  ;;  %v1761_v42 = vor.u32 %v1759_v38, %v1292_v16 }
 0x190   : > { %v1178_v43 = vunpack.c.l.b16 %v1000_v2  ;;  %v2161_v3 = vsel %vm9399_vm2, %v1000_v2, 0  ;;  %v2691_v49 = vor.u32 %v2690_v25, %v2687_v47 }
 0x191   : > { %v9862_v59 = vunpack.c.l.b16 %v2161_v3  ;;  %v707_v62 = vpop.f32.mrf.mxu0 }
 0x192   : > { %v9864_v8 = vpack.c.b16 %v1178_v43, %v1177_v27  ;;  %v708_v1 = vadd.f32 %v9846_v23, %v707_v62  ;;  %v9868_v50 = vsel %vm1102_vm5, %v2682_v44, %v2691_v49  ;;  %v9884_v62 = vsel %vm1481_vm6, %v1378_v56, 0  ;;  %v8535_v56 = vld [vmem:[%s15369_s3 + $0x6] sm:$0x3] }
 0x193   : > { %15784 = vst [vmem:[#allocation73_spill] sm:$0xff] %v9862_v59  ;;  %1632 = vmatpush.bf16.msra.mxu2 %v9884_v62 }
 0x194   : > { %15785 = vst [vmem:[#allocation74_spill] sm:$0xff] %v9864_v8  ;;  %v905_v37 = vmax.f32 %v708_v1, 0.0  ;;  %8451 = vmatmul.msk.bf16.gmra.mxu0 %vm483_vm0, %v445_v45  ;;  %v1303_v2 = vshll.u32 %v9864_v8, 16  ;;  %v1300_v25 = vshrl.u32 %v9864_v8, 16 }
 0x195   : > { %15786 = vst [vmem:[#allocation75_spill] sm:$0xff] %v9868_v50 }
 0x196   : > { %v1001_v28 = vpack.c.bf16 %v905_v37, %v905_v37  ;;  %v1762_v46 = vrot.slane %v1303_v2, 1  ;;  %v1302_v27 = vrot.slane %v1300_v25, 7  ;;  %15788 = vst [vmem:[#allocation77_spill] sm:$0xff] %v9884_v62 }
 0x198   : > { %v1179_v44 = vunpack.c.l.b16 %v1001_v28  ;;  %v1763_v47 = vsel %vm1723_vm3, %v1761_v42, %v1762_v46  ;;  %v1305_v16 = vor.u32 %v1303_v2, %v1302_v27  ;;  %v374_v2 = vld [vmem:[%s9356_s15 + $0x178] sm:$0xff] }
 0x199   : > { %v709_v3 = vpop.f32.mrf.mxu0  ;;  %v9881_v45 = vsel %vm9692_vm12, %v1763_v47, 0  ;;  %v373_v47 = vld [vmem:[%s9356_s15 + $0x170] sm:$0xff] }
 0x19a   : > { %15787 = vst [vmem:[#allocation76_spill] sm:$0xff] %v9881_v45  ;;  %v2576_v38 = vpack.c.b16 %v1179_v44, %v1178_v43  ;;  %v710_v1 = vadd.f32 %v9846_v23, %v709_v3  ;;  %8532 = vmatmul.msk.bf16.gmra.mxu3 %vm1432_vm11, %v9881_v45  ;;  %v9891_v37 = vsel %vm1195_vm4, %v1294_v63, %v1305_v16  ;;  %v9899_v43 = vsel %vm1481_vm6, %v8535_v56, 0  ;;  %v376_v45 = vld [vmem:[%s9356_s15 + $0x188] sm:$0xff] }
 0x19b   : > { %15789 = vst [vmem:[#allocation78_spill] sm:$0xff] %v9891_v37  ;;  %v2162_v3 = vsel %vm9399_vm2, %v1001_v28, 0  ;;  %2020 = vmatpush.bf16.msra.mxu1 %v9899_v43 }
 0x19c   : > { %v2694_v42 = vshrl.u32 %v2576_v38, 16  ;;  %v2697_v40 = vshll.u32 %v2576_v38, 16  ;;  %v906_v50 = vmax.f32 %v710_v1, 0.0  ;;  %15790 = vst [vmem:[#allocation79_spill] sm:$0xff] %v9899_v43  ;;  %v446_v38 = vpack.c.bf16 %v374_v2, %v373_v47 }
 0x19d   : > { %v9908_v37 = vunpack.c.l.b16 %v2162_v3 }
 0x19e   : > { %v2696_v10 = vrot.slane %v2694_v42, 3  ;;  %v2699_v59 = vrot.slane %v2697_v40, 4  ;;  %v1002_v62 = vpack.c.bf16 %v906_v50, %v906_v50 }
 0x19f   : > { %15791 = vst [vmem:[#allocation80_spill] sm:$0xff] %v9908_v37 }
 0x1a0   : > { %v1097_v63 = vunpack.c.l.b16 %v1002_v62  ;;  %v2163_v16 = vsel %vm9399_vm2, %v1002_v62, 0  ;;  %v9906_v1 = vor.u32 %v2699_v59, %v2696_v10  ;;  %v1340_v10 = vsel %vm1337_vm14, 65537, %v15752_v61 }
 0x1a1   : > { %v9910_v56 = vunpack.c.l.b16 %v2163_v16  ;;  %v712_v8 = vpop.f32.mrf.mxu0  ;;  %v1343_v62 = vunpack.c.l.b16 %v1340_v10 }
 0x1a2   : > { %v9912_v28 = vpack.c.b16 %v1097_v63, %v1179_v44  ;;  %v713_v50 = vadd.f32 %v9846_v23, %v712_v8  ;;  %v9917_v40 = vsel %vm1102_vm5, %v2691_v49, %v9906_v1  ;;  %v1764_v44 = vor.u32 %v1762_v46, %v1300_v25  ;;  %v8569_v8 = vld [vmem:[%s15369_s3 + $0xa] sm:$0x3] }
 0x1a3   : > { %15792 = vst [vmem:[#allocation81_spill] sm:$0xff] %v9910_v56  ;;  %v9929_v3 = vsel %vm1481_vm6, %v8569_v8, 0  ;;  %v8477_v10 = vunpack.i.l.s16 %v1343_v62 }
 0x1a4   : > { %15793 = vst [vmem:[#allocation82_spill] sm:$0xff] %v9912_v28  ;;  %v907_v59 = vmax.f32 %v713_v50, 0.0  ;;  %8452 = vmatmul.msk.bf16.gmra.mxu0 %vm483_vm0, %v446_v38  ;;  %v1311_v42 = vshll.u32 %v9912_v28, 16  ;;  %v1308_v47 = vshrl.u32 %v9912_v28, 16  ;;  %2449 = vmatpush.bf16.msrb.mxu3 %v9929_v3 }
 0x1a5   : > { %15794 = vst [vmem:[#allocation83_spill] sm:$0xff] %v9917_v40  ;;  %vm1352_vm15 = vcmp.ne.s32.totalorder %v8477_v10, %v9667_v53  ;;  %vm1353_vm1 = vcmp.ne.s32.totalorder %v8477_v10, %v9677_v0 }
 0x1a6   : > { %v1003_v2 = vpack.c.bf16 %v907_v59, %v907_v59  ;;  %v1765_v49 = vrot.slane %v1311_v42, 1  ;;  %15795 = vst [vmem:[#allocation84_spill] sm:$0xff] %v9929_v3  ;;  %v9931_v16 = vrot.slane %v1308_v47, 7  ;;  %vm9968_vm7 = vmpackc.low %vm1353_vm1, %vm1352_vm15  ;;  %vm1330_vm15 = vcmask 1040384  }
 0x1a7   : > { %vm1331_vm1 = vmand %vm1330_vm15, %vm1195_vm4 }
 0x1a8   : > { %v1098_v38 = vunpack.c.l.b16 %v1003_v2  ;;  %v1766_v50 = vsel %vm1723_vm3, %v1764_v44, %v1765_v49  ;;  %v1313_v59 = vor.u32 %v1311_v42, %v9931_v16 }
 0x1a9   : > { %v714_v25 = vpop.f32.mrf.mxu0  ;;  %v9937_v46 = vsel %vm9692_vm12, %v1766_v50, 0  ;;  %v2164_v50 = vsel %vm9399_vm2, %v1003_v2, 0  ;;  %v1072_v2 = vadd.s32 4294967295, %v9601_v31 }
 0x1aa   : > { %15796 = vst [vmem:[#allocation85_spill] sm:$0xff] %v9937_v46  ;;  %v1100_v40 = vpack.c.b16 %v1098_v38, %v1097_v63  ;;  %v1722_v8 = vpack.c.b16 %v1098_v38, %v1098_v38  ;;  %v715_v37 = vadd.f32 %v9846_v23, %v714_v25  ;;  %8533 = vmatmul.msk.bf16.gmra.mxu3 %vm1432_vm11, %v9937_v46 }
 0x1ab   : > { %v9944_v3 = vsel %vm1195_vm4, %v1302_v27, %v1313_v59  ;;  %v9957_v59 = vunpack.c.l.b16 %v2164_v50  ;;  %vm1074_vm9 = vcmp.ge.s32.totalorder %v1072_v2, 0 }
 0x1ac   : > { %15797 = vst [vmem:[#allocation86_spill] sm:$0xff] %v9944_v3  ;;  %v908_v56 = vmax.f32 %v715_v37, 0.0  ;;  %v1104_v44 = vshrl.u32 %v1100_v40, 16  ;;  %v1107_v28 = vshll.u32 %v1100_v40, 16  ;;  %v1769_v63 = vshll.u32 %v1722_v8, 16  ;;  %vm1338_vm14 = vmpackc.low %vm1074_vm9, %vm1074_vm9 }
 0x1ad   : > { %v447_v37 = vpack.c.bf16 %v376_v45, %v375_v60  ;;  %v2422_v40 = vpack.c.b16 %v9407_v41, %v9407_v41  ;;  %15798 = vst [vmem:[#allocation87_spill] sm:$0xff] %v9957_v59  ;;  %v15801_v41 = vmov 0  ;;  %v1767_v60 = vor.u32 %v1765_v49, %v1308_v47 }
 0x1ae   : > { %v1004_v42 = vpack.c.bf16 %v908_v56, %v908_v56  ;;  %v1106_v43 = vrot.slane %v1104_v44, 3  ;;  %v1109_v22 = vrot.slane %v1107_v28, 4  ;;  %v1771_v46 = vrot.slane %v1769_v63, 1 }
 0x1af   : > { %v857_v9 = vpop.f32.mrf.mxu1  ;;  %v15802_v41 = vsel %vm9968_vm7, 4294967295, %v15801_v41  ;;  %vm5327_vm9 = vsmask.f32 1280 }
 0x1b0   : > { %v1099_v62 = vunpack.c.l.b16 %v1004_v42  ;;  %v2165_v27 = vsel %vm9399_vm2, %v1004_v42, 0  ;;  %v1110_v25 = vor.u32 %v1109_v22, %v1106_v43  ;;  %15803 = vst [vmem:[#allocation90_spill] sm:$0xff] %v15802_v41  ;;  %v2424_v42 = vshll.u32 %v2422_v40, 16 }
 0x1b1   : > { %v9959_v56 = vunpack.c.l.b16 %v2165_v27  ;;  %v717_v28 = vpop.f32.mrf.mxu0 }
 0x1b2   : > { %v1101_v8 = vpack.c.b16 %v1099_v62, %v1099_v62  ;;  %v9961_v44 = vpack.c.b16 %v1099_v62, %v1098_v38  ;;  %v718_v3 = vadd.f32 %v9846_v23, %v717_v28  ;;  %v9976_v45 = vsel %vm1102_vm5, %v9906_v1, %v1110_v25 }
 0x1b3   : > { %15799 = vst [vmem:[#allocation88_spill] sm:$0xff] %v9959_v56  ;;  %v1772_v1 = vsel %vm1723_vm3, %v1767_v60, %v1771_v46  ;;  %v2426_v40 = vrot.slane %v2424_v42, 1 }
 0x1b4   : > { %15800 = vst [vmem:[#allocation89_spill] sm:$0xff] %v9961_v44  ;;  %v1112_v43 = vshrl.u32 %v1101_v8, 16  ;;  %v1115_v38 = vshll.u32 %v1101_v8, 16  ;;  %v909_v50 = vmax.f32 %v718_v3, 0.0  ;;  %8453 = vmatmul.msk.bf16.gmra.mxu0 %vm483_vm0, %v447_v37  ;;  %v1414_v10 = vsel %vm9968_vm7, %v9961_v44, 0 }
 0x1b5   : > { %15804 = vst [vmem:[#allocation91_spill] sm:$0xff] %v9976_v45  ;;  %8484 = vmatmul.msk.bf16.vlgmr.msrb.gmra.mxu1 %vm1432_vm11, %v1414_v10  ;;  %v1717_v63 = vshll.u32 %v9961_v44, 16  ;;  %v1715_v47 = vshrl.u32 %v9961_v44, 16  ;;  %v15805_v8 = vmov 0  ;;  %v1825_v2 = vsel %vm9692_vm12, %v1772_v1, 0 }
 0x1b6   : > { %v1114_v49 = vrot.slane %v1112_v43, 3  ;;  %v1117_v62 = vrot.slane %v1115_v38, 4  ;;  %v1005_v37 = vpack.c.bf16 %v909_v50, %v909_v50  ;;  %v15806_v8 = vsel %vm9987_vm13, 4294967295, %v15805_v8 }
 0x1b7   : > { %v1719_v3 = vrot.slane %v1717_v63, 1  ;;  %v2000_v27 = vrot.slane %v1715_v47, 7  ;;  %15807 = vst [vmem:[#allocation92_spill] sm:$0xff] %v15806_v8  ;;  %v859_v42 = vpop.f32.mrf.mxu1 }
 0x1b8   : > { %v1118_v28 = vor.u32 %v1117_v62, %v1114_v49 }
 0x1b9   : > { %v719_v10 = vpop.f32.mrf.mxu0  ;;  %v9994_v46 = vsel %vm1723_vm3, %v1767_v60, %v1719_v3  ;;  %v9996_v43 = vor.u32 %v1719_v3, %v1715_v47  ;;  %v2001_v60 = vor.u32 %v2000_v27, %v1717_v63  ;;  %v1341_v47 = vsel %vm1338_vm14, 65537, %v15752_v61 }
 0x1ba   : > { %v720_v38 = vadd.f32 %v9846_v23, %v719_v10  ;;  %8534 = vmatmul.msk.bf16.gmra.mxu3 %vm1432_vm11, %v1825_v2  ;;  %v10001_v50 = vsel %vm1102_vm5, %v1110_v25, %v1118_v28  ;;  %v4166_v3 = vsel %vm9399_vm2, %v1005_v37, 0  ;;  %v858_v25 = vadd.f32 %v9846_v23, %v857_v9  ;;  %v377_v28 = vld [vmem:[%s9356_s15 + $0x190] sm:$0xff]  ;;  %v378_v2 = vld [vmem:[%s9356_s15 + $0x198] sm:$0xff] }
 0x1bb   : > { %15808 = vst [vmem:[#allocation93_spill] sm:$0xff] %v9996_v43  ;;  %v1362_v62 = vsel %vm9968_vm7, %v10001_v50, 0  ;;  %v10009_v1 = vsel %vm9987_vm13, %v9996_v43, %v2426_v40  ;;  %v10020_v22 = vsel %vm1195_vm4, %v9931_v16, %v2001_v60  ;;  %vm1360_vm3 = vcmp.ne.s32.totalorder %v9679_v57, %v9677_v0 }
 0x1bc   : > { %15809 = vst [vmem:[#allocation94_spill] sm:$0xff] %v10001_v50  ;;  %v910_v10 = vmax.f32 %v720_v38, 0.0  ;;  %8500 = vmatmul.msk.bf16.vlgmr.msra.gmra.mxu2 %vm1432_vm11, %v1362_v62  ;;  %v10024_v63 = vunpack.c.l.b16 %v1005_v37  ;;  %v965_v40 = vmax.f32 %v858_v25, 0.0  ;;  %v1344_v44 = vunpack.c.l.b16 %v1341_v47  ;;  %vm10036_vm5 = vmpackc.low %vm1360_vm3, %vm15556_vm10 }
 0x1bd   : > { %15810 = vst [vmem:[#allocation95_spill] sm:$0xff] %v10020_v22  ;;  %v10026_v50 = vunpack.c.l.b16 %v4166_v3  ;;  %v448_v62 = vpack.c.bf16 %v378_v2, %v377_v28  ;;  %v15813_v16 = vmov 0  ;;  %v860_v2 = vadd.f32 %v9846_v23, %v859_v42 }
 0x1be   : > { %15811 = vst [vmem:[#allocation96_spill] sm:$0xff] %v10024_v63  ;;  %v1006_v27 = vpack.c.bf16 %v910_v10, %v910_v10  ;;  %v15814_v16 = vsel %vm10036_vm5, 4294967295, %v15813_v16  ;;  %v10042_v47 = vpack.c.bf16 %v965_v40, %v965_v40  ;;  %v8479_v25 = vunpack.i.l.s16 %v1344_v44 }
 0x1bf   : > { %15812 = vst [vmem:[#allocation97_spill] sm:$0xff] %v10026_v50  ;;  %v1415_v40 = vsel %vm10036_vm5, %v9416_v48, 0  ;;  %v15818_v42 = vshll.u32 %v9416_v48, 16  ;;  %v380_v48 = vld [vmem:[%s9356_s15 + $0x1a8] sm:$0xff]  ;;  %vm5803_vm14 = vsmask.f32 6400 }
 0x1c0   : > { %v3347_v38 = vunpack.c.l.b16 %v1006_v27  ;;  %v4167_v9 = vsel %vm9399_vm2, %v1006_v27, 0  ;;  %15815 = vst [vmem:[#allocation98_spill] sm:$0xff] %v15814_v16  ;;  %v862_v27 = vpop.f32.mrf.mxu1  ;;  %v6285_v44 = vsel %vm9399_vm2, %v10042_v47, 0  ;;  %vm1359_vm8 = vcmp.ne.s32.totalorder %v8479_v25, %v9667_v53 }
 0x1c1   : > { %v10040_v37 = vunpack.c.l.b16 %v4167_v9  ;;  %v722_v60 = vpop.f32.mrf.mxu0  ;;  %15817 = vst [vmem:[#allocation100_spill] sm:$0xff] %v10042_v47  ;;  %vm10082_vm4 = vmpackc.low %vm1360_vm3, %vm1359_vm8  ;;  %v863_v45 = vadd.f32 %v9846_v23, %v862_v27  ;;  %v15459_v56 = vunpack.c.l.b16 %v10042_v47  ;;  %vm3774_vm8 = vcmask 1046528  }
 0x1c2   : > { %v10045_v3 = vpack.c.b16 %v3347_v38, %v10024_v63  ;;  %v723_v10 = vadd.f32 %v9846_v23, %v722_v60  ;;  %v966_v38 = vmax.f32 %v860_v2, 0.0  ;;  %v1202_v60 = vor.u32 %v15818_v42, %v9454_v26  ;;  %vm10917_vm10 = vmand %vm3774_vm8, %vm5803_vm14 }
 0x1c3   : > { %15816 = vst [vmem:[#allocation99_spill] sm:$0xff] %v10040_v37  ;;  %v10074_v2 = vsel %vm9692_vm12, %v9452_v24, 0  ;;  %v967_v31 = vmax.f32 %v863_v45, 0.0 }
 0x1c4   : > { %8454 = vmatmul.msk.bf16.gmra.mxu0 %vm483_vm0, %v448_v62  ;;  %v911_v9 = vmax.f32 %v723_v10, 0.0  ;;  %v10065_v62 = vpack.c.bf16 %v966_v38, %v966_v38  ;;  %v10067_v28 = vsel %vm1331_vm1, %v1114_v49, %v1202_v60  ;;  %15822 = vst [vmem:[#allocation104_spill] sm:$0xff] %v10074_v2  ;;  %v15823_v49 = vmov 0 }
 0x1c5   : > { %8485 = vmatmul.msk.bf16.gmra.mxu1 %vm1432_vm11, %v1415_v40  ;;  %15820 = vst [vmem:[#allocation102_spill] sm:$0xff] %v10067_v28  ;;  %v10069_v40 = vunpack.c.l.b16 %v6285_v44  ;;  %v15824_v49 = vsel %vm10082_vm4, 4294967295, %v15823_v49  ;;  %v10094_v24 = vsel %vm10082_vm4, %v10067_v28, 0  ;;  %vm5224_vm1 = vsmask.f32 5376 }
 0x1c6   : > { %15819 = vst [vmem:[#allocation101_spill] sm:$0xff] %v10065_v62  ;;  %v6286_v26 = vsel %vm9399_vm2, %v10065_v62, 0  ;;  %v1007_v10 = vpack.c.bf16 %v911_v9, %v911_v9 }
 0x1c7   : > { %15821 = vst [vmem:[#allocation103_spill] sm:$0xff] %v10069_v40  ;;  %v10089_v44 = vunpack.c.l.b16 %v6286_v26  ;;  %v379_v26 = vld [vmem:[%s9356_s15 + $0x1a0] sm:$0xff] }
 0x1c8   : > { %15825 = vst [vmem:[#allocation105_spill] sm:$0xff] %v15824_v49  ;;  %v864_v38 = vpop.f32.mrf.mxu1  ;;  %v4168_v42 = vsel %vm9399_vm2, %v1007_v10, 0  ;;  %v3348_v50 = vunpack.c.l.b16 %v1007_v10  ;;  %v449_v57 = vpack.c.bf16 %v380_v48, %v379_v26  ;;  %v10123_v48 = vsel %vm10036_vm5, %v9443_v12, 0 }
 0x1c9   : > { %v724_v63 = vpop.f32.mrf.mxu0  ;;  %15826 = vst [vmem:[#allocation106_spill] sm:$0xff] %v10089_v44  ;;  %v10107_v37 = vunpack.c.l.b16 %v4168_v42  ;;  %v865_v10 = vadd.f32 %v9846_v23, %v864_v38  ;;  %v10137_v12 = vsel %vm9692_vm12, %v9483_v7, 0 }
 0x1ca   : > { %v725_v25 = vadd.f32 %v9846_v23, %v724_v63  ;;  %8570 = vmatmul.msk.bf16.vlgmr.msrb.gmra.mxu3 %vm1432_vm11, %v10074_v2  ;;  %15831 = vst [vmem:[#allocation111_spill] sm:$0xff] %v10123_v48 }
 0x1cb   : > { %15828 = vst [vmem:[#allocation108_spill] sm:$0xff] %v10107_v37 }
 0x1cc   : > { %v912_v60 = vmax.f32 %v725_v25, 0.0  ;;  %8501 = vmatmul.msk.bf16.gmra.mxu2 %vm1432_vm11, %v10094_v24 }
 0x1cd   : > { %v10102_v9 = vpop.f32.mrf.mxu3 }
 0x1ce   : > { %15827 = vst [vmem:[#allocation107_spill] sm:$0xff] %v10102_v9  ;;  %v1008_v28 = vpack.c.bf16 %v912_v60, %v912_v60 }
 0x1d0   : > { %v3349_v0 = vunpack.c.l.b16 %v1008_v28  ;;  %v4169_v25 = vsel %vm9399_vm2, %v1008_v28, 0  ;;  %v867_v42 = vpop.f32.mrf.mxu1  ;;  %v968_v28 = vmax.f32 %v865_v10, 0.0 }
 0x1d1   : > { %v10111_v53 = vunpack.c.l.b16 %v4169_v25  ;;  %v727_v61 = vpop.f32.mrf.mxu0  ;;  %v868_v45 = vadd.f32 %v9846_v23, %v867_v42 }
 0x1d2   : > { %v10113_v63 = vpack.c.b16 %v3349_v0, %v3348_v50  ;;  %v728_v40 = vadd.f32 %v9846_v23, %v727_v61  ;;  %v1063_v50 = vpack.c.bf16 %v967_v31, %v967_v31  ;;  %v1064_v38 = vpack.c.bf16 %v968_v28, %v968_v28 }
 0x1d3   : > { %15829 = vst [vmem:[#allocation109_spill] sm:$0xff] %v10111_v53  ;;  %v382_v53 = vld [vmem:[%s9356_s15 + $0x1b8] sm:$0xff] }
 0x1d4   : > { %15830 = vst [vmem:[#allocation110_spill] sm:$0xff] %v10113_v63  ;;  %v913_v60 = vmax.f32 %v728_v40, 0.0  ;;  %8455 = vmatmul.msk.bf16.gmra.mxu0 %vm483_vm0, %v449_v57  ;;  %v6287_v40 = vsel %vm9399_vm2, %v1063_v50, 0  ;;  %v969_v57 = vmax.f32 %v868_v45, 0.0  ;;  %v5215_v45 = vunpack.c.l.b16 %v1064_v38 }
 0x1d5   : > { %8486 = vmatmul.msk.bf16.gmra.mxu1 %vm1432_vm11, %v10123_v48  ;;  %v10128_v61 = vpop.f32.mrf.mxu3  ;;  %v10145_v10 = vunpack.c.l.b16 %v6287_v40  ;;  %v6288_v7 = vsel %vm9399_vm2, %v1064_v38, 0 }
 0x1d6   : > { %15832 = vst [vmem:[#allocation112_spill] sm:$0xff] %v10128_v61  ;;  %v1009_v26 = vpack.c.bf16 %v913_v60, %v913_v60  ;;  %v10150_v60 = vsel %vm10082_vm4, %v9459_v32, 0  ;;  %v10154_v28 = vpack.c.bf16 %v969_v57, %v969_v57  ;;  %v10160_v40 = vunpack.c.l.b16 %v6288_v7  ;;  %v381_v32 = vld [vmem:[%s9356_s15 + $0x1b0] sm:$0xff] }
 0x1d7   : > { %15834 = vst [vmem:[#allocation114_spill] sm:$0xff] %v10145_v10  ;;  %v450_v7 = vpack.c.bf16 %v382_v53, %v381_v32  ;;  %v10185_v10 = vunpack.c.l.b16 %v1063_v50 }
 0x1d8   : > { %v10132_v25 = vunpack.c.l.b16 %v1009_v26  ;;  %15835 = vst [vmem:[#allocation115_spill] sm:$0xff] %v10160_v40  ;;  %v5216_v48 = vunpack.c.l.b16 %v10154_v28  ;;  %v6289_v50 = vsel %vm9399_vm2, %v10154_v28, 0  ;;  %v10214_v40 = vsel %vm10082_vm4, %v9487_v18, 0 }
 0x1d9   : > { %v729_v27 = vpop.f32.mrf.mxu0  ;;  %15840 = vst [vmem:[#allocation120_spill] sm:$0xff] %v10185_v10 }
 0x1da   : > { %v10140_v42 = vpack.c.b16 %v10132_v25, %v3349_v0  ;;  %v730_v31 = vadd.f32 %v9846_v23, %v729_v27  ;;  %8571 = vmatmul.msk.bf16.gmra.mxu3 %vm1432_vm11, %v10137_v12  ;;  %v869_v0 = vpop.f32.mrf.mxu1  ;;  %v4170_v27 = vsel %vm9399_vm2, %v1009_v26, 0  ;;  %v10171_v9 = vpack.c.b16 %v5216_v48, %v5215_v45 }
 0x1db   : > { %v10169_v57 = vunpack.c.l.b16 %v4170_v27 }
 0x1dc   : > { %15833 = vst [vmem:[#allocation113_spill] sm:$0xff] %v10140_v42  ;;  %v914_v44 = vmax.f32 %v730_v31, 0.0  ;;  %8502 = vmatmul.msk.bf16.gmra.mxu2 %vm1432_vm11, %v10150_v60  ;;  %v5234_v18 = vshrl.u32 %v10171_v9, 16 }
 0x1dd   : > { %v10162_v37 = vpop.f32.mrf.mxu3  ;;  %15837 = vst [vmem:[#allocation117_spill] sm:$0xff] %v10169_v57 }
 0x1de   : > { %15836 = vst [vmem:[#allocation116_spill] sm:$0xff] %v10162_v37  ;;  %v1010_v61 = vpack.c.bf16 %v914_v44, %v914_v44 }
 0x1e0   : > { %v3351_v26 = vunpack.c.l.b16 %v1010_v61  ;;  %v4171_v31 = vsel %vm9399_vm2, %v1010_v61, 0  ;;  %v870_v61 = vadd.f32 %v9846_v23, %v869_v0 }
 0x1e1   : > { %v10175_v59 = vunpack.c.l.b16 %v4171_v31  ;;  %v732_v37 = vpop.f32.mrf.mxu0  ;;  %v10192_v31 = vsel %vm10036_vm5, %v9471_v58, 0 }
 0x1e2   : > { %v10179_v22 = vpack.c.b16 %v3351_v26, %v10132_v25  ;;  %v733_v44 = vadd.f32 %v9846_v23, %v732_v37  ;;  %v872_v53 = vpop.f32.mrf.mxu1  ;;  %15841 = vst [vmem:[#allocation121_spill] sm:$0xff] %v10192_v31  ;;  %v970_v0 = vmax.f32 %v870_v61, 0.0 }
 0x1e3   : > { %15838 = vst [vmem:[#allocation118_spill] sm:$0xff] %v10175_v59  ;;  %v873_v37 = vadd.f32 %v9846_v23, %v872_v53  ;;  %v10209_v53 = vpack.c.b16 %v5215_v45, %v10185_v10  ;;  %v10228_v45 = vsel %vm9692_vm12, %v9511_v51, 0 }
 0x1e4   : > { %15839 = vst [vmem:[#allocation119_spill] sm:$0xff] %v10179_v22  ;;  %v915_v32 = vmax.f32 %v733_v44, 0.0  ;;  %8456 = vmatmul.msk.bf16.gmra.mxu0 %vm483_vm0, %v450_v7  ;;  %v15843_v7 = vunpack.c.l.b16 %v10065_v62  ;;  %v1066_v28 = vpack.c.bf16 %v970_v0, %v970_v0  ;;  %v5236_v22 = vrot.slane %v5234_v18, 2 }
 0x1e5   : > { %8487 = vmatmul.msk.bf16.gmra.mxu1 %vm1432_vm11, %v10192_v31  ;;  %v10197_v27 = vpop.f32.mrf.mxu3  ;;  %v971_v38 = vmax.f32 %v873_v37, 0.0  ;;  %15845 = vst [vmem:[#allocation124_spill] sm:$0xff] %v10209_v53  ;;  %v10221_v37 = vsel %vm10036_vm5, %v9499_v39, 0  ;;  %v383_v39 = vld [vmem:[%s9356_s15 + $0x1c0] sm:$0xff]  ;;  %v8552_v31 = vld [vmem:[%s15369_s3 + $0x8] sm:$0x3] }
 0x1e6   : > { %15842 = vst [vmem:[#allocation122_spill] sm:$0xff] %v10197_v27  ;;  %v1011_v44 = vpack.c.bf16 %v915_v32, %v915_v32  ;;  %v10206_v58 = vpack.c.b16 %v15843_v7, %v15459_v56  ;;  %v10216_v32 = vunpack.c.l.b16 %v6289_v50  ;;  %v5217_v62 = vunpack.c.l.b16 %v1066_v28 }
 0x1e7   : > { %15847 = vst [vmem:[#allocation126_spill] sm:$0xff] %v10221_v37  ;;  %v10223_v7 = vpack.c.bf16 %v971_v38, %v971_v38  ;;  %v6290_v50 = vsel %vm9399_vm2, %v1066_v28, 0  ;;  %v384_v38 = vld [vmem:[%s9356_s15 + $0x1c8] sm:$0xff] }
 0x1e8   : > { %15844 = vst [vmem:[#allocation123_spill] sm:$0xff] %v10206_v58  ;;  %v3352_v61 = vunpack.c.l.b16 %v1011_v44  ;;  %v10240_v57 = vunpack.c.l.b16 %v6290_v50  ;;  %v4172_v28 = vsel %vm9399_vm2, %v1011_v44, 0  ;;  %v5808_v44 = vshll.u32 %v10209_v53, 16 }
 0x1e9   : > { %15846 = vst [vmem:[#allocation125_spill] sm:$0xff] %v10216_v32  ;;  %v734_v56 = vpop.f32.mrf.mxu0  ;;  %v15472_v51 = vunpack.c.l.b16 %v10223_v7  ;;  %v451_v2 = vpack.c.bf16 %v384_v38, %v383_v39 }
 0x1ea   : > { %v10233_v0 = vpack.c.b16 %v3352_v61, %v3351_v26  ;;  %v735_v10 = vadd.f32 %v9846_v23, %v734_v56  ;;  %8572 = vmatmul.msk.bf16.gmra.mxu3 %vm1432_vm11, %v10228_v45  ;;  %15849 = vst [vmem:[#allocation128_spill] sm:$0xff] %v10240_v57  ;;  %v5805_v26 = vshrl.u32 %v10209_v53, 16  ;;  %v10250_v56 = vpack.c.b16 %v5217_v62, %v5216_v48  ;;  %v874_v42 = vpop.f32.mrf.mxu1 }
 0x1eb   : > { %v5222_v47 = vpack.c.b16 %v15472_v51, %v5217_v62  ;;  %v10264_v48 = vsel %vm1481_vm6, %v8552_v31, 0  ;;  %v10267_v62 = vunpack.c.l.b16 %v4172_v28  ;;  %v15854_v57 = vshrl.u32 %v10206_v58, 16 }
 0x1ec   : > { %15848 = vst [vmem:[#allocation127_spill] sm:$0xff] %v10233_v0  ;;  %v916_v27 = vmax.f32 %v735_v10, 0.0  ;;  %8503 = vmatmul.msk.bf16.gmra.mxu2 %vm1432_vm11, %v10214_v40  ;;  %v5237_v10 = vshll.u32 %v10171_v9, 16  ;;  %v5807_v51 = vrot.slane %v5805_v26, 1  ;;  %v5816_v18 = vshll.u32 %v10250_v56, 16 }
 0x1ed   : > { %15850 = vst [vmem:[#allocation129_spill] sm:$0xff] %v10250_v56  ;;  %v10260_v59 = vpop.f32.mrf.mxu3  ;;  %v5243_v50 = vshrl.u32 %v5222_v47, 16  ;;  %v5246_v32 = vshll.u32 %v5222_v47, 16  ;;  %2306 = vmatpush.bf16.msrb.mxu2 %v10264_v48  ;;  %v5438_v53 = vrot.slane %v15854_v57, 6  ;;  %v5810_v28 = vrot.slane %v5808_v44, 2 }
 0x1ee   : > { %15851 = vst [vmem:[#allocation130_spill] sm:$0xff] %v10260_v59  ;;  %v1012_v41 = vpack.c.bf16 %v916_v27, %v916_v27  ;;  %v15855_v59 = vshll.u32 %v10206_v58, 16  ;;  %v5813_v27 = vshrl.u32 %v10250_v56, 16  ;;  %v6113_v58 = vrot.slane %v5805_v26, 6 }
 0x1ef   : > { %15852 = vst [vmem:[#allocation131_spill] sm:$0xff] %v10264_v48  ;;  %v5245_v38 = vrot.slane %v5243_v50, 2  ;;  %v5239_v43 = vrot.slane %v5237_v10, 3  ;;  %v6114_v56 = vrot.slane %v5808_v44, 7  ;;  %v875_v50 = vadd.f32 %v9846_v23, %v874_v42 }
 0x1f0   : > { %15853 = vst [vmem:[#allocation132_spill] sm:$0xff] %v10267_v62  ;;  %v5441_v0 = vrot.slane %v15855_v59, 7  ;;  %v3353_v9 = vunpack.c.l.b16 %v1012_v41  ;;  %v4173_v31 = vsel %vm9399_vm2, %v1012_v41, 0  ;;  %v5248_v59 = vrot.slane %v5246_v32, 3 }
 0x1f1   : > { %v10277_v47 = vunpack.c.l.b16 %v4173_v31  ;;  %v737_v39 = vpop.f32.mrf.mxu0  ;;  %v10292_v32 = vor.u32 %v5810_v28, %v5807_v51  ;;  %v6115_v26 = vor.u32 %v6114_v56, %v6113_v58  ;;  %v6118_v10 = vrot.slane %v5816_v18, 7 }
 0x1f2   : > { %v10279_v48 = vor.u32 %v5441_v0, %v5438_v53  ;;  %v10281_v8 = vpack.c.b16 %v3353_v9, %v3352_v61  ;;  %v738_v57 = vadd.f32 %v9846_v23, %v737_v39  ;;  %v5815_v53 = vrot.slane %v5813_v27, 1 }
 0x1f3   : > { %15856 = vst [vmem:[#allocation133_spill] sm:$0xff] %v10277_v47  ;;  %v5818_v0 = vrot.slane %v5816_v18, 2  ;;  %v6117_v39 = vrot.slane %v5813_v27, 6  ;;  %v972_v62 = vmax.f32 %v875_v50, 0.0  ;;  %v6291_v18 = vsel %vm9399_vm2, %v10223_v7, 0 }
 0x1f4   : > { %15857 = vst [vmem:[#allocation134_spill] sm:$0xff] %v10279_v48  ;;  %v917_v31 = vmax.f32 %v738_v57, 0.0  ;;  %8457 = vmatmul.msk.bf16.gmra.mxu0 %vm483_vm0, %v451_v2  ;;  %v10296_v57 = vor.u32 %v5248_v59, %v5245_v38  ;;  %v10298_v2 = vor.u32 %v5239_v43, %v5236_v22  ;;  %v10302_v42 = vsel %vm5327_vm9, %v10279_v48, %v6115_v26 }
 0x1f5   : > { %8488 = vmatmul.msk.bf16.gmra.mxu1 %vm1432_vm11, %v10221_v37  ;;  %v10290_v61 = vpop.f32.mrf.mxu3  ;;  %15859 = vst [vmem:[#allocation136_spill] sm:$0xff] %v10292_v32  ;;  %v10294_v44 = vor.u32 %v5818_v0, %v5815_v53  ;;  %v6119_v47 = vor.u32 %v6118_v10, %v6117_v39  ;;  %v1068_v51 = vpack.c.bf16 %v972_v62, %v972_v62  ;;  %v10312_v22 = vsel %vm9692_vm12, %v9539_v36, 0  ;;  %v385_v53 = vld [vmem:[%s9356_s15 + $0x1d0] sm:$0xff]  ;;  %v386_v0 = vld [vmem:[%s9356_s15 + $0x1d8] sm:$0xff] }
 0x1f6   : > { %15858 = vst [vmem:[#allocation135_spill] sm:$0xff] %v10290_v61  ;;  %v1013_v41 = vpack.c.bf16 %v917_v31, %v917_v31  ;;  %v10317_v43 = vsel %vm5224_vm1, %v10298_v2, %v10296_v57  ;;  %v10332_v36 = vsel %vm10082_vm4, %v9515_v11, 0  ;;  %v10343_v50 = vunpack.c.l.b16 %v6291_v18 }
 0x1f7   : > { %15860 = vst [vmem:[#allocation137_spill] sm:$0xff] %v10294_v44  ;;  %v10307_v58 = vsel %vm5803_vm14, %v10292_v32, %v10294_v44  ;;  %v10327_v38 = vunpack.c.l.b16 %v1068_v51  ;;  %v10335_v28 = vsel %vm5327_vm9, %v6115_v26, %v6119_v47  ;;  %v6292_v11 = vsel %vm9399_vm2, %v1068_v51, 0 }
 0x1f8   : > { %15861 = vst [vmem:[#allocation138_spill] sm:$0xff] %v10296_v57  ;;  %v3354_v37 = vunpack.c.l.b16 %v1013_v41  ;;  %v15870_v26 = vunpack.c.l.b16 %v10223_v7  ;;  %v452_v32 = vpack.c.bf16 %v386_v0, %v385_v53  ;;  %v10375_v53 = vsel %vm10036_vm5, %v9527_v33, 0 }
 0x1f9   : > { %15862 = vst [vmem:[#allocation139_spill] sm:$0xff] %v10298_v2  ;;  %v739_v56 = vpop.f32.mrf.mxu0  ;;  %v10388_v33 = vsel %vm9692_vm12, %v9567_v29, 0 }
 0x1fa   : > { %15863 = vst [vmem:[#allocation140_spill] sm:$0xff] %v10302_v42  ;;  %v10319_v62 = vpack.c.b16 %v3354_v37, %v3353_v9  ;;  %v740_v27 = vadd.f32 %v9846_v23, %v739_v56  ;;  %8573 = vmatmul.msk.bf16.gmra.mxu3 %vm1432_vm11, %v10312_v22  ;;  %v4174_v9 = vsel %vm9399_vm2, %v1013_v41, 0  ;;  %v10352_v10 = vpack.c.b16 %v10327_v38, %v15870_v26 }
 0x1fb   : > { %15864 = vst [vmem:[#allocation141_spill] sm:$0xff] %v10307_v58  ;;  %v10354_v41 = vunpack.c.l.b16 %v6292_v11  ;;  %v10356_v56 = vunpack.c.l.b16 %v4174_v9 }
 0x1fc   : > { %15865 = vst [vmem:[#allocation142_spill] sm:$0xff] %v10317_v43  ;;  %v918_v59 = vmax.f32 %v740_v27, 0.0  ;;  %8504 = vmatmul.msk.bf16.gmra.mxu2 %vm1432_vm11, %v10332_v36  ;;  %v15489_v11 = vshrl.u32 %v10352_v10, 16  ;;  %v15490_v26 = vshll.u32 %v10352_v10, 16 }
 0x1fd   : > { %15866 = vst [vmem:[#allocation143_spill] sm:$0xff] %v10327_v38  ;;  %v10341_v31 = vpop.f32.mrf.mxu3 }
 0x1fe   : > { %15867 = vst [vmem:[#allocation144_spill] sm:$0xff] %v10335_v28  ;;  %v1014_v39 = vpack.c.bf16 %v918_v59, %v918_v59  ;;  %v6122_v0 = vrot.slane %v15490_v26, 7 }
 0x1ff   : > { %15868 = vst [vmem:[#allocation145_spill] sm:$0xff] %v10341_v31 }
 0x200   : > { %15869 = vst [vmem:[#allocation146_spill] sm:$0xff] %v10343_v50  ;;  %v3355_v27 = vunpack.c.l.b16 %v1014_v39  ;;  %v4175_v18 = vsel %vm9399_vm2, %v1014_v39, 0 }
 0x201   : > { %15871 = vst [vmem:[#allocation147_spill] sm:$0xff] %v10352_v10  ;;  %v10360_v28 = vunpack.c.l.b16 %v4175_v18  ;;  %v742_v42 = vpop.f32.mrf.mxu0 }
 0x202   : > { %15872 = vst [vmem:[#allocation148_spill] sm:$0xff] %v10354_v41  ;;  %v10364_v59 = vpack.c.b16 %v3355_v27, %v3354_v37  ;;  %v743_v7 = vadd.f32 %v9846_v23, %v742_v42  ;;  %v6121_v37 = vrot.slane %v15489_v11, 6 }
 0x203   : > { %15873 = vst [vmem:[#allocation149_spill] sm:$0xff] %v10356_v56 }
 0x204   : > { %15874 = vst [vmem:[#allocation150_spill] sm:$0xff] %v10360_v28  ;;  %v919_v57 = vmax.f32 %v743_v7, 0.0  ;;  %8458 = vmatmul.msk.bf16.gmra.mxu0 %vm483_vm0, %v452_v32  ;;  %v6123_v32 = vor.u32 %v6122_v0, %v6121_v37  ;;  %v388_v0 = vld [vmem:[%s9356_s15 + $0x1e8] sm:$0xff] }
 0x205   : > { %15875 = vst [vmem:[#allocation151_spill] sm:$0xff] %v10375_v53  ;;  %8489 = vmatmul.msk.bf16.gmra.mxu1 %vm1432_vm11, %v10375_v53  ;;  %v10381_v42 = vpop.f32.mrf.mxu3 }
 0x206   : > { %15876 = vst [vmem:[#allocation152_spill] sm:$0xff] %v10381_v42  ;;  %v1015_v39 = vpack.c.bf16 %v919_v57, %v919_v57  ;;  %v10391_v51 = vsel %vm5327_vm9, %v6119_v47, %v6123_v32  ;;  %v10401_v57 = vsel %vm10082_vm4, %v9543_v21, 0 }
 0x207   : > { %15877 = vst [vmem:[#allocation153_spill] sm:$0xff] %v10391_v51 }
 0x208   : > { %v3356_v18 = vunpack.c.l.b16 %v1015_v39  ;;  %v4176_v37 = vsel %vm9399_vm2, %v1015_v39, 0 }
 0x209   : > { %v744_v7 = vpop.f32.mrf.mxu0 }
 0x20a   : > { %v10393_v9 = vpack.c.b16 %v3356_v18, %v3355_v27  ;;  %v745_v11 = vadd.f32 %v9846_v23, %v744_v7  ;;  %8574 = vmatmul.msk.bf16.gmra.mxu3 %vm1432_vm11, %v10388_v33  ;;  %v387_v27 = vld [vmem:[%s9356_s15 + $0x1e0] sm:$0xff]  ;;  %v10411_v7 = vunpack.c.l.b16 %v4176_v37  ;;  %v10426_v37 = vsel %vm10036_vm5, %v9555_v6, 0 }
 0x20b   : > { %v453_v21 = vpack.c.bf16 %v388_v0, %v387_v27  ;;  %15881 = vst [vmem:[#allocation157_spill] sm:$0xff] %v10426_v37  ;;  %v10435_v27 = vsel %vm9692_vm12, %v9605_v17, 0  ;;  %v10445_v6 = vsel %vm10082_vm4, %v9571_v34, 0 }
 0x20c   : > { %v920_v29 = vmax.f32 %v745_v11, 0.0  ;;  %8505 = vmatmul.msk.bf16.gmra.mxu2 %vm1432_vm11, %v10401_v57  ;;  %15879 = vst [vmem:[#allocation155_spill] sm:$0xff] %v10411_v7 }
 0x20d   : > { %v10407_v47 = vpop.f32.mrf.mxu3 }
 0x20e   : > { %15878 = vst [vmem:[#allocation154_spill] sm:$0xff] %v10407_v47  ;;  %v1016_v32 = vpack.c.bf16 %v920_v29, %v920_v29 }
 0x210   : > { %v3357_v26 = vunpack.c.l.b16 %v1016_v32  ;;  %v4177_v50 = vsel %vm9399_vm2, %v1016_v32, 0 }
 0x211   : > { %v10415_v41 = vunpack.c.l.b16 %v4177_v50  ;;  %v747_v51 = vpop.f32.mrf.mxu0 }
 0x212   : > { %v10417_v39 = vpack.c.b16 %v3357_v26, %v3356_v18  ;;  %v748_v11 = vadd.f32 %v9846_v23, %v747_v51 }
 0x213   : > { %15880 = vst [vmem:[#allocation156_spill] sm:$0xff] %v10415_v41 }
 0x214   : > { %v921_v2 = vmax.f32 %v748_v11, 0.0  ;;  %8459 = vmatmul.msk.bf16.gmra.mxu0 %vm483_vm0, %v453_v21  ;;  %v390_v11 = vld [vmem:[%s9356_s15 + $0x1f8] sm:$0xff] }
 0x215   : > { %8490 = vmatmul.msk.bf16.gmra.mxu1 %vm1432_vm11, %v10426_v37  ;;  %v10430_v50 = vpop.f32.mrf.mxu3 }
 0x216   : > { %15882 = vst [vmem:[#allocation158_spill] sm:$0xff] %v10430_v50  ;;  %v1017_v18 = vpack.c.bf16 %v921_v2, %v921_v2 }
 0x218   : > { %v3358_v51 = vunpack.c.l.b16 %v1017_v18  ;;  %v4178_v2 = vsel %vm9399_vm2, %v1017_v18, 0 }
 0x219   : > { %v749_v29 = vpop.f32.mrf.mxu0  ;;  %v10455_v43 = vunpack.c.l.b16 %v4178_v2  ;;  %v10470_v2 = vsel %vm10036_vm5, %v9583_v19, 0  ;;  %v10489_v19 = vsel %vm10082_vm4, %v9612_v15, 0 }
 0x21a   : > { %v10437_v0 = vpack.c.b16 %v3358_v51, %v3357_v26  ;;  %v750_v32 = vadd.f32 %v9846_v23, %v749_v29  ;;  %8575 = vmatmul.msk.bf16.gmra.mxu3 %vm1432_vm11, %v10435_v27  ;;  %v389_v26 = vld [vmem:[%s9356_s15 + $0x1f0] sm:$0xff]  ;;  %15886 = vst [vmem:[#allocation162_spill] sm:$0xff] %v10470_v2 }
 0x21b   : > { %15884 = vst [vmem:[#allocation160_spill] sm:$0xff] %v10455_v43  ;;  %v454_v34 = vpack.c.bf16 %v390_v11, %v389_v26  ;;  %v10479_v26 = vsel %vm9692_vm12, %v9642_v52, 0 }
 0x21c   : > { %v922_v21 = vmax.f32 %v750_v32, 0.0  ;;  %8506 = vmatmul.msk.bf16.gmra.mxu2 %vm1432_vm11, %v10445_v6 }
 0x21d   : > { %v10451_v17 = vpop.f32.mrf.mxu3 }
 0x21e   : > { %15883 = vst [vmem:[#allocation159_spill] sm:$0xff] %v10451_v17  ;;  %v1018_v29 = vpack.c.bf16 %v922_v21, %v922_v21 }
 0x220   : > { %v3359_v38 = vunpack.c.l.b16 %v1018_v29  ;;  %v4179_v44 = vsel %vm9399_vm2, %v1018_v29, 0 }
 0x221   : > { %v10459_v58 = vunpack.c.l.b16 %v4179_v44  ;;  %v752_v7 = vpop.f32.mrf.mxu0 }
 0x222   : > { %v10461_v18 = vpack.c.b16 %v3359_v38, %v3358_v51  ;;  %v753_v32 = vadd.f32 %v9846_v23, %v752_v7 }
 0x223   : > { %15885 = vst [vmem:[#allocation161_spill] sm:$0xff] %v10459_v58 }
 0x224   : > { %v923_v56 = vmax.f32 %v753_v32, 0.0  ;;  %8460 = vmatmul.msk.bf16.gmra.mxu0 %vm483_vm0, %v454_v34  ;;  %v392_v32 = vld [vmem:[%s9356_s15 + $0x208] sm:$0xff] }
 0x225   : > { %8491 = vmatmul.msk.bf16.gmra.mxu1 %vm1432_vm11, %v10470_v2  ;;  %v10474_v44 = vpop.f32.mrf.mxu3 }
 0x226   : > { %15887 = vst [vmem:[#allocation163_spill] sm:$0xff] %v10474_v44  ;;  %v1019_v51 = vpack.c.bf16 %v923_v56, %v923_v56 }
 0x228   : > { %v3360_v7 = vunpack.c.l.b16 %v1019_v51  ;;  %v4180_v56 = vsel %vm9399_vm2, %v1019_v51, 0 }
 0x229   : > { %v754_v21 = vpop.f32.mrf.mxu0  ;;  %v10499_v41 = vunpack.c.l.b16 %v4180_v56  ;;  %v10514_v56 = vsel %vm10036_vm5, %v9625_v14, 0  ;;  %v10528_v14 = vsel %vm10082_vm4, %v9648_v54, 0 }
 0x22a   : > { %v10481_v11 = vpack.c.b16 %v3360_v7, %v3359_v38  ;;  %v755_v29 = vadd.f32 %v9846_v23, %v754_v21  ;;  %8576 = vmatmul.msk.bf16.gmra.mxu3 %vm1432_vm11, %v10479_v26  ;;  %v391_v38 = vld [vmem:[%s9356_s15 + $0x200] sm:$0xff]  ;;  %15891 = vst [vmem:[#allocation167_spill] sm:$0xff] %v10514_v56 }
 0x22b   : > { %15889 = vst [vmem:[#allocation165_spill] sm:$0xff] %v10499_v41  ;;  %v455_v15 = vpack.c.bf16 %v392_v32, %v391_v38 }
 0x22c   : > { %v924_v34 = vmax.f32 %v755_v29, 0.0  ;;  %8507 = vmatmul.msk.bf16.gmra.mxu2 %vm1432_vm11, %v10489_v19 }
 0x22d   : > { %v10495_v52 = vpop.f32.mrf.mxu3 }
 0x22e   : > { %15888 = vst [vmem:[#allocation164_spill] sm:$0xff] %v10495_v52  ;;  %v1020_v21 = vpack.c.bf16 %v924_v34, %v924_v34 }
 0x230   : > { %v3361_v43 = vunpack.c.l.b16 %v1020_v21  ;;  %v4181_v58 = vsel %vm9399_vm2, %v1020_v21, 0 }
 0x231   : > { %v10503_v28 = vunpack.c.l.b16 %v4181_v58  ;;  %v757_v2 = vpop.f32.mrf.mxu0 }
 0x232   : > { %v10505_v51 = vpack.c.b16 %v3361_v43, %v3360_v7  ;;  %v758_v29 = vadd.f32 %v9846_v23, %v757_v2  ;;  %v1494_v44 = vpop.f32.mrf.mxu1 }
 0x233   : > { %15890 = vst [vmem:[#allocation166_spill] sm:$0xff] %v10503_v28 }
 0x234   : > { %v925_v17 = vmax.f32 %v758_v29, 0.0  ;;  %8461 = vmatmul.msk.bf16.gmra.mxu0 %vm483_vm0, %v455_v15 }
 0x235   : > { %8492 = vmatmul.msk.bf16.gmra.mxu1 %vm1432_vm11, %v10514_v56  ;;  %v10518_v58 = vpop.f32.mrf.mxu3 }
 0x236   : > { %15892 = vst [vmem:[#allocation168_spill] sm:$0xff] %v10518_v58  ;;  %v1021_v2 = vpack.c.bf16 %v925_v17, %v925_v17  ;;  %v393_v17 = vld [vmem:[%s9356_s15 + $0x210] sm:$0xff] }
 0x238   : > { %v3362_v7 = vunpack.c.l.b16 %v1021_v2  ;;  %v4182_v15 = vsel %vm9399_vm2, %v1021_v2, 0 }
 0x239   : > { %v759_v34 = vpop.f32.mrf.mxu0  ;;  %v10538_v52 = vunpack.c.l.b16 %v4182_v15 }
 0x23a   : > { %v10520_v38 = vpack.c.b16 %v3362_v7, %v3361_v43  ;;  %v760_v32 = vadd.f32 %v9846_v23, %v759_v34  ;;  %v1496_v21 = vpop.f32.mrf.mxu1  ;;  %8577 = vmatmul.msk.bf16.gmra.mxu3 %vm1432_vm11, %v9698_v4  ;;  %v394_v23 = vld [vmem:[%s9356_s15 + $0x218] sm:$0xff] }
 0x23b   : > { %15894 = vst [vmem:[#allocation170_spill] sm:$0xff] %v10538_v52  ;;  %v456_v58 = vpack.c.bf16 %v394_v23, %v393_v17 }
 0x23c   : > { %v926_v29 = vmax.f32 %v760_v32, 0.0  ;;  %8508 = vmatmul.msk.bf16.gmra.mxu2 %vm1432_vm11, %v10528_v14 }
 0x23d   : > { %v10534_v43 = vpop.f32.mrf.mxu3 }
 0x23e   : > { %15893 = vst [vmem:[#allocation169_spill] sm:$0xff] %v10534_v43  ;;  %v1022_v34 = vpack.c.bf16 %v926_v29, %v926_v29  ;;  %v10551_v43 = vld [vmem:[%s15368_s2] ss:$0 sm:$0xff] }
 0x23f   : > { %v1634_v41 = vpop.f32.mrf.mxu2 }
 0x240   : > { %v3363_v28 = vunpack.c.l.b16 %v1022_v34  ;;  %v4183_v54 = vsel %vm9399_vm2, %v1022_v34, 0  ;;  %v10542_v56 = vadd.f32 %v1634_v41, %v1494_v44  ;;  %v10560_v41 = vsel %vm10036_vm5, %v9663_v5, 0 }
 0x241   : > { %v10544_v2 = vunpack.c.l.b16 %v4183_v54  ;;  %v762_v32 = vpop.f32.mrf.mxu0  ;;  %15898 = vst [vmem:[#allocation174_spill] sm:$0xff] %v10560_v41  ;;  %v10576_v5 = vsel %vm10082_vm4, %v9705_v13, 0 }
 0x242   : > { %15895 = vst [vmem:[#allocation171_spill] sm:$0xff] %v10542_v56  ;;  %v10546_v37 = vpack.c.b16 %v3363_v28, %v3362_v7  ;;  %v763_v15 = vadd.f32 %v10551_v43, %v762_v32  ;;  %v1499_v29 = vpop.f32.mrf.mxu1  ;;  %v15917_v56 = vld [vmem:[#allocation56_spill] sm:$0xff] }
 0x243   : > { %15896 = vst [vmem:[#allocation172_spill] sm:$0xff] %v10544_v2 }
 0x244   : > { %15897 = vst [vmem:[#allocation173_spill] sm:$0xff] %v10546_v37  ;;  %v927_v34 = vmax.f32 %v763_v15, 0.0  ;;  %8462 = vmatmul.msk.bf16.gmra.mxu0 %vm483_vm0, %v456_v58 }
 0x245   : > { %8493 = vmatmul.msk.bf16.gmra.mxu1 %vm1432_vm11, %v10560_v41  ;;  %v10564_v44 = vpop.f32.mrf.mxu3 }
 0x246   : > { %15899 = vst [vmem:[#allocation175_spill] sm:$0xff] %v10564_v44  ;;  %v1023_v7 = vpack.c.bf16 %v927_v34, %v927_v34 }
 0x247   : > { %v1636_v17 = vpop.f32.mrf.mxu2 }
 0x248   : > { %v3364_v23 = vunpack.c.l.b16 %v1023_v7  ;;  %v10566_v54 = vadd.f32 %v1636_v17, %v1496_v21  ;;  %v4184_v34 = vsel %vm9399_vm2, %v1023_v7, 0  ;;  %v395_v21 = vld [vmem:[%s9356_s15 + $0x220] sm:$0xff]  ;;  %v396_v17 = vld [vmem:[%s9356_s15 + $0x228] sm:$0xff] }
 0x249   : > { %v764_v32 = vpop.f32.mrf.mxu0  ;;  %v10586_v2 = vunpack.c.l.b16 %v4184_v34  ;;  %v457_v53 = vpack.c.bf16 %v396_v17, %v395_v21 }
 0x24a   : > { %15900 = vst [vmem:[#allocation176_spill] sm:$0xff] %v10566_v54  ;;  %v10568_v15 = vpack.c.b16 %v3364_v23, %v3363_v28  ;;  %v765_v58 = vadd.f32 %v10551_v43, %v764_v32  ;;  %v1501_v50 = vpop.f32.mrf.mxu1  ;;  %8578 = vmatmul.msk.bf16.gmra.mxu3 %vm1432_vm11, %v9734_v55 }
 0x24b   : > { %15902 = vst [vmem:[#allocation178_spill] sm:$0xff] %v10586_v2 }
 0x24c   : > { %v928_v52 = vmax.f32 %v765_v58, 0.0  ;;  %8509 = vmatmul.msk.bf16.gmra.mxu2 %vm1432_vm11, %v10576_v5 }
 0x24d   : > { %v10582_v28 = vpop.f32.mrf.mxu3 }
 0x24e   : > { %15901 = vst [vmem:[#allocation177_spill] sm:$0xff] %v10582_v28  ;;  %v1024_v32 = vpack.c.bf16 %v928_v52, %v928_v52  ;;  %v15911_v52 = vld [vmem:[#allocation52_spill] sm:$0xff] }
 0x24f   : > { %v1639_v41 = vpop.f32.mrf.mxu2  ;;  %v10619_v2 = vsel %vm10082_vm4, %v15911_v52, 0 }
 0x250   : > { %v3365_v44 = vunpack.c.l.b16 %v1024_v32  ;;  %v4185_v13 = vsel %vm9399_vm2, %v1024_v32, 0  ;;  %v10590_v47 = vadd.f32 %v1639_v41, %v1499_v29  ;;  %v10603_v29 = vsel %vm10036_vm5, %v9717_v20, 0  ;;  %v15910_v20 = vld [vmem:[#allocation58_spill] sm:$0xff] }
 0x251   : > { %v10592_v7 = vunpack.c.l.b16 %v4185_v13  ;;  %v767_v58 = vpop.f32.mrf.mxu0  ;;  %15906 = vst [vmem:[#allocation182_spill] sm:$0xff] %v10603_v29 }
 0x252   : > { %15903 = vst [vmem:[#allocation179_spill] sm:$0xff] %v10590_v47  ;;  %v10594_v42 = vpack.c.b16 %v3365_v44, %v3364_v23  ;;  %v768_v28 = vadd.f32 %v10551_v43, %v767_v58  ;;  %v1504_v31 = vpop.f32.mrf.mxu1 }
 0x253   : > { %15904 = vst [vmem:[#allocation180_spill] sm:$0xff] %v10592_v7 }
 0x254   : > { %15905 = vst [vmem:[#allocation181_spill] sm:$0xff] %v10594_v42  ;;  %v929_v34 = vmax.f32 %v768_v28, 0.0  ;;  %8463 = vmatmul.msk.bf16.gmra.mxu0 %vm483_vm0, %v457_v53 }
 0x255   : > { %8494 = vmatmul.msk.bf16.gmra.mxu1 %vm1432_vm11, %v10603_v29  ;;  %v10607_v41 = vpop.f32.mrf.mxu3 }
 0x256   : > { %15907 = vst [vmem:[#allocation183_spill] sm:$0xff] %v10607_v41  ;;  %v1025_v23 = vpack.c.bf16 %v929_v34, %v929_v34 }
 0x257   : > { %v1641_v21 = vpop.f32.mrf.mxu2 }
 0x258   : > { %v3366_v17 = vunpack.c.l.b16 %v1025_v23  ;;  %v10609_v32 = vadd.f32 %v1641_v21, %v1501_v50  ;;  %v4186_v34 = vsel %vm9399_vm2, %v1025_v23, 0  ;;  %v398_v21 = vld [vmem:[%s9356_s15 + $0x238] sm:$0xff] }
 0x259   : > { %v769_v28 = vpop.f32.mrf.mxu0  ;;  %v10629_v29 = vunpack.c.l.b16 %v4186_v34 }
 0x25a   : > { %15908 = vst [vmem:[#allocation184_spill] sm:$0xff] %v10609_v32  ;;  %v10611_v13 = vpack.c.b16 %v3366_v17, %v3365_v44  ;;  %v770_v53 = vadd.f32 %v10551_v43, %v769_v28  ;;  %v1506_v58 = vpop.f32.mrf.mxu1  ;;  %8579 = vmatmul.msk.bf16.gmra.mxu3 %vm1432_vm11, %v15910_v20  ;;  %v397_v44 = vld [vmem:[%s9356_s15 + $0x230] sm:$0xff] }
 0x25b   : > { %15913 = vst [vmem:[#allocation52_spill] sm:$0xff] %v10629_v29  ;;  %v458_v47 = vpack.c.bf16 %v398_v21, %v397_v44 }
 0x25c   : > { %15909 = vst [vmem:[#allocation185_spill] sm:$0xff] %v10611_v13  ;;  %v930_v7 = vmax.f32 %v770_v53, 0.0  ;;  %8510 = vmatmul.msk.bf16.gmra.mxu2 %vm1432_vm11, %v10619_v2 }
 0x25d   : > { %v10625_v50 = vpop.f32.mrf.mxu3 }
 0x25e   : > { %15912 = vst [vmem:[#allocation58_spill] sm:$0xff] %v10625_v50  ;;  %v1026_v28 = vpack.c.bf16 %v930_v7, %v930_v7  ;;  %v15923_v7 = vld [vmem:[#allocation59_spill] sm:$0xff] }
 0x25f   : > { %v1644_v41 = vpop.f32.mrf.mxu2  ;;  %v10662_v29 = vsel %vm10082_vm4, %v15923_v7, 0 }
 0x260   : > { %v3367_v61 = vunpack.c.l.b16 %v1026_v28  ;;  %v4187_v52 = vsel %vm9399_vm2, %v1026_v28, 0  ;;  %v10633_v32 = vadd.f32 %v1644_v41, %v1504_v31  ;;  %v10646_v31 = vsel %vm10036_vm5, %v15917_v56, 0  ;;  %v15922_v56 = vld [vmem:[#allocation64_spill] sm:$0xff] }
 0x261   : > { %v10635_v23 = vunpack.c.l.b16 %v4187_v52  ;;  %v772_v53 = vpop.f32.mrf.mxu0  ;;  %15918 = vst [vmem:[#allocation56_spill] sm:$0xff] %v10646_v31 }
 0x262   : > { %15914 = vst [vmem:[#allocation186_spill] sm:$0xff] %v10633_v32  ;;  %v10637_v48 = vpack.c.b16 %v3367_v61, %v3366_v17  ;;  %v773_v50 = vadd.f32 %v10551_v43, %v772_v53  ;;  %v1509_v54 = vpop.f32.mrf.mxu1 }
 0x263   : > { %15915 = vst [vmem:[#allocation187_spill] sm:$0xff] %v10635_v23 }
 0x264   : > { %15916 = vst [vmem:[#allocation188_spill] sm:$0xff] %v10637_v48  ;;  %v931_v34 = vmax.f32 %v773_v50, 0.0  ;;  %8464 = vmatmul.msk.bf16.gmra.mxu0 %vm483_vm0, %v458_v47 }
 0x265   : > { %8495 = vmatmul.msk.bf16.gmra.mxu1 %vm1432_vm11, %v10646_v31  ;;  %v10650_v41 = vpop.f32.mrf.mxu3 }
 0x266   : > { %15919 = vst [vmem:[#allocation189_spill] sm:$0xff] %v10650_v41  ;;  %v1027_v17 = vpack.c.bf16 %v931_v34, %v931_v34 }
 0x267   : > { %v1646_v44 = vpop.f32.mrf.mxu2 }
 0x268   : > { %v3368_v21 = vunpack.c.l.b16 %v1027_v17  ;;  %v10652_v28 = vadd.f32 %v1646_v44, %v1506_v58  ;;  %v4188_v34 = vsel %vm9399_vm2, %v1027_v17, 0  ;;  %v399_v44 = vld [vmem:[%s9356_s15 + $0x240] sm:$0xff] }
 0x269   : > { %v774_v50 = vpop.f32.mrf.mxu0  ;;  %v10679_v41 = vunpack.c.l.b16 %v4188_v34  ;;  %v15937_v34 = vld [vmem:[#allocation65_spill] sm:$0xff] }
 0x26a   : > { %15920 = vst [vmem:[#allocation190_spill] sm:$0xff] %v10652_v28  ;;  %v10654_v52 = vpack.c.b16 %v3368_v21, %v3367_v61  ;;  %v775_v47 = vadd.f32 %v10551_v43, %v774_v50  ;;  %v1511_v53 = vpop.f32.mrf.mxu1  ;;  %8580 = vmatmul.msk.bf16.gmra.mxu3 %vm1432_vm11, %v15922_v56  ;;  %v8620_v61 = vld [vmem:[%s15369_s3 + $0x10] sm:$0x3]  ;;  %v400_v50 = vld [vmem:[%s9356_s15 + $0x248] sm:$0xff] }
 0x26b   : > { %v10676_v31 = vsel %vm1481_vm6, %v8620_v61, 0  ;;  %15926 = vst [vmem:[#allocation192_spill] sm:$0xff] %v10679_v41  ;;  %v10713_v41 = vsel %vm10082_vm4, %v15937_v34, 0 }
 0x26c   : > { %15921 = vst [vmem:[#allocation191_spill] sm:$0xff] %v10654_v52  ;;  %v932_v23 = vmax.f32 %v775_v47, 0.0  ;;  %8511 = vmatmul.msk.bf16.gmra.mxu2 %vm1432_vm11, %v10662_v29  ;;  %3068 = vmatpush.bf16.msra.mxu3 %v10676_v31  ;;  %v15927_v47 = vld [vmem:[#allocation79_spill] sm:$0xff] }
 0x26d   : > { %v10671_v58 = vpop.f32.mrf.mxu3  ;;  %15925 = vst [vmem:[#allocation59_spill] sm:$0xff] %v10676_v31 }
 0x26e   : > { %15924 = vst [vmem:[#allocation64_spill] sm:$0xff] %v10671_v58  ;;  %v1028_v7 = vpack.c.bf16 %v932_v23, %v932_v23  ;;  %v459_v58 = vpack.c.bf16 %v400_v50, %v399_v44 }
 0x26f   : > { %v1649_v17 = vpop.f32.mrf.mxu2  ;;  %15938 = vst [vmem:[#allocation65_spill] sm:$0xff] %v10713_v41 }
 0x270   : > { %4052 = vmatpush.bf16.msrb.mxu3 %v15927_v47  ;;  %v3369_v28 = vunpack.c.l.b16 %v1028_v7  ;;  %v4189_v32 = vsel %vm9399_vm2, %v1028_v7, 0  ;;  %v10684_v48 = vadd.f32 %v1649_v17, %v1509_v54  ;;  %v15931_v47 = vld [vmem:[#allocation62_spill] sm:$0xff] }
 0x271   : > { %v10686_v52 = vunpack.c.l.b16 %v4189_v32  ;;  %v777_v42 = vpop.f32.mrf.mxu0  ;;  %v10697_v54 = vsel %vm10036_vm5, %v15931_v47, 0  ;;  %v15936_v47 = vld [vmem:[#allocation70_spill] sm:$0xff] }
 0x272   : > { %15928 = vst [vmem:[#allocation193_spill] sm:$0xff] %v10684_v48  ;;  %v10688_v61 = vpack.c.b16 %v3369_v28, %v3368_v21  ;;  %v778_v23 = vadd.f32 %v10551_v43, %v777_v42  ;;  %v1514_v31 = vpop.f32.mrf.mxu1 }
 0x273   : > { %15929 = vst [vmem:[#allocation194_spill] sm:$0xff] %v10686_v52 }
 0x274   : > { %15930 = vst [vmem:[#allocation195_spill] sm:$0xff] %v10688_v61  ;;  %v933_v13 = vmax.f32 %v778_v23, 0.0  ;;  %8465 = vmatmul.msk.bf16.gmra.mxu0 %vm483_vm0, %v459_v58 }
 0x275   : > { %15932 = vst [vmem:[#allocation62_spill] sm:$0xff] %v10697_v54  ;;  %8496 = vmatmul.msk.bf16.gmra.mxu1 %vm1432_vm11, %v10697_v54  ;;  %v10701_v32 = vpop.f32.mrf.mxu3 }
 0x276   : > { %15933 = vst [vmem:[#allocation196_spill] sm:$0xff] %v10701_v32  ;;  %v1029_v42 = vpack.c.bf16 %v933_v13, %v933_v13 }
 0x277   : > { %v1651_v21 = vpop.f32.mrf.mxu2 }
 0x278   : > { %v3370_v44 = vunpack.c.l.b16 %v1029_v42  ;;  %v10703_v50 = vadd.f32 %v1651_v21, %v1511_v53  ;;  %v4190_v13 = vsel %vm9399_vm2, %v1029_v42, 0  ;;  %v401_v53 = vld [vmem:[%s9356_s15 + $0x250] sm:$0xff]  ;;  %v402_v21 = vld [vmem:[%s9356_s15 + $0x258] sm:$0xff] }
 0x279   : > { %v779_v7 = vpop.f32.mrf.mxu0  ;;  %v10723_v54 = vunpack.c.l.b16 %v4190_v13  ;;  %v460_v61 = vpack.c.bf16 %v402_v21, %v401_v53 }
 0x27a   : > { %15934 = vst [vmem:[#allocation197_spill] sm:$0xff] %v10703_v50  ;;  %v10705_v17 = vpack.c.b16 %v3370_v44, %v3369_v28  ;;  %v780_v58 = vadd.f32 %v10551_v43, %v779_v7  ;;  %v1516_v23 = vpop.f32.mrf.mxu1  ;;  %8581 = vmatmul.msk.bf16.gmra.mxu3 %vm1432_vm11, %v15936_v47 }
 0x27b   : > { %15940 = vst [vmem:[#allocation200_spill] sm:$0xff] %v10723_v54 }
 0x27c   : > { %15935 = vst [vmem:[#allocation198_spill] sm:$0xff] %v10705_v17  ;;  %v934_v52 = vmax.f32 %v780_v58, 0.0  ;;  %8512 = vmatmul.msk.bf16.gmra.mxu2 %vm1432_vm11, %v10713_v41  ;;  %v15944_v41 = vld [vmem:[#allocation68_spill] sm:$0xff] }
 0x27d   : > { %v10719_v28 = vpop.f32.mrf.mxu3 }
 0x27e   : > { %15939 = vst [vmem:[#allocation199_spill] sm:$0xff] %v10719_v28  ;;  %v1030_v7 = vpack.c.bf16 %v934_v52, %v934_v52  ;;  %v15950_v52 = vld [vmem:[#allocation71_spill] sm:$0xff] }
 0x27f   : > { %v1654_v32 = vpop.f32.mrf.mxu2  ;;  %v10756_v54 = vsel %vm10082_vm4, %v15950_v52, 0 }
 0x280   : > { %v3371_v50 = vunpack.c.l.b16 %v1030_v7  ;;  %v4191_v34 = vsel %vm9399_vm2, %v1030_v7, 0  ;;  %v10727_v48 = vadd.f32 %v1654_v32, %v1514_v31  ;;  %v10740_v31 = vsel %vm10036_vm5, %v15944_v41, 0  ;;  %v15949_v41 = vld [vmem:[#allocation76_spill] sm:$0xff]  ;;  %15951 = vst [vmem:[#allocation71_spill] sm:$0xff] %v10756_v54 }
 0x281   : > { %v10729_v42 = vunpack.c.l.b16 %v4191_v34  ;;  %v782_v58 = vpop.f32.mrf.mxu0  ;;  %15945 = vst [vmem:[#allocation68_spill] sm:$0xff] %v10740_v31 }
 0x282   : > { %15941 = vst [vmem:[#allocation201_spill] sm:$0xff] %v10727_v48  ;;  %v10731_v17 = vpack.c.b16 %v3371_v50, %v3370_v44  ;;  %v783_v28 = vadd.f32 %v10551_v43, %v782_v58  ;;  %v1519_v47 = vpop.f32.mrf.mxu1 }
 0x283   : > { %15942 = vst [vmem:[#allocation202_spill] sm:$0xff] %v10729_v42 }
 0x284   : > { %15943 = vst [vmem:[#allocation203_spill] sm:$0xff] %v10731_v17  ;;  %v935_v13 = vmax.f32 %v783_v28, 0.0  ;;  %8466 = vmatmul.msk.bf16.gmra.mxu0 %vm483_vm0, %v460_v61 }
 0x285   : > { %8497 = vmatmul.msk.bf16.gmra.mxu1 %vm1432_vm11, %v10740_v31  ;;  %v10744_v32 = vpop.f32.mrf.mxu3 }
 0x286   : > { %15946 = vst [vmem:[#allocation204_spill] sm:$0xff] %v10744_v32  ;;  %v1031_v44 = vpack.c.bf16 %v935_v13, %v935_v13 }
 0x287   : > { %v1656_v53 = vpop.f32.mrf.mxu2 }
 0x288   : > { %v3372_v21 = vunpack.c.l.b16 %v1031_v44  ;;  %v10746_v7 = vadd.f32 %v1656_v53, %v1516_v23  ;;  %v4192_v13 = vsel %vm9399_vm2, %v1031_v44, 0  ;;  %v403_v23 = vld [vmem:[%s9356_s15 + $0x260] sm:$0xff]  ;;  %v404_v53 = vld [vmem:[%s9356_s15 + $0x268] sm:$0xff] }
 0x289   : > { %v784_v28 = vpop.f32.mrf.mxu0  ;;  %v10766_v31 = vunpack.c.l.b16 %v4192_v13  ;;  %v461_v17 = vpack.c.bf16 %v404_v53, %v403_v23 }
 0x28a   : > { %15947 = vst [vmem:[#allocation205_spill] sm:$0xff] %v10746_v7  ;;  %v10748_v34 = vpack.c.b16 %v3372_v21, %v3371_v50  ;;  %v785_v61 = vadd.f32 %v10551_v43, %v784_v28  ;;  %v1521_v58 = vpop.f32.mrf.mxu1  ;;  %8582 = vmatmul.msk.bf16.gmra.mxu3 %vm1432_vm11, %v15949_v41 }
 0x28b   : > { %15953 = vst [vmem:[#allocation208_spill] sm:$0xff] %v10766_v31 }
 0x28c   : > { %15948 = vst [vmem:[#allocation206_spill] sm:$0xff] %v10748_v34  ;;  %v936_v42 = vmax.f32 %v785_v61, 0.0  ;;  %8513 = vmatmul.msk.bf16.gmra.mxu2 %vm1432_vm11, %v10756_v54  ;;  %v15957_v54 = vld [vmem:[#allocation74_spill] sm:$0xff] }
 0x28d   : > { %v10762_v50 = vpop.f32.mrf.mxu3 }
 0x28e   : > { %15952 = vst [vmem:[#allocation207_spill] sm:$0xff] %v10762_v50  ;;  %v1032_v28 = vpack.c.bf16 %v936_v42, %v936_v42  ;;  %v15964_v42 = vld [vmem:[#allocation78_spill] sm:$0xff] }
 0x28f   : > { %v1659_v32 = vpop.f32.mrf.mxu2  ;;  %v10802_v31 = vsel %vm10082_vm4, %v15964_v42, 0 }
 0x290   : > { %v3303_v7 = vunpack.c.l.b16 %v1032_v28  ;;  %v4193_v52 = vsel %vm9399_vm2, %v1032_v28, 0  ;;  %v10770_v48 = vadd.f32 %v1659_v32, %v1519_v47  ;;  %v10783_v47 = vsel %vm10036_vm5, %v15957_v54, 0  ;;  %15965 = vst [vmem:[#allocation78_spill] sm:$0xff] %v10802_v31 }
 0x291   : > { %v10772_v44 = vunpack.c.l.b16 %v4193_v52  ;;  %v787_v61 = vpop.f32.mrf.mxu0  ;;  %15958 = vst [vmem:[#allocation74_spill] sm:$0xff] %v10783_v47 }
 0x292   : > { %15954 = vst [vmem:[#allocation209_spill] sm:$0xff] %v10770_v48  ;;  %v10774_v34 = vpack.c.b16 %v3303_v7, %v3372_v21  ;;  %v788_v50 = vadd.f32 %v10551_v43, %v787_v61  ;;  %v1524_v41 = vpop.f32.mrf.mxu1  ;;  %v15963_v61 = vld [vmem:[#allocation85_spill] sm:$0xff] }
 0x293   : > { %15955 = vst [vmem:[#allocation210_spill] sm:$0xff] %v10772_v44 }
 0x294   : > { %15956 = vst [vmem:[#allocation211_spill] sm:$0xff] %v10774_v34  ;;  %v937_v13 = vmax.f32 %v788_v50, 0.0  ;;  %8467 = vmatmul.msk.bf16.gmra.mxu0 %vm483_vm0, %v461_v17 }
 0x295   : > { %8498 = vmatmul.msk.bf16.gmra.mxu1 %vm1432_vm11, %v10783_v47  ;;  %v10787_v32 = vpop.f32.mrf.mxu3  ;;  %v8586_v47 = vld [vmem:[%s15369_s3 + $0xc] sm:$0x3] }
 0x296   : > { %15959 = vst [vmem:[#allocation212_spill] sm:$0xff] %v10787_v32  ;;  %v1033_v21 = vpack.c.bf16 %v937_v13, %v937_v13 }
 0x297   : > { %v1661_v23 = vpop.f32.mrf.mxu2 }
 0x298   : > { %v10789_v53 = vunpack.c.l.b16 %v1033_v21  ;;  %v10791_v28 = vadd.f32 %v1661_v23, %v1521_v58  ;;  %v4194_v13 = vsel %vm9399_vm2, %v1033_v21, 0  ;;  %v405_v23 = vld [vmem:[%s9356_s15 + $0x270] sm:$0xff] }
 0x299   : > { %v789_v50 = vpop.f32.mrf.mxu0  ;;  %v10815_v32 = vunpack.c.l.b16 %v4194_v13 }
 0x29a   : > { %15960 = vst [vmem:[#allocation213_spill] sm:$0xff] %v10789_v53  ;;  %v10794_v17 = vpack.c.b16 %v10789_v53, %v3303_v7  ;;  %v790_v54 = vadd.f32 %v10551_v43, %v789_v50  ;;  %v1526_v52 = vpop.f32.mrf.mxu1  ;;  %8583 = vmatmul.msk.bf16.gmra.mxu3 %vm1432_vm11, %v15963_v61  ;;  %v406_v50 = vld [vmem:[%s9356_s15 + $0x278] sm:$0xff] }
 0x29b   : > { %15961 = vst [vmem:[#allocation214_spill] sm:$0xff] %v10791_v28  ;;  %v10818_v28 = vsel %vm1481_vm6, %v8586_v47, 0 }
 0x29c   : > { %15962 = vst [vmem:[#allocation215_spill] sm:$0xff] %v10794_v17  ;;  %v938_v58 = vmax.f32 %v790_v54, 0.0  ;;  %8514 = vmatmul.msk.bf16.gmra.mxu2 %vm1432_vm11, %v10802_v31  ;;  %2793 = vmatpush.bf16.msrb.mxu1 %v10818_v28 }
 0x29d   : > { %v10808_v7 = vpop.f32.mrf.mxu3  ;;  %15967 = vst [vmem:[#allocation217_spill] sm:$0xff] %v10815_v32 }
 0x29e   : > { %15966 = vst [vmem:[#allocation216_spill] sm:$0xff] %v10808_v7  ;;  %v1034_v44 = vpack.c.bf16 %v938_v58, %v938_v58  ;;  %v462_v7 = vpack.c.bf16 %v406_v50, %v405_v23 }
 0x29f   : > { %v1664_v42 = vpop.f32.mrf.mxu2  ;;  %15968 = vst [vmem:[#allocation218_spill] sm:$0xff] %v10818_v28 }
 0x2a0   : > { %v3305_v21 = vunpack.c.l.b16 %v1034_v44  ;;  %v4195_v54 = vsel %vm9399_vm2, %v1034_v44, 0  ;;  %v10822_v48 = vadd.f32 %v1664_v42, %v1524_v41  ;;  %v15971_v41 = vld [vmem:[#allocation82_spill] sm:$0xff] }
 0x2a1   : > { %v10825_v58 = vunpack.c.l.b16 %v4195_v54  ;;  %v792_v34 = vpop.f32.mrf.mxu0  ;;  %v10837_v44 = vsel %vm10036_vm5, %v15971_v41, 0 }
 0x2a2   : > { %15969 = vst [vmem:[#allocation219_spill] sm:$0xff] %v10822_v48  ;;  %v10828_v17 = vpack.c.b16 %v3305_v21, %v10789_v53  ;;  %v793_v13 = vadd.f32 %v10551_v43, %v792_v34  ;;  %v1529_v61 = vpop.f32.mrf.mxu1 }
 0x2a3   : > { %15970 = vst [vmem:[#allocation220_spill] sm:$0xff] %v10825_v58 }
 0x2a4   : > { %v939_v31 = vmax.f32 %v793_v13, 0.0  ;;  %8468 = vmatmul.msk.bf16.gmra.mxu0 %vm483_vm0, %v462_v7  ;;  %15972 = vst [vmem:[#allocation82_spill] sm:$0xff] %v10837_v44  ;;  %v10848_v7 = vsel %vm9692_vm12, %v9994_v46, 0 }
 0x2a5   : > { %8499 = vmatmul.msk.bf16.gmra.mxu1 %vm1432_vm11, %v10837_v44  ;;  %v10841_v23 = vpop.f32.mrf.mxu3  ;;  %15975 = vst [vmem:[#allocation223_spill] sm:$0xff] %v10848_v7 }
 0x2a6   : > { %15973 = vst [vmem:[#allocation221_spill] sm:$0xff] %v10841_v23  ;;  %v1035_v50 = vpack.c.bf16 %v939_v31, %v939_v31  ;;  %v15977_v31 = vld [vmem:[#allocation86_spill] sm:$0xff] }
 0x2a7   : > { %v1666_v34 = vpop.f32.mrf.mxu2  ;;  %v10858_v58 = vsel %vm10082_vm4, %v15977_v31, 0 }
 0x2a8   : > { %v3306_v42 = vunpack.c.l.b16 %v1035_v50  ;;  %v10843_v54 = vadd.f32 %v1666_v34, %v1526_v52  ;;  %15978 = vst [vmem:[#allocation86_spill] sm:$0xff] %v10858_v58  ;;  %v4196_v52 = vsel %vm9399_vm2, %v1035_v50, 0 }
 0x2a9   : > { %v794_v13 = vpop.f32.mrf.mxu0  ;;  %v10868_v23 = vunpack.c.l.b16 %v4196_v52 }
 0x2aa   : > { %15974 = vst [vmem:[#allocation222_spill] sm:$0xff] %v10843_v54  ;;  %v10850_v41 = vpack.c.b16 %v3306_v42, %v3305_v21  ;;  %v795_v47 = vadd.f32 %v10551_v43, %v794_v13  ;;  %v1531_v32 = vpop.f32.mrf.mxu1  ;;  %8584 = vmatmul.msk.bf16.gmra.mxu3 %vm1432_vm11, %v10848_v7  ;;  %v407_v21 = vld [vmem:[%s9356_s15 + $0x280] sm:$0xff]  ;;  %v408_v13 = vld [vmem:[%s9356_s15 + $0x288] sm:$0xff] }
 0x2ab   : > { %15980 = vst [vmem:[#allocation226_spill] sm:$0xff] %v10868_v23  ;;  %v463_v50 = vpack.c.bf16 %v408_v13, %v407_v21  ;;  %v15989_v23 = vshll.u32 %v10352_v10, 16 }
 0x2ac   : > { %15976 = vst [vmem:[#allocation224_spill] sm:$0xff] %v10850_v41  ;;  %v940_v34 = vmax.f32 %v795_v47, 0.0  ;;  %8515 = vmatmul.msk.bf16.gmra.mxu2 %vm1432_vm11, %v10858_v58 }
 0x2ad   : > { %v10864_v46 = vpop.f32.mrf.mxu3 }
 0x2ae   : > { %15979 = vst [vmem:[#allocation225_spill] sm:$0xff] %v10864_v46  ;;  %v1036_v44 = vpack.c.bf16 %v940_v34, %v940_v34 }
 0x2af   : > { %v1669_v54 = vpop.f32.mrf.mxu2 }
 0x2b0   : > { %v10870_v48 = vunpack.c.l.b16 %v1036_v44  ;;  %v4197_v31 = vsel %vm9399_vm2, %v1036_v44, 0  ;;  %v10874_v28 = vadd.f32 %v1669_v54, %v1529_v61  ;;  %v15986_v54 = vld [vmem:[#allocation77_spill] sm:$0xff] }
 0x2b1   : > { %v10876_v47 = vunpack.c.l.b16 %v4197_v31  ;;  %v797_v41 = vpop.f32.mrf.mxu0 }
 0x2b2   : > { %15981 = vst [vmem:[#allocation227_spill] sm:$0xff] %v10870_v48  ;;  %v10879_v53 = vpack.c.b16 %v10870_v48, %v3306_v42  ;;  %v798_v46 = vadd.f32 %v10551_v43, %v797_v41  ;;  %v1534_v34 = vpop.f32.mrf.mxu1 }
 0x2b3   : > { %15982 = vst [vmem:[#allocation228_spill] sm:$0xff] %v10874_v28 }
 0x2b4   : > { %15983 = vst [vmem:[#allocation229_spill] sm:$0xff] %v10876_v47  ;;  %v941_v49 = vmax.f32 %v798_v46, 0.0  ;;  %8469 = vmatmul.msk.bf16.gmra.mxu0 %vm483_vm0, %v463_v50  ;;  %v2430_v46 = vsel %vm9692_vm12, %v10009_v1, 0  ;;  %v15990_v1 = vld [vmem:[#allocation15_spill] sm:$0xff] }
 0x2b5   : > { %15984 = vst [vmem:[#allocation230_spill] sm:$0xff] %v10879_v53  ;;  %8536 = vmatmul.msk.bf16.vlgmr.msra.gmra.mxu1 %vm1432_vm11, %v10094_v24  ;;  %v10887_v61 = vpop.f32.mrf.mxu3 }
 0x2b6   : > { %15985 = vst [vmem:[#allocation231_spill] sm:$0xff] %v10887_v61  ;;  %v1037_v44 = vpack.c.bf16 %v941_v49, %v941_v49  ;;  %3692 = vmatpush.bf16.msra.mxu1 %v15986_v54  ;;  %v15988_v49 = vshrl.u32 %v10352_v10, 16 }
 0x2b7   : > { %v1671_v21 = vpop.f32.mrf.mxu2 }
 0x2b8   : > { %v5289_v42 = vunpack.c.l.b16 %v1037_v44  ;;  %v10890_v13 = vadd.f32 %v1671_v21, %v1531_v32  ;;  %v5824_v52 = vrot.slane %v15988_v49, 1  ;;  %v5827_v32 = vrot.slane %v15989_v23, 2 }
 0x2b9   : > { %v799_v41 = vpop.f32.mrf.mxu0  ;;  %v6261_v21 = vsel %vm9399_vm2, %v1037_v44, 0 }
 0x2ba   : > { %15987 = vst [vmem:[#allocation232_spill] sm:$0xff] %v10890_v13  ;;  %v6544_v31 = vpack.c.b16 %v5289_v42, %v5289_v42  ;;  %v800_v50 = vadd.f32 %v10551_v43, %v799_v41  ;;  %v1536_v24 = vpop.f32.mrf.mxu1  ;;  %8585 = vmatmul.msk.bf16.gmra.mxu3 %vm1432_vm11, %v2430_v46  ;;  %v15991_v13 = vld [vmem:[#allocation14_spill] sm:$0xff]  ;;  %v409_v41 = vld [vmem:[%s9356_s15 + $0x290] sm:$0xff]  ;;  %v410_v46 = vld [vmem:[%s9356_s15 + $0x298] sm:$0xff]  ;;  %v10911_v10 = vunpack.c.l.b16 %v6261_v21  ;;  %v10913_v44 = vor.u32 %v5827_v32, %v5824_v52 }
 0x2bb   : > { %v15992_v28 = vpack.c.b16 %v15990_v1, %v15991_v13  ;;  %v464_v58 = vpack.c.bf16 %v410_v46, %v409_v41 }
 0x2bc   : > { %v6546_v47 = vshrl.u32 %v6544_v31, 16  ;;  %v6549_v54 = vshll.u32 %v6544_v31, 16  ;;  %v942_v61 = vmax.f32 %v800_v50, 0.0  ;;  %15994 = vst [vmem:[#allocation14_spill] sm:$0xff] %v10911_v10  ;;  %v15996_v31 = vmov 0 }
 0x2bd   : > { %8553 = vmatmul.msk.bf16.vlgmr.msrb.gmra.mxu2 %vm1432_vm11, %v15992_v28  ;;  %v10909_v48 = vpop.f32.mrf.mxu3  ;;  %15995 = vst [vmem:[#allocation233_spill] sm:$0xff] %v10913_v44  ;;  %v15997_v31 = vsel %vm10917_vm10, 4294967295, %v15996_v31 }
 0x2be   : > { %15993 = vst [vmem:[#allocation15_spill] sm:$0xff] %v10909_v48  ;;  %v6548_v30 = vrot.slane %v6546_v47, 1  ;;  %v6551_v49 = vrot.slane %v6549_v54, 2  ;;  %v1038_v7 = vpack.c.bf16 %v942_v61, %v942_v61 }
 0x2bf   : > { %v1674_v23 = vpop.f32.mrf.mxu2  ;;  %15998 = vst [vmem:[#allocation234_spill] sm:$0xff] %v15997_v31 }
 0x2c0   : > { %v5290_v28 = vunpack.c.l.b16 %v1038_v7  ;;  %v6262_v13 = vsel %vm9399_vm2, %v1038_v7, 0  ;;  %v10923_v50 = vadd.f32 %v1674_v23, %v1534_v34  ;;  %v6552_v47 = vor.u32 %v6551_v49, %v6548_v30 }
 0x2c1   : > { %v10925_v61 = vunpack.c.l.b16 %v6262_v13  ;;  %v802_v54 = vpop.f32.mrf.mxu0 }
 0x2c2   : > { %v10927_v21 = vpack.c.b16 %v5290_v28, %v5289_v42  ;;  %v803_v52 = vadd.f32 %v10551_v43, %v802_v54  ;;  %v1539_v32 = vpop.f32.mrf.mxu1  ;;  %v10933_v1 = vsel %vm10917_vm10, %v10913_v44, %v6552_v47 }
 0x2c3   : > { %15999 = vst [vmem:[#allocation235_spill] sm:$0xff] %v10925_v61 }
 0x2c4   : > { %16000 = vst [vmem:[#allocation236_spill] sm:$0xff] %v10927_v21  ;;  %8470 = vmatmul.msk.bf16.gmra.mxu0 %vm483_vm0, %v464_v58  ;;  %v15557_v30 = vshrl.u32 %v10927_v21, 16  ;;  %v15558_v7 = vshll.u32 %v10927_v21, 16  ;;  %v943_v42 = vmax.f32 %v803_v52, 0.0 }
 0x2c5   : > { %16001 = vst [vmem:[#allocation237_spill] sm:$0xff] %v10933_v1  ;;  %8537 = vmatmul.msk.bf16.gmra.mxu1 %vm1432_vm11, %v10150_v60  ;;  %v10942_v34 = vpop.f32.mrf.mxu3  ;;  %v16005_v1 = vld [vmem:[#allocation19_spill] sm:$0xff] }
 0x2c6   : > { %16002 = vst [vmem:[#allocation238_spill] sm:$0xff] %v10942_v34  ;;  %v5331_v46 = vrot.slane %v15557_v30, 6  ;;  %v5334_v49 = vrot.slane %v15558_v7, 7  ;;  %v1039_v47 = vpack.c.bf16 %v943_v42, %v943_v42  ;;  %v16004_v30 = vld [vmem:[#allocation20_spill] sm:$0xff] }
 0x2c7   : > { %v1676_v23 = vpop.f32.mrf.mxu2  ;;  %v16006_v7 = vpack.c.b16 %v16004_v30, %v16005_v1 }
 0x2c8   : > { %v10948_v58 = vadd.f32 %v1676_v23, %v1536_v24  ;;  %v10950_v28 = vor.u32 %v5334_v49, %v5331_v46  ;;  %v6263_v52 = vsel %vm9399_vm2, %v1039_v47, 0  ;;  %v411_v46 = vld [vmem:[%s9356_s15 + $0x2a0] sm:$0xff]  ;;  %v412_v49 = vld [vmem:[%s9356_s15 + $0x2a8] sm:$0xff]  ;;  %v5291_v42 = vunpack.c.l.b16 %v1039_v47 }
 0x2c9   : > { %v804_v13 = vpop.f32.mrf.mxu0 }
 0x2ca   : > { %16003 = vst [vmem:[#allocation239_spill] sm:$0xff] %v10950_v28  ;;  %v805_v60 = vadd.f32 %v10551_v43, %v804_v13  ;;  %v1541_v54 = vpop.f32.mrf.mxu1  ;;  %8621 = vmatmul.msk.bf16.vlgmr.msra.gmra.mxu3 %vm1432_vm11, %v10137_v12  ;;  %v10965_v13 = vunpack.c.l.b16 %v6263_v52 }
 0x2cc   : > { %v944_v41 = vmax.f32 %v805_v60, 0.0  ;;  %16008 = vst [vmem:[#allocation19_spill] sm:$0xff] %v10965_v13  ;;  %v465_v60 = vpack.c.bf16 %v412_v49, %v411_v46  ;;  %v3388_v13 = vrot.slane %v10113_v63, 7 }
 0x2cd   : > { %8554 = vmatmul.msk.bf16.gmra.mxu2 %vm1432_vm11, %v16006_v7  ;;  %v10961_v24 = vpop.f32.mrf.mxu3 }
 0x2ce   : > { %16007 = vst [vmem:[#allocation20_spill] sm:$0xff] %v10961_v24  ;;  %v1040_v23 = vpack.c.bf16 %v944_v41, %v944_v41 }
 0x2cf   : > { %v1679_v10 = vpop.f32.mrf.mxu2 }
 0x2d0   : > { %v5292_v61 = vunpack.c.l.b16 %v1040_v23  ;;  %v6264_v31 = vsel %vm9399_vm2, %v1040_v23, 0  ;;  %v10969_v21 = vadd.f32 %v1679_v10, %v1539_v32 }
 0x2d1   : > { %v10971_v44 = vunpack.c.l.b16 %v6264_v31  ;;  %v807_v1 = vpop.f32.mrf.mxu0 }
 0x2d2   : > { %v10973_v30 = vpack.c.b16 %v5292_v61, %v5291_v42  ;;  %v808_v7 = vadd.f32 %v10551_v43, %v807_v1  ;;  %v1544_v24 = vpop.f32.mrf.mxu1 }
 0x2d3   : > { %16009 = vst [vmem:[#allocation240_spill] sm:$0xff] %v10971_v44 }
 0x2d4   : > { %16010 = vst [vmem:[#allocation241_spill] sm:$0xff] %v10973_v30  ;;  %8471 = vmatmul.msk.bf16.gmra.mxu0 %vm483_vm0, %v465_v60  ;;  %v945_v31 = vmax.f32 %v808_v7, 0.0  ;;  %v16012_v60 = vld [vmem:[#allocation22_spill] sm:$0xff] }
 0x2d5   : > { %8538 = vmatmul.msk.bf16.gmra.mxu1 %vm1432_vm11, %v10214_v40  ;;  %v10981_v10 = vpop.f32.mrf.mxu3  ;;  %v16013_v40 = vld [vmem:[#allocation21_spill] sm:$0xff] }
 0x2d6   : > { %16011 = vst [vmem:[#allocation242_spill] sm:$0xff] %v10981_v10  ;;  %v1041_v52 = vpack.c.bf16 %v945_v31, %v945_v31  ;;  %v16014_v1 = vpack.c.b16 %v16012_v60, %v16013_v40 }
 0x2d7   : > { %v1681_v32 = vpop.f32.mrf.mxu2 }
 0x2d8   : > { %v10983_v47 = vadd.f32 %v1681_v32, %v1541_v54  ;;  %v6265_v42 = vsel %vm9399_vm2, %v1041_v52, 0  ;;  %v413_v54 = vld [vmem:[%s9356_s15 + $0x2b0] sm:$0xff]  ;;  %v414_v32 = vld [vmem:[%s9356_s15 + $0x2b8] sm:$0xff]  ;;  %v5293_v31 = vunpack.c.l.b16 %v1041_v52 }
 0x2d9   : > { %v809_v61 = vpop.f32.mrf.mxu0  ;;  %v11000_v44 = vunpack.c.l.b16 %v6265_v42  ;;  %v466_v40 = vpack.c.bf16 %v414_v32, %v413_v54 }
 0x2da   : > { %v810_v46 = vadd.f32 %v10551_v43, %v809_v61  ;;  %v1546_v49 = vpop.f32.mrf.mxu1  ;;  %8622 = vmatmul.msk.bf16.gmra.mxu3 %vm1432_vm11, %v10228_v45  ;;  %v15569_v61 = vrot.slane %v10045_v3, 7 }
 0x2db   : > { %16016 = vst [vmem:[#allocation21_spill] sm:$0xff] %v11000_v44 }
 0x2dc   : > { %v946_v23 = vmax.f32 %v810_v46, 0.0  ;;  %v11011_v52 = vsel %vm1330_vm15, %v15569_v61, %v3388_v13 }
 0x2dd   : > { %8555 = vmatmul.msk.bf16.gmra.mxu2 %vm1432_vm11, %v16014_v1  ;;  %v10994_v7 = vpop.f32.mrf.mxu3  ;;  %16019 = vst [vmem:[#allocation245_spill] sm:$0xff] %v11011_v52 }
 0x2de   : > { %16015 = vst [vmem:[#allocation22_spill] sm:$0xff] %v10994_v7  ;;  %v1042_v41 = vpack.c.bf16 %v946_v23, %v946_v23 }
 0x2df   : > { %v1684_v10 = vpop.f32.mrf.mxu2 }
 0x2e0   : > { %v5294_v34 = vunpack.c.l.b16 %v1042_v41  ;;  %v6266_v46 = vsel %vm9399_vm2, %v1042_v41, 0  ;;  %v11004_v60 = vadd.f32 %v1684_v10, %v1544_v24  ;;  %v15571_v24 = vrot.slane %v10045_v3, 1 }
 0x2e1   : > { %v11006_v1 = vunpack.c.l.b16 %v6266_v46  ;;  %v812_v7 = vpop.f32.mrf.mxu0  ;;  %v3781_v41 = vrot.slane %v10113_v63, 1 }
 0x2e2   : > { %16017 = vst [vmem:[#allocation243_spill] sm:$0xff] %v11004_v60  ;;  %v11013_v23 = vpack.c.b16 %v5294_v34, %v5293_v31  ;;  %v813_v42 = vadd.f32 %v10551_v43, %v812_v7  ;;  %v1549_v48 = vpop.f32.mrf.mxu1 }
 0x2e3   : > { %16018 = vst [vmem:[#allocation244_spill] sm:$0xff] %v11006_v1  ;;  %v11028_v7 = vsel %vm3774_vm8, %v15571_v24, %v3781_v41  ;;  %v16026_v24 = vld [vmem:[#allocation25_spill] sm:$0xff] }
 0x2e4   : > { %16020 = vst [vmem:[#allocation246_spill] sm:$0xff] %v11013_v23  ;;  %v947_v10 = vmax.f32 %v813_v42, 0.0  ;;  %8472 = vmatmul.msk.bf16.gmra.mxu0 %vm483_vm0, %v466_v40  ;;  %v4957_v40 = vpack.c.b16 %v10132_v25, %v10132_v25  ;;  %v16030_v25 = vld [vmem:[#allocation113_spill] sm:$0xff] }
 0x2e5   : > { %8539 = vmatmul.msk.bf16.gmra.mxu1 %vm1432_vm11, %v10332_v36  ;;  %v11023_v54 = vpop.f32.mrf.mxu3  ;;  %16022 = vst [vmem:[#allocation248_spill] sm:$0xff] %v11028_v7 }
 0x2e6   : > { %16021 = vst [vmem:[#allocation247_spill] sm:$0xff] %v11023_v54  ;;  %v1043_v32 = vpack.c.bf16 %v947_v10, %v947_v10  ;;  %v16027_v10 = vld [vmem:[#allocation24_spill] sm:$0xff]  ;;  %v4958_v54 = vrot.slane %v4957_v40, 1 }
 0x2e7   : > { %v1686_v31 = vpop.f32.mrf.mxu2  ;;  %v16028_v1 = vpack.c.b16 %v16026_v24, %v16027_v10  ;;  %v8603_v24 = vld [vmem:[%s15369_s3 + $0xe] sm:$0x3] }
 0x2e8   : > { %v11030_v46 = vunpack.c.l.b16 %v1043_v32  ;;  %v11032_v28 = vadd.f32 %v1686_v31, %v1546_v49  ;;  %v6267_v49 = vsel %vm9399_vm2, %v1043_v32, 0 }
 0x2e9   : > { %v814_v61 = vpop.f32.mrf.mxu0  ;;  %v11065_v40 = vunpack.c.l.b16 %v6267_v49 }
 0x2ea   : > { %16023 = vst [vmem:[#allocation249_spill] sm:$0xff] %v11030_v46  ;;  %v11037_v42 = vpack.c.b16 %v11030_v46, %v5294_v34  ;;  %v815_v36 = vadd.f32 %v10551_v43, %v814_v61  ;;  %v1551_v44 = vpop.f32.mrf.mxu1  ;;  %8623 = vmatmul.msk.bf16.gmra.mxu3 %vm1432_vm11, %v10312_v22  ;;  %v4599_v34 = vrot.slane %v16030_v25, 3  ;;  %v16032_v61 = vld [vmem:[#allocation93_spill] sm:$0xff] }
 0x2eb   : > { %16024 = vst [vmem:[#allocation250_spill] sm:$0xff] %v11032_v28 }
 0x2ec   : > { %16025 = vst [vmem:[#allocation251_spill] sm:$0xff] %v11037_v42  ;;  %v948_v31 = vmax.f32 %v815_v36, 0.0  ;;  %v16031_v42 = vld [vmem:[#allocation17_spill] sm:$0xff]  ;;  %v11062_v36 = vsel %vm1481_vm6, %v8603_v24, 0 }
 0x2ed   : > { %8556 = vmatmul.msk.bf16.gmra.mxu2 %vm1432_vm11, %v16028_v1  ;;  %v11048_v7 = vpop.f32.mrf.mxu3  ;;  %v11055_v30 = vsel %vm9987_vm13, %v16032_v61, %v16031_v42  ;;  %v16034_v1 = vld [vmem:[#allocation127_spill] sm:$0xff]  ;;  %16035 = vst [vmem:[#allocation24_spill] sm:$0xff] %v11062_v36  ;;  %4843 = vmatpush.bf16.msra.mxu3 %v11062_v36  ;;  %vm3311_vm13 = vcmask 1044480  }
 0x2ee   : > { %16029 = vst [vmem:[#allocation25_spill] sm:$0xff] %v11048_v7  ;;  %v4600_v10 = vrot.slane %v16034_v1, 3  ;;  %v1044_v52 = vpack.c.bf16 %v948_v31, %v948_v31  ;;  %v16036_v7 = vld [vmem:[#allocation119_spill] sm:$0xff]  ;;  %2927 = vmatpush.bf16.msra.mxu2 %v11062_v36  ;;  %v16040_v1 = vld [vmem:[#allocation36_spill] sm:$0xff] }
 0x2ef   : > { %v1689_v32 = vpop.f32.mrf.mxu2  ;;  %v3390_v25 = vrot.slane %v16036_v7, 7  ;;  %16037 = vst [vmem:[#allocation113_spill] sm:$0xff] %v11065_v40  ;;  %v3783_v23 = vrot.slane %v16036_v7, 1  ;;  %v16050_v40 = vld [vmem:[#allocation28_spill] sm:$0xff] }
 0x2f0   : > { %v11067_v28 = vadd.f32 %v1689_v32, %v1549_v48  ;;  %v5296_v42 = vunpack.c.l.b16 %v1044_v52  ;;  %v6268_v31 = vsel %vm9399_vm2, %v1044_v52, 0 }
 0x2f1   : > { %v817_v61 = vpop.f32.mrf.mxu0  ;;  %v11075_v24 = vsel %vm1330_vm15, %v3388_v13, %v3390_v25  ;;  %v11078_v49 = vunpack.c.l.b16 %v6268_v31  ;;  %v11088_v52 = vsel %vm3774_vm8, %v3781_v41, %v3783_v23  ;;  %v11091_v13 = vsel %vm3311_vm13, %v4599_v34, %v4600_v10 }
 0x2f2   : > { %16038 = vst [vmem:[#allocation17_spill] sm:$0xff] %v11067_v28  ;;  %3917 = vmatpush.bf16.msrb.mxu2 %v16040_v1  ;;  %v818_v48 = vadd.f32 %v10551_v43, %v817_v61  ;;  %v1554_v32 = vpop.f32.mrf.mxu1  ;;  %v1810_v28 = vsel %vm9968_vm7, %v11055_v30, 0  ;;  %v11085_v60 = vpack.c.b16 %v5296_v42, %v11030_v46 }
 0x2f3   : > { %16039 = vst [vmem:[#allocation93_spill] sm:$0xff] %v11075_v24  ;;  %v11094_v24 = vsel %vm3774_vm8, %v3781_v41, %v4958_v54 }
 0x2f4   : > { %16041 = vst [vmem:[#allocation92_spill] sm:$0xff] %v11078_v49  ;;  %v949_v61 = vmax.f32 %v818_v48, 0.0  ;;  %8519 = vmatmul.msk.bf16.vlgmr.msrb.gmra.mxu0 %vm1432_vm11, %v1810_v28  ;;  %v16051_v49 = vld [vmem:[#allocation27_spill] sm:$0xff] }
 0x2f5   : > { %16043 = vst [vmem:[#allocation127_spill] sm:$0xff] %v11085_v60  ;;  %8540 = vmatmul.msk.bf16.gmra.mxu1 %vm1432_vm11, %v10401_v57  ;;  %v11101_v46 = vpop.f32.mrf.mxu3  ;;  %v16048_v60 = vld [vmem:[#allocation131_spill] sm:$0xff] }
 0x2f6   : > { %16044 = vst [vmem:[#allocation119_spill] sm:$0xff] %v11088_v52  ;;  %4333 = vmatpush.bf16.msrb.mxu0 %v16048_v60  ;;  %v1045_v52 = vpack.c.bf16 %v949_v61, %v949_v61  ;;  %v16052_v61 = vpack.c.b16 %v16050_v40, %v16051_v49  ;;  %v3392_v60 = vrot.slane %v10281_v8, 7 }
 0x2f7   : > { %16045 = vst [vmem:[#allocation90_spill] sm:$0xff] %v11091_v13  ;;  %v1691_v1 = vpop.f32.mrf.mxu2 }
 0x2f8   : > { %16046 = vst [vmem:[#allocation252_spill] sm:$0xff] %v11094_v24  ;;  %v5297_v34 = vunpack.c.l.b16 %v1045_v52  ;;  %v11104_v13 = vadd.f32 %v1691_v1, %v1551_v44  ;;  %v6269_v57 = vsel %vm9399_vm2, %v1045_v52, 0  ;;  %v11130_v49 = vsel %vm1330_vm15, %v3390_v25, %v3392_v60 }
 0x2f9   : > { %16047 = vst [vmem:[#allocation253_spill] sm:$0xff] %v11101_v46  ;;  %v819_v41 = vpop.f32.mrf.mxu0  ;;  %v11120_v24 = vunpack.c.l.b16 %v6269_v57 }
 0x2fa   : > { %v11106_v54 = vpack.c.b16 %v5297_v34, %v5296_v42  ;;  %v820_v31 = vadd.f32 %v10551_v43, %v819_v41  ;;  %v1556_v48 = vpop.f32.mrf.mxu1  ;;  %8624 = vmatmul.msk.bf16.gmra.mxu3 %vm1432_vm11, %v10388_v33  ;;  %v4602_v42 = vrot.slane %v10319_v62, 3  ;;  %16056 = vst [vmem:[#allocation256_spill] sm:$0xff] %v11130_v49 }
 0x2fb   : > { %16054 = vst [vmem:[#allocation27_spill] sm:$0xff] %v11120_v24 }
 0x2fc   : > { %16049 = vst [vmem:[#allocation254_spill] sm:$0xff] %v11106_v54  ;;  %v950_v28 = vmax.f32 %v820_v31, 0.0 }
 0x2fd   : > { %8557 = vmatmul.msk.bf16.gmra.mxu2 %vm1432_vm11, %v16052_v61  ;;  %v11117_v44 = vpop.f32.mrf.mxu3 }
 0x2fe   : > { %16053 = vst [vmem:[#allocation28_spill] sm:$0xff] %v11117_v44  ;;  %v1046_v1 = vpack.c.bf16 %v950_v28, %v950_v28  ;;  %v3785_v28 = vrot.slane %v10281_v8, 1 }
 0x2ff   : > { %v1694_v41 = vpop.f32.mrf.mxu2 }
 0x300   : > { %v5298_v46 = vunpack.c.l.b16 %v1046_v1  ;;  %v6270_v52 = vsel %vm9399_vm2, %v1046_v1, 0  ;;  %v11125_v31 = vadd.f32 %v1694_v41, %v1554_v32  ;;  %v11139_v1 = vsel %vm3774_vm8, %v3783_v23, %v3785_v28 }
 0x301   : > { %v11127_v54 = vunpack.c.l.b16 %v6270_v52  ;;  %v822_v40 = vpop.f32.mrf.mxu0  ;;  %16058 = vst [vmem:[#allocation258_spill] sm:$0xff] %v11139_v1  ;;  %v11142_v32 = vsel %vm3311_vm13, %v4600_v10, %v4602_v42  ;;  %v16060_v52 = vld [vmem:[#allocation104_spill] sm:$0xff]  ;;  %v3394_v1 = vrot.slane %v10364_v59, 7 }
 0x302   : > { %v11133_v62 = vpack.c.b16 %v5298_v46, %v5297_v34  ;;  %v823_v57 = vadd.f32 %v10551_v43, %v822_v40  ;;  %v1559_v61 = vpop.f32.mrf.mxu1  ;;  %16059 = vst [vmem:[#allocation259_spill] sm:$0xff] %v11142_v32 }
 0x303   : > { %16055 = vst [vmem:[#allocation255_spill] sm:$0xff] %v11127_v54  ;;  %v16064_v54 = vld [vmem:[#allocation30_spill] sm:$0xff] }
 0x304   : > { %16057 = vst [vmem:[#allocation257_spill] sm:$0xff] %v11133_v62  ;;  %v951_v41 = vmax.f32 %v823_v57, 0.0  ;;  %8520 = vmatmul.msk.bf16.gmra.mxu0 %vm1432_vm11, %v16060_v52  ;;  %v16063_v52 = vld [vmem:[#allocation31_spill] sm:$0xff] }
 0x305   : > { %8541 = vmatmul.msk.bf16.gmra.mxu1 %vm1432_vm11, %v10445_v6  ;;  %v11148_v25 = vpop.f32.mrf.mxu3 }
 0x306   : > { %16061 = vst [vmem:[#allocation104_spill] sm:$0xff] %v11148_v25  ;;  %v1047_v34 = vpack.c.bf16 %v951_v41, %v951_v41  ;;  %v16065_v41 = vpack.c.b16 %v16063_v52, %v16064_v54  ;;  %v3787_v54 = vrot.slane %v10364_v59, 1 }
 0x307   : > { %v1696_v40 = vpop.f32.mrf.mxu2 }
 0x308   : > { %v5299_v62 = vunpack.c.l.b16 %v1047_v34  ;;  %v11150_v49 = vadd.f32 %v1696_v40, %v1556_v48  ;;  %v6271_v57 = vsel %vm9399_vm2, %v1047_v34, 0 }
 0x309   : > { %v824_v44 = vpop.f32.mrf.mxu0  ;;  %v11166_v32 = vunpack.c.l.b16 %v6271_v57 }
 0x30a   : > { %v11152_v23 = vpack.c.b16 %v5299_v62, %v5298_v46  ;;  %v825_v10 = vadd.f32 %v10551_v43, %v824_v44  ;;  %v1561_v24 = vpop.f32.mrf.mxu1  ;;  %8625 = vmatmul.msk.bf16.gmra.mxu3 %vm1432_vm11, %v10435_v27  ;;  %v4604_v46 = vrot.slane %v10393_v9, 3 }
 0x30b   : > { %16067 = vst [vmem:[#allocation30_spill] sm:$0xff] %v11166_v32 }
 0x30c   : > { %16062 = vst [vmem:[#allocation260_spill] sm:$0xff] %v11152_v23  ;;  %v952_v6 = vmax.f32 %v825_v10, 0.0 }
 0x30d   : > { %8558 = vmatmul.msk.bf16.gmra.mxu2 %vm1432_vm11, %v16065_v41  ;;  %v11163_v48 = vpop.f32.mrf.mxu3 }
 0x30e   : > { %16066 = vst [vmem:[#allocation31_spill] sm:$0xff] %v11163_v48  ;;  %v1048_v40 = vpack.c.bf16 %v952_v6, %v952_v6  ;;  %v11177_v6 = vsel %vm1330_vm15, %v3392_v60, %v3394_v1 }
 0x30f   : > { %v1699_v44 = vpop.f32.mrf.mxu2 }
 0x310   : > { %v5300_v25 = vunpack.c.l.b16 %v1048_v40  ;;  %v6272_v34 = vsel %vm9399_vm2, %v1048_v40, 0  ;;  %v11171_v10 = vadd.f32 %v1699_v44, %v1559_v61  ;;  %v11185_v40 = vsel %vm3774_vm8, %v3785_v28, %v3787_v54 }
 0x311   : > { %v11174_v52 = vunpack.c.l.b16 %v6272_v34  ;;  %v827_v41 = vpop.f32.mrf.mxu0  ;;  %16070 = vst [vmem:[#allocation263_spill] sm:$0xff] %v11185_v40  ;;  %v11188_v61 = vsel %vm3311_vm13, %v4602_v42, %v4604_v46 }
 0x312   : > { %v11179_v9 = vpack.c.b16 %v5300_v25, %v5299_v62  ;;  %v828_v57 = vadd.f32 %v10551_v43, %v827_v41  ;;  %v1564_v48 = vpop.f32.mrf.mxu1  ;;  %16071 = vst [vmem:[#allocation264_spill] sm:$0xff] %v11188_v61 }
 0x313   : > { %16068 = vst [vmem:[#allocation261_spill] sm:$0xff] %v11174_v52  ;;  %v16075_v52 = vld [vmem:[#allocation33_spill] sm:$0xff] }
 0x314   : > { %16069 = vst [vmem:[#allocation262_spill] sm:$0xff] %v11179_v9  ;;  %v953_v44 = vmax.f32 %v828_v57, 0.0  ;;  %8521 = vmatmul.msk.bf16.gmra.mxu0 %vm1432_vm11, %v10137_v12  ;;  %v16074_v57 = vld [vmem:[#allocation34_spill] sm:$0xff] }
 0x315   : > { %8542 = vmatmul.msk.bf16.gmra.mxu1 %vm1432_vm11, %v10489_v19  ;;  %v11194_v60 = vpop.f32.mrf.mxu3 }
 0x316   : > { %16072 = vst [vmem:[#allocation265_spill] sm:$0xff] %v11194_v60  ;;  %v1049_v62 = vpack.c.bf16 %v953_v44, %v953_v44  ;;  %v16076_v44 = vpack.c.b16 %v16074_v57, %v16075_v52  ;;  %v3789_v52 = vrot.slane %v10417_v39, 1 }
 0x317   : > { %v1701_v34 = vpop.f32.mrf.mxu2 }
 0x318   : > { %v5301_v41 = vunpack.c.l.b16 %v1049_v62  ;;  %v11196_v9 = vadd.f32 %v1701_v34, %v1561_v24  ;;  %v6273_v12 = vsel %vm9399_vm2, %v1049_v62, 0 }
 0x319   : > { %v829_v23 = vpop.f32.mrf.mxu0  ;;  %v11212_v61 = vunpack.c.l.b16 %v6273_v12  ;;  %v11230_v12 = vld [vmem:[%s15368_s2] ss:$0 sm:$0xff] }
 0x31a   : > { %v11198_v28 = vpack.c.b16 %v5301_v41, %v5300_v25  ;;  %v830_v42 = vadd.f32 %v10551_v43, %v829_v23  ;;  %v1566_v32 = vpop.f32.mrf.mxu1  ;;  %8626 = vmatmul.msk.bf16.gmra.mxu3 %vm1432_vm11, %v10479_v26  ;;  %v4606_v25 = vrot.slane %v10437_v0, 3  ;;  %v3396_v23 = vrot.slane %v10417_v39, 7 }
 0x31b   : > { %16078 = vst [vmem:[#allocation33_spill] sm:$0xff] %v11212_v61 }
 0x31c   : > { %16073 = vst [vmem:[#allocation266_spill] sm:$0xff] %v11198_v28  ;;  %v954_v19 = vmax.f32 %v830_v42, 0.0 }
 0x31d   : > { %8559 = vmatmul.msk.bf16.gmra.mxu2 %vm1432_vm11, %v16076_v44  ;;  %v11209_v24 = vpop.f32.mrf.mxu3 }
 0x31e   : > { %16077 = vst [vmem:[#allocation34_spill] sm:$0xff] %v11209_v24  ;;  %v1050_v34 = vpack.c.bf16 %v954_v19, %v954_v19  ;;  %v11223_v19 = vsel %vm1330_vm15, %v3394_v1, %v3396_v23 }
 0x31f   : > { %v1704_v43 = vpop.f32.mrf.mxu2  ;;  %16081 = vst [vmem:[#allocation269_spill] sm:$0xff] %v11223_v19  ;;  %v16151_v19 = vld [vmem:[#allocation100_spill] sm:$0xff] }
 0x320   : > { %v5302_v40 = vunpack.c.l.b16 %v1050_v34  ;;  %v6274_v62 = vsel %vm9399_vm2, %v1050_v34, 0  ;;  %v11217_v42 = vadd.f32 %v1704_v43, %v1564_v48  ;;  %v11236_v43 = vsel %vm3774_vm8, %v3787_v54, %v3789_v52 }
 0x321   : > { %v11220_v57 = vunpack.c.l.b16 %v6274_v62  ;;  %v832_v44 = vpop.f32.mrf.mxu0  ;;  %16083 = vst [vmem:[#allocation271_spill] sm:$0xff] %v11236_v43  ;;  %v11239_v62 = vsel %vm3311_vm13, %v4604_v46, %v4606_v25  ;;  %v3398_v43 = vrot.slane %v10461_v18, 7 }
 0x322   : > { %16079 = vst [vmem:[#allocation267_spill] sm:$0xff] %v11217_v42  ;;  %v11225_v0 = vpack.c.b16 %v5302_v40, %v5301_v41  ;;  %v833_v24 = vadd.f32 %v11230_v12, %v832_v44  ;;  %v1569_v34 = vpop.f32.mrf.mxu1 }
 0x323   : > { %16080 = vst [vmem:[#allocation268_spill] sm:$0xff] %v11220_v57  ;;  %v16089_v57 = vld [vmem:[#allocation39_spill] sm:$0xff] }
 0x324   : > { %16082 = vst [vmem:[#allocation270_spill] sm:$0xff] %v11225_v0  ;;  %v955_v1 = vmax.f32 %v833_v24, 0.0  ;;  %8522 = vmatmul.msk.bf16.gmra.mxu0 %vm1432_vm11, %v10228_v45  ;;  %v16088_v24 = vld [vmem:[#allocation40_spill] sm:$0xff] }
 0x325   : > { %16084 = vst [vmem:[#allocation272_spill] sm:$0xff] %v11239_v62  ;;  %8543 = vmatmul.msk.bf16.gmra.mxu1 %vm1432_vm11, %v10528_v14  ;;  %v11245_v41 = vpop.f32.mrf.mxu3 }
 0x326   : > { %16085 = vst [vmem:[#allocation273_spill] sm:$0xff] %v11245_v41  ;;  %v1051_v44 = vpack.c.bf16 %v955_v1, %v955_v1  ;;  %v16090_v1 = vpack.c.b16 %v16088_v24, %v16089_v57  ;;  %v3791_v57 = vrot.slane %v10461_v18, 1 }
 0x327   : > { %v1706_v60 = vpop.f32.mrf.mxu2 }
 0x328   : > { %v5303_v0 = vunpack.c.l.b16 %v1051_v44  ;;  %v11247_v28 = vadd.f32 %v1706_v60, %v1566_v32  ;;  %v6275_v45 = vsel %vm9399_vm2, %v1051_v44, 0 }
 0x329   : > { %v834_v48 = vpop.f32.mrf.mxu0  ;;  %v11263_v62 = vunpack.c.l.b16 %v6275_v45 }
 0x32a   : > { %16086 = vst [vmem:[#allocation274_spill] sm:$0xff] %v11247_v28  ;;  %v11249_v54 = vpack.c.b16 %v5303_v0, %v5302_v40  ;;  %v835_v46 = vadd.f32 %v11230_v12, %v834_v48  ;;  %v1571_v61 = vpop.f32.mrf.mxu1  ;;  %8627 = vmatmul.msk.bf16.gmra.mxu3 %vm1432_vm11, %v9698_v4  ;;  %v4608_v40 = vrot.slane %v10481_v11, 3  ;;  %v16152_v28 = vunpack.c.l.b16 %v16151_v19 }
 0x32b   : > { %16092 = vst [vmem:[#allocation39_spill] sm:$0xff] %v11263_v62 }
 0x32c   : > { %16087 = vst [vmem:[#allocation275_spill] sm:$0xff] %v11249_v54  ;;  %v956_v14 = vmax.f32 %v835_v46, 0.0 }
 0x32d   : > { %8560 = vmatmul.msk.bf16.gmra.mxu2 %vm1432_vm11, %v16090_v1  ;;  %v11260_v32 = vpop.f32.mrf.mxu3 }
 0x32e   : > { %16091 = vst [vmem:[#allocation40_spill] sm:$0xff] %v11260_v32  ;;  %v1052_v60 = vpack.c.bf16 %v956_v14, %v956_v14  ;;  %v11274_v14 = vsel %vm1330_vm15, %v3396_v23, %v3398_v43 }
 0x32f   : > { %v1709_v48 = vpop.f32.mrf.mxu2  ;;  %16095 = vst [vmem:[#allocation278_spill] sm:$0xff] %v11274_v14 }
 0x330   : > { %v5304_v4 = vunpack.c.l.b16 %v1052_v60  ;;  %v6276_v44 = vsel %vm9399_vm2, %v1052_v60, 0  ;;  %v11268_v46 = vadd.f32 %v1709_v48, %v1569_v34  ;;  %v11284_v34 = vsel %vm3774_vm8, %v3789_v52, %v3791_v57 }
 0x331   : > { %v11271_v24 = vunpack.c.l.b16 %v6276_v44  ;;  %v837_v1 = vpop.f32.mrf.mxu0  ;;  %16097 = vst [vmem:[#allocation280_spill] sm:$0xff] %v11284_v34  ;;  %v11287_v60 = vsel %vm3311_vm13, %v4606_v25, %v4608_v40 }
 0x332   : > { %16093 = vst [vmem:[#allocation276_spill] sm:$0xff] %v11268_v46  ;;  %v11276_v11 = vpack.c.b16 %v5304_v4, %v5303_v0  ;;  %v838_v45 = vadd.f32 %v11230_v12, %v837_v1  ;;  %v11279_v32 = vpop.f32.mrf.mxu1 }
 0x333   : > { %16094 = vst [vmem:[#allocation277_spill] sm:$0xff] %v11271_v24 }
 0x334   : > { %16096 = vst [vmem:[#allocation279_spill] sm:$0xff] %v11276_v11  ;;  %v957_v48 = vmax.f32 %v838_v45, 0.0  ;;  %8523 = vmatmul.msk.bf16.gmra.mxu0 %vm1432_vm11, %v10312_v22  ;;  %v16102_v45 = vld [vmem:[#allocation43_spill] sm:$0xff] }
 0x335   : > { %16098 = vst [vmem:[#allocation281_spill] sm:$0xff] %v11287_v60  ;;  %8544 = vmatmul.msk.bf16.gmra.mxu1 %vm1432_vm11, %v10576_v5  ;;  %v11293_v23 = vpop.f32.mrf.mxu3 }
 0x336   : > { %16099 = vst [vmem:[#allocation282_spill] sm:$0xff] %v11293_v23  ;;  %v1053_v0 = vpack.c.bf16 %v957_v48, %v957_v48  ;;  %v16103_v48 = vld [vmem:[#allocation42_spill] sm:$0xff] }
 0x337   : > { %v1711_v44 = vpop.f32.mrf.mxu2  ;;  %v16104_v24 = vpack.c.b16 %v16102_v45, %v16103_v48 }
 0x338   : > { %v5305_v1 = vunpack.c.l.b16 %v1053_v0  ;;  %v11295_v11 = vadd.f32 %v1711_v44, %v1571_v61  ;;  %v6277_v22 = vsel %vm9399_vm2, %v1053_v0, 0  ;;  %v4610_v44 = vrot.slane %v10520_v38, 3 }
 0x339   : > { %v839_v41 = vpop.f32.mrf.mxu0 }
 0x33a   : > { %16100 = vst [vmem:[#allocation283_spill] sm:$0xff] %v11295_v11  ;;  %v11297_v52 = vpack.c.b16 %v5305_v1, %v5304_v4  ;;  %v840_v25 = vadd.f32 %v11230_v12, %v839_v41  ;;  %v11300_v62 = vpop.f32.mrf.mxu1  ;;  %8628 = vmatmul.msk.bf16.gmra.mxu3 %vm1432_vm11, %v9734_v55  ;;  %v11313_v41 = vunpack.c.l.b16 %v6277_v22  ;;  %v3400_v55 = vrot.slane %v10505_v51, 7 }
 0x33b   : > { %v11337_v23 = vsel %vm3311_vm13, %v4608_v40, %v4610_v44 }
 0x33c   : > { %16101 = vst [vmem:[#allocation284_spill] sm:$0xff] %v11297_v52  ;;  %v958_v5 = vmax.f32 %v840_v25, 0.0  ;;  %v3793_v25 = vrot.slane %v10505_v51, 1  ;;  %v11324_v48 = vsel %vm1330_vm15, %v3398_v43, %v3400_v55 }
 0x33d   : > { %8561 = vmatmul.msk.bf16.gmra.mxu2 %vm1432_vm11, %v16104_v24  ;;  %v11310_v61 = vpop.f32.mrf.mxu3  ;;  %16106 = vst [vmem:[#allocation42_spill] sm:$0xff] %v11313_v41  ;;  %v16115_v41 = vld [vmem:[#allocation49_spill] sm:$0xff] }
 0x33e   : > { %16105 = vst [vmem:[#allocation43_spill] sm:$0xff] %v11310_v61  ;;  %v1054_v4 = vpack.c.bf16 %v958_v5, %v958_v5  ;;  %v11332_v61 = vsel %vm3774_vm8, %v3791_v57, %v3793_v25 }
 0x33f   : > { %16108 = vst [vmem:[#allocation286_spill] sm:$0xff] %v11324_v48 }
 0x340   : > { %v11315_v60 = vpop.f32.mrf.mxu2  ;;  %v5306_v34 = vunpack.c.l.b16 %v1054_v4  ;;  %v6278_v0 = vsel %vm9399_vm2, %v1054_v4, 0  ;;  %16110 = vst [vmem:[#allocation288_spill] sm:$0xff] %v11332_v61 }
 0x341   : > { %v11321_v45 = vunpack.c.l.b16 %v6278_v0  ;;  %v842_v24 = vpop.f32.mrf.mxu0  ;;  %16111 = vst [vmem:[#allocation289_spill] sm:$0xff] %v11337_v23  ;;  %v4612_v23 = vrot.slane %v10568_v15, 3 }
 0x342   : > { %v11326_v5 = vpack.c.b16 %v5306_v34, %v5305_v1  ;;  %v843_v38 = vadd.f32 %v11230_v12, %v842_v24  ;;  %v11329_v22 = vpop.f32.mrf.mxu1 }
 0x343   : > { %16107 = vst [vmem:[#allocation285_spill] sm:$0xff] %v11321_v45  ;;  %v11387_v52 = vsel %vm3311_vm13, %v4610_v44, %v4612_v23 }
 0x344   : > { %16109 = vst [vmem:[#allocation287_spill] sm:$0xff] %v11326_v5  ;;  %v959_v0 = vmax.f32 %v843_v38, 0.0  ;;  %8524 = vmatmul.msk.bf16.gmra.mxu0 %vm1432_vm11, %v10388_v33  ;;  %v16114_v38 = vld [vmem:[#allocation50_spill] sm:$0xff] }
 0x345   : > { %8545 = vmatmul.msk.bf16.gmra.mxu1 %vm1432_vm11, %v10619_v2  ;;  %v11343_v43 = vpop.f32.mrf.mxu3  ;;  %16123 = vst [vmem:[#allocation296_spill] sm:$0xff] %v11387_v52  ;;  %v16130_v52 = vld [vmem:[#allocation185_spill] sm:$0xff] }
 0x346   : > { %16112 = vst [vmem:[#allocation290_spill] sm:$0xff] %v11343_v43  ;;  %v1055_v1 = vpack.c.bf16 %v959_v0, %v959_v0  ;;  %v16116_v0 = vpack.c.b16 %v16114_v38, %v16115_v41 }
 0x348   : > { %v11345_v24 = vpop.f32.mrf.mxu2  ;;  %v5307_v57 = vunpack.c.l.b16 %v1055_v1  ;;  %v6279_v33 = vsel %vm9399_vm2, %v1055_v1, 0  ;;  %v3795_v1 = vrot.slane %v10546_v37, 1 }
 0x349   : > { %v844_v61 = vpop.f32.mrf.mxu0 }
 0x34a   : > { %v11347_v5 = vpack.c.b16 %v5307_v57, %v5306_v34  ;;  %v845_v4 = vadd.f32 %v11230_v12, %v844_v61  ;;  %v11350_v40 = vpop.f32.mrf.mxu1  ;;  %8629 = vmatmul.msk.bf16.gmra.mxu3 %vm1432_vm11, %v15910_v20  ;;  %v11363_v61 = vunpack.c.l.b16 %v6279_v33  ;;  %v3402_v20 = vrot.slane %v10546_v37, 7 }
 0x34c   : > { %16113 = vst [vmem:[#allocation291_spill] sm:$0xff] %v11347_v5  ;;  %v960_v2 = vmax.f32 %v845_v4, 0.0 }
 0x34d   : > { %8562 = vmatmul.msk.bf16.gmra.mxu2 %vm1432_vm11, %v16116_v0  ;;  %v11360_v45 = vpop.f32.mrf.mxu3  ;;  %16118 = vst [vmem:[#allocation49_spill] sm:$0xff] %v11363_v61  ;;  %v11374_v0 = vsel %vm1330_vm15, %v3400_v55, %v3402_v20  ;;  %v16127_v61 = vld [vmem:[#allocation54_spill] sm:$0xff] }
 0x34e   : > { %16117 = vst [vmem:[#allocation50_spill] sm:$0xff] %v11360_v45  ;;  %v1056_v34 = vpack.c.bf16 %v960_v2, %v960_v2  ;;  %v11382_v45 = vsel %vm3774_vm8, %v3793_v25, %v3795_v1 }
 0x34f   : > { %16120 = vst [vmem:[#allocation293_spill] sm:$0xff] %v11374_v0  ;;  %v16132_v0 = vld [vmem:[#allocation181_spill] sm:$0xff] }
 0x350   : > { %v11365_v43 = vpop.f32.mrf.mxu2  ;;  %v5308_v5 = vunpack.c.l.b16 %v1056_v34  ;;  %v6280_v4 = vsel %vm9399_vm2, %v1056_v34, 0  ;;  %16122 = vst [vmem:[#allocation295_spill] sm:$0xff] %v11382_v45 }
 0x351   : > { %v11371_v41 = vunpack.c.l.b16 %v6280_v4  ;;  %v847_v38 = vpop.f32.mrf.mxu0 }
 0x352   : > { %v11376_v2 = vpack.c.b16 %v5308_v5, %v5307_v57  ;;  %v848_v15 = vadd.f32 %v11230_v12, %v847_v38  ;;  %v11379_v33 = vpop.f32.mrf.mxu1 }
 0x353   : > { %16119 = vst [vmem:[#allocation292_spill] sm:$0xff] %v11371_v41 }
 0x354   : > { %16121 = vst [vmem:[#allocation294_spill] sm:$0xff] %v11376_v2  ;;  %v961_v4 = vmax.f32 %v848_v15, 0.0  ;;  %8525 = vmatmul.msk.bf16.gmra.mxu0 %vm1432_vm11, %v10435_v27  ;;  %v16126_v15 = vld [vmem:[#allocation55_spill] sm:$0xff] }
 0x355   : > { %8546 = vmatmul.msk.bf16.gmra.mxu1 %vm1432_vm11, %v10662_v29  ;;  %v11393_v55 = vpop.f32.mrf.mxu3 }
 0x356   : > { %16124 = vst [vmem:[#allocation297_spill] sm:$0xff] %v11393_v55  ;;  %v1057_v57 = vpack.c.bf16 %v961_v4, %v961_v4  ;;  %v16128_v4 = vpack.c.b16 %v16126_v15, %v16127_v61 }
 0x358   : > { %v11395_v38 = vpop.f32.mrf.mxu2  ;;  %v5309_v25 = vunpack.c.l.b16 %v1057_v57  ;;  %v6281_v27 = vsel %vm9399_vm2, %v1057_v57, 0  ;;  %v3797_v57 = vrot.slane %v16132_v0, 1 }
 0x359   : > { %v849_v45 = vpop.f32.mrf.mxu0 }
 0x35a   : > { %v11397_v2 = vpack.c.b16 %v5309_v25, %v5308_v5  ;;  %v850_v34 = vadd.f32 %v11230_v12, %v849_v45  ;;  %v11400_v44 = vpop.f32.mrf.mxu1  ;;  %8630 = vmatmul.msk.bf16.gmra.mxu3 %vm1432_vm11, %v15922_v56  ;;  %v11413_v45 = vunpack.c.l.b16 %v6281_v27  ;;  %v3404_v56 = vrot.slane %v16132_v0, 7 }
 0x35c   : > { %16125 = vst [vmem:[#allocation298_spill] sm:$0xff] %v11397_v2  ;;  %v962_v29 = vmax.f32 %v850_v34, 0.0  ;;  %v4614_v2 = vrot.slane %v16130_v52, 3 }
 0x35d   : > { %8563 = vmatmul.msk.bf16.gmra.mxu2 %vm1432_vm11, %v16128_v4  ;;  %v11410_v41 = vpop.f32.mrf.mxu3  ;;  %16131 = vst [vmem:[#allocation54_spill] sm:$0xff] %v11413_v45  ;;  %v11424_v4 = vsel %vm1330_vm15, %v3402_v20, %v3404_v56  ;;  %v16138_v20 = vld [vmem:[#allocation65_spill] sm:$0xff] }
 0x35e   : > { %16129 = vst [vmem:[#allocation55_spill] sm:$0xff] %v11410_v41  ;;  %v1058_v5 = vpack.c.bf16 %v962_v29, %v962_v29  ;;  %v11432_v41 = vsel %vm3774_vm8, %v3795_v1, %v3797_v57  ;;  %v11437_v54 = vsel %vm3311_vm13, %v4612_v23, %v4614_v2  ;;  %v16140_v23 = vld [vmem:[#allocation70_spill] sm:$0xff] }
 0x35f   : > { %16134 = vst [vmem:[#allocation299_spill] sm:$0xff] %v11424_v4 }
 0x360   : > { %v11415_v55 = vpop.f32.mrf.mxu2  ;;  %v5310_v48 = vunpack.c.l.b16 %v1058_v5  ;;  %v6282_v34 = vsel %vm9399_vm2, %v1058_v5, 0  ;;  %16136 = vst [vmem:[#allocation301_spill] sm:$0xff] %v11432_v41 }
 0x361   : > { %v11421_v61 = vunpack.c.l.b16 %v6282_v34  ;;  %v852_v15 = vpop.f32.mrf.mxu0  ;;  %16137 = vst [vmem:[#allocation302_spill] sm:$0xff] %v11437_v54 }
 0x362   : > { %v11426_v29 = vpack.c.b16 %v5310_v48, %v5309_v25  ;;  %v853_v52 = vadd.f32 %v11230_v12, %v852_v15  ;;  %v11429_v27 = vpop.f32.mrf.mxu1 }
 0x363   : > { %16133 = vst [vmem:[#allocation185_spill] sm:$0xff] %v11421_v61  ;;  %v16142_v61 = vld [vmem:[#allocation60_spill] sm:$0xff] }
 0x364   : > { %16135 = vst [vmem:[#allocation300_spill] sm:$0xff] %v11426_v29  ;;  %v963_v34 = vmax.f32 %v853_v52, 0.0  ;;  %8526 = vmatmul.msk.bf16.gmra.mxu0 %vm1432_vm11, %v10479_v26 }
 0x365   : > { %8547 = vmatmul.msk.bf16.gmra.mxu1 %vm1432_vm11, %v16138_v20  ;;  %v11443_v25 = vpop.f32.mrf.mxu3  ;;  %v16141_v20 = vld [vmem:[#allocation61_spill] sm:$0xff] }
 0x366   : > { %16139 = vst [vmem:[#allocation65_spill] sm:$0xff] %v11443_v25  ;;  %v1059_v15 = vpack.c.bf16 %v963_v34, %v963_v34  ;;  %v16143_v54 = vpack.c.b16 %v16141_v20, %v16142_v61 }
 0x368   : > { %v11445_v29 = vpop.f32.mrf.mxu2  ;;  %v5311_v1 = vunpack.c.l.b16 %v1059_v15  ;;  %v6283_v26 = vsel %vm9399_vm2, %v1059_v15, 0 }
 0x369   : > { %v854_v41 = vpop.f32.mrf.mxu0  ;;  %v11461_v11 = vunpack.c.l.b16 %v6283_v26 }
 0x36a   : > { %v6700_v4 = vpack.c.b16 %v5311_v1, %v5310_v48  ;;  %v855_v5 = vadd.f32 %v11230_v12, %v854_v41  ;;  %v11448_v45 = vpop.f32.mrf.mxu1  ;;  %8631 = vmatmul.msk.bf16.gmra.mxu3 %vm1432_vm11, %v16140_v23  ;;  %v16145_v12 = vld [vmem:[#allocation191_spill] sm:$0xff]  ;;  %v16147_v23 = vld [vmem:[#allocation188_spill] sm:$0xff] }
 0x36b   : > { %v4616_v41 = vrot.slane %v16145_v12, 3  ;;  %16146 = vst [vmem:[#allocation61_spill] sm:$0xff] %v11461_v11  ;;  %v3406_v46 = vrot.slane %v16147_v23, 7  ;;  %v3799_v61 = vrot.slane %v16147_v23, 1 }
 0x36c   : > { %v964_v52 = vmax.f32 %v855_v5, 0.0  ;;  %v6774_v34 = vshrl.u32 %v6700_v4, 16  ;;  %v6777_v48 = vshll.u32 %v6700_v4, 16  ;;  %v3484_v4 = vsel %vm9968_vm7, %v10828_v17, 0 }
 0x36d   : > { %8564 = vmatmul.msk.bf16.gmra.mxu2 %vm1432_vm11, %v16143_v54  ;;  %v11458_v25 = vpop.f32.mrf.mxu3  ;;  %v11475_v26 = vsel %vm1330_vm15, %v3404_v56, %v3406_v46  ;;  %v11490_v42 = vsel %vm3311_vm13, %v4614_v2, %v4616_v41 }
 0x36e   : > { %16144 = vst [vmem:[#allocation70_spill] sm:$0xff] %v11458_v25  ;;  %v1060_v14 = vpack.c.bf16 %v964_v52, %v964_v52  ;;  %v6776_v54 = vrot.slane %v6774_v34, 2  ;;  %v6779_v52 = vrot.slane %v6777_v48, 3 }
 0x36f   : > { %16149 = vst [vmem:[#allocation191_spill] sm:$0xff] %v11475_v26  ;;  %v16218_v26 = vld [vmem:[#allocation224_spill] sm:$0xff] }
 0x370   : > { %v11463_v0 = vpop.f32.mrf.mxu2  ;;  %v5312_v15 = vunpack.c.l.b16 %v1060_v14  ;;  %v6284_v5 = vsel %vm9399_vm2, %v1060_v14, 0  ;;  %v16153_v14 = vld [vmem:[#allocation171_spill] sm:$0xff]  ;;  %v11501_v34 = vor.u32 %v6779_v52, %v6776_v54  ;;  %v16165_v52 = vld [vmem:[#allocation76_spill] sm:$0xff] }
 0x371   : > { %v11469_v20 = vunpack.c.l.b16 %v6284_v5  ;;  %v1888_v25 = vpop.f32.mrf.mxu0  ;;  %v11487_v5 = vsel %vm3774_vm8, %v3797_v57, %v3799_v61  ;;  %16155 = vst [vmem:[#allocation171_spill] sm:$0xff] %v11490_v42  ;;  %v16158_v57 = vld [vmem:[#allocation59_spill] sm:$0xff] }
 0x372   : > { %v11477_v12 = vpack.c.b16 %v5312_v15, %v5311_v1  ;;  %v6701_v35 = vpack.c.b16 %v16152_v28, %v5312_v15  ;;  %v1968_v37 = vadd.f32 %v1888_v25, %v16153_v14  ;;  %v11482_v23 = vpop.f32.mrf.mxu1  ;;  %16154 = vst [vmem:[#allocation100_spill] sm:$0xff] %v11487_v5  ;;  %v16156_v25 = vld [vmem:[#allocation71_spill] sm:$0xff] }
 0x373   : > { %16148 = vst [vmem:[#allocation60_spill] sm:$0xff] %v11469_v20 }
 0x374   : > { %16150 = vst [vmem:[#allocation303_spill] sm:$0xff] %v11477_v12  ;;  %v6783_v48 = vshrl.u32 %v6701_v35, 16  ;;  %v6786_v19 = vshll.u32 %v6701_v35, 16  ;;  %8639 = vmatmul.msk.bf16.vlgmr.msra.gmra.mxu0 %vm1432_vm11, %v3484_v4  ;;  %v2102_v28 = vadd.f32 %v11279_v32, %v1968_v37  ;;  %v16160_v4 = vshrl.u32 %v11477_v12, 16 }
 0x375   : > { %8548 = vmatmul.msk.bf16.gmra.mxu1 %vm1432_vm11, %v16156_v25  ;;  %v11498_v15 = vpop.f32.mrf.mxu3  ;;  %4980 = vmatpush.bf16.msra.mxu0 %v16158_v57  ;;  %16159 = vst [vmem:[#allocation304_spill] sm:$0xff] %v11501_v34  ;;  %v16161_v37 = vshll.u32 %v11477_v12, 16 }
 0x376   : > { %16157 = vst [vmem:[#allocation71_spill] sm:$0xff] %v11498_v15  ;;  %v6785_v14 = vrot.slane %v6783_v48, 2  ;;  %v6788_v2 = vrot.slane %v6786_v19, 3  ;;  %v11506_v1 = vadd.f32 %v11315_v60, %v2102_v28  ;;  %v5429_v35 = vrot.slane %v16160_v4, 6  ;;  %v16164_v48 = vld [vmem:[#allocation176_spill] sm:$0xff]  ;;  %v16167_v28 = vld [vmem:[#allocation134_spill] sm:$0xff] }
 0x377   : > { %v5432_v32 = vrot.slane %v16161_v37, 7  ;;  %v16169_v4 = vld [vmem:[#allocation67_spill] sm:$0xff] }
 0x378   : > { %v11503_v56 = vpop.f32.mrf.mxu2  ;;  %v11512_v25 = vor.u32 %v6788_v2, %v6785_v14 }
 0x379   : > { %v1890_v11 = vpop.f32.mrf.mxu0  ;;  %v11514_v20 = vor.u32 %v5432_v32, %v5429_v35  ;;  %v16170_v35 = vld [vmem:[#allocation66_spill] sm:$0xff] }
 0x37a   : > { %16162 = vst [vmem:[#allocation305_spill] sm:$0xff] %v11512_v25  ;;  %v1969_v19 = vadd.f32 %v1890_v11, %v16164_v48  ;;  %v11517_v54 = vpop.f32.mrf.mxu1  ;;  %8632 = vmatmul.msk.bf16.gmra.mxu3 %vm1432_vm11, %v16165_v52  ;;  %v11524_v60 = vsel %vm5224_vm1, %v11501_v34, %v11512_v25  ;;  %v16171_v11 = vpack.c.b16 %v16169_v4, %v16170_v35  ;;  %v16173_v32 = vld [vmem:[#allocation198_spill] sm:$0xff]  ;;  %v16174_v25 = vld [vmem:[#allocation195_spill] sm:$0xff]  ;;  %v3485_v4 = vsel %vm9968_vm7, %v10879_v53, 0 }
 0x37b   : > { %16163 = vst [vmem:[#allocation306_spill] sm:$0xff] %v11514_v20  ;;  %v11529_v14 = vsel %vm5327_vm9, %v11514_v20, %v16167_v28  ;;  %v4618_v48 = vrot.slane %v16173_v32, 3  ;;  %v16176_v35 = vld [vmem:[#allocation179_spill] sm:$0xff] }
 0x37c   : > { %16166 = vst [vmem:[#allocation176_spill] sm:$0xff] %v11524_v60  ;;  %v2103_v2 = vadd.f32 %v11300_v62, %v1969_v19  ;;  %v3408_v60 = vrot.slane %v16174_v25, 7  ;;  %v3801_v62 = vrot.slane %v16174_v25, 1 }
 0x37d   : > { %16168 = vst [vmem:[#allocation76_spill] sm:$0xff] %v11529_v14  ;;  %8565 = vmatmul.msk.bf16.gmra.mxu2 %vm1432_vm11, %v16171_v11  ;;  %v11536_v37 = vpop.f32.mrf.mxu3  ;;  %v16179_v14 = vld [vmem:[#allocation78_spill] sm:$0xff] }
 0x37e   : > { %16172 = vst [vmem:[#allocation134_spill] sm:$0xff] %v11536_v37  ;;  %v11540_v52 = vadd.f32 %v11345_v24, %v2103_v2  ;;  %v11546_v28 = vsel %vm1330_vm15, %v3406_v46, %v3408_v60  ;;  %v11556_v24 = vsel %vm3774_vm8, %v3799_v61, %v3801_v62  ;;  %v11559_v2 = vsel %vm3311_vm13, %v4616_v41, %v4618_v48  ;;  %v16181_v61 = vld [vmem:[#allocation184_spill] sm:$0xff]  ;;  %v16182_v41 = vld [vmem:[#allocation85_spill] sm:$0xff] }
 0x37f   : > { %16175 = vst [vmem:[#allocation67_spill] sm:$0xff] %v11546_v28 }
 0x380   : > { %v11543_v57 = vpop.f32.mrf.mxu2  ;;  %16177 = vst [vmem:[#allocation66_spill] sm:$0xff] %v11556_v24 }
 0x381   : > { %v1893_v19 = vpop.f32.mrf.mxu0  ;;  %16178 = vst [vmem:[#allocation198_spill] sm:$0xff] %v11559_v2 }
 0x382   : > { %v1970_v11 = vadd.f32 %v1893_v19, %v16176_v35  ;;  %v11553_v32 = vpop.f32.mrf.mxu1 }
 0x384   : > { %v2104_v46 = vadd.f32 %v11329_v22, %v1970_v11  ;;  %8640 = vmatmul.msk.bf16.gmra.mxu0 %vm1432_vm11, %v3485_v4  ;;  %v16183_v4 = vld [vmem:[#allocation73_spill] sm:$0xff]  ;;  %v16184_v11 = vld [vmem:[#allocation72_spill] sm:$0xff] }
 0x385   : > { %8549 = vmatmul.msk.bf16.gmra.mxu1 %vm1432_vm11, %v16179_v14  ;;  %v11565_v12 = vpop.f32.mrf.mxu3  ;;  %v16185_v14 = vpack.c.b16 %v16183_v4, %v16184_v11  ;;  %v16190_v4 = vld [vmem:[#allocation186_spill] sm:$0xff] }
 0x386   : > { %16180 = vst [vmem:[#allocation195_spill] sm:$0xff] %v11565_v12  ;;  %v11568_v42 = vadd.f32 %v11365_v43, %v2104_v46  ;;  %v16187_v43 = vld [vmem:[#allocation206_spill] sm:$0xff]  ;;  %v16196_v12 = vld [vmem:[#allocation223_spill] sm:$0xff] }
 0x387   : > { %v4620_v46 = vrot.slane %v16187_v43, 3  ;;  %v16193_v43 = vld [vmem:[#allocation86_spill] sm:$0xff] }
 0x388   : > { %v11570_v19 = vpop.f32.mrf.mxu2 }
 0x389   : > { %v1895_v35 = vpop.f32.mrf.mxu0 }
 0x38a   : > { %v1971_v24 = vadd.f32 %v1895_v35, %v16181_v61  ;;  %v11573_v5 = vpop.f32.mrf.mxu1  ;;  %8633 = vmatmul.msk.bf16.gmra.mxu3 %vm1432_vm11, %v16182_v41  ;;  %v16188_v35 = vld [vmem:[#allocation203_spill] sm:$0xff] }
 0x38b   : > { %v3410_v61 = vrot.slane %v16188_v35, 7 }
 0x38c   : > { %v2105_v22 = vadd.f32 %v11350_v40, %v1971_v24  ;;  %v3803_v40 = vrot.slane %v16188_v35, 1 }
 0x38d   : > { %8566 = vmatmul.msk.bf16.gmra.mxu2 %vm1432_vm11, %v16185_v14  ;;  %v11582_v2 = vpop.f32.mrf.mxu3  ;;  %v11592_v41 = vsel %vm1330_vm15, %v3408_v60, %v3410_v61 }
 0x38e   : > { %16186 = vst [vmem:[#allocation179_spill] sm:$0xff] %v11582_v2  ;;  %v11586_v53 = vadd.f32 %v11395_v38, %v2105_v22  ;;  %v11599_v2 = vsel %vm3774_vm8, %v3801_v62, %v3803_v40  ;;  %v11602_v38 = vsel %vm3311_vm13, %v4618_v48, %v4620_v46  ;;  %v3486_v22 = vsel %vm10036_vm5, %v10045_v3, 0 }
 0x38f   : > { %16189 = vst [vmem:[#allocation78_spill] sm:$0xff] %v11592_v41 }
 0x390   : > { %v11589_v20 = vpop.f32.mrf.mxu2  ;;  %16191 = vst [vmem:[#allocation184_spill] sm:$0xff] %v11599_v2 }
 0x391   : > { %v1898_v24 = vpop.f32.mrf.mxu0  ;;  %16192 = vst [vmem:[#allocation85_spill] sm:$0xff] %v11602_v38  ;;  %v16195_v38 = vld [vmem:[#allocation190_spill] sm:$0xff] }
 0x392   : > { %v1972_v11 = vadd.f32 %v1898_v24, %v16190_v4  ;;  %v11596_v14 = vpop.f32.mrf.mxu1 }
 0x394   : > { %v2106_v60 = vadd.f32 %v11379_v33, %v1972_v11  ;;  %8641 = vmatmul.msk.bf16.gmra.mxu0 %vm1432_vm11, %v3486_v22  ;;  %v16197_v11 = vld [vmem:[#allocation81_spill] sm:$0xff]  ;;  %v16198_v22 = vld [vmem:[#allocation80_spill] sm:$0xff] }
 0x395   : > { %8550 = vmatmul.msk.bf16.gmra.mxu1 %vm1432_vm11, %v16193_v43  ;;  %v11611_v24 = vpop.f32.mrf.mxu3  ;;  %v16199_v43 = vpack.c.b16 %v16197_v11, %v16198_v22  ;;  %v16204_v11 = vld [vmem:[#allocation193_spill] sm:$0xff] }
 0x396   : > { %16194 = vst [vmem:[#allocation73_spill] sm:$0xff] %v11611_v24  ;;  %v11614_v4 = vadd.f32 %v11415_v55, %v2106_v60  ;;  %v16201_v55 = vld [vmem:[#allocation215_spill] sm:$0xff] }
 0x397   : > { %v3312_v60 = vrot.slane %v16201_v55, 3 }
 0x398   : > { %v11616_v62 = vpop.f32.mrf.mxu2 }
 0x399   : > { %v1900_v48 = vpop.f32.mrf.mxu0 }
 0x39a   : > { %v1973_v2 = vadd.f32 %v1900_v48, %v16195_v38  ;;  %v11619_v41 = vpop.f32.mrf.mxu1  ;;  %8634 = vmatmul.msk.bf16.gmra.mxu3 %vm1432_vm11, %v16196_v12  ;;  %v16202_v38 = vld [vmem:[#allocation211_spill] sm:$0xff] }
 0x39b   : > { %v15623_v48 = vrot.slane %v16202_v38, 7  ;;  %v3805_v12 = vrot.slane %v16202_v38, 1 }
 0x39c   : > { %v2107_v33 = vadd.f32 %v11400_v44, %v1973_v2 }
 0x39d   : > { %8567 = vmatmul.msk.bf16.gmra.mxu2 %vm1432_vm11, %v16199_v43  ;;  %v11628_v24 = vpop.f32.mrf.mxu3  ;;  %v11640_v44 = vsel %vm1330_vm15, %v3410_v61, %v15623_v48  ;;  %v11647_v55 = vsel %vm3774_vm8, %v3803_v40, %v3805_v12  ;;  %v16207_v48 = vld [vmem:[#allocation95_spill] sm:$0xff] }
 0x39e   : > { %16200 = vst [vmem:[#allocation72_spill] sm:$0xff] %v11628_v24  ;;  %v11632_v28 = vadd.f32 %v11445_v29, %v2107_v33  ;;  %v11650_v29 = vsel %vm3311_vm13, %v4620_v46, %v3312_v60  ;;  %v3487_v33 = vsel %vm10036_vm5, %v10113_v63, 0  ;;  %v16217_v63 = vld [vmem:[#allocation37_spill] sm:$0xff] }
 0x39f   : > { %16203 = vst [vmem:[#allocation206_spill] sm:$0xff] %v11640_v44 }
 0x3a0   : > { %v11635_v34 = vpop.f32.mrf.mxu2  ;;  %16205 = vst [vmem:[#allocation203_spill] sm:$0xff] %v11647_v55  ;;  %v16212_v55 = vld [vmem:[#allocation197_spill] sm:$0xff] }
 0x3a1   : > { %v1903_v2 = vpop.f32.mrf.mxu0  ;;  %16206 = vst [vmem:[#allocation186_spill] sm:$0xff] %v11650_v29 }
 0x3a2   : > { %v1974_v22 = vadd.f32 %v1903_v2, %v16204_v11  ;;  %v11644_v43 = vpop.f32.mrf.mxu1  ;;  %v2004_v2 = vsel %vm10082_vm4, %v16207_v48, 0 }
 0x3a4   : > { %v2108_v61 = vadd.f32 %v11429_v27, %v1974_v22  ;;  %8642 = vmatmul.msk.bf16.gmra.mxu0 %vm1432_vm11, %v3487_v33  ;;  %v3048_v27 = vsel %vm9692_vm12, %v11055_v30, 0  ;;  %v16211_v22 = vld [vmem:[#allocation213_spill] sm:$0xff]  ;;  %v3282_v30 = vadd.s32 4294967294, %v16217_v63 }
 0x3a5   : > { %8551 = vmatmul.msk.bf16.gmra.mxu1 %vm1432_vm11, %v2004_v2  ;;  %v11661_v11 = vpop.f32.mrf.mxu3  ;;  %v3779_v33 = vpack.c.b16 %v16211_v22, %v16211_v22  ;;  %v15625_v22 = vrot.slane %v16218_v26, 3 }
 0x3a6   : > { %16209 = vst [vmem:[#allocation86_spill] sm:$0xff] %v11661_v11  ;;  %v11664_v40 = vadd.f32 %v11463_v0, %v2108_v61  ;;  %v16213_v0 = vld [vmem:[#allocation88_spill] sm:$0xff]  ;;  %v16214_v61 = vld [vmem:[#allocation87_spill] sm:$0xff]  ;;  %vm3284_vm2 = vcmp.ge.s32.totalorder %v3282_v30, 0 }
 0x3a7   : > { %v16215_v11 = vpack.c.b16 %v16213_v0, %v16214_v61  ;;  %v3807_v15 = vrot.slane %v3779_v33, 1  ;;  %v11698_v33 = vsel %vm3311_vm13, %v3312_v60, %v15625_v22  ;;  %v16224_v30 = vld [vmem:[#allocation23_spill] sm:$0xff]  ;;  %v16225_v60 = vrot.slane %v10828_v17, 1  ;;  %vm3436_vm12 = vmpackc.low %vm3284_vm2, %vm3284_vm2 }
 0x3a8   : > { %v11666_v46 = vpop.f32.mrf.mxu2  ;;  %16221 = vst [vmem:[#allocation223_spill] sm:$0xff] %v11698_v33 }
 0x3a9   : > { %v1905_v29 = vpop.f32.mrf.mxu0 }
 0x3aa   : > { %v1975_v24 = vadd.f32 %v1905_v29, %v16212_v55  ;;  %v11674_v48 = vpop.f32.mrf.mxu1  ;;  %8635 = vmatmul.msk.bf16.gmra.mxu3 %vm1432_vm11, %v3048_v27  ;;  %v11706_v27 = vsel %vm10036_vm5, %v16036_v7, 0 }
 0x3ab   : > { %16223 = vst [vmem:[#allocation80_spill] sm:$0xff] %v11706_v27 }
 0x3ac   : > { %v2109_v2 = vadd.f32 %v11448_v45, %v1975_v24  ;;  %v16219_v24 = vld [vmem:[#allocation107_spill] sm:$0xff] }
 0x3ad   : > { %8568 = vmatmul.msk.bf16.gmra.mxu2 %vm1432_vm11, %v16215_v11  ;;  %v11682_v37 = vpop.f32.mrf.mxu3  ;;  %v1984_v0 = vadd.f32 %v16219_v24, %v10923_v50  ;;  %v16220_v11 = vld [vmem:[#allocation201_spill] sm:$0xff] }
 0x3ae   : > { %16216 = vst [vmem:[#allocation190_spill] sm:$0xff] %v11682_v37  ;;  %v11687_v55 = vadd.f32 %v11503_v56, %v2109_v2  ;;  %v11701_v56 = vsel %vm3774_vm8, %v3805_v12, %v3807_v15  ;;  %v11717_v15 = vsel %vm3774_vm8, %v3805_v12, %v16225_v60  ;;  %v16230_v12 = vld [vmem:[#allocation18_spill] sm:$0xff] }
 0x3af   : > { %16222 = vst [vmem:[#allocation81_spill] sm:$0xff] %v11701_v56  ;;  %v3049_v60 = vsel %vm9968_vm7, %v16230_v12, 0  ;;  %v16232_v56 = vld [vmem:[#allocation111_spill] sm:$0xff] }
 0x3b0   : > { %v11689_v29 = vpop.f32.mrf.mxu2  ;;  %16226 = vst [vmem:[#allocation215_spill] sm:$0xff] %v11717_v15 }
 0x3b1   : > { %v1908_v45 = vpop.f32.mrf.mxu0 }
 0x3b2   : > { %v1976_v61 = vadd.f32 %v1908_v45, %v16220_v11  ;;  %v2062_v37 = vpop.f32.mrf.mxu1  ;;  %v2717_v45 = vsel %vm10082_vm4, %v16224_v30, 0  ;;  %v16229_v30 = vld [vmem:[#allocation112_spill] sm:$0xff] }
 0x3b3   : > { %v2118_v2 = vadd.f32 %v2062_v37, %v1984_v0  ;;  %v16228_v0 = vmov 0   ;;  %v1985_v22 = vadd.f32 %v16229_v30, %v10948_v58  ;;  %v16234_v58 = vld [vmem:[#allocation227_spill] sm:$0xff] }
 0x3b4   : > { %v2110_v50 = vadd.f32 %v11482_v23, %v1976_v61  ;;  %8643 = vmatmul.msk.bf16.gmra.mxu0 %vm1432_vm11, %v11706_v27  ;;  %v16227_v23 = vld [vmem:[#allocation84_spill] sm:$0xff]  ;;  %v3438_v11 = vsel %vm3436_vm12, 65537, %v16228_v0  ;;  %v16233_v27 = vld [vmem:[#allocation218_spill] sm:$0xff]  ;;  %v3310_v30 = vpack.c.b16 %v16234_v58, %v16234_v58 }
 0x3b5   : > { %8587 = vmatmul.msk.bf16.vlgmr.msrb.gmra.mxu1 %vm1432_vm11, %v2717_v45  ;;  %v11720_v37 = vpop.f32.mrf.mxu3  ;;  %v16231_v45 = vld [vmem:[#allocation205_spill] sm:$0xff] }
 0x3b6   : > { %v11723_v7 = vadd.f32 %v11543_v57, %v2110_v50  ;;  %4473 = vmatpush.bf16.msrb.mxu1 %v16227_v23  ;;  %v3440_v57 = vunpack.c.l.b16 %v3438_v11 }
 0x3b8   : > { %v11726_v24 = vpop.f32.mrf.mxu2 }
 0x3b9   : > { %v1910_v61 = vpop.f32.mrf.mxu0 }
 0x3ba   : > { %v1977_v63 = vadd.f32 %v1910_v61, %v16231_v45  ;;  %v2064_v15 = vpop.f32.mrf.mxu1  ;;  %8636 = vmatmul.msk.bf16.gmra.mxu3 %vm1432_vm11, %v3049_v60  ;;  %v8637_v61 = vunpack.i.l.s16 %v3440_v57 }
 0x3bb   : > { %v2119_v50 = vadd.f32 %v2064_v15, %v1985_v22  ;;  %v11751_v15 = vrot.slane %v3310_v30, 3 }
 0x3bc   : > { %v2111_v23 = vadd.f32 %v11517_v54, %v1977_v63  ;;  %v16235_v54 = vld [vmem:[#allocation116_spill] sm:$0xff] }
 0x3bd   : > { %8604 = vmatmul.msk.bf16.vlgmr.msra.gmra.mxu2 %vm1432_vm11, %v16232_v56  ;;  %v11739_v0 = vpop.f32.mrf.mxu3  ;;  %v1986_v63 = vadd.f32 %v16235_v54, %v10969_v21  ;;  %v16236_v56 = vld [vmem:[#allocation209_spill] sm:$0xff] }
 0x3be   : > { %4706 = vmatpush.bf16.msra.mxu2 %v16233_v27  ;;  %v11745_v12 = vadd.f32 %v11570_v19, %v2111_v23  ;;  %v16237_v27 = vld [vmem:[#allocation44_spill] sm:$0xff]  ;;  %v11758_v19 = vsel %vm10036_vm5, %v10281_v8, 0  ;;  %v16239_v23 = vld [vmem:[#allocation26_spill] sm:$0xff]  ;;  %v16244_v8 = vrot.slane %v10045_v3, 7 }
 0x3bf   : > { %vm3447_vm2 = vcmp.ne.s32.totalorder %v8637_v61, %v16237_v27  ;;  %16238 = vst [vmem:[#allocation211_spill] sm:$0xff] %v11758_v19  ;;  %v2718_v21 = vsel %vm10082_vm4, %v16239_v23, 0  ;;  %v16248_v23 = vld [vmem:[#allocation214_spill] sm:$0xff] }
 0x3c0   : > { %v2348_v45 = vpop.f32.mrf.mxu2  ;;  %vm11772_vm12 = vmpackc.low %vm1360_vm3, %vm3447_vm2  ;;  %v16252_v27 = vld [vmem:[#allocation130_spill] sm:$0xff] }
 0x3c1   : > { %v11747_v60 = vadd.f32 %v2348_v45, %v2118_v2  ;;  %v1913_v22 = vpop.f32.mrf.mxu0 }
 0x3c2   : > { %v1978_v11 = vadd.f32 %v1913_v22, %v16236_v56  ;;  %v2067_v26 = vpop.f32.mrf.mxu1 }
 0x3c3   : > { %v2120_v33 = vadd.f32 %v2067_v26, %v1986_v63  ;;  %v16246_v63 = vld [vmem:[#allocation122_spill] sm:$0xff] }
 0x3c4   : > { %v2112_v2 = vadd.f32 %v11553_v32, %v1978_v11  ;;  %8644 = vmatmul.msk.bf16.gmra.mxu0 %vm1432_vm11, %v11758_v19  ;;  %v11780_v32 = vsel %vm1330_vm15, %v11751_v15, %v16244_v8  ;;  %v1987_v56 = vadd.f32 %v16246_v63, %v10983_v47  ;;  %v16250_v8 = vld [vmem:[#allocation121_spill] sm:$0xff] }
 0x3c5   : > { %8588 = vmatmul.msk.bf16.gmra.mxu1 %vm1432_vm11, %v2718_v21  ;;  %v11767_v57 = vpop.f32.mrf.mxu3  ;;  %16245 = vst [vmem:[#allocation193_spill] sm:$0xff] %v11780_v32  ;;  %v11792_v11 = vsel %vm11772_vm12, %v11780_v32, 0 }
 0x3c6   : > { %v11783_v61 = vadd.f32 %v11589_v20, %v2112_v2  ;;  %16247 = vst [vmem:[#allocation95_spill] sm:$0xff] %v11792_v11  ;;  %v16249_v2 = vld [vmem:[#allocation36_spill] sm:$0xff] }
 0x3c8   : > { %v2350_v45 = vpop.f32.mrf.mxu2 }
 0x3c9   : > { %v11785_v22 = vadd.f32 %v2350_v45, %v2119_v50  ;;  %v1915_v54 = vpop.f32.mrf.mxu0 }
 0x3ca   : > { %v1979_v21 = vadd.f32 %v1915_v54, %v16248_v23  ;;  %v2069_v19 = vpop.f32.mrf.mxu1  ;;  %8689 = vmatmul.msk.bf16.vlgmr.msrb.gmra.mxu3 %vm1432_vm11, %v11792_v11  ;;  %v16251_v23 = vld [vmem:[#allocation243_spill] sm:$0xff] }
 0x3cb   : > { %v2121_v20 = vadd.f32 %v2069_v19, %v1987_v56  ;;  %5999 = vmatpush.bf16.msrb.mxu3 %v16249_v2  ;;  %v1988_v58 = vadd.f32 %v16252_v27, %v16251_v23  ;;  %v16253_v19 = vld [vmem:[#allocation219_spill] sm:$0xff]  ;;  %v16259_v23 = vld [vmem:[#allocation245_spill] sm:$0xff] }
 0x3cc   : > { %v2113_v50 = vadd.f32 %v11573_v5, %v1979_v21  ;;  %v11814_v5 = vsel %vm10036_vm5, %v10364_v59, 0 }
 0x3cd   : > { %8605 = vmatmul.msk.bf16.gmra.mxu2 %vm1432_vm11, %v16250_v8  ;;  %v11801_v47 = vpop.f32.mrf.mxu3  ;;  %16254 = vst [vmem:[#allocation105_spill] sm:$0xff] %v11814_v5 }
 0x3ce   : > { %v11804_v45 = vadd.f32 %v11616_v62, %v2113_v50  ;;  %v16255_v62 = vld [vmem:[#allocation29_spill] sm:$0xff] }
 0x3d0   : > { %v2353_v63 = vpop.f32.mrf.mxu2 }
 0x3d1   : > { %v11806_v32 = vadd.f32 %v2353_v63, %v2120_v33  ;;  %v1918_v54 = vpop.f32.mrf.mxu0  ;;  %v2719_v33 = vsel %vm10082_vm4, %v16255_v62, 0  ;;  %v16257_v63 = vld [vmem:[#allocation250_spill] sm:$0xff] }
 0x3d2   : > { %v1980_v56 = vadd.f32 %v1918_v54, %v16253_v19  ;;  %v2072_v2 = vpop.f32.mrf.mxu1  ;;  %v11835_v19 = vsel %vm11772_vm12, %v16259_v23, 0  ;;  %v16265_v23 = vld [vmem:[#allocation241_spill] sm:$0xff] }
 0x3d3   : > { %v2122_v26 = vadd.f32 %v2072_v2, %v1988_v58  ;;  %16260 = vst [vmem:[#allocation213_spill] sm:$0xff] %v11835_v19 }
 0x3d4   : > { %v2114_v21 = vadd.f32 %v11596_v14, %v1980_v56  ;;  %8645 = vmatmul.msk.bf16.gmra.mxu0 %vm1432_vm11, %v11814_v5  ;;  %v16258_v14 = vld [vmem:[#allocation135_spill] sm:$0xff]  ;;  %v16261_v56 = vld [vmem:[#allocation222_spill] sm:$0xff] }
 0x3d5   : > { %8589 = vmatmul.msk.bf16.gmra.mxu1 %vm1432_vm11, %v2719_v33  ;;  %v11823_v27 = vpop.f32.mrf.mxu3  ;;  %v1989_v54 = vadd.f32 %v16258_v14, %v16257_v63 }
 0x3d6   : > { %16256 = vst [vmem:[#allocation48_spill] sm:$0xff] %v11823_v27  ;;  %v11826_v58 = vadd.f32 %v11635_v34, %v2114_v21 }
 0x3d8   : > { %v2355_v50 = vpop.f32.mrf.mxu2 }
 0x3d9   : > { %v11828_v8 = vadd.f32 %v2355_v50, %v2121_v20  ;;  %v1920_v59 = vpop.f32.mrf.mxu0  ;;  %v16262_v20 = vld [vmem:[#allocation126_spill] sm:$0xff] }
 0x3da   : > { %v1981_v2 = vadd.f32 %v1920_v59, %v16261_v56  ;;  %v2074_v62 = vpop.f32.mrf.mxu1  ;;  %8690 = vmatmul.msk.bf16.gmra.mxu3 %vm1432_vm11, %v11835_v19  ;;  %v5337_v59 = vshrl.u32 %v16265_v23, 16  ;;  %v5340_v56 = vshll.u32 %v16265_v23, 16  ;;  %v16266_v19 = vld [vmem:[#allocation17_spill] sm:$0xff]  ;;  %v16270_v23 = vld [vmem:[#allocation32_spill] sm:$0xff] }
 0x3db   : > { %v2123_v34 = vadd.f32 %v2074_v62, %v1989_v54  ;;  %v16267_v54 = vld [vmem:[#allocation145_spill] sm:$0xff] }
 0x3dc   : > { %v2115_v21 = vadd.f32 %v11619_v41, %v1981_v2  ;;  %v1990_v62 = vadd.f32 %v16267_v54, %v16266_v19  ;;  %v16268_v41 = vld [vmem:[#allocation228_spill] sm:$0xff]  ;;  %v2720_v19 = vsel %vm10082_vm4, %v16270_v23, 0  ;;  %v16276_v23 = vld [vmem:[#allocation93_spill] sm:$0xff] }
 0x3dd   : > { %8606 = vmatmul.msk.bf16.gmra.mxu2 %vm1432_vm11, %v16262_v20  ;;  %v11843_v33 = vpop.f32.mrf.mxu3 }
 0x3de   : > { %16263 = vst [vmem:[#allocation197_spill] sm:$0xff] %v11843_v33  ;;  %v11846_v50 = vadd.f32 %v11666_v46, %v2115_v21  ;;  %v11858_v46 = vsel %vm10036_vm5, %v10417_v39, 0  ;;  %v5339_v21 = vrot.slane %v5337_v59, 6 }
 0x3df   : > { %16269 = vst [vmem:[#allocation87_spill] sm:$0xff] %v11858_v46 }
 0x3e0   : > { %v2358_v63 = vpop.f32.mrf.mxu2 }
 0x3e1   : > { %v11848_v14 = vadd.f32 %v2358_v63, %v2122_v26  ;;  %v1923_v5 = vpop.f32.mrf.mxu0  ;;  %v5342_v26 = vrot.slane %v5340_v56, 7 }
 0x3e2   : > { %v1982_v2 = vadd.f32 %v1923_v5, %v16268_v41  ;;  %v2077_v11 = vpop.f32.mrf.mxu1 }
 0x3e3   : > { %16264 = vst [vmem:[#allocation88_spill] sm:$0xff] %v11848_v14  ;;  %v2124_v20 = vadd.f32 %v2077_v11, %v1990_v62  ;;  %v5343_v11 = vor.u32 %v5342_v26, %v5339_v21  ;;  %v16272_v62 = vld [vmem:[#allocation239_spill] sm:$0xff]  ;;  %v16278_v21 = vld [vmem:[#allocation232_spill] sm:$0xff] }
 0x3e4   : > { %v2116_v63 = vadd.f32 %v11644_v43, %v1982_v2  ;;  %8646 = vmatmul.msk.bf16.gmra.mxu0 %vm1432_vm11, %v11858_v46  ;;  %v16275_v46 = vld [vmem:[#allocation152_spill] sm:$0xff] }
 0x3e5   : > { %8590 = vmatmul.msk.bf16.gmra.mxu1 %vm1432_vm11, %v2720_v19  ;;  %v11867_v5 = vpop.f32.mrf.mxu3  ;;  %v11874_v41 = vsel %vm5327_vm9, %v16272_v62, %v5343_v11  ;;  %v1991_v33 = vadd.f32 %v16275_v46, %v11104_v13  ;;  %v11883_v19 = vsel %vm11772_vm12, %v16276_v23, 0  ;;  %v5837_v23 = vrot.slane %v5337_v59, 1 }
 0x3e6   : > { %16271 = vst [vmem:[#allocation107_spill] sm:$0xff] %v11867_v5  ;;  %v11870_v54 = vadd.f32 %v11689_v29, %v2116_v63  ;;  %v11907_v59 = vsel %vm10036_vm5, %v10461_v18, 0 }
 0x3e7   : > { %16273 = vst [vmem:[#allocation201_spill] sm:$0xff] %v11874_v41 }
 0x3e8   : > { %v2360_v39 = vpop.f32.mrf.mxu2  ;;  %16277 = vst [vmem:[#allocation112_spill] sm:$0xff] %v11883_v19 }
 0x3e9   : > { %v11876_v43 = vadd.f32 %v2360_v39, %v2123_v34  ;;  %v1925_v2 = vpop.f32.mrf.mxu0  ;;  %v16279_v34 = vld [vmem:[#allocation151_spill] sm:$0xff]  ;;  %16285 = vst [vmem:[#allocation227_spill] sm:$0xff] %v11907_v59 }
 0x3ea   : > { %v1983_v26 = vadd.f32 %v1925_v2, %v16278_v21  ;;  %v2079_v29 = vpop.f32.mrf.mxu1  ;;  %8691 = vmatmul.msk.bf16.gmra.mxu3 %vm1432_vm11, %v11883_v19  ;;  %v5838_v2 = vrot.slane %v5340_v56, 2  ;;  %v16282_v21 = vld [vmem:[#allocation246_spill] sm:$0xff] }
 0x3eb   : > { %16274 = vst [vmem:[#allocation23_spill] sm:$0xff] %v11876_v43  ;;  %v2125_v63 = vadd.f32 %v2079_v29, %v1991_v33  ;;  %v5346_v5 = vshrl.u32 %v16282_v21, 16  ;;  %v5349_v19 = vshll.u32 %v16282_v21, 16 }
 0x3ec   : > { %v2117_v41 = vadd.f32 %v11674_v48, %v1983_v26  ;;  %v16284_v48 = vld [vmem:[#allocation154_spill] sm:$0xff] }
 0x3ed   : > { %8607 = vmatmul.msk.bf16.gmra.mxu2 %vm1432_vm11, %v16279_v34  ;;  %v11891_v39 = vpop.f32.mrf.mxu3  ;;  %v1992_v26 = vadd.f32 %v16284_v48, %v11125_v31  ;;  %v5841_v34 = vrot.slane %v5346_v5, 1  ;;  %v5348_v43 = vrot.slane %v5346_v5, 6  ;;  %v5351_v56 = vrot.slane %v5349_v19, 7 }
 0x3ee   : > { %16280 = vst [vmem:[#allocation18_spill] sm:$0xff] %v11891_v39  ;;  %v11894_v13 = vadd.f32 %v11726_v24, %v2117_v41  ;;  %v5842_v39 = vrot.slane %v5349_v19, 2 }
 0x3ef   : > { %v5352_v48 = vor.u32 %v5351_v56, %v5348_v43  ;;  %v16296_v43 = vld [vmem:[#allocation158_spill] sm:$0xff] }
 0x3f0   : > { %v2363_v46 = vpop.f32.mrf.mxu2  ;;  %v11916_v31 = vor.u32 %v5842_v39, %v5841_v34  ;;  %v16294_v39 = vld [vmem:[#allocation251_spill] sm:$0xff]  ;;  %v1993_v56 = vadd.f32 %v16296_v43, %v11150_v49 }
 0x3f1   : > { %v11896_v62 = vadd.f32 %v2363_v46, %v2124_v20  ;;  %v11900_v33 = vpop.f32.mrf.mxu0  ;;  %v16286_v20 = vld [vmem:[#allocation35_spill] sm:$0xff]  ;;  %v11914_v46 = vor.u32 %v5838_v2, %v5837_v23  ;;  %v6703_v34 = vshrl.u32 %v16294_v39, 16 }
 0x3f2   : > { %16283 = vst [vmem:[#allocation111_spill] sm:$0xff] %v11900_v33  ;;  %v2082_v29 = vpop.f32.mrf.mxu1  ;;  %v2721_v41 = vsel %vm10082_vm4, %v16286_v20, 0  ;;  %v16300_v33 = vld [vmem:[#allocation157_spill] sm:$0xff] }
 0x3f3   : > { %16281 = vst [vmem:[#allocation205_spill] sm:$0xff] %v11896_v62  ;;  %v2126_v24 = vadd.f32 %v2082_v29, %v1992_v26  ;;  %v11924_v18 = vsel %vm5803_vm14, %v11914_v46, %v11916_v31  ;;  %v11927_v26 = vsel %vm5327_vm9, %v5343_v11, %v5352_v48  ;;  %v16292_v29 = vld [vmem:[#allocation249_spill] sm:$0xff]  ;;  %v6706_v11 = vshll.u32 %v16294_v39, 16 }
 0x3f4   : > { %8647 = vmatmul.msk.bf16.gmra.mxu0 %vm1432_vm11, %v11907_v59  ;;  %16287 = vst [vmem:[#allocation116_spill] sm:$0xff] %v11914_v46  ;;  %v7132_v23 = vpack.c.b16 %v16292_v29, %v16292_v29  ;;  %v6705_v49 = vrot.slane %v6703_v34, 2  ;;  %v16302_v59 = vld [vmem:[#allocation127_spill] sm:$0xff] }
 0x3f5   : > { %16288 = vst [vmem:[#allocation209_spill] sm:$0xff] %v11916_v31  ;;  %8591 = vmatmul.msk.bf16.gmra.mxu1 %vm1432_vm11, %v2721_v41  ;;  %v11919_v5 = vpop.f32.mrf.mxu3  ;;  %v16297_v41 = vld [vmem:[#allocation256_spill] sm:$0xff]  ;;  %v15645_v39 = vshrl.u32 %v16302_v59, 16 }
 0x3f6   : > { %16289 = vst [vmem:[#allocation26_spill] sm:$0xff] %v11919_v5  ;;  %v11941_v21 = vsel %vm11772_vm12, %v16297_v41, 0  ;;  %v7134_v46 = vshrl.u32 %v7132_v23, 16  ;;  %v6708_v41 = vrot.slane %v6706_v11, 3 }
 0x3f7   : > { %16290 = vst [vmem:[#allocation122_spill] sm:$0xff] %v11924_v18  ;;  %v5357_v11 = vrot.slane %v15645_v39, 6 }
 0x3f8   : > { %v2365_v19 = vpop.f32.mrf.mxu2  ;;  %16291 = vst [vmem:[#allocation214_spill] sm:$0xff] %v11927_v26  ;;  %v16299_v26 = vld [vmem:[#allocation254_spill] sm:$0xff]  ;;  %v7136_v14 = vrot.slane %v7134_v46, 1  ;;  %v6709_v34 = vor.u32 %v6708_v41, %v6705_v49 }
 0x3f9   : > { %v11931_v2 = vadd.f32 %v2365_v19, %v2125_v63  ;;  %v11934_v20 = vpop.f32.mrf.mxu0  ;;  %16298 = vst [vmem:[#allocation243_spill] sm:$0xff] %v11941_v21  ;;  %v6711_v18 = vshrl.u32 %v16299_v26, 16  ;;  %v6714_v29 = vshll.u32 %v16299_v26, 16  ;;  %v15644_v26 = vshll.u32 %v16302_v59, 16 }
 0x3fa   : > { %16295 = vst [vmem:[#allocation121_spill] sm:$0xff] %v11934_v20  ;;  %v2084_v63 = vpop.f32.mrf.mxu1  ;;  %8692 = vmatmul.msk.bf16.gmra.mxu3 %vm1432_vm11, %v11941_v21  ;;  %v7137_v20 = vshll.u32 %v7132_v23, 16  ;;  %v16304_v23 = vld [vmem:[#allocation159_spill] sm:$0xff] }
 0x3fb   : > { %16293 = vst [vmem:[#allocation36_spill] sm:$0xff] %v11931_v2  ;;  %v2127_v19 = vadd.f32 %v2084_v63, %v1993_v56  ;;  %v6713_v5 = vrot.slane %v6711_v18, 2  ;;  %v6716_v2 = vrot.slane %v6714_v29, 3  ;;  %v11965_v29 = vsel %vm10036_vm5, %v10505_v51, 0 }
 0x3fc   : > { %v7139_v27 = vrot.slane %v7137_v20, 2  ;;  %16305 = vst [vmem:[#allocation29_spill] sm:$0xff] %v11965_v29 }
 0x3fd   : > { %8608 = vmatmul.msk.bf16.gmra.mxu2 %vm1432_vm11, %v16300_v33  ;;  %v11950_v43 = vpop.f32.mrf.mxu3  ;;  %v1994_v33 = vadd.f32 %v16304_v23, %v11171_v10  ;;  %v6717_v63 = vor.u32 %v6716_v2, %v6713_v5 }
 0x3fe   : > { %16301 = vst [vmem:[#allocation130_spill] sm:$0xff] %v11950_v43  ;;  %v7140_v46 = vor.u32 %v7139_v27, %v7136_v14  ;;  %v16311_v27 = vld [vmem:[#allocation163_spill] sm:$0xff] }
 0x3ff   : > { %v11978_v20 = vsel %vm5224_vm1, %v6709_v34, %v6717_v63  ;;  %v1995_v14 = vadd.f32 %v16311_v27, %v11196_v9  ;;  %v16315_v9 = vld [vmem:[#allocation257_spill] sm:$0xff] }
 0x400   : > { %v2368_v62 = vpop.f32.mrf.mxu2  ;;  %16307 = vst [vmem:[#allocation250_spill] sm:$0xff] %v11978_v20  ;;  %v11982_v51 = vsel %vm5803_vm14, %v11916_v31, %v7140_v46  ;;  %v15649_v46 = vshrl.u32 %v16315_v9, 16  ;;  %v16319_v31 = vld [vmem:[#allocation173_spill] sm:$0xff] }
 0x401   : > { %v11954_v21 = vadd.f32 %v2368_v62, %v2126_v24  ;;  %v11956_v56 = vpop.f32.mrf.mxu0  ;;  %v5360_v62 = vrot.slane %v15644_v26, 7  ;;  %v16306_v24 = vld [vmem:[#allocation41_spill] sm:$0xff]  ;;  %16308 = vst [vmem:[#allocation135_spill] sm:$0xff] %v11982_v51  ;;  %v12019_v59 = vsel %vm10036_vm5, %v16319_v31, 0 }
 0x402   : > { %16303 = vst [vmem:[#allocation219_spill] sm:$0xff] %v11956_v56  ;;  %v2087_v43 = vpop.f32.mrf.mxu1  ;;  %v2722_v10 = vsel %vm10082_vm4, %v16306_v24, 0  ;;  %v16314_v24 = vld [vmem:[#allocation162_spill] sm:$0xff] }
 0x403   : > { %v2128_v18 = vadd.f32 %v2087_v43, %v1994_v33  ;;  %v5361_v2 = vor.u32 %v5360_v62, %v5357_v11  ;;  %v11996_v33 = vsel %vm11772_vm12, %v11177_v6, 0  ;;  %v16313_v62 = vld [vmem:[#allocation260_spill] sm:$0xff]  ;;  %16320 = vst [vmem:[#allocation228_spill] sm:$0xff] %v12019_v59 }
 0x404   : > { %8648 = vmatmul.msk.bf16.gmra.mxu0 %vm1432_vm11, %v11965_v29  ;;  %16312 = vst [vmem:[#allocation17_spill] sm:$0xff] %v11996_v33  ;;  %v16335_v29 = vld [vmem:[#allocation181_spill] sm:$0xff] }
 0x405   : > { %8592 = vmatmul.msk.bf16.gmra.mxu1 %vm1432_vm11, %v2722_v10  ;;  %v11975_v5 = vpop.f32.mrf.mxu3  ;;  %v11985_v43 = vsel %vm5327_vm9, %v5352_v48, %v5361_v2  ;;  %v6720_v48 = vshrl.u32 %v16313_v62, 16 }
 0x406   : > { %16309 = vst [vmem:[#allocation222_spill] sm:$0xff] %v11985_v43 }
 0x407   : > { %v6722_v27 = vrot.slane %v6720_v48, 2 }
 0x408   : > { %v2370_v49 = vpop.f32.mrf.mxu2 }
 0x409   : > { %v11987_v41 = vadd.f32 %v2370_v49, %v2127_v19  ;;  %v11989_v23 = vpop.f32.mrf.mxu0  ;;  %v6723_v19 = vshll.u32 %v16313_v62, 16  ;;  %v15648_v49 = vshll.u32 %v16315_v9, 16  ;;  %v16325_v9 = vld [vmem:[#allocation274_spill] sm:$0xff] }
 0x40a   : > { %16310 = vst [vmem:[#allocation126_spill] sm:$0xff] %v11989_v23  ;;  %v2089_v34 = vpop.f32.mrf.mxu1  ;;  %8693 = vmatmul.msk.bf16.gmra.mxu3 %vm1432_vm11, %v11996_v33  ;;  %v12069_v33 = vsel %vm10036_vm5, %v16335_v29, 0 }
 0x40b   : > { %v2129_v11 = vadd.f32 %v2089_v34, %v1995_v14  ;;  %v6725_v26 = vrot.slane %v6723_v19, 3  ;;  %v16317_v14 = vld [vmem:[#allocation267_spill] sm:$0xff]  ;;  %v16318_v34 = vld [vmem:[#allocation164_spill] sm:$0xff]  ;;  %v5369_v48 = vrot.slane %v15648_v49, 7  ;;  %16336 = vst [vmem:[#allocation154_spill] sm:$0xff] %v12069_v33 }
 0x40c   : > { %v1996_v20 = vadd.f32 %v16318_v34, %v16317_v14 }
 0x40d   : > { %8609 = vmatmul.msk.bf16.gmra.mxu2 %vm1432_vm11, %v16314_v24  ;;  %v12004_v10 = vpop.f32.mrf.mxu3  ;;  %v5366_v24 = vrot.slane %v15649_v46, 6 }
 0x410   : > { %v2373_v6 = vpop.f32.mrf.mxu2 }
 0x411   : > { %v12008_v39 = vadd.f32 %v2373_v6, %v2128_v18  ;;  %v12010_v51 = vpop.f32.mrf.mxu0  ;;  %v16321_v18 = vld [vmem:[#allocation45_spill] sm:$0xff]  ;;  %v6726_v6 = vor.u32 %v6725_v26, %v6722_v27 }
 0x412   : > { %16316 = vst [vmem:[#allocation145_spill] sm:$0xff] %v12010_v51  ;;  %v2092_v62 = vpop.f32.mrf.mxu1  ;;  %v2723_v19 = vsel %vm10082_vm4, %v16321_v18, 0  ;;  %v16326_v51 = vld [vmem:[#allocation168_spill] sm:$0xff]  ;;  %v16327_v26 = vld [vmem:[#allocation269_spill] sm:$0xff] }
 0x413   : > { %v2130_v43 = vadd.f32 %v2092_v62, %v1996_v20  ;;  %v5370_v20 = vor.u32 %v5369_v48, %v5366_v24  ;;  %v12032_v34 = vsel %vm5224_vm1, %v6717_v63, %v6726_v6  ;;  %v1997_v18 = vadd.f32 %v16326_v51, %v16325_v9  ;;  %v16329_v48 = vld [vmem:[#allocation266_spill] sm:$0xff] }
 0x414   : > { %8649 = vmatmul.msk.bf16.gmra.mxu0 %vm1432_vm11, %v12019_v59  ;;  %16322 = vst [vmem:[#allocation32_spill] sm:$0xff] %v12032_v34  ;;  %v12046_v27 = vsel %vm11772_vm12, %v16327_v26, 0  ;;  %v16331_v51 = vld [vmem:[#allocation262_spill] sm:$0xff] }
 0x415   : > { %8593 = vmatmul.msk.bf16.gmra.mxu1 %vm1432_vm11, %v2723_v19  ;;  %v12029_v14 = vpop.f32.mrf.mxu3  ;;  %v12035_v62 = vsel %vm5327_vm9, %v5361_v2, %v5370_v20  ;;  %16328 = vst [vmem:[#allocation232_spill] sm:$0xff] %v12046_v27  ;;  %v6729_v2 = vshrl.u32 %v16329_v48, 16  ;;  %v16330_v19 = vld [vmem:[#allocation167_spill] sm:$0xff]  ;;  %v15656_v9 = vshrl.u32 %v16331_v51, 16  ;;  %v15655_v34 = vshll.u32 %v16331_v51, 16 }
 0x416   : > { %16323 = vst [vmem:[#allocation152_spill] sm:$0xff] %v12035_v62  ;;  %v16343_v51 = vld [vmem:[#allocation283_spill] sm:$0xff] }
 0x417   : > { %v6731_v62 = vrot.slane %v6729_v2, 2  ;;  %v5378_v2 = vrot.slane %v15655_v34, 7 }
 0x418   : > { %v2375_v31 = vpop.f32.mrf.mxu2 }
 0x419   : > { %v12037_v49 = vadd.f32 %v2375_v31, %v2129_v11  ;;  %v12039_v46 = vpop.f32.mrf.mxu0  ;;  %v6732_v11 = vshll.u32 %v16329_v48, 16 }
 0x41a   : > { %16324 = vst [vmem:[#allocation93_spill] sm:$0xff] %v12039_v46  ;;  %v2094_v24 = vpop.f32.mrf.mxu1  ;;  %8694 = vmatmul.msk.bf16.gmra.mxu3 %vm1432_vm11, %v12046_v27 }
 0x41b   : > { %v2131_v63 = vadd.f32 %v2094_v24, %v1997_v18  ;;  %v6734_v46 = vrot.slane %v6732_v11, 3  ;;  %v16333_v18 = vld [vmem:[#allocation276_spill] sm:$0xff]  ;;  %v16334_v24 = vld [vmem:[#allocation169_spill] sm:$0xff] }
 0x41c   : > { %v1998_v59 = vadd.f32 %v16334_v24, %v16333_v18 }
 0x41d   : > { %8610 = vmatmul.msk.bf16.gmra.mxu2 %vm1432_vm11, %v16330_v19  ;;  %v12054_v31 = vpop.f32.mrf.mxu3  ;;  %v5375_v19 = vrot.slane %v15656_v9, 6 }
 0x420   : > { %v2378_v26 = vpop.f32.mrf.mxu2 }
 0x421   : > { %v12058_v23 = vadd.f32 %v2378_v26, %v2130_v43  ;;  %v12060_v56 = vpop.f32.mrf.mxu0  ;;  %v16337_v43 = vld [vmem:[#allocation51_spill] sm:$0xff]  ;;  %v6735_v26 = vor.u32 %v6734_v46, %v6731_v62  ;;  %v16345_v46 = vld [vmem:[#allocation278_spill] sm:$0xff] }
 0x422   : > { %16332 = vst [vmem:[#allocation151_spill] sm:$0xff] %v12060_v56  ;;  %v2097_v48 = vpop.f32.mrf.mxu1  ;;  %v2724_v11 = vsel %vm10082_vm4, %v16337_v43, 0  ;;  %v16344_v56 = vld [vmem:[#allocation175_spill] sm:$0xff]  ;;  %v12096_v62 = vsel %vm11772_vm12, %v16345_v46, 0 }
 0x423   : > { %v2132_v27 = vadd.f32 %v2097_v48, %v1998_v59  ;;  %v5379_v59 = vor.u32 %v5378_v2, %v5375_v19  ;;  %v12082_v24 = vsel %vm5224_vm1, %v6726_v6, %v6735_v26  ;;  %v1999_v43 = vadd.f32 %v16344_v56, %v16343_v51  ;;  %16346 = vst [vmem:[#allocation254_spill] sm:$0xff] %v12096_v62  ;;  %v16347_v2 = vld [vmem:[#allocation275_spill] sm:$0xff]  ;;  %v16350_v56 = vld [vmem:[#allocation270_spill] sm:$0xff] }
 0x424   : > { %8650 = vmatmul.msk.bf16.gmra.mxu0 %vm1432_vm11, %v12069_v33  ;;  %16339 = vst [vmem:[#allocation249_spill] sm:$0xff] %v12082_v24  ;;  %v15661_v51 = vshrl.u32 %v16350_v56, 16  ;;  %v15660_v24 = vshll.u32 %v16350_v56, 16  ;;  %v16362_v56 = vld [vmem:[#allocation183_spill] sm:$0xff] }
 0x425   : > { %8594 = vmatmul.msk.bf16.gmra.mxu1 %vm1432_vm11, %v2724_v11  ;;  %v12079_v18 = vpop.f32.mrf.mxu3  ;;  %v12085_v48 = vsel %vm5327_vm9, %v5370_v20, %v5379_v59  ;;  %v6738_v20 = vshrl.u32 %v16347_v2, 16  ;;  %v16348_v11 = vld [vmem:[#allocation174_spill] sm:$0xff] }
 0x426   : > { %16338 = vst [vmem:[#allocation35_spill] sm:$0xff] %v12079_v18 }
 0x427   : > { %16340 = vst [vmem:[#allocation251_spill] sm:$0xff] %v12085_v48  ;;  %v6740_v48 = vrot.slane %v6738_v20, 2  ;;  %v5387_v20 = vrot.slane %v15660_v24, 7 }
 0x428   : > { %v2380_v29 = vpop.f32.mrf.mxu2 }
 0x429   : > { %v12087_v34 = vadd.f32 %v2380_v29, %v2131_v63  ;;  %v12089_v9 = vpop.f32.mrf.mxu0  ;;  %v6741_v63 = vshll.u32 %v16347_v2, 16 }
 0x42a   : > { %16342 = vst [vmem:[#allocation256_spill] sm:$0xff] %v12089_v9  ;;  %v2099_v19 = vpop.f32.mrf.mxu1  ;;  %8695 = vmatmul.msk.bf16.gmra.mxu3 %vm1432_vm11, %v12096_v62 }
 0x42b   : > { %16341 = vst [vmem:[#allocation158_spill] sm:$0xff] %v12087_v34  ;;  %v2133_v6 = vadd.f32 %v2099_v19, %v1999_v43  ;;  %v6743_v9 = vrot.slane %v6741_v63, 3  ;;  %v16353_v43 = vld [vmem:[#allocation177_spill] sm:$0xff] }
 0x42c   : > { %v2531_v19 = vadd.f32 %v16353_v43, %v11506_v1 }
 0x42d   : > { %8611 = vmatmul.msk.bf16.gmra.mxu2 %vm1432_vm11, %v16348_v11  ;;  %v12104_v29 = vpop.f32.mrf.mxu3  ;;  %v5384_v11 = vrot.slane %v15661_v51, 6  ;;  %v6744_v63 = vor.u32 %v6743_v9, %v6740_v48  ;;  %v16363_v9 = vld [vmem:[#allocation286_spill] sm:$0xff] }
 0x42e   : > { %16349 = vst [vmem:[#allocation157_spill] sm:$0xff] %v12104_v29  ;;  %v16354_v29 = vld [vmem:[#allocation188_spill] sm:$0xff]  ;;  %v12146_v48 = vsel %vm11772_vm12, %v16363_v9, 0 }
 0x42f   : > { %v12119_v34 = vsel %vm10036_vm5, %v16354_v29, 0  ;;  %v5388_v43 = vor.u32 %v5387_v20, %v5384_v11  ;;  %16364 = vst [vmem:[#allocation45_spill] sm:$0xff] %v12146_v48  ;;  %v16365_v20 = vld [vmem:[#allocation284_spill] sm:$0xff] }
 0x430   : > { %v2383_v46 = vpop.f32.mrf.mxu2  ;;  %16355 = vst [vmem:[#allocation163_spill] sm:$0xff] %v12119_v34 }
 0x431   : > { %v12108_v33 = vadd.f32 %v2383_v46, %v2132_v27  ;;  %v12110_v62 = vpop.f32.mrf.mxu0  ;;  %v16356_v27 = vld [vmem:[#allocation57_spill] sm:$0xff] }
 0x432   : > { %16352 = vst [vmem:[#allocation41_spill] sm:$0xff] %v12110_v62  ;;  %v2795_v2 = vpop.f32.mrf.mxu1  ;;  %v2725_v1 = vsel %vm10082_vm4, %v16356_v27, 0  ;;  %v2532_v27 = vadd.f32 %v16362_v56, %v11540_v52  ;;  %v16368_v52 = vld [vmem:[#allocation279_spill] sm:$0xff] }
 0x433   : > { %16351 = vst [vmem:[#allocation159_spill] sm:$0xff] %v12108_v33  ;;  %v2875_v18 = vadd.f32 %v2795_v2, %v2531_v19  ;;  %v12132_v19 = vsel %vm5224_vm1, %v6735_v26, %v6744_v63  ;;  %v12135_v2 = vsel %vm5327_vm9, %v5379_v59, %v5388_v43  ;;  %v6747_v59 = vshrl.u32 %v16365_v20, 16  ;;  %v16388_v33 = vld [vmem:[#allocation55_spill] sm:$0xff] }
 0x434   : > { %8651 = vmatmul.msk.bf16.gmra.mxu0 %vm1432_vm11, %v12119_v34  ;;  %16358 = vst [vmem:[#allocation162_spill] sm:$0xff] %v12132_v19  ;;  %v15665_v56 = vshrl.u32 %v16368_v52, 16 }
 0x435   : > { %8595 = vmatmul.msk.bf16.gmra.mxu1 %vm1432_vm11, %v2725_v1  ;;  %v12129_v46 = vpop.f32.mrf.mxu3  ;;  %16359 = vst [vmem:[#allocation267_spill] sm:$0xff] %v12135_v2  ;;  %v16366_v1 = vld [vmem:[#allocation182_spill] sm:$0xff]  ;;  %v6749_v2 = vrot.slane %v6747_v59, 2  ;;  %v16373_v59 = vshll.u32 %v16368_v52, 16 }
 0x436   : > { %16357 = vst [vmem:[#allocation260_spill] sm:$0xff] %v12129_v46  ;;  %v5393_v19 = vrot.slane %v15665_v56, 6 }
 0x438   : > { %v2385_v29 = vpop.f32.mrf.mxu2 }
 0x439   : > { %v12137_v24 = vadd.f32 %v2385_v29, %v2133_v6  ;;  %v12139_v51 = vpop.f32.mrf.mxu0  ;;  %v6750_v6 = vshll.u32 %v16365_v20, 16 }
 0x43a   : > { %16361 = vst [vmem:[#allocation173_spill] sm:$0xff] %v12139_v51  ;;  %v2797_v11 = vpop.f32.mrf.mxu1  ;;  %8696 = vmatmul.msk.bf16.gmra.mxu3 %vm1432_vm11, %v12146_v48  ;;  %v16371_v48 = vld [vmem:[#allocation50_spill] sm:$0xff] }
 0x43b   : > { %16360 = vst [vmem:[#allocation164_spill] sm:$0xff] %v12137_v24  ;;  %v2876_v26 = vadd.f32 %v2797_v11, %v2532_v27  ;;  %v6752_v51 = vrot.slane %v6750_v6, 3  ;;  %v16370_v27 = vld [vmem:[#allocation58_spill] sm:$0xff] }
 0x43c   : > { %v2533_v11 = vadd.f32 %v16370_v27, %v11568_v42  ;;  %v5396_v42 = vrot.slane %v16373_v59, 7 }
 0x43d   : > { %8612 = vmatmul.msk.bf16.gmra.mxu2 %vm1432_vm11, %v16366_v1  ;;  %v12154_v29 = vpop.f32.mrf.mxu3  ;;  %v12166_v1 = vld [vmem:[%s15370_s4] ss:$0 sm:$0xff]  ;;  %v6753_v6 = vor.u32 %v6752_v51, %v6749_v2  ;;  %v16380_v2 = vld [vmem:[#allocation293_spill] sm:$0xff] }
 0x43e   : > { %16367 = vst [vmem:[#allocation274_spill] sm:$0xff] %v12154_v29 }
 0x440   : > { %v2929_v9 = vpop.f32.mrf.mxu2 }
 0x441   : > { %v3009_v62 = vadd.f32 %v2929_v9, %v2875_v18  ;;  %v12158_v34 = vpop.f32.mrf.mxu0  ;;  %v12173_v18 = vsel %vm10036_vm5, %v16174_v25, 0  ;;  %v12187_v25 = vsel %vm5224_vm1, %v6744_v63, %v6753_v6 }
 0x442   : > { %16369 = vst [vmem:[#allocation168_spill] sm:$0xff] %v12158_v34  ;;  %v2800_v29 = vpop.f32.mrf.mxu1 }
 0x443   : > { %v3150_v20 = vadd.f32 %v16371_v48, %v3009_v62  ;;  %v2877_v46 = vadd.f32 %v2800_v29, %v2533_v11  ;;  %16372 = vst [vmem:[#allocation269_spill] sm:$0xff] %v12173_v18  ;;  %v16374_v62 = vld [vmem:[#allocation63_spill] sm:$0xff]  ;;  %v5397_v29 = vor.u32 %v5396_v42, %v5393_v19 }
 0x444   : > { %8652 = vmatmul.msk.bf16.gmra.mxu0 %vm1432_vm11, %v12173_v18  ;;  %v2726_v48 = vsel %vm10082_vm4, %v16374_v62, 0  ;;  %16376 = vst [vmem:[#allocation167_spill] sm:$0xff] %v12187_v25  ;;  %v16379_v62 = vld [vmem:[#allocation189_spill] sm:$0xff]  ;;  %v16383_v25 = vld [vmem:[#allocation291_spill] sm:$0xff] }
 0x445   : > { %8596 = vmatmul.msk.bf16.gmra.mxu1 %vm1432_vm11, %v2726_v48  ;;  %v12183_v9 = vpop.f32.mrf.mxu3  ;;  %v3186_v27 = vadd.f32 %v12166_v1, %v3150_v20  ;;  %v12190_v59 = vsel %vm5327_vm9, %v5388_v43, %v5397_v29  ;;  %v2534_v51 = vadd.f32 %v16379_v62, %v11586_v53  ;;  %v12199_v48 = vsel %vm11772_vm12, %v16380_v2, 0  ;;  %v16382_v20 = vld [vmem:[#allocation297_spill] sm:$0xff]  ;;  %v16384_v53 = vld [vmem:[#allocation56_spill] sm:$0xff] }
 0x446   : > { %16375 = vst [vmem:[#allocation266_spill] sm:$0xff] %v12183_v9 }
 0x447   : > { %16377 = vst [vmem:[#allocation276_spill] sm:$0xff] %v12190_v59  ;;  %v3218_v19 = vmax.f32 %v3186_v27, 0.0 }
 0x448   : > { %v2931_v11 = vpop.f32.mrf.mxu2  ;;  %16381 = vst [vmem:[#allocation181_spill] sm:$0xff] %v12199_v48 }
 0x449   : > { %v3010_v56 = vadd.f32 %v2931_v11, %v2876_v26  ;;  %v12192_v52 = vpop.f32.mrf.mxu0  ;;  %v6756_v26 = vshrl.u32 %v16383_v25, 16  ;;  %v6759_v11 = vshll.u32 %v16383_v25, 16  ;;  %v3250_v2 = vpack.c.bf16 %v3218_v19, %v3218_v19  ;;  %v16387_v25 = vld [vmem:[#allocation64_spill] sm:$0xff] }
 0x44a   : > { %16378 = vst [vmem:[#allocation169_spill] sm:$0xff] %v12192_v52  ;;  %v2802_v63 = vpop.f32.mrf.mxu1  ;;  %8697 = vmatmul.msk.bf16.gmra.mxu3 %vm1432_vm11, %v12199_v48  ;;  %v16386_v52 = vld [vmem:[#allocation287_spill] sm:$0xff] }
 0x44b   : > { %v3151_v42 = vadd.f32 %v16382_v20, %v3010_v56  ;;  %v2878_v43 = vadd.f32 %v2802_v63, %v2534_v51  ;;  %v15669_v56 = vshrl.u32 %v16386_v52, 16  ;;  %v6758_v18 = vrot.slane %v6756_v26, 2 }
 0x44c   : > { %v6761_v51 = vrot.slane %v6759_v11, 3  ;;  %v7408_v24 = vunpack.c.l.b16 %v3250_v2  ;;  %v12221_v20 = vsel %vm10036_vm5, %v16188_v35, 0 }
 0x44d   : > { %v3187_v59 = vadd.f32 %v12166_v1, %v3151_v42  ;;  %8613 = vmatmul.msk.bf16.gmra.mxu2 %vm1432_vm11, %v16384_v53  ;;  %v12209_v62 = vpop.f32.mrf.mxu3  ;;  %v2535_v42 = vadd.f32 %v16387_v25, %v11614_v4  ;;  %v5402_v26 = vrot.slane %v15669_v56, 6  ;;  %v16391_v4 = vld [vmem:[#allocation69_spill] sm:$0xff]  ;;  %v16402_v56 = vld [vmem:[#allocation294_spill] sm:$0xff] }
 0x44e   : > { %16385 = vst [vmem:[#allocation51_spill] sm:$0xff] %v12209_v62 }
 0x44f   : > { %v3219_v27 = vmax.f32 %v3187_v59, 0.0 }
 0x450   : > { %v2934_v34 = vpop.f32.mrf.mxu2 }
 0x451   : > { %v3251_v63 = vpack.c.bf16 %v3219_v27, %v3219_v27  ;;  %v3011_v48 = vadd.f32 %v2934_v34, %v2877_v46  ;;  %v12213_v9 = vpop.f32.mrf.mxu0  ;;  %v16389_v34 = vshll.u32 %v16386_v52, 16 }
 0x452   : > { %v2805_v19 = vpop.f32.mrf.mxu1 }
 0x453   : > { %v7409_v53 = vunpack.c.l.b16 %v3251_v63  ;;  %v3152_v62 = vadd.f32 %v16388_v33, %v3011_v48  ;;  %v2879_v59 = vadd.f32 %v2805_v19, %v2535_v42  ;;  %v5405_v46 = vrot.slane %v16389_v34, 7  ;;  %v16396_v19 = vld [vmem:[#allocation196_spill] sm:$0xff] }
 0x454   : > { %8653 = vmatmul.msk.bf16.gmra.mxu0 %vm1432_vm11, %v12221_v20  ;;  %v2727_v33 = vsel %vm10082_vm4, %v16391_v4, 0  ;;  %v6762_v48 = vor.u32 %v6761_v51, %v6758_v18  ;;  %v2536_v18 = vadd.f32 %v16396_v19, %v11632_v28  ;;  %v16397_v51 = vld [vmem:[#allocation299_spill] sm:$0xff]  ;;  %v16399_v4 = vld [vmem:[#allocation298_spill] sm:$0xff] }
 0x455   : > { %v12227_v11 = vpack.c.b16 %v7409_v53, %v7408_v24  ;;  %8597 = vmatmul.msk.bf16.gmra.mxu1 %vm1432_vm11, %v2727_v33  ;;  %v12235_v35 = vpop.f32.mrf.mxu3  ;;  %v5406_v2 = vor.u32 %v5405_v46, %v5402_v26  ;;  %v3188_v27 = vadd.f32 %v12166_v1, %v3152_v62  ;;  %v12251_v34 = vsel %vm11772_vm12, %v16397_v51, 0  ;;  %v16398_v62 = vld [vmem:[#allocation65_spill] sm:$0xff]  ;;  %v16400_v28 = vld [vmem:[#allocation62_spill] sm:$0xff] }
 0x456   : > { %16392 = vst [vmem:[#allocation175_spill] sm:$0xff] %v12235_v35  ;;  %v12239_v63 = vsel %vm5224_vm1, %v6753_v6, %v6762_v48  ;;  %v6768_v33 = vshll.u32 %v16399_v4, 16 }
 0x457   : > { %16390 = vst [vmem:[#allocation283_spill] sm:$0xff] %v12227_v11  ;;  %v12242_v25 = vsel %vm5327_vm9, %v5397_v29, %v5406_v2  ;;  %v3220_v26 = vmax.f32 %v3188_v27, 0.0 }
 0x458   : > { %16393 = vst [vmem:[#allocation278_spill] sm:$0xff] %v12239_v63  ;;  %v2936_v24 = vpop.f32.mrf.mxu2 }
 0x459   : > { %16394 = vst [vmem:[#allocation275_spill] sm:$0xff] %v12242_v25  ;;  %v3012_v42 = vadd.f32 %v2936_v24, %v2878_v43  ;;  %v12244_v53 = vpop.f32.mrf.mxu0  ;;  %v6765_v43 = vshrl.u32 %v16399_v4, 16  ;;  %v3252_v51 = vpack.c.bf16 %v3220_v26, %v3220_v26 }
 0x45a   : > { %16395 = vst [vmem:[#allocation174_spill] sm:$0xff] %v12244_v53  ;;  %v2807_v6 = vpop.f32.mrf.mxu1  ;;  %8698 = vmatmul.msk.bf16.gmra.mxu3 %vm1432_vm11, %v12251_v34  ;;  %v16404_v53 = vld [vmem:[#allocation70_spill] sm:$0xff] }
 0x45b   : > { %v3153_v46 = vadd.f32 %v16398_v62, %v3012_v42  ;;  %v2880_v29 = vadd.f32 %v2807_v6, %v2536_v18  ;;  %v15671_v42 = vshrl.u32 %v16402_v56, 16  ;;  %v6767_v63 = vrot.slane %v6765_v43, 2 }
 0x45c   : > { %v6770_v18 = vrot.slane %v6768_v33, 3  ;;  %v7410_v35 = vunpack.c.l.b16 %v3252_v51  ;;  %v12273_v62 = vsel %vm10036_vm5, %v16202_v38, 0 }
 0x45d   : > { %v3189_v24 = vadd.f32 %v12166_v1, %v3153_v46  ;;  %8614 = vmatmul.msk.bf16.gmra.mxu2 %vm1432_vm11, %v16400_v28  ;;  %v12261_v19 = vpop.f32.mrf.mxu3  ;;  %v16403_v46 = vld [vmem:[#allocation199_spill] sm:$0xff]  ;;  %v5411_v43 = vrot.slane %v15671_v42, 6 }
 0x45e   : > { %16401 = vst [vmem:[#allocation177_spill] sm:$0xff] %v12261_v19  ;;  %v2537_v4 = vadd.f32 %v16403_v46, %v11664_v40  ;;  %v16406_v40 = vld [vmem:[#allocation75_spill] sm:$0xff] }
 0x45f   : > { %v3221_v27 = vmax.f32 %v3189_v24, 0.0 }
 0x460   : > { %v2939_v11 = vpop.f32.mrf.mxu2 }
 0x461   : > { %v3253_v6 = vpack.c.bf16 %v3221_v27, %v3221_v27  ;;  %v3013_v25 = vadd.f32 %v2939_v11, %v2879_v59  ;;  %v12265_v52 = vpop.f32.mrf.mxu0  ;;  %v16405_v59 = vshll.u32 %v16402_v56, 16  ;;  %v16419_v56 = vld [vmem:[#allocation134_spill] sm:$0xff] }
 0x462   : > { %v2810_v26 = vpop.f32.mrf.mxu1 }
 0x463   : > { %v7411_v28 = vunpack.c.l.b16 %v3253_v6  ;;  %v3154_v19 = vadd.f32 %v16404_v53, %v3013_v25  ;;  %v2881_v24 = vadd.f32 %v2810_v26, %v2537_v4  ;;  %v5414_v11 = vrot.slane %v16405_v59, 7 }
 0x464   : > { %8654 = vmatmul.msk.bf16.gmra.mxu0 %vm1432_vm11, %v12273_v62  ;;  %v2728_v25 = vsel %vm10082_vm4, %v16406_v40, 0  ;;  %v6771_v53 = vor.u32 %v6770_v18, %v6767_v63  ;;  %v16413_v18 = vld [vmem:[#allocation191_spill] sm:$0xff]  ;;  %v16415_v40 = vld [vmem:[#allocation68_spill] sm:$0xff] }
 0x465   : > { %v12284_v33 = vpack.c.b16 %v7411_v28, %v7410_v35  ;;  %8598 = vmatmul.msk.bf16.gmra.mxu1 %vm1432_vm11, %v2728_v25  ;;  %v12287_v51 = vpop.f32.mrf.mxu3  ;;  %v5415_v27 = vor.u32 %v5414_v11, %v5411_v43  ;;  %v3190_v6 = vadd.f32 %v12166_v1, %v3154_v19  ;;  %v16412_v35 = vld [vmem:[#allocation204_spill] sm:$0xff]  ;;  %v12303_v28 = vsel %vm11772_vm12, %v16413_v18, 0  ;;  %v16414_v19 = vld [vmem:[#allocation71_spill] sm:$0xff] }
 0x466   : > { %16408 = vst [vmem:[#allocation57_spill] sm:$0xff] %v12287_v51  ;;  %v12291_v46 = vsel %vm5224_vm1, %v6762_v48, %v6771_v53  ;;  %v2538_v63 = vadd.f32 %v16412_v35, %v11687_v55  ;;  %v16417_v35 = vld [vmem:[#allocation300_spill] sm:$0xff] }
 0x467   : > { %16407 = vst [vmem:[#allocation188_spill] sm:$0xff] %v12284_v33  ;;  %v12294_v26 = vsel %vm5327_vm9, %v5406_v2, %v5415_v27  ;;  %v3222_v43 = vmax.f32 %v3190_v6, 0.0  ;;  %v15674_v18 = vshrl.u32 %v16417_v35, 16  ;;  %v15673_v6 = vshll.u32 %v16417_v35, 16  ;;  %v16437_v35 = vld [vmem:[#allocation109_spill] sm:$0xff] }
 0x468   : > { %16409 = vst [vmem:[#allocation183_spill] sm:$0xff] %v12291_v46  ;;  %v2941_v4 = vpop.f32.mrf.mxu2 }
 0x469   : > { %16410 = vst [vmem:[#allocation286_spill] sm:$0xff] %v12294_v26  ;;  %v3014_v59 = vadd.f32 %v2941_v4, %v2880_v29  ;;  %v12296_v42 = vpop.f32.mrf.mxu0  ;;  %v3254_v55 = vpack.c.bf16 %v3222_v43, %v3222_v43  ;;  %v5420_v43 = vrot.slane %v15674_v18, 6 }
 0x46a   : > { %16411 = vst [vmem:[#allocation284_spill] sm:$0xff] %v12296_v42  ;;  %v2812_v48 = vpop.f32.mrf.mxu1  ;;  %8699 = vmatmul.msk.bf16.gmra.mxu3 %vm1432_vm11, %v12303_v28  ;;  %v16420_v42 = vld [vmem:[#allocation99_spill] sm:$0xff] }
 0x46b   : > { %v3155_v11 = vadd.f32 %v16414_v19, %v3014_v59  ;;  %v2882_v2 = vadd.f32 %v2812_v48, %v2538_v63  ;;  %v16418_v63 = vld [vmem:[#allocation207_spill] sm:$0xff] }
 0x46c   : > { %v2539_v48 = vadd.f32 %v16418_v63, %v11723_v7  ;;  %v16427_v63 = vld [vmem:[#allocation304_spill] sm:$0xff] }
 0x46d   : > { %v3191_v29 = vadd.f32 %v12166_v1, %v3155_v11  ;;  %8615 = vmatmul.msk.bf16.gmra.mxu2 %vm1432_vm11, %v16415_v40  ;;  %v12311_v25 = vpop.f32.mrf.mxu3  ;;  %v7412_v11 = vunpack.c.l.b16 %v3254_v55 }
 0x46e   : > { %16416 = vst [vmem:[#allocation182_spill] sm:$0xff] %v12311_v25 }
 0x46f   : > { %v3223_v4 = vmax.f32 %v3191_v29, 0.0  ;;  %v5423_v29 = vrot.slane %v15673_v6, 7 }
 0x470   : > { %v2944_v33 = vpop.f32.mrf.mxu2 }
 0x471   : > { %v3255_v59 = vpack.c.bf16 %v3223_v4, %v3223_v4  ;;  %v3015_v19 = vadd.f32 %v2944_v33, %v2881_v24  ;;  %v12315_v46 = vpop.f32.mrf.mxu0  ;;  %v16421_v4 = vld [vmem:[#allocation97_spill] sm:$0xff]  ;;  %v16423_v33 = vld [vmem:[#allocation83_spill] sm:$0xff] }
 0x472   : > { %v2815_v51 = vpop.f32.mrf.mxu1  ;;  %v16422_v24 = vpack.c.b16 %v16420_v42, %v16421_v4  ;;  %v2729_v7 = vsel %vm10082_vm4, %v16423_v33, 0  ;;  %v12340_v42 = vsel %vm5224_vm1, %v6771_v53, %v16427_v63  ;;  %v16433_v63 = vld [vmem:[#allocation74_spill] sm:$0xff] }
 0x473   : > { %v7413_v26 = vunpack.c.l.b16 %v3255_v59  ;;  %v3156_v40 = vadd.f32 %v16419_v56, %v3015_v19  ;;  %v2883_v25 = vadd.f32 %v2815_v51, %v2539_v48  ;;  %v16426_v51 = vld [vmem:[#allocation79_spill] sm:$0xff]  ;;  %v5424_v59 = vor.u32 %v5423_v29, %v5420_v43  ;;  %16428 = vst [vmem:[#allocation63_spill] sm:$0xff] %v12340_v42 }
 0x474   : > { %8705 = vmatmul.msk.bf16.vlgmr.msrb.gmra.mxu0 %vm1432_vm11, %v16422_v24  ;;  %v16432_v29 = vld [vmem:[#allocation195_spill] sm:$0xff] }
 0x475   : > { %v12331_v55 = vpack.c.b16 %v7413_v26, %v7412_v11  ;;  %8599 = vmatmul.msk.bf16.gmra.mxu1 %vm1432_vm11, %v2729_v7  ;;  %v12334_v56 = vpop.f32.mrf.mxu3  ;;  %6147 = vmatpush.bf16.msrb.mxu0 %v16426_v51  ;;  %v3192_v19 = vadd.f32 %v12166_v1, %v3156_v40  ;;  %v12343_v4 = vsel %vm5327_vm9, %v5415_v27, %v5424_v59  ;;  %v16430_v11 = vld [vmem:[#allocation212_spill] sm:$0xff]  ;;  %v16431_v7 = vld [vmem:[#allocation67_spill] sm:$0xff] }
 0x476   : > { %16425 = vst [vmem:[#allocation50_spill] sm:$0xff] %v12334_v56  ;;  %v2540_v33 = vadd.f32 %v16430_v11, %v11745_v12  ;;  %v12352_v43 = vsel %vm11772_vm12, %v16431_v7, 0 }
 0x477   : > { %16424 = vst [vmem:[#allocation58_spill] sm:$0xff] %v12331_v55  ;;  %v3224_v40 = vmax.f32 %v3192_v19, 0.0 }
 0x478   : > { %v2946_v48 = vpop.f32.mrf.mxu2  ;;  %16429 = vst [vmem:[#allocation189_spill] sm:$0xff] %v12343_v4 }
 0x479   : > { %v3016_v24 = vadd.f32 %v2946_v48, %v2882_v2  ;;  %v12345_v26 = vpop.f32.mrf.mxu0  ;;  %v3256_v12 = vpack.c.bf16 %v3224_v40, %v3224_v40  ;;  %v16440_v40 = vld [vmem:[#allocation91_spill] sm:$0xff] }
 0x47a   : > { %v2817_v53 = vpop.f32.mrf.mxu1  ;;  %8700 = vmatmul.msk.bf16.gmra.mxu3 %vm1432_vm11, %v12352_v43 }
 0x47b   : > { %v3157_v51 = vadd.f32 %v16432_v29, %v3016_v24  ;;  %v2884_v27 = vadd.f32 %v2817_v53, %v2540_v33  ;;  %v16435_v24 = vld [vmem:[#allocation216_spill] sm:$0xff]  ;;  %v7414_v55 = vunpack.c.l.b16 %v3256_v12  ;;  %v16436_v33 = vld [vmem:[#allocation179_spill] sm:$0xff] }
 0x47c   : > { %v2541_v29 = vadd.f32 %v16435_v24, %v11783_v61 }
 0x47d   : > { %v3193_v2 = vadd.f32 %v12166_v1, %v3157_v51  ;;  %8616 = vmatmul.msk.bf16.gmra.mxu2 %vm1432_vm11, %v16433_v63  ;;  %v12360_v48 = vpop.f32.mrf.mxu3  ;;  %v16438_v63 = vld [vmem:[#allocation108_spill] sm:$0xff] }
 0x47e   : > { %16434 = vst [vmem:[#allocation293_spill] sm:$0xff] %v12360_v48  ;;  %v16439_v56 = vpack.c.b16 %v16437_v35, %v16438_v63  ;;  %v16448_v63 = vld [vmem:[#allocation82_spill] sm:$0xff] }
 0x47f   : > { %v3225_v11 = vmax.f32 %v3193_v2, 0.0 }
 0x480   : > { %v2949_v6 = vpop.f32.mrf.mxu2 }
 0x481   : > { %v3257_v7 = vpack.c.bf16 %v3225_v11, %v3225_v11  ;;  %v3017_v18 = vadd.f32 %v2949_v6, %v2883_v25  ;;  %v12362_v19 = vpop.f32.mrf.mxu0  ;;  %v2730_v25 = vsel %vm10082_vm4, %v16440_v40, 0 }
 0x482   : > { %v2820_v51 = vpop.f32.mrf.mxu1 }
 0x483   : > { %v7415_v42 = vunpack.c.l.b16 %v3257_v7  ;;  %v3158_v53 = vadd.f32 %v16436_v33, %v3017_v18  ;;  %v2885_v4 = vadd.f32 %v2820_v51, %v2541_v29  ;;  %v16443_v18 = vld [vmem:[#allocation306_spill] sm:$0xff]  ;;  %v16447_v33 = vld [vmem:[#allocation73_spill] sm:$0xff] }
 0x484   : > { %8706 = vmatmul.msk.bf16.gmra.mxu0 %vm1432_vm11, %v16439_v56  ;;  %v12382_v12 = vsel %vm5327_vm9, %v5424_v59, %v16443_v18  ;;  %v16445_v56 = vld [vmem:[#allocation221_spill] sm:$0xff]  ;;  %v16446_v29 = vld [vmem:[#allocation78_spill] sm:$0xff] }
 0x485   : > { %v12374_v6 = vpack.c.b16 %v7415_v42, %v7414_v55  ;;  %8600 = vmatmul.msk.bf16.gmra.mxu1 %vm1432_vm11, %v2730_v25  ;;  %v12377_v61 = vpop.f32.mrf.mxu3  ;;  %v3194_v2 = vadd.f32 %v12166_v1, %v3158_v53  ;;  %16444 = vst [vmem:[#allocation56_spill] sm:$0xff] %v12382_v12  ;;  %v2542_v24 = vadd.f32 %v16445_v56, %v11804_v45  ;;  %v12391_v55 = vsel %vm11772_vm12, %v16446_v29, 0 }
 0x486   : > { %16442 = vst [vmem:[#allocation291_spill] sm:$0xff] %v12377_v61  ;;  %v16452_v61 = vld [vmem:[#allocation118_spill] sm:$0xff] }
 0x487   : > { %16441 = vst [vmem:[#allocation297_spill] sm:$0xff] %v12374_v6  ;;  %v3226_v42 = vmax.f32 %v3194_v2, 0.0 }
 0x488   : > { %v2951_v11 = vpop.f32.mrf.mxu2 }
 0x489   : > { %v3018_v35 = vadd.f32 %v2951_v11, %v2884_v27  ;;  %v12384_v7 = vpop.f32.mrf.mxu0  ;;  %v3258_v45 = vpack.c.bf16 %v3226_v42, %v3226_v42  ;;  %v16455_v42 = vld [vmem:[#allocation94_spill] sm:$0xff] }
 0x48a   : > { %v2822_v53 = vpop.f32.mrf.mxu1  ;;  %8701 = vmatmul.msk.bf16.gmra.mxu3 %vm1432_vm11, %v12391_v55 }
 0x48b   : > { %v3159_v51 = vadd.f32 %v16447_v33, %v3018_v35  ;;  %v2886_v59 = vadd.f32 %v2822_v53, %v2542_v24  ;;  %v16450_v35 = vld [vmem:[#allocation225_spill] sm:$0xff]  ;;  %v7416_v33 = vunpack.c.l.b16 %v3258_v45  ;;  %v16451_v24 = vld [vmem:[#allocation72_spill] sm:$0xff] }
 0x48c   : > { %v2543_v29 = vadd.f32 %v16450_v35, %v11826_v58  ;;  %v16460_v35 = vld [vmem:[#allocation86_spill] sm:$0xff] }
 0x48d   : > { %v3195_v27 = vadd.f32 %v12166_v1, %v3159_v51  ;;  %8617 = vmatmul.msk.bf16.gmra.mxu2 %vm1432_vm11, %v16448_v63  ;;  %v12399_v40 = vpop.f32.mrf.mxu3  ;;  %v16453_v63 = vld [vmem:[#allocation117_spill] sm:$0xff] }
 0x48e   : > { %16449 = vst [vmem:[#allocation64_spill] sm:$0xff] %v12399_v40  ;;  %v16454_v48 = vpack.c.b16 %v16452_v61, %v16453_v63  ;;  %v16458_v61 = vld [vmem:[#allocation231_spill] sm:$0xff] }
 0x48f   : > { %v3227_v25 = vmax.f32 %v3195_v27, 0.0 }
 0x490   : > { %v2954_v18 = vpop.f32.mrf.mxu2 }
 0x491   : > { %v3259_v11 = vpack.c.bf16 %v3227_v25, %v3227_v25  ;;  %v3019_v56 = vadd.f32 %v2954_v18, %v2885_v4  ;;  %v12401_v2 = vpop.f32.mrf.mxu0  ;;  %v2731_v4 = vsel %vm10082_vm4, %v16455_v42, 0 }
 0x492   : > { %v2825_v51 = vpop.f32.mrf.mxu1 }
 0x493   : > { %v7417_v6 = vunpack.c.l.b16 %v3259_v11  ;;  %v3160_v53 = vadd.f32 %v16451_v24, %v3019_v56  ;;  %v2887_v12 = vadd.f32 %v2825_v51, %v2543_v29  ;;  %v2544_v56 = vadd.f32 %v16458_v61, %v11846_v50  ;;  %v16463_v61 = vld [vmem:[#allocation15_spill] sm:$0xff] }
 0x494   : > { %8707 = vmatmul.msk.bf16.gmra.mxu0 %vm1432_vm11, %v16454_v48  ;;  %v16459_v48 = vld [vmem:[#allocation206_spill] sm:$0xff] }
 0x495   : > { %v12413_v27 = vpack.c.b16 %v7417_v6, %v7416_v33  ;;  %8601 = vmatmul.msk.bf16.gmra.mxu1 %vm1432_vm11, %v2731_v4  ;;  %v12416_v58 = vpop.f32.mrf.mxu3  ;;  %v3196_v45 = vadd.f32 %v12166_v1, %v3160_v53  ;;  %v12426_v44 = vsel %vm11772_vm12, %v16459_v48, 0  ;;  %v16461_v53 = vld [vmem:[#allocation89_spill] sm:$0xff] }
 0x496   : > { %16457 = vst [vmem:[#allocation69_spill] sm:$0xff] %v12416_v58  ;;  %v16465_v58 = vld [vmem:[#allocation133_spill] sm:$0xff] }
 0x497   : > { %16456 = vst [vmem:[#allocation55_spill] sm:$0xff] %v12413_v27  ;;  %v3228_v6 = vmax.f32 %v3196_v45, 0.0 }
 0x498   : > { %v2956_v25 = vpop.f32.mrf.mxu2 }
 0x499   : > { %v3020_v18 = vadd.f32 %v2956_v25, %v2886_v59  ;;  %v12419_v11 = vpop.f32.mrf.mxu0  ;;  %v2907_v59 = vsel %vm10036_vm5, %v16461_v53, 0  ;;  %v3260_v63 = vpack.c.bf16 %v3228_v6, %v3228_v6 }
 0x49a   : > { %v2827_v33 = vpop.f32.mrf.mxu1  ;;  %8702 = vmatmul.msk.bf16.gmra.mxu3 %vm1432_vm11, %v12426_v44 }
 0x49b   : > { %v3161_v29 = vadd.f32 %v16460_v35, %v3020_v18  ;;  %v2888_v24 = vadd.f32 %v2827_v33, %v2544_v56  ;;  %v2545_v56 = vadd.f32 %v16463_v61, %v11870_v54  ;;  %v7418_v48 = vunpack.c.l.b16 %v3260_v63  ;;  %v16464_v33 = vld [vmem:[#allocation190_spill] sm:$0xff] }
 0x49d   : > { %v3197_v51 = vadd.f32 %v12166_v1, %v3161_v29  ;;  %8618 = vmatmul.msk.bf16.gmra.mxu2 %vm1432_vm11, %v2907_v59  ;;  %v12436_v50 = vpop.f32.mrf.mxu3  ;;  %v4031_v29 = vrot.slane %v10828_v17, 7 }
 0x49e   : > { %16462 = vst [vmem:[#allocation196_spill] sm:$0xff] %v12436_v50  ;;  %v16466_v50 = vld [vmem:[#allocation132_spill] sm:$0xff] }
 0x49f   : > { %v3229_v42 = vmax.f32 %v3197_v51, 0.0  ;;  %v16467_v6 = vpack.c.b16 %v16465_v58, %v16466_v50  ;;  %v16468_v51 = vld [vmem:[#allocation102_spill] sm:$0xff] }
 0x4a0   : > { %v2959_v4 = vpop.f32.mrf.mxu2 }
 0x4a1   : > { %v3261_v45 = vpack.c.bf16 %v3229_v42, %v3229_v42  ;;  %v3021_v25 = vadd.f32 %v2959_v4, %v2887_v12  ;;  %v12438_v18 = vpop.f32.mrf.mxu0  ;;  %v2732_v12 = vsel %vm9968_vm7, %v16468_v51, 0  ;;  %v16471_v4 = vrot.slane %v16202_v38, 7  ;;  %v16473_v38 = vld [vmem:[#allocation16_spill] sm:$0xff] }
 0x4a2   : > { %v2830_v27 = vpop.f32.mrf.mxu1 }
 0x4a3   : > { %v7419_v35 = vunpack.c.l.b16 %v3261_v45  ;;  %v3162_v53 = vadd.f32 %v16464_v33, %v3021_v25  ;;  %v2889_v59 = vadd.f32 %v2830_v27, %v2545_v56  ;;  %v4032_v27 = vsel %vm1330_vm15, %v16471_v4, %v4031_v29  ;;  %v16472_v25 = vld [vmem:[#allocation238_spill] sm:$0xff] }
 0x4a4   : > { %8708 = vmatmul.msk.bf16.gmra.mxu0 %vm1432_vm11, %v16467_v6  ;;  %v2546_v61 = vadd.f32 %v16472_v25, %v11894_v13  ;;  %v4037_v56 = vsel %vm11772_vm12, %v4032_v27, 0  ;;  %v2908_v6 = vsel %vm9968_vm7, %v16473_v38, 0 }
 0x4a5   : > { %v12451_v42 = vpack.c.b16 %v7419_v35, %v7418_v48  ;;  %8602 = vmatmul.msk.bf16.gmra.mxu1 %vm1432_vm11, %v2732_v12  ;;  %v12454_v54 = vpop.f32.mrf.mxu3  ;;  %v3198_v63 = vadd.f32 %v12166_v1, %v3162_v53 }
 0x4a6   : > { %16470 = vst [vmem:[#allocation65_spill] sm:$0xff] %v12454_v54 }
 0x4a7   : > { %16469 = vst [vmem:[#allocation299_spill] sm:$0xff] %v12451_v42  ;;  %v3230_v48 = vmax.f32 %v3198_v63, 0.0  ;;  %v16477_v42 = vld [vmem:[#allocation150_spill] sm:$0xff] }
 0x4a8   : > { %v2961_v45 = vpop.f32.mrf.mxu2 }
 0x4a9   : > { %v3022_v58 = vadd.f32 %v2961_v45, %v2888_v24  ;;  %v12460_v50 = vpop.f32.mrf.mxu0  ;;  %v3262_v13 = vpack.c.bf16 %v3230_v48, %v3230_v48  ;;  %v16475_v45 = vld [vmem:[#allocation20_spill] sm:$0xff] }
 0x4aa   : > { %v2832_v33 = vpop.f32.mrf.mxu1  ;;  %8703 = vmatmul.msk.bf16.gmra.mxu3 %vm1432_vm11, %v4037_v56 }
 0x4ab   : > { %v3163_v35 = vadd.f32 %v11720_v37, %v3022_v58  ;;  %v2890_v53 = vadd.f32 %v2832_v33, %v2546_v61  ;;  %v2547_v58 = vadd.f32 %v16475_v45, %v11747_v60  ;;  %v7420_v25 = vunpack.c.l.b16 %v3262_v13 }
 0x4ad   : > { %v3199_v24 = vadd.f32 %v12166_v1, %v3163_v35  ;;  %8619 = vmatmul.msk.bf16.gmra.mxu2 %vm1432_vm11, %v2908_v6  ;;  %v12473_v51 = vpop.f32.mrf.mxu3  ;;  %v16476_v35 = vld [vmem:[#allocation230_spill] sm:$0xff] }
 0x4ae   : > { %16474 = vst [vmem:[#allocation298_spill] sm:$0xff] %v12473_v51  ;;  %v4033_v38 = vrot.slane %v16476_v35, 7  ;;  %v16478_v51 = vld [vmem:[#allocation149_spill] sm:$0xff] }
 0x4af   : > { %v3231_v12 = vmax.f32 %v3199_v24, 0.0  ;;  %v16479_v48 = vpack.c.b16 %v16477_v42, %v16478_v51  ;;  %v16480_v24 = vld [vmem:[#allocation223_spill] sm:$0xff]  ;;  %v16484_v42 = vld [vmem:[#allocation53_spill] sm:$0xff] }
 0x4b0   : > { %v2964_v4 = vpop.f32.mrf.mxu2  ;;  %v4034_v13 = vsel %vm1330_vm15, %v4031_v29, %v4033_v38 }
 0x4b1   : > { %v3263_v63 = vpack.c.bf16 %v3231_v12, %v3231_v12  ;;  %v3023_v27 = vadd.f32 %v2964_v4, %v2889_v59  ;;  %v12475_v37 = vpop.f32.mrf.mxu0  ;;  %v3450_v59 = vsel %vm9968_vm7, %v16480_v24, 0  ;;  %v12496_v4 = vrot.slane %v16476_v35, 1  ;;  %v16514_v24 = vld [vmem:[#allocation197_spill] sm:$0xff] }
 0x4b2   : > { %v2835_v33 = vpop.f32.mrf.mxu1  ;;  %v4038_v29 = vsel %vm11772_vm12, %v4034_v13, 0 }
 0x4b3   : > { %v7421_v61 = vunpack.c.l.b16 %v3263_v63  ;;  %v3164_v56 = vadd.f32 %v11739_v0, %v3023_v27  ;;  %v2891_v6 = vadd.f32 %v2835_v33, %v2547_v58  ;;  %16483 = vst [vmem:[#allocation70_spill] sm:$0xff] %v12496_v4  ;;  %v16485_v27 = vrot.slane %v10828_v17, 1 }
 0x4b4   : > { %8709 = vmatmul.msk.bf16.gmra.mxu0 %vm1432_vm11, %v16479_v48 }
 0x4b5   : > { %v12488_v12 = vpack.c.b16 %v7421_v61, %v7420_v25  ;;  %8655 = vmatmul.msk.bf16.vlgmr.msra.gmra.mxu1 %vm1432_vm11, %v3450_v59  ;;  %v12491_v60 = vpop.f32.mrf.mxu3  ;;  %v3200_v0 = vadd.f32 %v12166_v1, %v3164_v56  ;;  %v12503_v45 = vsel %vm3774_vm8, %v16485_v27, %v12496_v4  ;;  %v16488_v25 = vld [vmem:[#allocation242_spill] sm:$0xff] }
 0x4b6   : > { %16482 = vst [vmem:[#allocation199_spill] sm:$0xff] %v12491_v60  ;;  %5584 = vmatpush.bf16.msra.mxu1 %v16484_v42  ;;  %v2548_v61 = vadd.f32 %v16488_v25, %v11785_v22  ;;  %v3846_v48 = vsel %vm9968_vm7, %v12503_v45, 0  ;;  %v16490_v22 = vld [vmem:[#allocation77_spill] sm:$0xff]  ;;  %v16491_v27 = vld [vmem:[#allocation38_spill] sm:$0xff] }
 0x4b7   : > { %16481 = vst [vmem:[#allocation62_spill] sm:$0xff] %v12488_v12  ;;  %v3232_v56 = vmax.f32 %v3200_v0, 0.0  ;;  %v3291_v25 = vadd.s32 2, %v16491_v27 }
 0x4b8   : > { %v2966_v51 = vpop.f32.mrf.mxu2  ;;  %16486 = vst [vmem:[#allocation75_spill] sm:$0xff] %v12503_v45  ;;  %v16537_v45 = vld [vmem:[#allocation18_spill] sm:$0xff] }
 0x4b9   : > { %v3024_v63 = vadd.f32 %v2966_v51, %v2890_v53  ;;  %v12505_v58 = vpop.f32.mrf.mxu0  ;;  %v3264_v13 = vpack.c.bf16 %v3232_v56, %v3232_v56  ;;  %vm3295_vm15 = vcmp.lt.s32.totalorder %v3291_v25, 16 }
 0x4ba   : > { %16487 = vst [vmem:[#allocation204_spill] sm:$0xff] %v12505_v58  ;;  %v2837_v38 = vpop.f32.mrf.mxu1  ;;  %8704 = vmatmul.msk.bf16.gmra.mxu3 %vm1432_vm11, %v4038_v29  ;;  %v16493_v29 = vld [vmem:[#allocation22_spill] sm:$0xff]  ;;  %vm3833_vm4 = vmpackc.low %vm3295_vm15, %vm3295_vm15 }
 0x4bb   : > { %v3165_v33 = vadd.f32 %v11767_v57, %v3024_v63  ;;  %v2892_v53 = vadd.f32 %v2837_v38, %v2548_v61  ;;  %v2549_v38 = vadd.f32 %v16493_v29, %v11806_v32 }
 0x4bd   : > { %v3201_v59 = vadd.f32 %v12166_v1, %v3165_v33  ;;  %8673 = vmatmul.msk.bf16.vlgmr.msrb.gmra.mxu2 %vm1432_vm11, %v3846_v48  ;;  %v12518_v42 = vpop.f32.mrf.mxu3  ;;  %v16494_v33 = vld [vmem:[#allocation224_spill] sm:$0xff] }
 0x4be   : > { %16489 = vst [vmem:[#allocation191_spill] sm:$0xff] %v12518_v42  ;;  %5721 = vmatpush.bf16.msrb.mxu2 %v16490_v22  ;;  %v16495_v12 = vrot.slane %v16494_v33, 3  ;;  %v7422_v42 = vunpack.c.l.b16 %v3264_v13  ;;  %v16506_v33 = vld [vmem:[#allocation48_spill] sm:$0xff] }
 0x4bf   : > { %v3233_v0 = vmax.f32 %v3201_v59, 0.0 }
 0x4c0   : > { %v2969_v51 = vpop.f32.mrf.mxu2  ;;  %v12530_v48 = vsel %vm3311_vm13, %v16495_v12, %v11751_v15 }
 0x4c1   : > { %v3265_v57 = vpack.c.bf16 %v3233_v0, %v3233_v0  ;;  %v3025_v63 = vadd.f32 %v2969_v51, %v2891_v6  ;;  %v12522_v61 = vpop.f32.mrf.mxu0  ;;  %16496 = vst [vmem:[#allocation68_spill] sm:$0xff] %v12530_v48  ;;  %v16497_v6 = vld [vmem:[#allocation156_spill] sm:$0xff]  ;;  %v16498_v51 = vld [vmem:[#allocation155_spill] sm:$0xff]  ;;  %v3451_v32 = vsel %vm9968_vm7, %v12530_v48, 0 }
 0x4c2   : > { %16492 = vst [vmem:[#allocation71_spill] sm:$0xff] %v12522_v61  ;;  %v2840_v59 = vpop.f32.mrf.mxu1  ;;  %v16499_v60 = vpack.c.b16 %v16497_v6, %v16498_v51  ;;  %v16507_v6 = vld [vmem:[#allocation80_spill] sm:$0xff]  ;;  %v16539_v61 = vld [vmem:[#allocation165_spill] sm:$0xff] }
 0x4c3   : > { %v7423_v22 = vunpack.c.l.b16 %v3265_v57  ;;  %v3166_v56 = vadd.f32 %v11801_v47, %v3025_v63  ;;  %v2893_v0 = vadd.f32 %v2840_v59, %v2549_v38  ;;  %v16502_v57 = vrot.slane %v10045_v3, 1 }
 0x4c4   : > { %8710 = vmatmul.msk.bf16.gmra.mxu0 %vm1432_vm11, %v16499_v60 }
 0x4c5   : > { %v12540_v29 = vpack.c.b16 %v7423_v22, %v7422_v42  ;;  %8656 = vmatmul.msk.bf16.gmra.mxu1 %vm1432_vm11, %v3451_v32  ;;  %v12543_v15 = vpop.f32.mrf.mxu3  ;;  %v3202_v47 = vadd.f32 %v12166_v1, %v3166_v56  ;;  %v12550_v60 = vsel %vm3774_vm8, %v12496_v4, %v16502_v57  ;;  %v16505_v42 = vld [vmem:[#allocation247_spill] sm:$0xff]  ;;  %v16508_v56 = vmov 0  }
 0x4c6   : > { %16501 = vst [vmem:[#allocation134_spill] sm:$0xff] %v12543_v15  ;;  %v2550_v25 = vadd.f32 %v16505_v42, %v11828_v8  ;;  %v3847_v32 = vsel %vm9968_vm7, %v12550_v60, 0 }
 0x4c7   : > { %16500 = vst [vmem:[#allocation207_spill] sm:$0xff] %v12540_v29  ;;  %v3234_v38 = vmax.f32 %v3202_v47, 0.0 }
 0x4c8   : > { %v2971_v12 = vpop.f32.mrf.mxu2  ;;  %16503 = vst [vmem:[#allocation99_spill] sm:$0xff] %v12550_v60  ;;  %v16515_v60 = vld [vmem:[#allocation161_spill] sm:$0xff] }
 0x4c9   : > { %v3026_v13 = vadd.f32 %v2971_v12, %v2892_v53  ;;  %v12552_v63 = vpop.f32.mrf.mxu0  ;;  %v3835_v53 = vsel %vm3833_vm4, 65537, %v16508_v56  ;;  %v16509_v12 = vld [vmem:[#allocation218_spill] sm:$0xff] }
 0x4ca   : > { %16504 = vst [vmem:[#allocation97_spill] sm:$0xff] %v12552_v63  ;;  %v2842_v59 = vpop.f32.mrf.mxu1  ;;  %8753 = vmatmul.msk.bf16.vlgmr.msra.gmra.mxu3 %vm1432_vm11, %v16507_v6  ;;  %v3837_v47 = vunpack.c.l.b16 %v3835_v53  ;;  %v16538_v63 = vld [vmem:[#allocation166_spill] sm:$0xff] }
 0x4cb   : > { %v3167_v22 = vadd.f32 %v16506_v33, %v3026_v13  ;;  %v2894_v51 = vadd.f32 %v2842_v59, %v2550_v25  ;;  %6873 = vmatpush.bf16.msra.mxu3 %v16509_v12  ;;  %v3266_v13 = vpack.c.bf16 %v3234_v38, %v3234_v38  ;;  %v16512_v25 = vld [vmem:[#allocation88_spill] sm:$0xff]  ;;  %v16513_v59 = vld [vmem:[#allocation25_spill] sm:$0xff]  ;;  %v16540_v58 = vpack.c.b16 %v16538_v63, %v16539_v61  ;;  %v16547_v61 = vld [vmem:[#allocation26_spill] sm:$0xff] }
 0x4cc   : > { %v2551_v4 = vadd.f32 %v16513_v59, %v16512_v25  ;;  %v8672_v48 = vunpack.i.l.s16 %v3837_v47  ;;  %v16530_v25 = vld [vmem:[#allocation107_spill] sm:$0xff] }
 0x4cd   : > { %v3203_v57 = vadd.f32 %v12166_v1, %v3167_v22  ;;  %8674 = vmatmul.msk.bf16.gmra.mxu2 %vm1432_vm11, %v3847_v32  ;;  %v12566_v8 = vpop.f32.mrf.mxu3  ;;  %v7424_v54 = vunpack.c.l.b16 %v3266_v13 }
 0x4ce   : > { %16510 = vst [vmem:[#allocation83_spill] sm:$0xff] %v12566_v8  ;;  %v16516_v8 = vld [vmem:[#allocation160_spill] sm:$0xff] }
 0x4cf   : > { %v3235_v42 = vmax.f32 %v3203_v57, 0.0  ;;  %v16517_v53 = vpack.c.b16 %v16515_v60, %v16516_v8  ;;  %v16528_v60 = vld [vmem:[#allocation23_spill] sm:$0xff]  ;;  %v16529_v8 = vld [vmem:[#allocation253_spill] sm:$0xff] }
 0x4d0   : > { %v2974_v33 = vpop.f32.mrf.mxu2 }
 0x4d1   : > { %v3267_v6 = vpack.c.bf16 %v3235_v42, %v3235_v42  ;;  %v3027_v29 = vadd.f32 %v2974_v33, %v2893_v0  ;;  %v12568_v15 = vpop.f32.mrf.mxu0  ;;  %v16519_v0 = vld [vmem:[#allocation95_spill] sm:$0xff]  ;;  %v16521_v42 = vld [vmem:[#allocation46_spill] sm:$0xff]  ;;  %v2552_v33 = vadd.f32 %v16529_v8, %v16528_v60 }
 0x4d2   : > { %16511 = vst [vmem:[#allocation79_spill] sm:$0xff] %v12568_v15  ;;  %v2845_v40 = vpop.f32.mrf.mxu1  ;;  %vm3844_vm13 = vcmp.ne.s32.totalorder %v8672_v48, %v16521_v42 }
 0x4d3   : > { %v7425_v12 = vunpack.c.l.b16 %v3267_v6  ;;  %v3168_v22 = vadd.f32 %v16514_v24, %v3027_v29  ;;  %v2895_v32 = vadd.f32 %v2845_v40, %v2551_v4  ;;  %v16522_v29 = vld [vmem:[#allocation47_spill] sm:$0xff]  ;;  %v16523_v40 = vld [vmem:[#allocation44_spill] sm:$0xff] }
 0x4d4   : > { %8711 = vmatmul.msk.bf16.gmra.mxu0 %vm1432_vm11, %v16517_v53  ;;  %vm16524_vm2 = vcmp.ne.s32.totalorder %v16522_v29, %v16523_v40  ;;  %v16826_v29 = vld [vmem:[#allocation69_spill] sm:$0xff] }
 0x4d5   : > { %v12577_v38 = vpack.c.b16 %v7425_v12, %v7424_v54  ;;  %8657 = vmatmul.msk.bf16.gmra.mxu1 %vm1432_vm11, %v16519_v0  ;;  %v12581_v57 = vpop.f32.mrf.mxu3  ;;  %v3204_v47 = vadd.f32 %v12166_v1, %v3168_v22  ;;  %vm12588_vm15 = vmpackc.low %vm3844_vm13, %vm16524_vm2  ;;  %v16531_v12 = vld [vmem:[#allocation211_spill] sm:$0xff]  ;;  %v16532_v22 = vld [vmem:[#allocation248_spill] sm:$0xff] }
 0x4d6   : > { %16520 = vst [vmem:[#allocation212_spill] sm:$0xff] %v12581_v57  ;;  %v12602_v53 = vsel %vm12588_vm15, %v16532_v22, 0 }
 0x4d7   : > { %16518 = vst [vmem:[#allocation304_spill] sm:$0xff] %v12577_v38  ;;  %v3236_v6 = vmax.f32 %v3204_v47, 0.0 }
 0x4d8   : > { %v2976_v13 = vpop.f32.mrf.mxu2 }
 0x4d9   : > { %v3028_v24 = vadd.f32 %v2976_v13, %v2894_v51  ;;  %v12592_v54 = vpop.f32.mrf.mxu0  ;;  %v3268_v47 = vpack.c.bf16 %v3236_v6, %v3236_v6 }
 0x4da   : > { %16527 = vst [vmem:[#allocation67_spill] sm:$0xff] %v12592_v54  ;;  %v2847_v48 = vpop.f32.mrf.mxu1  ;;  %8754 = vmatmul.msk.bf16.gmra.mxu3 %vm1432_vm11, %v16531_v12 }
 0x4db   : > { %v3169_v59 = vadd.f32 %v16530_v25, %v3028_v24  ;;  %v2896_v51 = vadd.f32 %v2847_v48, %v2552_v33  ;;  %v16535_v33 = vld [vmem:[#allocation205_spill] sm:$0xff]  ;;  %v16536_v48 = vld [vmem:[#allocation28_spill] sm:$0xff]  ;;  %v7426_v57 = vunpack.c.l.b16 %v3268_v47 }
 0x4dc   : > { %v2553_v12 = vadd.f32 %v16536_v48, %v16535_v33 }
 0x4dd   : > { %v3205_v0 = vadd.f32 %v12166_v1, %v3169_v59  ;;  %8675 = vmatmul.msk.bf16.gmra.mxu2 %vm1432_vm11, %v12602_v53  ;;  %v12607_v13 = vpop.f32.mrf.mxu3 }
 0x4de   : > { %16533 = vst [vmem:[#allocation195_spill] sm:$0xff] %v12607_v13  ;;  %v16553_v13 = vld [vmem:[#allocation172_spill] sm:$0xff] }
 0x4df   : > { %v3237_v60 = vmax.f32 %v3205_v0, 0.0  ;;  %v16542_v0 = vld [vmem:[#allocation213_spill] sm:$0xff] }
 0x4e0   : > { %v2979_v24 = vpop.f32.mrf.mxu2 }
 0x4e1   : > { %v3269_v8 = vpack.c.bf16 %v3237_v60, %v3237_v60  ;;  %v3029_v25 = vadd.f32 %v2979_v24, %v2895_v32  ;;  %v12609_v38 = vpop.f32.mrf.mxu0 }
 0x4e2   : > { %16534 = vst [vmem:[#allocation74_spill] sm:$0xff] %v12609_v38  ;;  %v2850_v59 = vpop.f32.mrf.mxu1 }
 0x4e3   : > { %v7427_v22 = vunpack.c.l.b16 %v3269_v8  ;;  %v3170_v54 = vadd.f32 %v16537_v45, %v3029_v25  ;;  %v2897_v15 = vadd.f32 %v2850_v59, %v2553_v12  ;;  %v16545_v45 = vld [vmem:[#allocation36_spill] sm:$0xff]  ;;  %v16549_v12 = vld [vmem:[#allocation119_spill] sm:$0xff] }
 0x4e4   : > { %8712 = vmatmul.msk.bf16.gmra.mxu0 %vm1432_vm11, %v16540_v58  ;;  %v16546_v25 = vld [vmem:[#allocation104_spill] sm:$0xff]  ;;  %v12635_v59 = vsel %vm12588_vm15, %v16549_v12, 0  ;;  %v16552_v12 = vld [vmem:[#allocation130_spill] sm:$0xff] }
 0x4e5   : > { %v12618_v6 = vpack.c.b16 %v7427_v22, %v7426_v57  ;;  %8658 = vmatmul.msk.bf16.gmra.mxu1 %vm1432_vm11, %v16542_v0  ;;  %v12622_v32 = vpop.f32.mrf.mxu3  ;;  %v3206_v60 = vadd.f32 %v12166_v1, %v3170_v54  ;;  %v2554_v33 = vadd.f32 %v16546_v25, %v16545_v45  ;;  %v16548_v57 = vld [vmem:[#allocation105_spill] sm:$0xff] }
 0x4e6   : > { %16543 = vst [vmem:[#allocation179_spill] sm:$0xff] %v12622_v32 }
 0x4e7   : > { %16541 = vst [vmem:[#allocation216_spill] sm:$0xff] %v12618_v6  ;;  %v3238_v48 = vmax.f32 %v3206_v60, 0.0 }
 0x4e8   : > { %v2981_v47 = vpop.f32.mrf.mxu2 }
 0x4e9   : > { %v3030_v24 = vadd.f32 %v2981_v47, %v2896_v51  ;;  %v12625_v8 = vpop.f32.mrf.mxu0  ;;  %v3270_v0 = vpack.c.bf16 %v3238_v48, %v3238_v48 }
 0x4ea   : > { %16544 = vst [vmem:[#allocation109_spill] sm:$0xff] %v12625_v8  ;;  %v2852_v58 = vpop.f32.mrf.mxu1  ;;  %8755 = vmatmul.msk.bf16.gmra.mxu3 %vm1432_vm11, %v16548_v57  ;;  %v16554_v8 = vld [vmem:[#allocation170_spill] sm:$0xff] }
 0x4eb   : > { %v3171_v63 = vadd.f32 %v16547_v61, %v3030_v24  ;;  %v2898_v22 = vadd.f32 %v2852_v58, %v2554_v33  ;;  %v16551_v33 = vld [vmem:[#allocation31_spill] sm:$0xff]  ;;  %v7428_v58 = vunpack.c.l.b16 %v3270_v0  ;;  %v16555_v38 = vpack.c.b16 %v16553_v13, %v16554_v8 }
 0x4ec   : > { %v2555_v61 = vadd.f32 %v16551_v33, %v11954_v21  ;;  %v16560_v8 = vld [vmem:[#allocation87_spill] sm:$0xff] }
 0x4ed   : > { %v3207_v54 = vadd.f32 %v12166_v1, %v3171_v63  ;;  %8676 = vmatmul.msk.bf16.gmra.mxu2 %vm1432_vm11, %v12635_v59  ;;  %v12640_v51 = vpop.f32.mrf.mxu3 }
 0x4ee   : > { %16550 = vst [vmem:[#allocation108_spill] sm:$0xff] %v12640_v51  ;;  %v16594_v51 = vld [vmem:[#allocation192_spill] sm:$0xff] }
 0x4ef   : > { %v3239_v60 = vmax.f32 %v3207_v54, 0.0  ;;  %v16557_v54 = vld [vmem:[#allocation112_spill] sm:$0xff] }
 0x4f0   : > { %v2984_v47 = vpop.f32.mrf.mxu2 }
 0x4f1   : > { %v3271_v24 = vpack.c.bf16 %v3239_v60, %v3239_v60  ;;  %v3031_v45 = vadd.f32 %v2984_v47, %v2897_v15  ;;  %v12642_v25 = vpop.f32.mrf.mxu0 }
 0x4f2   : > { %v2855_v63 = vpop.f32.mrf.mxu1 }
 0x4f3   : > { %v7429_v57 = vunpack.c.l.b16 %v3271_v24  ;;  %v3172_v6 = vadd.f32 %v16552_v12, %v3031_v45  ;;  %v2899_v32 = vadd.f32 %v2855_v63, %v2555_v61  ;;  %v16559_v24 = vld [vmem:[#allocation265_spill] sm:$0xff] }
 0x4f4   : > { %8713 = vmatmul.msk.bf16.gmra.mxu0 %vm1432_vm11, %v16555_v38  ;;  %v2556_v45 = vadd.f32 %v16559_v24, %v11987_v41 }
 0x4f5   : > { %v12651_v48 = vpack.c.b16 %v7429_v57, %v7428_v58  ;;  %8659 = vmatmul.msk.bf16.gmra.mxu1 %vm1432_vm11, %v16557_v54  ;;  %v12655_v15 = vpop.f32.mrf.mxu3  ;;  %v3208_v21 = vadd.f32 %v12166_v1, %v3172_v6  ;;  %v16561_v58 = vld [vmem:[#allocation258_spill] sm:$0xff] }
 0x4f6   : > { %16558 = vst [vmem:[#allocation306_spill] sm:$0xff] %v12655_v15  ;;  %v12668_v57 = vsel %vm12588_vm15, %v16561_v58, 0  ;;  %v16564_v58 = vld [vmem:[#allocation180_spill] sm:$0xff] }
 0x4f7   : > { %16556 = vst [vmem:[#allocation91_spill] sm:$0xff] %v12651_v48  ;;  %v3240_v33 = vmax.f32 %v3208_v21, 0.0  ;;  %v16565_v48 = vld [vmem:[#allocation178_spill] sm:$0xff] }
 0x4f8   : > { %v2986_v0 = vpop.f32.mrf.mxu2  ;;  %v16566_v15 = vpack.c.b16 %v16564_v58, %v16565_v48 }
 0x4f9   : > { %v3032_v60 = vadd.f32 %v2986_v0, %v2898_v22  ;;  %v12658_v47 = vpop.f32.mrf.mxu0  ;;  %v3272_v41 = vpack.c.bf16 %v3240_v33, %v3240_v33  ;;  %v16563_v0 = vld [vmem:[#allocation34_spill] sm:$0xff] }
 0x4fa   : > { %v2857_v38 = vpop.f32.mrf.mxu1  ;;  %8756 = vmatmul.msk.bf16.gmra.mxu3 %vm1432_vm11, %v16560_v8 }
 0x4fb   : > { %v3173_v13 = vadd.f32 %v11975_v5, %v3032_v60  ;;  %v2900_v61 = vadd.f32 %v2857_v38, %v2556_v45  ;;  %v2557_v60 = vadd.f32 %v16563_v0, %v12008_v39  ;;  %v7430_v24 = vunpack.c.l.b16 %v3272_v41  ;;  %v16571_v0 = vld [vmem:[#allocation227_spill] sm:$0xff] }
 0x4fd   : > { %v3209_v6 = vadd.f32 %v12166_v1, %v3173_v13  ;;  %8677 = vmatmul.msk.bf16.gmra.mxu2 %vm1432_vm11, %v12668_v57  ;;  %v12673_v22 = vpop.f32.mrf.mxu3 }
 0x4fe   : > { %16562 = vst [vmem:[#allocation221_spill] sm:$0xff] %v12673_v22  ;;  %v16593_v22 = vld [vmem:[#allocation194_spill] sm:$0xff] }
 0x4ff   : > { %v3241_v12 = vmax.f32 %v3209_v6, 0.0  ;;  %v16568_v6 = vld [vmem:[#allocation243_spill] sm:$0xff] }
 0x500   : > { %v2989_v5 = vpop.f32.mrf.mxu2 }
 0x501   : > { %v3273_v63 = vpack.c.bf16 %v3241_v12, %v3241_v12  ;;  %v3033_v54 = vadd.f32 %v2989_v5, %v2899_v32  ;;  %v12675_v21 = vpop.f32.mrf.mxu0 }
 0x502   : > { %v2860_v13 = vpop.f32.mrf.mxu1 }
 0x503   : > { %v7431_v45 = vunpack.c.l.b16 %v3273_v63  ;;  %v3174_v38 = vadd.f32 %v12004_v10, %v3033_v54  ;;  %v2901_v8 = vadd.f32 %v2860_v13, %v2557_v60  ;;  %v16570_v10 = vld [vmem:[#allocation273_spill] sm:$0xff] }
 0x504   : > { %8714 = vmatmul.msk.bf16.gmra.mxu0 %vm1432_vm11, %v16566_v15  ;;  %v2558_v63 = vadd.f32 %v16570_v10, %v12037_v49 }
 0x505   : > { %v12684_v33 = vpack.c.b16 %v7431_v45, %v7430_v24  ;;  %8660 = vmatmul.msk.bf16.gmra.mxu1 %vm1432_vm11, %v16568_v6  ;;  %v12688_v32 = vpop.f32.mrf.mxu3  ;;  %v3210_v39 = vadd.f32 %v12166_v1, %v3174_v38  ;;  %v16572_v24 = vld [vmem:[#allocation263_spill] sm:$0xff] }
 0x506   : > { %16569 = vst [vmem:[#allocation73_spill] sm:$0xff] %v12688_v32  ;;  %v12701_v45 = vsel %vm12588_vm15, %v16572_v24, 0  ;;  %v16576_v24 = vld [vmem:[#allocation187_spill] sm:$0xff] }
 0x507   : > { %16567 = vst [vmem:[#allocation78_spill] sm:$0xff] %v12684_v33  ;;  %v3242_v54 = vmax.f32 %v3210_v39, 0.0  ;;  %v16577_v33 = vld [vmem:[#allocation52_spill] sm:$0xff] }
 0x508   : > { %v2991_v41 = vpop.f32.mrf.mxu2  ;;  %v16578_v32 = vpack.c.b16 %v16576_v24, %v16577_v33  ;;  %v16585_v33 = vld [vmem:[#allocation35_spill] sm:$0xff] }
 0x509   : > { %v3034_v12 = vadd.f32 %v2991_v41, %v2900_v61  ;;  %v12691_v5 = vpop.f32.mrf.mxu0  ;;  %v3274_v49 = vpack.c.bf16 %v3242_v54, %v3242_v54  ;;  %v16575_v41 = vld [vmem:[#allocation40_spill] sm:$0xff] }
 0x50a   : > { %v2862_v15 = vpop.f32.mrf.mxu1  ;;  %8757 = vmatmul.msk.bf16.gmra.mxu3 %vm1432_vm11, %v16571_v0 }
 0x50b   : > { %v3175_v48 = vadd.f32 %v12029_v14, %v3034_v12  ;;  %v2902_v60 = vadd.f32 %v2862_v15, %v2558_v63  ;;  %v2559_v12 = vadd.f32 %v16575_v41, %v12058_v23  ;;  %v7432_v10 = vunpack.c.l.b16 %v3274_v49 }
 0x50d   : > { %v3211_v61 = vadd.f32 %v12166_v1, %v3175_v48  ;;  %8678 = vmatmul.msk.bf16.gmra.mxu2 %vm1432_vm11, %v12701_v45  ;;  %v12706_v38 = vpop.f32.mrf.mxu3 }
 0x50e   : > { %16573 = vst [vmem:[#allocation82_spill] sm:$0xff] %v12706_v38 }
 0x50f   : > { %v3243_v13 = vmax.f32 %v3211_v61, 0.0  ;;  %v16580_v61 = vld [vmem:[#allocation17_spill] sm:$0xff] }
 0x510   : > { %v2994_v14 = vpop.f32.mrf.mxu2 }
 0x511   : > { %v3275_v58 = vpack.c.bf16 %v3243_v13, %v3243_v13  ;;  %v3035_v6 = vadd.f32 %v2994_v14, %v2901_v8  ;;  %v12708_v39 = vpop.f32.mrf.mxu0 }
 0x512   : > { %16574 = vst [vmem:[#allocation225_spill] sm:$0xff] %v12708_v39  ;;  %v2865_v48 = vpop.f32.mrf.mxu1  ;;  %v16648_v39 = vld [vmem:[#allocation93_spill] sm:$0xff] }
 0x513   : > { %v7433_v63 = vunpack.c.l.b16 %v3275_v58  ;;  %v3176_v15 = vadd.f32 %v12054_v31, %v3035_v6  ;;  %v2903_v0 = vadd.f32 %v2865_v48, %v2559_v12  ;;  %v16583_v31 = vld [vmem:[#allocation158_spill] sm:$0xff]  ;;  %v16587_v48 = vld [vmem:[#allocation271_spill] sm:$0xff] }
 0x514   : > { %8715 = vmatmul.msk.bf16.gmra.mxu0 %vm1432_vm11, %v16578_v32  ;;  %v16584_v58 = vld [vmem:[#allocation282_spill] sm:$0xff]  ;;  %v12734_v24 = vsel %vm12588_vm15, %v16587_v48, 0 }
 0x515   : > { %v12717_v54 = vpack.c.b16 %v7433_v63, %v7432_v10  ;;  %8661 = vmatmul.msk.bf16.gmra.mxu1 %vm1432_vm11, %v16580_v61  ;;  %v12721_v8 = vpop.f32.mrf.mxu3  ;;  %v3212_v23 = vadd.f32 %v12166_v1, %v3176_v15  ;;  %v2560_v6 = vadd.f32 %v16584_v58, %v16583_v31  ;;  %v16586_v10 = vld [vmem:[#allocation29_spill] sm:$0xff] }
 0x516   : > { %16581 = vst [vmem:[#allocation118_spill] sm:$0xff] %v12721_v8 }
 0x517   : > { %16579 = vst [vmem:[#allocation72_spill] sm:$0xff] %v12717_v54  ;;  %v3244_v41 = vmax.f32 %v3212_v23, 0.0  ;;  %v16592_v54 = vld [vmem:[#allocation157_spill] sm:$0xff] }
 0x518   : > { %v2996_v49 = vpop.f32.mrf.mxu2 }
 0x519   : > { %v3036_v13 = vadd.f32 %v2996_v49, %v2902_v60  ;;  %v12724_v14 = vpop.f32.mrf.mxu0  ;;  %v3276_v61 = vpack.c.bf16 %v3244_v41, %v3244_v41 }
 0x51a   : > { %16582 = vst [vmem:[#allocation117_spill] sm:$0xff] %v12724_v14  ;;  %v2867_v32 = vpop.f32.mrf.mxu1  ;;  %8758 = vmatmul.msk.bf16.gmra.mxu3 %vm1432_vm11, %v16586_v10  ;;  %v16595_v14 = vpack.c.b16 %v16593_v22, %v16594_v51  ;;  %v16602_v51 = vld [vmem:[#allocation260_spill] sm:$0xff] }
 0x51b   : > { %v3177_v12 = vadd.f32 %v16585_v33, %v3036_v13  ;;  %v2904_v63 = vadd.f32 %v2867_v32, %v2560_v6  ;;  %v16590_v6 = vld [vmem:[#allocation159_spill] sm:$0xff]  ;;  %v7434_v10 = vunpack.c.l.b16 %v3276_v61 }
 0x51c   : > { %v16591_v33 = vld [vmem:[#allocation43_spill] sm:$0xff] }
 0x51d   : > { %v3213_v60 = vadd.f32 %v12166_v1, %v3177_v12  ;;  %8679 = vmatmul.msk.bf16.gmra.mxu2 %vm1432_vm11, %v12734_v24  ;;  %v12739_v15 = vpop.f32.mrf.mxu3  ;;  %v2561_v32 = vadd.f32 %v16591_v33, %v16590_v6 }
 0x51e   : > { %16588 = vst [vmem:[#allocation94_spill] sm:$0xff] %v12739_v15 }
 0x51f   : > { %v3245_v23 = vmax.f32 %v3213_v60, 0.0  ;;  %v16597_v60 = vld [vmem:[#allocation232_spill] sm:$0xff] }
 0x520   : > { %v2999_v49 = vpop.f32.mrf.mxu2 }
 0x521   : > { %v3277_v13 = vpack.c.bf16 %v3245_v23, %v3245_v23  ;;  %v3037_v31 = vadd.f32 %v2999_v49, %v2903_v0  ;;  %v12741_v58 = vpop.f32.mrf.mxu0 }
 0x522   : > { %16589 = vst [vmem:[#allocation231_spill] sm:$0xff] %v12741_v58  ;;  %v2870_v12 = vpop.f32.mrf.mxu1 }
 0x523   : > { %v7435_v48 = vunpack.c.l.b16 %v3277_v13  ;;  %v3178_v8 = vadd.f32 %v16592_v54, %v3037_v31  ;;  %v2905_v38 = vadd.f32 %v2870_v12, %v2561_v32  ;;  %v16600_v54 = vld [vmem:[#allocation164_spill] sm:$0xff]  ;;  %v16601_v31 = vld [vmem:[#allocation290_spill] sm:$0xff] }
 0x524   : > { %8716 = vmatmul.msk.bf16.gmra.mxu0 %vm1432_vm11, %v16595_v14  ;;  %v2562_v6 = vadd.f32 %v16601_v31, %v16600_v54  ;;  %v16603_v32 = vld [vmem:[#allocation228_spill] sm:$0xff] }
 0x525   : > { %v12750_v41 = vpack.c.b16 %v7435_v48, %v7434_v10  ;;  %8662 = vmatmul.msk.bf16.gmra.mxu1 %vm1432_vm11, %v16597_v60  ;;  %v12754_v0 = vpop.f32.mrf.mxu3  ;;  %v3214_v23 = vadd.f32 %v12166_v1, %v3178_v8  ;;  %v16604_v48 = vld [vmem:[#allocation280_spill] sm:$0xff] }
 0x526   : > { %16598 = vst [vmem:[#allocation86_spill] sm:$0xff] %v12754_v0  ;;  %v12767_v12 = vsel %vm12588_vm15, %v16604_v48, 0  ;;  %v16609_v0 = vld [vmem:[#allocation200_spill] sm:$0xff] }
 0x527   : > { %16596 = vst [vmem:[#allocation206_spill] sm:$0xff] %v12750_v41  ;;  %v3246_v33 = vmax.f32 %v3214_v23, 0.0  ;;  %v16608_v41 = vld [vmem:[#allocation202_spill] sm:$0xff] }
 0x528   : > { %v3001_v61 = vpop.f32.mrf.mxu2 }
 0x529   : > { %v3038_v49 = vadd.f32 %v3001_v61, %v2904_v63  ;;  %v12757_v13 = vpop.f32.mrf.mxu0  ;;  %v3278_v60 = vpack.c.bf16 %v3246_v33, %v3246_v33 }
 0x52a   : > { %16599 = vst [vmem:[#allocation89_spill] sm:$0xff] %v12757_v13  ;;  %v2872_v14 = vpop.f32.mrf.mxu1  ;;  %8759 = vmatmul.msk.bf16.gmra.mxu3 %vm1432_vm11, %v16603_v32 }
 0x52b   : > { %v3179_v22 = vadd.f32 %v16602_v51, %v3038_v49  ;;  %v2906_v10 = vadd.f32 %v2872_v14, %v2562_v6  ;;  %v7436_v6 = vunpack.c.l.b16 %v3278_v60  ;;  %v16607_v14 = vld [vmem:[#allocation274_spill] sm:$0xff] }
 0x52d   : > { %v3215_v8 = vadd.f32 %v12166_v1, %v3179_v22  ;;  %8680 = vmatmul.msk.bf16.gmra.mxu2 %vm1432_vm11, %v12767_v12  ;;  %v12772_v63 = vpop.f32.mrf.mxu3  ;;  %v16610_v1 = vpack.c.b16 %v16608_v41, %v16609_v0  ;;  %v16615_v0 = vld [vmem:[#allocation266_spill] sm:$0xff] }
 0x52e   : > { %16605 = vst [vmem:[#allocation15_spill] sm:$0xff] %v12772_v63  ;;  %v16612_v63 = vld [vmem:[#allocation254_spill] sm:$0xff] }
 0x52f   : > { %v3247_v23 = vmax.f32 %v3215_v8, 0.0 }
 0x530   : > { %v3004_v61 = vpop.f32.mrf.mxu2 }
 0x531   : > { %v3279_v49 = vpack.c.bf16 %v3247_v23, %v3247_v23  ;;  %v3039_v54 = vadd.f32 %v3004_v61, %v2905_v38  ;;  %v12774_v31 = vpop.f32.mrf.mxu0  ;;  %v12790_v38 = vld [vmem:[%s15370_s4] ss:$0 sm:$0xff] }
 0x532   : > { %16606 = vst [vmem:[#allocation190_spill] sm:$0xff] %v12774_v31  ;;  %v3694_v48 = vpop.f32.mrf.mxu1 }
 0x533   : > { %v7437_v51 = vunpack.c.l.b16 %v3279_v49  ;;  %v3180_v32 = vadd.f32 %v16607_v14, %v3039_v54 }
 0x534   : > { %8717 = vmatmul.msk.bf16.gmra.mxu0 %vm1432_vm11, %v16610_v1  ;;  %v16619_v1 = vld [vmem:[#allocation111_spill] sm:$0xff] }
 0x535   : > { %v12781_v22 = vpack.c.b16 %v7437_v51, %v7436_v6  ;;  %8663 = vmatmul.msk.bf16.gmra.mxu1 %vm1432_vm11, %v16612_v63  ;;  %v12785_v33 = vpop.f32.mrf.mxu3  ;;  %v3216_v8 = vadd.f32 %v12790_v38, %v3180_v32  ;;  %v16616_v6 = vld [vmem:[#allocation154_spill] sm:$0xff]  ;;  %v16617_v63 = vld [vmem:[#allocation288_spill] sm:$0xff] }
 0x536   : > { %16613 = vst [vmem:[#allocation132_spill] sm:$0xff] %v12785_v33  ;;  %v12801_v51 = vsel %vm12588_vm15, %v16617_v63, 0 }
 0x537   : > { %16611 = vst [vmem:[#allocation133_spill] sm:$0xff] %v12781_v22  ;;  %v3248_v41 = vmax.f32 %v3216_v8, 0.0  ;;  %v3695_v8 = vadd.f32 %v3694_v48, %v16619_v1 }
 0x538   : > { %v3006_v60 = vpop.f32.mrf.mxu2 }
 0x539   : > { %v3040_v23 = vadd.f32 %v3006_v60, %v2906_v10  ;;  %v12793_v61 = vpop.f32.mrf.mxu0  ;;  %v3280_v32 = vpack.c.bf16 %v3248_v41, %v3248_v41  ;;  %v16625_v41 = vld [vmem:[#allocation45_spill] sm:$0xff] }
 0x53a   : > { %16614 = vst [vmem:[#allocation102_spill] sm:$0xff] %v12793_v61  ;;  %v3696_v54 = vpop.f32.mrf.mxu1  ;;  %8760 = vmatmul.msk.bf16.gmra.mxu3 %vm1432_vm11, %v16616_v6  ;;  %v16621_v61 = vld [vmem:[#allocation210_spill] sm:$0xff] }
 0x53b   : > { %v3181_v49 = vadd.f32 %v16615_v0, %v3040_v23  ;;  %v7438_v33 = vunpack.c.l.b16 %v3280_v32 }
 0x53d   : > { %v3217_v14 = vadd.f32 %v12790_v38, %v3181_v49  ;;  %8681 = vmatmul.msk.bf16.gmra.mxu2 %vm1432_vm11, %v12801_v51  ;;  %v12806_v10 = vpop.f32.mrf.mxu3  ;;  %v16622_v49 = vld [vmem:[#allocation208_spill] sm:$0xff] }
 0x53e   : > { %16618 = vst [vmem:[#allocation238_spill] sm:$0xff] %v12806_v10  ;;  %v16623_v31 = vpack.c.b16 %v16621_v61, %v16622_v49  ;;  %v16630_v61 = vld [vmem:[#allocation295_spill] sm:$0xff]  ;;  %v16638_v10 = vld [vmem:[#allocation126_spill] sm:$0xff] }
 0x53f   : > { %v3249_v60 = vmax.f32 %v3217_v14, 0.0  ;;  %v16627_v14 = vld [vmem:[#allocation121_spill] sm:$0xff] }
 0x540   : > { %v3919_v23 = vpop.f32.mrf.mxu2  ;;  %v3697_v1 = vadd.f32 %v3696_v54, %v16627_v14  ;;  %v16631_v54 = vld [vmem:[#allocation219_spill] sm:$0xff] }
 0x541   : > { %v3281_v0 = vpack.c.bf16 %v3249_v60, %v3249_v60  ;;  %v12809_v22 = vadd.f32 %v3919_v23, %v3695_v8  ;;  %v12811_v6 = vpop.f32.mrf.mxu0 }
 0x542   : > { %16620 = vst [vmem:[#allocation16_spill] sm:$0xff] %v12811_v6  ;;  %v3699_v15 = vpop.f32.mrf.mxu1 }
 0x543   : > { %v7439_v63 = vunpack.c.l.b16 %v3281_v0  ;;  %v16629_v0 = vld [vmem:[#allocation163_spill] sm:$0xff] }
 0x544   : > { %8718 = vmatmul.msk.bf16.gmra.mxu0 %vm1432_vm11, %v16623_v31  ;;  %v12833_v31 = vsel %vm12588_vm15, %v16630_v61, 0  ;;  %v16636_v61 = vld [vmem:[#allocation181_spill] sm:$0xff] }
 0x545   : > { %v12817_v13 = vpack.c.b16 %v7439_v63, %v7438_v33  ;;  %8664 = vmatmul.msk.bf16.gmra.mxu1 %vm1432_vm11, %v16625_v41  ;;  %v12821_v48 = vpop.f32.mrf.mxu3  ;;  %v3700_v63 = vadd.f32 %v3699_v15, %v16631_v54 }
 0x546   : > { %16626 = vst [vmem:[#allocation230_spill] sm:$0xff] %v12821_v48 }
 0x547   : > { %16624 = vst [vmem:[#allocation20_spill] sm:$0xff] %v12817_v13 }
 0x548   : > { %v3921_v8 = vpop.f32.mrf.mxu2 }
 0x549   : > { %v12824_v60 = vadd.f32 %v3921_v8, %v3697_v1  ;;  %v12826_v32 = vpop.f32.mrf.mxu0  ;;  %v16633_v8 = vld [vmem:[#allocation220_spill] sm:$0xff] }
 0x54a   : > { %16628 = vst [vmem:[#allocation150_spill] sm:$0xff] %v12826_v32  ;;  %v3701_v23 = vpop.f32.mrf.mxu1  ;;  %8761 = vmatmul.msk.bf16.gmra.mxu3 %vm1432_vm11, %v16629_v0  ;;  %v16634_v0 = vld [vmem:[#allocation217_spill] sm:$0xff] }
 0x54b   : > { %v16635_v13 = vpack.c.b16 %v16633_v8, %v16634_v0  ;;  %v3702_v32 = vadd.f32 %v3701_v23, %v16638_v10  ;;  %v16643_v10 = vld [vmem:[#allocation145_spill] sm:$0xff] }
 0x54d   : > { %8682 = vmatmul.msk.bf16.gmra.mxu2 %vm1432_vm11, %v12833_v31  ;;  %v12837_v33 = vpop.f32.mrf.mxu3 }
 0x550   : > { %v3924_v49 = vpop.f32.mrf.mxu2 }
 0x551   : > { %v12840_v41 = vadd.f32 %v3924_v49, %v3700_v63  ;;  %v12842_v14 = vpop.f32.mrf.mxu0  ;;  %v16640_v49 = vld [vmem:[#allocation269_spill] sm:$0xff] }
 0x552   : > { %16632 = vst [vmem:[#allocation149_spill] sm:$0xff] %v12842_v14  ;;  %v3704_v1 = vpop.f32.mrf.mxu1  ;;  %v16641_v14 = vld [vmem:[#allocation301_spill] sm:$0xff] }
 0x553   : > { %v3705_v23 = vadd.f32 %v3704_v1, %v16643_v10 }
 0x554   : > { %8719 = vmatmul.msk.bf16.gmra.mxu0 %vm1432_vm11, %v16635_v13  ;;  %v12862_v13 = vsel %vm12588_vm15, %v16641_v14, 0 }
 0x555   : > { %8665 = vmatmul.msk.bf16.gmra.mxu1 %vm1432_vm11, %v16636_v61  ;;  %v12850_v48 = vpop.f32.mrf.mxu3 }
 0x556   : > { %16637 = vst [vmem:[#allocation53_spill] sm:$0xff] %v12850_v48 }
 0x558   : > { %v3926_v6 = vpop.f32.mrf.mxu2 }
 0x559   : > { %v12853_v15 = vadd.f32 %v3926_v6, %v3702_v32  ;;  %v12855_v54 = vpop.f32.mrf.mxu0 }
 0x55a   : > { %16639 = vst [vmem:[#allocation242_spill] sm:$0xff] %v12855_v54  ;;  %v3706_v63 = vpop.f32.mrf.mxu1  ;;  %8762 = vmatmul.msk.bf16.gmra.mxu3 %vm1432_vm11, %v16640_v49  ;;  %v16645_v54 = vld [vmem:[#allocation229_spill] sm:$0xff]  ;;  %v16646_v49 = vld [vmem:[#allocation226_spill] sm:$0xff] }
 0x55b   : > { %v16647_v58 = vpack.c.b16 %v16645_v54, %v16646_v49 }
 0x55d   : > { %8683 = vmatmul.msk.bf16.gmra.mxu2 %vm1432_vm11, %v12862_v13  ;;  %v12866_v8 = vpop.f32.mrf.mxu3 }
 0x55e   : > { %16642 = vst [vmem:[#allocation77_spill] sm:$0xff] %v12866_v8  ;;  %v3707_v8 = vadd.f32 %v3706_v63, %v16648_v39  ;;  %v16652_v39 = vld [vmem:[#allocation151_spill] sm:$0xff] }
 0x560   : > { %v3929_v6 = vpop.f32.mrf.mxu2 }
 0x561   : > { %v12869_v32 = vadd.f32 %v3929_v6, %v3705_v23  ;;  %v12871_v0 = vpop.f32.mrf.mxu0  ;;  %v16650_v6 = vld [vmem:[#allocation100_spill] sm:$0xff] }
 0x562   : > { %16644 = vst [vmem:[#allocation38_spill] sm:$0xff] %v12871_v0  ;;  %v3709_v61 = vpop.f32.mrf.mxu1 }
 0x563   : > { %v3710_v54 = vadd.f32 %v3709_v61, %v16652_v39 }
 0x564   : > { %8720 = vmatmul.msk.bf16.gmra.mxu0 %vm1432_vm11, %v16647_v58  ;;  %v12891_v58 = vsel %vm12588_vm15, %v16650_v6, 0  ;;  %v16655_v6 = vld [vmem:[#allocation24_spill] sm:$0xff] }
 0x565   : > { %8666 = vmatmul.msk.bf16.gmra.mxu1 %vm1432_vm11, %v12251_v34  ;;  %v12879_v14 = vpop.f32.mrf.mxu3 }
 0x568   : > { %v3931_v48 = vpop.f32.mrf.mxu2 }
 0x569   : > { %v12882_v1 = vadd.f32 %v3931_v48, %v3707_v8  ;;  %v12884_v10 = vpop.f32.mrf.mxu0 }
 0x56a   : > { %16649 = vst [vmem:[#allocation22_spill] sm:$0xff] %v12884_v10  ;;  %v3711_v23 = vpop.f32.mrf.mxu1  ;;  %8763 = vmatmul.msk.bf16.gmra.mxu3 %vm1432_vm11, %v12221_v20  ;;  %v16656_v10 = vld [vmem:[#allocation256_spill] sm:$0xff] }
 0x56b   : > { %v3712_v0 = vadd.f32 %v3711_v23, %v16656_v10  ;;  %v16661_v10 = vld [vmem:[#allocation41_spill] sm:$0xff] }
 0x56d   : > { %8684 = vmatmul.msk.bf16.gmra.mxu2 %vm1432_vm11, %v12891_v58  ;;  %v12895_v34 = vpop.f32.mrf.mxu3 }
 0x56e   : > { %16651 = vst [vmem:[#allocation224_spill] sm:$0xff] %v12895_v34 }
 0x570   : > { %v3934_v48 = vpop.f32.mrf.mxu2 }
 0x571   : > { %v12898_v63 = vadd.f32 %v3934_v48, %v3710_v54  ;;  %v12900_v8 = vpop.f32.mrf.mxu0  ;;  %v16659_v48 = vld [vmem:[#allocation66_spill] sm:$0xff] }
 0x572   : > { %16653 = vst [vmem:[#allocation156_spill] sm:$0xff] %v12900_v8  ;;  %v3714_v49 = vpop.f32.mrf.mxu1  ;;  %v12919_v8 = vsel %vm12588_vm15, %v16659_v48, 0  ;;  %v16664_v48 = vld [vmem:[#allocation173_spill] sm:$0xff] }
 0x573   : > { %v3715_v23 = vadd.f32 %v3714_v49, %v16661_v10  ;;  %v4820_v10 = vsel %vm10036_vm5, %v10828_v17, 0 }
 0x574   : > { %8769 = vmatmul.msk.bf16.vlgmr.msra.gmra.mxu0 %vm1432_vm11, %v12668_v57 }
 0x575   : > { %8667 = vmatmul.msk.bf16.gmra.mxu1 %vm1432_vm11, %v12303_v28  ;;  %v12906_v20 = vpop.f32.mrf.mxu3  ;;  %7018 = vmatpush.bf16.msra.mxu0 %v16655_v6 }
 0x576   : > { %16654 = vst [vmem:[#allocation155_spill] sm:$0xff] %v12906_v20 }
 0x578   : > { %v3936_v34 = vpop.f32.mrf.mxu2 }
 0x579   : > { %v12910_v61 = vadd.f32 %v3936_v34, %v3712_v0  ;;  %v12912_v39 = vpop.f32.mrf.mxu0 }
 0x57a   : > { %16658 = vst [vmem:[#allocation48_spill] sm:$0xff] %v12912_v39  ;;  %v3716_v54 = vpop.f32.mrf.mxu1  ;;  %8764 = vmatmul.msk.bf16.gmra.mxu3 %vm1432_vm11, %v12273_v62 }
 0x57b   : > { %16657 = vst [vmem:[#allocation247_spill] sm:$0xff] %v12910_v61  ;;  %v3717_v20 = vadd.f32 %v3716_v54, %v16664_v48 }
 0x57d   : > { %8685 = vmatmul.msk.bf16.gmra.mxu2 %vm1432_vm11, %v12919_v8  ;;  %v12923_v28 = vpop.f32.mrf.mxu3 }
 0x57e   : > { %16660 = vst [vmem:[#allocation80_spill] sm:$0xff] %v12923_v28 }
 0x580   : > { %v3939_v0 = vpop.f32.mrf.mxu2 }
 0x581   : > { %v12926_v34 = vadd.f32 %v3939_v0, %v3715_v23  ;;  %v12928_v6 = vpop.f32.mrf.mxu0  ;;  %v16667_v0 = vld [vmem:[#allocation184_spill] sm:$0xff] }
 0x582   : > { %16662 = vst [vmem:[#allocation218_spill] sm:$0xff] %v12928_v6  ;;  %v3719_v39 = vpop.f32.mrf.mxu1 }
 0x584   : > { %8770 = vmatmul.msk.bf16.gmra.mxu0 %vm1432_vm11, %v12701_v45 }
 0x585   : > { %8668 = vmatmul.msk.bf16.gmra.mxu1 %vm1432_vm11, %v12352_v43  ;;  %v12934_v62 = vpop.f32.mrf.mxu3  ;;  %v12948_v43 = vsel %vm12588_vm15, %v16667_v0, 0  ;;  %v16671_v0 = vld [vmem:[#allocation169_spill] sm:$0xff] }
 0x586   : > { %16663 = vst [vmem:[#allocation88_spill] sm:$0xff] %v12934_v62 }
 0x588   : > { %v3941_v61 = vpop.f32.mrf.mxu2 }
 0x589   : > { %v12937_v28 = vadd.f32 %v3941_v61, %v3717_v20  ;;  %v12939_v49 = vpop.f32.mrf.mxu0  ;;  %v16669_v20 = vld [vmem:[#allocation168_spill] sm:$0xff] }
 0x58a   : > { %16666 = vst [vmem:[#allocation197_spill] sm:$0xff] %v12939_v49  ;;  %v3721_v23 = vpop.f32.mrf.mxu1  ;;  %8765 = vmatmul.msk.bf16.gmra.mxu3 %vm1432_vm11, %v4820_v10  ;;  %v3720_v61 = vadd.f32 %v3719_v39, %v16669_v20  ;;  %v4821_v20 = vsel %vm10036_vm5, %v16476_v35, 0 }
 0x58b   : > { %16665 = vst [vmem:[#allocation25_spill] sm:$0xff] %v12937_v28  ;;  %v3722_v62 = vadd.f32 %v3721_v23, %v16671_v0 }
 0x58d   : > { %8686 = vmatmul.msk.bf16.gmra.mxu2 %vm1432_vm11, %v12948_v43  ;;  %v12952_v54 = vpop.f32.mrf.mxu3 }
 0x58e   : > { %16668 = vst [vmem:[#allocation161_spill] sm:$0xff] %v12952_v54 }
 0x590   : > { %v3944_v48 = vpop.f32.mrf.mxu2 }
 0x591   : > { %v12955_v49 = vadd.f32 %v3944_v48, %v3720_v61  ;;  %v12957_v6 = vpop.f32.mrf.mxu0  ;;  %v16673_v48 = vld [vmem:[#allocation203_spill] sm:$0xff] }
 0x592   : > { %16670 = vst [vmem:[#allocation160_spill] sm:$0xff] %v12957_v6  ;;  %v3724_v17 = vpop.f32.mrf.mxu1 }
 0x594   : > { %8771 = vmatmul.msk.bf16.gmra.mxu0 %vm1432_vm11, %v12734_v24 }
 0x595   : > { %8669 = vmatmul.msk.bf16.gmra.mxu1 %vm1432_vm11, %v12391_v55  ;;  %v12963_v10 = vpop.f32.mrf.mxu3  ;;  %v12977_v55 = vsel %vm12588_vm15, %v16673_v48, 0  ;;  %v16676_v48 = vld [vmem:[#allocation174_spill] sm:$0xff] }
 0x598   : > { %v3946_v28 = vpop.f32.mrf.mxu2 }
 0x599   : > { %v12966_v54 = vadd.f32 %v3946_v28, %v3722_v62  ;;  %v12968_v39 = vpop.f32.mrf.mxu0  ;;  %v3725_v28 = vadd.f32 %v3724_v17, %v12213_v9  ;;  %v4822_v17 = vsel %vm9968_vm7, %v10045_v3, 0 }
 0x59a   : > { %16672 = vst [vmem:[#allocation95_spill] sm:$0xff] %v12968_v39  ;;  %v3726_v61 = vpop.f32.mrf.mxu1  ;;  %8766 = vmatmul.msk.bf16.gmra.mxu3 %vm1432_vm11, %v4821_v20 }
 0x59b   : > { %v3727_v39 = vadd.f32 %v3726_v61, %v16676_v48 }
 0x59d   : > { %8687 = vmatmul.msk.bf16.gmra.mxu2 %vm1432_vm11, %v12977_v55  ;;  %v12981_v23 = vpop.f32.mrf.mxu3 }
 0x59e   : > { %16674 = vst [vmem:[#allocation46_spill] sm:$0xff] %v12981_v23 }
 0x5a0   : > { %v3949_v62 = vpop.f32.mrf.mxu2 }
 0x5a1   : > { %v12984_v0 = vadd.f32 %v3949_v62, %v3725_v28  ;;  %v12986_v16 = vpop.f32.mrf.mxu0  ;;  %v16678_v62 = vld [vmem:[#allocation81_spill] sm:$0xff] }
 0x5a2   : > { %16675 = vst [vmem:[#allocation47_spill] sm:$0xff] %v12986_v16  ;;  %v3729_v35 = vpop.f32.mrf.mxu1 }
 0x5a4   : > { %8772 = vmatmul.msk.bf16.gmra.mxu0 %vm1432_vm11, %v12767_v12 }
 0x5a5   : > { %8670 = vmatmul.msk.bf16.gmra.mxu1 %vm1432_vm11, %v12426_v44  ;;  %v12992_v20 = vpop.f32.mrf.mxu3  ;;  %v3861_v44 = vsel %vm12588_vm15, %v16678_v62, 0 }
 0x5a8   : > { %v3951_v6 = vpop.f32.mrf.mxu2 }
 0x5a9   : > { %v12995_v23 = vadd.f32 %v3951_v6, %v3727_v39  ;;  %v12997_v9 = vpop.f32.mrf.mxu0  ;;  %v3730_v6 = vadd.f32 %v3729_v35, %v12265_v52 }
 0x5aa   : > { %16677 = vst [vmem:[#allocation44_spill] sm:$0xff] %v12997_v9  ;;  %v3731_v28 = vpop.f32.mrf.mxu1  ;;  %8767 = vmatmul.msk.bf16.gmra.mxu3 %vm1432_vm11, %v4822_v17  ;;  %v16682_v17 = vld [vmem:[#allocation284_spill] sm:$0xff] }
 0x5ab   : > { %v3732_v62 = vadd.f32 %v3731_v28, %v16682_v17  ;;  %v16688_v17 = vld [vmem:[#allocation84_spill] sm:$0xff] }
 0x5ad   : > { %8688 = vmatmul.msk.bf16.gmra.mxu2 %vm1432_vm11, %v3861_v44  ;;  %v13007_v16 = vpop.f32.mrf.mxu3  ;;  %v16683_v44 = vld [vmem:[#allocation131_spill] sm:$0xff] }
 0x5ae   : > { %16679 = vst [vmem:[#allocation23_spill] sm:$0xff] %v13007_v16 }
 0x5b0   : > { %v3954_v39 = vpop.f32.mrf.mxu2 }
 0x5b1   : > { %v13010_v61 = vadd.f32 %v3954_v39, %v3730_v6  ;;  %v13012_v48 = vpop.f32.mrf.mxu0  ;;  %v16685_v6 = vld [vmem:[#allocation110_spill] sm:$0xff] }
 0x5b2   : > { %16681 = vst [vmem:[#allocation107_spill] sm:$0xff] %v13012_v48  ;;  %v3734_v9 = vpop.f32.mrf.mxu1  ;;  %v4823_v39 = vsel %vm9968_vm7, %v16685_v6, 0 }
 0x5b3   : > { %16680 = vst [vmem:[#allocation253_spill] sm:$0xff] %v13010_v61  ;;  %v16686_v61 = vld [vmem:[#allocation90_spill] sm:$0xff] }
 0x5b4   : > { %8773 = vmatmul.msk.bf16.gmra.mxu0 %vm1432_vm11, %v12801_v51 }
 0x5b5   : > { %8721 = vmatmul.msk.bf16.vlgmr.msrb.gmra.mxu1 %vm1432_vm11, %v12602_v53  ;;  %v13018_v3 = vpop.f32.mrf.mxu3  ;;  %v4635_v53 = vsel %vm11772_vm12, %v16686_v61, 0 }
 0x5b6   : > { %6428 = vmatpush.bf16.msrb.mxu1 %v16683_v44 }
 0x5b8   : > { %v3956_v16 = vpop.f32.mrf.mxu2 }
 0x5b9   : > { %v13022_v52 = vadd.f32 %v3956_v16, %v3732_v62  ;;  %v13024_v35 = vpop.f32.mrf.mxu0  ;;  %v3735_v16 = vadd.f32 %v3734_v9, %v12315_v46  ;;  %v16694_v9 = vld [vmem:[#allocation141_spill] sm:$0xff] }
 0x5ba   : > { %16684 = vst [vmem:[#allocation211_spill] sm:$0xff] %v13024_v35  ;;  %v3736_v48 = vpop.f32.mrf.mxu1  ;;  %8768 = vmatmul.msk.bf16.gmra.mxu3 %vm1432_vm11, %v4823_v39 }
 0x5bb   : > { %v3737_v39 = vadd.f32 %v3736_v48, %v12345_v26 }
 0x5bd   : > { %8737 = vmatmul.msk.bf16.vlgmr.msra.gmra.mxu2 %vm1432_vm11, %v4635_v53  ;;  %v13034_v28 = vpop.f32.mrf.mxu3 }
 0x5be   : > { %16687 = vst [vmem:[#allocation205_spill] sm:$0xff] %v13034_v28  ;;  %6578 = vmatpush.bf16.msra.mxu2 %v16688_v17 }
 0x5c0   : > { %v3959_v62 = vpop.f32.mrf.mxu2 }
 0x5c1   : > { %v13038_v44 = vadd.f32 %v3959_v62, %v3735_v16  ;;  %v13040_v35 = vpop.f32.mrf.mxu0  ;;  %v5928_v16 = vsel %vm9968_vm7, %v16694_v9, 0  ;;  %v16701_v9 = vld [vmem:[#allocation137_spill] sm:$0xff] }
 0x5c2   : > { %16690 = vst [vmem:[#allocation18_spill] sm:$0xff] %v13040_v35  ;;  %v3739_v6 = vpop.f32.mrf.mxu1  ;;  %v16695_v35 = vld [vmem:[#allocation259_spill] sm:$0xff] }
 0x5c3   : > { %16689 = vst [vmem:[#allocation28_spill] sm:$0xff] %v13038_v44  ;;  %v3740_v26 = vadd.f32 %v3739_v6, %v12362_v19 }
 0x5c4   : > { %8774 = vmatmul.msk.bf16.gmra.mxu0 %vm1432_vm11, %v12833_v31 }
 0x5c5   : > { %8722 = vmatmul.msk.bf16.gmra.mxu1 %vm1432_vm11, %v12635_v59  ;;  %v13046_v61 = vpop.f32.mrf.mxu3  ;;  %v4636_v59 = vsel %vm11772_vm12, %v16695_v35, 0 }
 0x5c6   : > { %16691 = vst [vmem:[#allocation166_spill] sm:$0xff] %v13046_v61 }
 0x5c8   : > { %v3961_v53 = vpop.f32.mrf.mxu2 }
 0x5c9   : > { %v13049_v17 = vadd.f32 %v3961_v53, %v3737_v39  ;;  %v13051_v46 = vpop.f32.mrf.mxu0 }
 0x5ca   : > { %16693 = vst [vmem:[#allocation213_spill] sm:$0xff] %v13051_v46  ;;  %v3741_v62 = vpop.f32.mrf.mxu1  ;;  %8821 = vmatmul.msk.bf16.vlgmr.msrb.gmra.mxu3 %vm1432_vm11, %v5928_v16 }
 0x5cb   : > { %16692 = vst [vmem:[#allocation165_spill] sm:$0xff] %v13049_v17  ;;  %v3742_v35 = vadd.f32 %v3741_v62, %v12384_v7 }
 0x5cd   : > { %8738 = vmatmul.msk.bf16.gmra.mxu2 %vm1432_vm11, %v4636_v59  ;;  %v13061_v61 = vpop.f32.mrf.mxu3  ;;  %v16700_v59 = vld [vmem:[#allocation233_spill] sm:$0xff] }
 0x5ce   : > { %16696 = vst [vmem:[#allocation36_spill] sm:$0xff] %v13061_v61  ;;  %v13078_v19 = vsel %vm5803_vm14, %v16701_v9, %v16700_v59 }
 0x5cf   : > { %16702 = vst [vmem:[#allocation119_spill] sm:$0xff] %v13078_v19 }
 0x5d0   : > { %v3964_v48 = vpop.f32.mrf.mxu2 }
 0x5d1   : > { %v13064_v39 = vadd.f32 %v3964_v48, %v3740_v26  ;;  %v13066_v53 = vpop.f32.mrf.mxu0 }
 0x5d2   : > { %16698 = vst [vmem:[#allocation26_spill] sm:$0xff] %v13066_v53  ;;  %v3744_v46 = vpop.f32.mrf.mxu1  ;;  %v5929_v53 = vsel %vm9968_vm7, %v13078_v19, 0 }
 0x5d3   : > { %16697 = vst [vmem:[#allocation104_spill] sm:$0xff] %v13064_v39  ;;  %v3745_v62 = vadd.f32 %v3744_v46, %v12401_v2 }
 0x5d4   : > { %8775 = vmatmul.msk.bf16.gmra.mxu0 %vm1432_vm11, %v12862_v13 }
 0x5d5   : > { %8723 = vmatmul.msk.bf16.gmra.mxu1 %vm1432_vm11, %v12668_v57  ;;  %v13072_v16 = vpop.f32.mrf.mxu3  ;;  %v16705_v57 = vld [vmem:[#allocation264_spill] sm:$0xff] }
 0x5d6   : > { %16699 = vst [vmem:[#allocation105_spill] sm:$0xff] %v13072_v16  ;;  %v4637_v7 = vsel %vm11772_vm12, %v16705_v57, 0 }
 0x5d8   : > { %v3966_v6 = vpop.f32.mrf.mxu2 }
 0x5d9   : > { %v13080_v26 = vadd.f32 %v3966_v6, %v3742_v35  ;;  %v13082_v48 = vpop.f32.mrf.mxu0  ;;  %v16707_v35 = vld [vmem:[#allocation236_spill] sm:$0xff] }
 0x5da   : > { %16704 = vst [vmem:[#allocation130_spill] sm:$0xff] %v13082_v48  ;;  %v3746_v61 = vpop.f32.mrf.mxu1  ;;  %8822 = vmatmul.msk.bf16.gmra.mxu3 %vm1432_vm11, %v5929_v53  ;;  %v16708_v6 = vshrl.u32 %v16707_v35, 16  ;;  %v16709_v16 = vshll.u32 %v16707_v35, 16  ;;  %v5199_v53 = vadd.s32 3, %v16491_v27 }
 0x5db   : > { %16703 = vst [vmem:[#allocation31_spill] sm:$0xff] %v13080_v26  ;;  %v3747_v46 = vadd.f32 %v3746_v61, %v12419_v11  ;;  %v16717_v61 = vld [vmem:[#allocation272_spill] sm:$0xff] }
 0x5dc   : > { %v5834_v48 = vrot.slane %v16708_v6, 1  ;;  %v5835_v26 = vrot.slane %v16709_v16, 2  ;;  %vm5203_vm4 = vcmp.lt.s32.totalorder %v5199_v53, 16 }
 0x5dd   : > { %8739 = vmatmul.msk.bf16.gmra.mxu2 %vm1432_vm11, %v4637_v7  ;;  %v13092_v9 = vpop.f32.mrf.mxu3  ;;  %vm5915_vm13 = vmpackc.low %vm5203_vm4, %vm5203_vm4 }
 0x5de   : > { %16706 = vst [vmem:[#allocation172_spill] sm:$0xff] %v13092_v9  ;;  %v5836_v28 = vor.u32 %v5835_v26, %v5834_v48  ;;  %v5917_v11 = vsel %vm5915_vm13, 65537, %v16508_v56 }
 0x5df   : > { %v5919_v6 = vunpack.c.l.b16 %v5917_v11 }
 0x5e0   : > { %v3969_v19 = vpop.f32.mrf.mxu2 }
 0x5e1   : > { %v13099_v39 = vadd.f32 %v3969_v19, %v3745_v62  ;;  %v13102_v17 = vpop.f32.mrf.mxu0  ;;  %v13114_v19 = vsel %vm10917_vm10, %v16700_v59, %v5836_v28  ;;  %v4638_v59 = vsel %vm11772_vm12, %v16717_v61, 0 }
 0x5e2   : > { %16711 = vst [vmem:[#allocation112_spill] sm:$0xff] %v13102_v17  ;;  %v3749_v57 = vpop.f32.mrf.mxu1  ;;  %v5930_v48 = vsel %vm9968_vm7, %v13114_v19, 0 }
 0x5e3   : > { %16710 = vst [vmem:[#allocation170_spill] sm:$0xff] %v13099_v39  ;;  %v3750_v53 = vadd.f32 %v3749_v57, %v12438_v18  ;;  %v16721_v18 = vld [vmem:[#allocation116_spill] sm:$0xff] }
 0x5e4   : > { %8776 = vmatmul.msk.bf16.gmra.mxu0 %vm1432_vm11, %v12891_v58  ;;  %16714 = vst [vmem:[#allocation87_spill] sm:$0xff] %v13114_v19  ;;  %v8820_v19 = vunpack.i.l.s16 %v5919_v6  ;;  %v13146_v57 = vsel %vm5803_vm14, %v5836_v28, %v16721_v18  ;;  %v16724_v6 = vmov 0  ;;  %v16728_v28 = vld [vmem:[#allocation281_spill] sm:$0xff] }
 0x5e5   : > { %8724 = vmatmul.msk.bf16.gmra.mxu1 %vm1432_vm11, %v12701_v45  ;;  %v13108_v2 = vpop.f32.mrf.mxu3  ;;  %16722 = vst [vmem:[#allocation273_spill] sm:$0xff] %v13146_v57 }
 0x5e6   : > { %16712 = vst [vmem:[#allocation265_spill] sm:$0xff] %v13108_v2  ;;  %vm5926_vm10 = vcmp.ne.s32.totalorder %v8820_v19, %v16521_v42  ;;  %v16825_v42 = vld [vmem:[#allocation25_spill] sm:$0xff] }
 0x5e7   : > { %vm13153_vm4 = vmpackc.low %vm5926_vm10, %vm16524_vm2 }
 0x5e8   : > { %v3971_v27 = vpop.f32.mrf.mxu2  ;;  %v16725_v6 = vsel %vm13153_vm4, 4294967295, %v16724_v6  ;;  %vm5458_vm2 = vmand %vm1481_vm6, %vm5327_vm9 }
 0x5e9   : > { %v13116_v7 = vadd.f32 %v3971_v27, %v3747_v46  ;;  %v13118_v26 = vpop.f32.mrf.mxu0  ;;  %16726 = vst [vmem:[#allocation263_spill] sm:$0xff] %v16725_v6  ;;  %v16911_v6 = vld [vmem:[#allocation160_spill] sm:$0xff] }
 0x5ea   : > { %16716 = vst [vmem:[#allocation34_spill] sm:$0xff] %v13118_v26  ;;  %v3751_v45 = vpop.f32.mrf.mxu1  ;;  %8823 = vmatmul.msk.bf16.gmra.mxu3 %vm1432_vm11, %v5930_v48 }
 0x5eb   : > { %16715 = vst [vmem:[#allocation258_spill] sm:$0xff] %v13116_v7  ;;  %v3752_v11 = vadd.f32 %v3751_v45, %v12460_v50  ;;  %v13162_v50 = vsel %vm13153_vm4, %v13146_v57, 0  ;;  %v4639_v45 = vsel %vm11772_vm12, %v16728_v28, 0  ;;  %v16732_v28 = vld [vmem:[#allocation204_spill] sm:$0xff] }
 0x5ec   : > { %16727 = vst [vmem:[#allocation40_spill] sm:$0xff] %v13162_v50 }
 0x5ed   : > { %8740 = vmatmul.msk.bf16.gmra.mxu2 %vm1432_vm11, %v4638_v59  ;;  %v13129_v62 = vpop.f32.mrf.mxu3 }
 0x5ee   : > { %16718 = vst [vmem:[#allocation180_spill] sm:$0xff] %v13129_v62 }
 0x5f0   : > { %v3974_v46 = vpop.f32.mrf.mxu2 }
 0x5f1   : > { %v13132_v16 = vadd.f32 %v3974_v46, %v3750_v53  ;;  %v13134_v27 = vpop.f32.mrf.mxu0 }
 0x5f2   : > { %v3754_v48 = vpop.f32.mrf.mxu1 }
 0x5f3   : > { %16719 = vst [vmem:[#allocation178_spill] sm:$0xff] %v13132_v16 }
 0x5f4   : > { %8777 = vmatmul.msk.bf16.gmra.mxu0 %vm1432_vm11, %v12919_v8 }
 0x5f5   : > { %8725 = vmatmul.msk.bf16.gmra.mxu1 %vm1432_vm11, %v12734_v24  ;;  %v13140_v61 = vpop.f32.mrf.mxu3 }
 0x5f6   : > { %16720 = vst [vmem:[#allocation243_spill] sm:$0xff] %v13140_v61 }
 0x5f8   : > { %v3976_v59 = vpop.f32.mrf.mxu2 }
 0x5f9   : > { %v13148_v53 = vadd.f32 %v3976_v59, %v3752_v11  ;;  %v13157_v24 = vpop.f32.mrf.mxu0  ;;  %v3755_v11 = vadd.f32 %v3754_v48, %v12475_v37  ;;  %v16734_v48 = vld [vmem:[#allocation122_spill] sm:$0xff] }
 0x5fa   : > { %v3756_v19 = vpop.f32.mrf.mxu1  ;;  %8824 = vmatmul.msk.bf16.gmra.mxu3 %vm1432_vm11, %v13162_v50 }
 0x5fb   : > { %16723 = vst [vmem:[#allocation227_spill] sm:$0xff] %v13148_v53 }
 0x5fd   : > { %8741 = vmatmul.msk.bf16.gmra.mxu2 %vm1432_vm11, %v4639_v45  ;;  %v13170_v46 = vpop.f32.mrf.mxu3  ;;  %v3757_v45 = vadd.f32 %v3756_v19, %v16732_v28 }
 0x5fe   : > { %16729 = vst [vmem:[#allocation187_spill] sm:$0xff] %v13170_v46 }
 0x600   : > { %v3979_v18 = vpop.f32.mrf.mxu2 }
 0x601   : > { %v13173_v59 = vadd.f32 %v3979_v18, %v3755_v11  ;;  %v13175_v26 = vpop.f32.mrf.mxu0  ;;  %v13191_v11 = vsel %vm13153_vm4, %v16734_v48, 0 }
 0x602   : > { %v3759_v57 = vpop.f32.mrf.mxu1  ;;  %16735 = vst [vmem:[#allocation282_spill] sm:$0xff] %v13191_v11 }
 0x603   : > { %16730 = vst [vmem:[#allocation52_spill] sm:$0xff] %v13173_v59  ;;  %v16736_v59 = vld [vmem:[#allocation289_spill] sm:$0xff] }
 0x604   : > { %8778 = vmatmul.msk.bf16.gmra.mxu0 %vm1432_vm11, %v12948_v43 }
 0x605   : > { %8726 = vmatmul.msk.bf16.gmra.mxu1 %vm1432_vm11, %v12767_v12  ;;  %v13181_v50 = vpop.f32.mrf.mxu3  ;;  %v4640_v12 = vsel %vm11772_vm12, %v16736_v59, 0  ;;  %v16744_v59 = vld [vmem:[#allocation97_spill] sm:$0xff] }
 0x606   : > { %16731 = vst [vmem:[#allocation17_spill] sm:$0xff] %v13181_v50 }
 0x608   : > { %v3981_v17 = vpop.f32.mrf.mxu2 }
 0x609   : > { %v13184_v46 = vadd.f32 %v3981_v17, %v3757_v45  ;;  %v13186_v37 = vpop.f32.mrf.mxu0  ;;  %v16738_v17 = vld [vmem:[#allocation71_spill] sm:$0xff] }
 0x60a   : > { %v3761_v18 = vpop.f32.mrf.mxu1  ;;  %8825 = vmatmul.msk.bf16.gmra.mxu3 %vm1432_vm11, %v13191_v11  ;;  %v3760_v28 = vadd.f32 %v3759_v57, %v16738_v17  ;;  %v16739_v45 = vld [vmem:[#allocation127_spill] sm:$0xff] }
 0x60b   : > { %16733 = vst [vmem:[#allocation158_spill] sm:$0xff] %v13184_v46  ;;  %v16740_v50 = vshrl.u32 %v16739_v45, 16  ;;  %v16741_v48 = vshll.u32 %v16739_v45, 16 }
 0x60d   : > { %8742 = vmatmul.msk.bf16.gmra.mxu2 %vm1432_vm11, %v4640_v12  ;;  %v13199_v19 = vpop.f32.mrf.mxu3  ;;  %v5845_v46 = vrot.slane %v16740_v50, 1  ;;  %v5846_v61 = vrot.slane %v16741_v48, 2  ;;  %v3762_v50 = vadd.f32 %v3761_v18, %v16744_v59  ;;  %v16745_v12 = vld [vmem:[#allocation209_spill] sm:$0xff] }
 0x60e   : > { %16737 = vst [vmem:[#allocation35_spill] sm:$0xff] %v13199_v19 }
 0x60f   : > { %v5847_v16 = vor.u32 %v5846_v61, %v5845_v46 }
 0x610   : > { %v3984_v53 = vpop.f32.mrf.mxu2 }
 0x611   : > { %v13206_v35 = vadd.f32 %v3984_v53, %v3760_v28  ;;  %v13208_v11 = vpop.f32.mrf.mxu0  ;;  %v5848_v48 = vsel %vm5803_vm14, %v16745_v12, %v5847_v16 }
 0x612   : > { %v3764_v62 = vpop.f32.mrf.mxu1  ;;  %v13225_v61 = vsel %vm13153_vm4, %v5848_v48, 0 }
 0x613   : > { %16742 = vst [vmem:[#allocation29_spill] sm:$0xff] %v13206_v35 }
 0x614   : > { %8779 = vmatmul.msk.bf16.gmra.mxu0 %vm1432_vm11, %v12977_v55  ;;  %16747 = vst [vmem:[#allocation43_spill] sm:$0xff] %v13225_v61 }
 0x615   : > { %8727 = vmatmul.msk.bf16.gmra.mxu1 %vm1432_vm11, %v12801_v51  ;;  %v13214_v57 = vpop.f32.mrf.mxu3  ;;  %v16748_v51 = vld [vmem:[#allocation296_spill] sm:$0xff] }
 0x616   : > { %16743 = vst [vmem:[#allocation271_spill] sm:$0xff] %v13214_v57  ;;  %v4641_v18 = vsel %vm11772_vm12, %v16748_v51, 0  ;;  %v16755_v51 = vld [vmem:[#allocation215_spill] sm:$0xff] }
 0x618   : > { %v3986_v17 = vpop.f32.mrf.mxu2 }
 0x619   : > { %v13219_v53 = vadd.f32 %v3986_v17, %v3762_v50  ;;  %v13221_v28 = vpop.f32.mrf.mxu0  ;;  %v16750_v50 = vld [vmem:[#allocation79_spill] sm:$0xff]  ;;  %v16751_v17 = vld [vmem:[#allocation257_spill] sm:$0xff] }
 0x61a   : > { %v3766_v46 = vpop.f32.mrf.mxu1  ;;  %8826 = vmatmul.msk.bf16.gmra.mxu3 %vm1432_vm11, %v13225_v61  ;;  %v3765_v12 = vadd.f32 %v3764_v62, %v16750_v50  ;;  %v16752_v45 = vshrl.u32 %v16751_v17, 16  ;;  %v16753_v48 = vshll.u32 %v16751_v17, 16 }
 0x61b   : > { %16746 = vst [vmem:[#allocation159_spill] sm:$0xff] %v13219_v53 }
 0x61c   : > { %v5849_v57 = vrot.slane %v16752_v45, 1  ;;  %v5850_v53 = vrot.slane %v16753_v48, 2  ;;  %v16757_v45 = vld [vmem:[#allocation67_spill] sm:$0xff] }
 0x61d   : > { %8743 = vmatmul.msk.bf16.gmra.mxu2 %vm1432_vm11, %v4641_v18  ;;  %v13233_v59 = vpop.f32.mrf.mxu3  ;;  %v13247_v18 = vsel %vm12588_vm15, %v16755_v51, 0 }
 0x61e   : > { %16749 = vst [vmem:[#allocation157_spill] sm:$0xff] %v13233_v59  ;;  %v5851_v7 = vor.u32 %v5850_v53, %v5849_v57 }
 0x620   : > { %v3989_v19 = vpop.f32.mrf.mxu2  ;;  %v5852_v50 = vsel %vm5803_vm14, %v5847_v16, %v5851_v7  ;;  %v16761_v16 = vld [vmem:[#allocation51_spill] sm:$0xff] }
 0x621   : > { %v13240_v35 = vadd.f32 %v3989_v19, %v3765_v12  ;;  %v13242_v61 = vpop.f32.mrf.mxu0  ;;  %v3767_v19 = vadd.f32 %v3766_v46, %v16757_v45  ;;  %v13263_v53 = vsel %vm13153_vm4, %v5852_v50, 0  ;;  %v4134_v46 = vadd.f32 %v16761_v16, %v12809_v22  ;;  %v16766_v16 = vld [vmem:[#allocation75_spill] sm:$0xff] }
 0x622   : > { %v3769_v2 = vpop.f32.mrf.mxu1  ;;  %16759 = vst [vmem:[#allocation164_spill] sm:$0xff] %v13263_v53 }
 0x623   : > { %16754 = vst [vmem:[#allocation194_spill] sm:$0xff] %v13240_v35 }
 0x624   : > { %8780 = vmatmul.msk.bf16.gmra.mxu0 %vm1432_vm11, %v13247_v18 }
 0x625   : > { %8728 = vmatmul.msk.bf16.gmra.mxu1 %vm1432_vm11, %v12833_v31  ;;  %v13253_v62 = vpop.f32.mrf.mxu3  ;;  %v16760_v31 = vld [vmem:[#allocation302_spill] sm:$0xff] }
 0x626   : > { %16756 = vst [vmem:[#allocation192_spill] sm:$0xff] %v13253_v62  ;;  %v4642_v17 = vsel %vm11772_vm12, %v16760_v31, 0  ;;  %v16763_v62 = vld [vmem:[#allocation262_spill] sm:$0xff] }
 0x627   : > { %v16764_v50 = vshrl.u32 %v16763_v62, 16  ;;  %v16765_v59 = vshll.u32 %v16763_v62, 16 }
 0x628   : > { %v3991_v12 = vpop.f32.mrf.mxu2 }
 0x629   : > { %v13257_v48 = vadd.f32 %v3991_v12, %v3767_v19  ;;  %v13259_v57 = vpop.f32.mrf.mxu0  ;;  %v16762_v19 = vld [vmem:[#allocation74_spill] sm:$0xff]  ;;  %v5854_v35 = vrot.slane %v16765_v59, 2  ;;  %v16767_v59 = vld [vmem:[#allocation175_spill] sm:$0xff] }
 0x62a   : > { %v3771_v51 = vpop.f32.mrf.mxu1  ;;  %8827 = vmatmul.msk.bf16.gmra.mxu3 %vm1432_vm11, %v13263_v53  ;;  %v3770_v12 = vadd.f32 %v3769_v2, %v16762_v19  ;;  %v13288_v2 = vsel %vm12588_vm15, %v16766_v16, 0  ;;  %v4135_v19 = vadd.f32 %v16767_v59, %v12824_v60  ;;  %v16772_v16 = vld [vmem:[#allocation171_spill] sm:$0xff] }
 0x62b   : > { %16758 = vst [vmem:[#allocation232_spill] sm:$0xff] %v13257_v48  ;;  %v5853_v48 = vrot.slane %v16764_v50, 1 }
 0x62d   : > { %8744 = vmatmul.msk.bf16.gmra.mxu2 %vm1432_vm11, %v4642_v17  ;;  %v13273_v45 = vpop.f32.mrf.mxu3  ;;  %v4415_v17 = vadd.f32 %v12642_v25, %v4134_v46  ;;  %v5855_v44 = vor.u32 %v5854_v35, %v5853_v48  ;;  %v16769_v25 = vld [vmem:[#allocation109_spill] sm:$0xff] }
 0x62e   : > { %v3772_v46 = vadd.f32 %v3771_v51, %v16769_v25  ;;  %v16773_v51 = vld [vmem:[#allocation177_spill] sm:$0xff] }
 0x62f   : > { %v5856_v35 = vsel %vm5803_vm14, %v5851_v7, %v5855_v44  ;;  %v4643_v7 = vsel %vm11772_vm12, %v16772_v16, 0  ;;  %v4136_v59 = vadd.f32 %v16773_v51, %v12840_v41  ;;  %v16777_v41 = vld [vmem:[#allocation99_spill] sm:$0xff] }
 0x630   : > { %v3994_v53 = vpop.f32.mrf.mxu2  ;;  %v4961_v51 = vsel %vm12588_vm15, %v16777_v41, 0 }
 0x631   : > { %v13280_v9 = vadd.f32 %v3994_v53, %v3770_v12  ;;  %v13282_v39 = vpop.f32.mrf.mxu0 }
 0x632   : > { %v4475_v31 = vpop.f32.mrf.mxu1 }
 0x633   : > { %v4555_v22 = vadd.f32 %v4475_v31, %v4415_v17  ;;  %v4416_v17 = vadd.f32 %v12658_v47, %v4135_v19  ;;  %v13307_v31 = vsel %vm13153_vm4, %v5856_v35, 0  ;;  %v16774_v47 = vld [vmem:[#allocation270_spill] sm:$0xff] }
 0x634   : > { %8781 = vmatmul.msk.bf16.gmra.mxu0 %vm1432_vm11, %v13288_v2  ;;  %16771 = vst [vmem:[#allocation228_spill] sm:$0xff] %v13307_v31  ;;  %v16775_v19 = vshrl.u32 %v16774_v47, 16  ;;  %v16776_v35 = vshll.u32 %v16774_v47, 16 }
 0x635   : > { %8729 = vmatmul.msk.bf16.gmra.mxu1 %vm1432_vm11, %v12862_v13  ;;  %v13296_v53 = vpop.f32.mrf.mxu3 }
 0x636   : > { %16768 = vst [vmem:[#allocation290_spill] sm:$0xff] %v13296_v53 }
 0x638   : > { %v3996_v48 = vpop.f32.mrf.mxu2 }
 0x639   : > { %v13300_v12 = vadd.f32 %v3996_v48, %v3772_v46  ;;  %v13302_v50 = vpop.f32.mrf.mxu0  ;;  %v5857_v46 = vrot.slane %v16775_v19, 1  ;;  %v5858_v48 = vrot.slane %v16776_v35, 2  ;;  %v16778_v35 = vld [vmem:[#allocation57_spill] sm:$0xff] }
 0x63a   : > { %v4477_v60 = vpop.f32.mrf.mxu1  ;;  %8828 = vmatmul.msk.bf16.gmra.mxu3 %vm1432_vm11, %v13307_v31 }
 0x63b   : > { %16770 = vst [vmem:[#allocation260_spill] sm:$0xff] %v13300_v12  ;;  %v4556_v13 = vadd.f32 %v4477_v60, %v4416_v17  ;;  %v4417_v60 = vadd.f32 %v12675_v21, %v4136_v59  ;;  %v5859_v53 = vor.u32 %v5858_v48, %v5857_v46 }
 0x63d   : > { %8745 = vmatmul.msk.bf16.gmra.mxu2 %vm1432_vm11, %v4643_v7  ;;  %v13317_v25 = vpop.f32.mrf.mxu3 }
 0x640   : > { %v4708_v62 = vpop.f32.mrf.mxu2 }
 0x641   : > { %v4788_v31 = vadd.f32 %v4708_v62, %v4555_v22  ;;  %v13323_v17 = vpop.f32.mrf.mxu0  ;;  %v4137_v62 = vadd.f32 %v16778_v35, %v12853_v15  ;;  %v16781_v15 = vld [vmem:[#allocation53_spill] sm:$0xff] }
 0x642   : > { %v4480_v7 = vpop.f32.mrf.mxu1 }
 0x643   : > { %v4925_v16 = vadd.f32 %v12837_v33, %v4788_v31  ;;  %v4557_v12 = vadd.f32 %v4480_v7, %v4417_v60  ;;  %v5860_v33 = vsel %vm5803_vm14, %v5855_v44, %v5859_v53  ;;  %v16782_v44 = vld [vmem:[#allocation198_spill] sm:$0xff] }
 0x644   : > { %8782 = vmatmul.msk.bf16.gmra.mxu0 %vm1432_vm11, %v4961_v51  ;;  %v13345_v48 = vsel %vm13153_vm4, %v5860_v33, 0  ;;  %v4644_v7 = vsel %vm11772_vm12, %v16782_v44, 0 }
 0x645   : > { %v5062_v19 = vadd.f32 %v13134_v27, %v4925_v16  ;;  %8730 = vmatmul.msk.bf16.gmra.mxu1 %vm1432_vm11, %v12891_v58  ;;  %v13336_v21 = vpop.f32.mrf.mxu3  ;;  %v4418_v27 = vadd.f32 %v12691_v5, %v4137_v62  ;;  %16780 = vst [vmem:[#allocation274_spill] sm:$0xff] %v13345_v48  ;;  %v16783_v5 = vld [vmem:[#allocation182_spill] sm:$0xff]  ;;  %v16785_v62 = vld [vmem:[#allocation279_spill] sm:$0xff] }
 0x646   : > { %16779 = vst [vmem:[#allocation280_spill] sm:$0xff] %v13336_v21  ;;  %v4138_v51 = vadd.f32 %v16783_v5, %v12869_v32  ;;  %v16786_v33 = vshrl.u32 %v16785_v62, 16  ;;  %v16789_v32 = vld [vmem:[#allocation77_spill] sm:$0xff]  ;;  %v16790_v21 = vld [vmem:[#allocation248_spill] sm:$0xff] }
 0x647   : > { %v5094_v31 = vadd.f32 %v12790_v38, %v5062_v19 }
 0x648   : > { %v4710_v22 = vpop.f32.mrf.mxu2 }
 0x649   : > { %v4789_v59 = vadd.f32 %v4710_v22, %v4556_v13  ;;  %v13340_v46 = vpop.f32.mrf.mxu0  ;;  %v5126_v13 = vmax.f32 %v5094_v31, 0.0  ;;  %v5861_v22 = vrot.slane %v16786_v33, 1  ;;  %v4962_v33 = vsel %vm9968_vm7, %v16790_v21, 0 }
 0x64a   : > { %v4482_v16 = vpop.f32.mrf.mxu1  ;;  %8829 = vmatmul.msk.bf16.gmra.mxu3 %vm1432_vm11, %v13345_v48 }
 0x64b   : > { %v4926_v60 = vadd.f32 %v16781_v15, %v4789_v59  ;;  %v4558_v58 = vadd.f32 %v4482_v16, %v4418_v27  ;;  %v16787_v59 = vshll.u32 %v16785_v62, 16  ;;  %v5158_v16 = vpack.c.bf16 %v5126_v13, %v5126_v13 }
 0x64d   : > { %v5063_v41 = vadd.f32 %v13157_v24, %v4926_v60  ;;  %8746 = vmatmul.msk.bf16.gmra.mxu2 %vm1432_vm11, %v4644_v7  ;;  %v13357_v19 = vpop.f32.mrf.mxu3  ;;  %v5862_v27 = vrot.slane %v16787_v59, 2  ;;  %v16788_v60 = vld [vmem:[#allocation225_spill] sm:$0xff]  ;;  %v7488_v62 = vunpack.c.l.b16 %v5158_v16 }
 0x64e   : > { %16784 = vst [vmem:[#allocation202_spill] sm:$0xff] %v13357_v19  ;;  %v4419_v7 = vadd.f32 %v16788_v60, %v4138_v51 }
 0x64f   : > { %v5095_v35 = vadd.f32 %v12790_v38, %v5063_v41  ;;  %v5863_v47 = vor.u32 %v5862_v27, %v5861_v22 }
 0x650   : > { %v4713_v15 = vpop.f32.mrf.mxu2 }
 0x651   : > { %v5127_v31 = vmax.f32 %v5095_v35, 0.0  ;;  %v4790_v44 = vadd.f32 %v4713_v15, %v4557_v12  ;;  %v13364_v24 = vpop.f32.mrf.mxu0  ;;  %v16791_v12 = vld [vmem:[#allocation50_spill] sm:$0xff] }
 0x652   : > { %v4485_v19 = vpop.f32.mrf.mxu1  ;;  %v4139_v35 = vadd.f32 %v16791_v12, %v12882_v1 }
 0x653   : > { %v5159_v48 = vpack.c.bf16 %v5127_v31, %v5127_v31  ;;  %v4927_v5 = vadd.f32 %v16789_v32, %v4790_v44  ;;  %v4559_v41 = vadd.f32 %v4485_v19, %v4419_v7  ;;  %v5864_v19 = vsel %vm5803_vm14, %v5859_v53, %v5863_v47  ;;  %v16796_v31 = vld [vmem:[#allocation37_spill] sm:$0xff] }
 0x654   : > { %8783 = vmatmul.msk.bf16.gmra.mxu0 %vm1432_vm11, %v4962_v33  ;;  %v13388_v1 = vsel %vm13153_vm4, %v5864_v19, 0 }
 0x655   : > { %v7489_v59 = vunpack.c.l.b16 %v5159_v48  ;;  %v5064_v13 = vadd.f32 %v13175_v26, %v4927_v5  ;;  %8731 = vmatmul.msk.bf16.gmra.mxu1 %vm1432_vm11, %v12919_v8  ;;  %v13377_v51 = vpop.f32.mrf.mxu3  ;;  %v16794_v26 = vld [vmem:[#allocation117_spill] sm:$0xff]  ;;  %16795 = vst [vmem:[#allocation266_spill] sm:$0xff] %v13388_v1  ;;  %v5190_v8 = vadd.s32 4294967293, %v16796_v31  ;;  %v16803_v31 = vld [vmem:[#allocation231_spill] sm:$0xff] }
 0x656   : > { %16792 = vst [vmem:[#allocation200_spill] sm:$0xff] %v13377_v51  ;;  %v4420_v16 = vadd.f32 %v16794_v26, %v4139_v35  ;;  %v16798_v5 = vld [vmem:[#allocation293_spill] sm:$0xff]  ;;  %v16913_v51 = vld [vmem:[#allocation267_spill] sm:$0xff] }
 0x657   : > { %v13380_v22 = vpack.c.b16 %v7489_v59, %v7488_v62  ;;  %v5096_v21 = vadd.f32 %v12790_v38, %v5064_v13  ;;  %v16797_v62 = vld [vmem:[#allocation85_spill] sm:$0xff]  ;;  %v4140_v33 = vadd.f32 %v16798_v5, %v12898_v63  ;;  %vm5192_vm13 = vcmp.ge.s32.totalorder %v5190_v8, 0  ;;  %v16800_v13 = vld [vmem:[#allocation287_spill] sm:$0xff] }
 0x658   : > { %v4715_v27 = vpop.f32.mrf.mxu2  ;;  %v16801_v12 = vshrl.u32 %v16800_v13, 16  ;;  %v16802_v19 = vshll.u32 %v16800_v13, 16  ;;  %vm5464_vm10 = vmpackc.low %vm5192_vm13, %vm5192_vm13 }
 0x659   : > { %16793 = vst [vmem:[#allocation254_spill] sm:$0xff] %v13380_v22  ;;  %v4791_v48 = vadd.f32 %v4715_v27, %v4558_v58  ;;  %v13383_v15 = vpop.f32.mrf.mxu0  ;;  %v4645_v58 = vsel %vm11772_vm12, %v16797_v62, 0  ;;  %v5128_v7 = vmax.f32 %v5096_v21, 0.0  ;;  %v4421_v63 = vadd.f32 %v16803_v31, %v4140_v33  ;;  %v16805_v62 = vld [vmem:[#allocation224_spill] sm:$0xff]  ;;  %v16807_v31 = vld [vmem:[#allocation247_spill] sm:$0xff] }
 0x65a   : > { %v4487_v60 = vpop.f32.mrf.mxu1  ;;  %8830 = vmatmul.msk.bf16.gmra.mxu3 %vm1432_vm11, %v13388_v1  ;;  %v5865_v35 = vrot.slane %v16801_v12, 1  ;;  %v5866_v27 = vrot.slane %v16802_v19, 2  ;;  %v16806_v19 = vld [vmem:[#allocation252_spill] sm:$0xff] }
 0x65b   : > { %v4928_v44 = vadd.f32 %v12879_v14, %v4791_v48  ;;  %v4560_v53 = vadd.f32 %v4487_v60, %v4420_v16  ;;  %v5160_v21 = vpack.c.bf16 %v5128_v7, %v5128_v7  ;;  %v4963_v7 = vsel %vm9968_vm7, %v16806_v19, 0 }
 0x65c   : > { %v13414_v5 = vor.u32 %v5866_v27, %v5865_v35 }
 0x65d   : > { %v5065_v32 = vadd.f32 %v13186_v37, %v4928_v44  ;;  %8747 = vmatmul.msk.bf16.gmra.mxu2 %vm1432_vm11, %v4645_v58  ;;  %v13401_v59 = vpop.f32.mrf.mxu3  ;;  %v16804_v44 = vld [vmem:[#allocation143_spill] sm:$0xff] }
 0x65e   : > { %16799 = vst [vmem:[#allocation154_spill] sm:$0xff] %v13401_v59  ;;  %v5223_v8 = vpack.c.b16 %v16804_v44, %v16804_v44 }
 0x65f   : > { %v5097_v14 = vadd.f32 %v12790_v38, %v5065_v32 }
 0x660   : > { %v4718_v48 = vpop.f32.mrf.mxu2  ;;  %v5252_v27 = vshrl.u32 %v5223_v8, 16 }
 0x661   : > { %v5129_v26 = vmax.f32 %v5097_v14, 0.0  ;;  %v4792_v37 = vadd.f32 %v4718_v48, %v4559_v41  ;;  %v13408_v16 = vpop.f32.mrf.mxu0  ;;  %v5466_v41 = vsel %vm5464_vm10, 65537, %v16508_v56  ;;  %v7490_v14 = vunpack.c.l.b16 %v5160_v21 }
 0x662   : > { %v4490_v32 = vpop.f32.mrf.mxu1  ;;  %v5468_v21 = vunpack.c.l.b16 %v5466_v41 }
 0x663   : > { %v5161_v60 = vpack.c.bf16 %v5129_v26, %v5129_v26  ;;  %v4929_v58 = vadd.f32 %v16805_v62, %v4792_v37  ;;  %v4561_v12 = vadd.f32 %v4490_v32, %v4421_v63  ;;  %v16808_v26 = vld [vmem:[#allocation291_spill] sm:$0xff]  ;;  %v5255_v37 = vshll.u32 %v5223_v8, 16  ;;  %v16811_v32 = vld [vmem:[#allocation89_spill] sm:$0xff] }
 0x664   : > { %8784 = vmatmul.msk.bf16.gmra.mxu0 %vm1432_vm11, %v4963_v7  ;;  %v4141_v44 = vadd.f32 %v16808_v26, %v16807_v31  ;;  %v5868_v63 = vsel %vm5803_vm14, %v5863_v47, %v13414_v5  ;;  %v5254_v7 = vrot.slane %v5252_v27, 2  ;;  %v16813_v31 = vld [vmem:[#allocation155_spill] sm:$0xff]  ;;  %v8785_v41 = vunpack.i.l.s16 %v5468_v21  ;;  %v16815_v27 = vld [vmem:[#allocation64_spill] sm:$0xff] }
 0x665   : > { %v7491_v48 = vunpack.c.l.b16 %v5161_v60  ;;  %v5066_v33 = vadd.f32 %v13208_v11, %v4929_v58  ;;  %8732 = vmatmul.msk.bf16.gmra.mxu1 %vm1432_vm11, %v12948_v43  ;;  %v13426_v35 = vpop.f32.mrf.mxu3  ;;  %v13438_v43 = vsel %vm13153_vm4, %v5868_v63, 0  ;;  %v5257_v8 = vrot.slane %v5255_v37, 3 }
 0x666   : > { %16809 = vst [vmem:[#allocation288_spill] sm:$0xff] %v13426_v35  ;;  %v4422_v19 = vadd.f32 %v16811_v32, %v4141_v44  ;;  %v4142_v37 = vadd.f32 %v16815_v27, %v12926_v34  ;;  %vm5475_vm13 = vcmp.ne.s32.totalorder %v8785_v41, %v16523_v40  ;;  %v16824_v41 = vld [vmem:[#allocation80_spill] sm:$0xff]  ;;  %v16870_v35 = vld [vmem:[#allocation222_spill] sm:$0xff] }
 0x667   : > { %v13430_v56 = vpack.c.b16 %v7491_v48, %v7490_v14  ;;  %v5098_v11 = vadd.f32 %v12790_v38, %v5066_v33  ;;  %16812 = vst [vmem:[#allocation210_spill] sm:$0xff] %v13438_v43  ;;  %v16814_v48 = vld [vmem:[#allocation186_spill] sm:$0xff]  ;;  %vm13472_vm9 = vmpackc.low %vm1360_vm3, %vm5475_vm13 }
 0x668   : > { %v4720_v60 = vpop.f32.mrf.mxu2 }
 0x669   : > { %16810 = vst [vmem:[#allocation111_spill] sm:$0xff] %v13430_v56  ;;  %v4793_v62 = vadd.f32 %v4720_v60, %v4560_v53  ;;  %v13433_v58 = vpop.f32.mrf.mxu0  ;;  %v4646_v53 = vsel %vm11772_vm12, %v16814_v48, 0  ;;  %v5130_v33 = vmax.f32 %v5098_v11, 0.0  ;;  %v13454_v60 = vor.u32 %v5257_v8, %v5254_v7  ;;  %v16820_v48 = vld [vmem:[#allocation239_spill] sm:$0xff]  ;;  %v16821_v8 = vld [vmem:[#allocation190_spill] sm:$0xff] }
 0x66a   : > { %v4492_v47 = vpop.f32.mrf.mxu1  ;;  %8831 = vmatmul.msk.bf16.gmra.mxu3 %vm1432_vm11, %v13438_v43  ;;  %v16926_v43 = vld [vmem:[#allocation180_spill] sm:$0xff] }
 0x66b   : > { %v4930_v26 = vadd.f32 %v16813_v31, %v4793_v62  ;;  %v4562_v14 = vadd.f32 %v4492_v47, %v4422_v19  ;;  %v16817_v62 = vld [vmem:[#allocation294_spill] sm:$0xff] }
 0x66c   : > { %v16818_v32 = vshrl.u32 %v16817_v62, 16  ;;  %v16819_v11 = vshll.u32 %v16817_v62, 16 }
 0x66d   : > { %v5067_v44 = vadd.f32 %v13221_v28, %v4930_v26  ;;  %8748 = vmatmul.msk.bf16.gmra.mxu2 %vm1432_vm11, %v4646_v53  ;;  %v13450_v63 = vpop.f32.mrf.mxu3  ;;  %v5162_v26 = vpack.c.bf16 %v5130_v33, %v5130_v33  ;;  %v13464_v53 = vsel %vm5458_vm2, %v13454_v60, %v16820_v48 }
 0x66e   : > { %16816 = vst [vmem:[#allocation208_spill] sm:$0xff] %v13450_v63  ;;  %v5869_v19 = vrot.slane %v16818_v32, 1  ;;  %v5870_v28 = vrot.slane %v16819_v11, 2  ;;  %v13480_v11 = vsel %vm13472_vm9, %v13464_v53, 0 }
 0x66f   : > { %v5099_v21 = vadd.f32 %v12790_v38, %v5067_v44  ;;  %v4423_v44 = vadd.f32 %v16821_v8, %v4142_v37 }
 0x670   : > { %v4723_v31 = vpop.f32.mrf.mxu2 }
 0x671   : > { %v5131_v34 = vmax.f32 %v5099_v21, 0.0  ;;  %v4794_v47 = vadd.f32 %v4723_v31, %v4561_v12  ;;  %v13466_v7 = vpop.f32.mrf.mxu0  ;;  %v5871_v12 = vor.u32 %v5870_v28, %v5869_v19  ;;  %v7492_v31 = vunpack.c.l.b16 %v5162_v26 }
 0x672   : > { %v4495_v21 = vpop.f32.mrf.mxu1 }
 0x673   : > { %v5163_v40 = vpack.c.bf16 %v5131_v34, %v5131_v34  ;;  %v4931_v33 = vadd.f32 %v16824_v41, %v4794_v47  ;;  %v4563_v32 = vadd.f32 %v4495_v21, %v4423_v44  ;;  %v4143_v34 = vadd.f32 %v16826_v29, %v16825_v42  ;;  %v16833_v29 = vld [vmem:[#allocation196_spill] sm:$0xff] }
 0x674   : > { %8837 = vmatmul.msk.bf16.vlgmr.msrb.gmra.mxu0 %vm1432_vm11, %v13480_v11  ;;  %v5872_v28 = vsel %vm5803_vm14, %v13414_v5, %v5871_v12 }
 0x675   : > { %v7493_v37 = vunpack.c.l.b16 %v5163_v40  ;;  %v5068_v48 = vadd.f32 %v13242_v61, %v4931_v33  ;;  %8733 = vmatmul.msk.bf16.gmra.mxu1 %vm1432_vm11, %v12977_v55  ;;  %v13489_v19 = vpop.f32.mrf.mxu3  ;;  %v16829_v40 = vld [vmem:[#allocation102_spill] sm:$0xff]  ;;  %v13501_v33 = vsel %vm13153_vm4, %v5872_v28, 0  ;;  %v16831_v55 = vld [vmem:[#allocation88_spill] sm:$0xff] }
 0x676   : > { %16827 = vst [vmem:[#allocation45_spill] sm:$0xff] %v13489_v19  ;;  %v4424_v41 = vadd.f32 %v16829_v40, %v4143_v34  ;;  %v4144_v34 = vadd.f32 %v16833_v29, %v12955_v49  ;;  %v16839_v49 = vld [vmem:[#allocation161_spill] sm:$0xff] }
 0x677   : > { %v13493_v47 = vpack.c.b16 %v7493_v37, %v7492_v31  ;;  %v5100_v8 = vadd.f32 %v12790_v38, %v5068_v48  ;;  %16830 = vst [vmem:[#allocation163_spill] sm:$0xff] %v13501_v33  ;;  %v16832_v31 = vld [vmem:[#allocation223_spill] sm:$0xff] }
 0x678   : > { %v4725_v26 = vpop.f32.mrf.mxu2  ;;  %v4647_v37 = vsel %vm11772_vm12, %v16832_v31, 0 }
 0x679   : > { %16828 = vst [vmem:[#allocation121_spill] sm:$0xff] %v13493_v47  ;;  %v4795_v61 = vadd.f32 %v4725_v26, %v4562_v14  ;;  %v13496_v44 = vpop.f32.mrf.mxu0  ;;  %v5132_v14 = vmax.f32 %v5100_v8, 0.0 }
 0x67a   : > { %v4497_v42 = vpop.f32.mrf.mxu1  ;;  %8832 = vmatmul.msk.bf16.gmra.mxu3 %vm1432_vm11, %v13501_v33  ;;  %v16912_v33 = vld [vmem:[#allocation172_spill] sm:$0xff] }
 0x67b   : > { %v4932_v21 = vadd.f32 %v16831_v55, %v4795_v61  ;;  %v4564_v5 = vadd.f32 %v4497_v42, %v4424_v41  ;;  %v16835_v61 = vld [vmem:[#allocation300_spill] sm:$0xff]  ;;  %v5164_v31 = vpack.c.bf16 %v5132_v14, %v5132_v14 }
 0x67c   : > { %v16836_v40 = vshrl.u32 %v16835_v61, 16  ;;  %v16837_v41 = vshll.u32 %v16835_v61, 16 }
 0x67d   : > { %v5069_v48 = vadd.f32 %v13259_v57, %v4932_v21  ;;  %8749 = vmatmul.msk.bf16.gmra.mxu2 %vm1432_vm11, %v4647_v37  ;;  %v13513_v28 = vpop.f32.mrf.mxu3  ;;  %v16838_v21 = vld [vmem:[#allocation16_spill] sm:$0xff] }
 0x67e   : > { %16834 = vst [vmem:[#allocation295_spill] sm:$0xff] %v13513_v28  ;;  %v5873_v55 = vrot.slane %v16836_v40, 1  ;;  %v5874_v42 = vrot.slane %v16837_v41, 2  ;;  %v4425_v37 = vadd.f32 %v16838_v21, %v4144_v34  ;;  %v7494_v41 = vunpack.c.l.b16 %v5164_v31  ;;  %v16846_v21 = vld [vmem:[#allocation68_spill] sm:$0xff] }
 0x67f   : > { %v5101_v26 = vadd.f32 %v12790_v38, %v5069_v48  ;;  %v16840_v48 = vld [vmem:[#allocation201_spill] sm:$0xff] }
 0x680   : > { %v4728_v47 = vpop.f32.mrf.mxu2  ;;  %v5875_v19 = vor.u32 %v5874_v42, %v5873_v55  ;;  %v13527_v40 = vsel %vm13472_vm9, %v16840_v48, 0 }
 0x681   : > { %v5133_v8 = vmax.f32 %v5101_v26, 0.0  ;;  %v4796_v56 = vadd.f32 %v4728_v47, %v4563_v32  ;;  %v13520_v57 = vpop.f32.mrf.mxu0  ;;  %v16841_v32 = vld [vmem:[#allocation65_spill] sm:$0xff] }
 0x682   : > { %v4500_v28 = vpop.f32.mrf.mxu1  ;;  %v4145_v47 = vadd.f32 %v16841_v32, %v12966_v54  ;;  %v5876_v34 = vsel %vm5803_vm14, %v5871_v12, %v5875_v19  ;;  %v16844_v54 = vld [vmem:[#allocation150_spill] sm:$0xff] }
 0x683   : > { %v5165_v22 = vpack.c.bf16 %v5133_v8, %v5133_v8  ;;  %v4933_v29 = vadd.f32 %v16839_v49, %v4796_v56  ;;  %v4565_v38 = vadd.f32 %v4500_v28, %v4425_v37  ;;  %v4648_v37 = vsel %vm11772_vm12, %v16846_v21, 0 }
 0x684   : > { %8838 = vmatmul.msk.bf16.gmra.mxu0 %vm1432_vm11, %v13527_v40  ;;  %v4426_v31 = vadd.f32 %v16844_v54, %v4145_v47  ;;  %v16849_v47 = vld [vmem:[#allocation303_spill] sm:$0xff] }
 0x685   : > { %v7495_v63 = vunpack.c.l.b16 %v5165_v22  ;;  %v5070_v14 = vadd.f32 %v13282_v39, %v4933_v29  ;;  %8734 = vmatmul.msk.bf16.gmra.mxu1 %vm1432_vm11, %v13247_v18  ;;  %v13536_v56 = vpop.f32.mrf.mxu3  ;;  %v13544_v39 = vld [vmem:[%s15370_s4] ss:$0 sm:$0xff]  ;;  %v13552_v18 = vsel %vm13153_vm4, %v5876_v34, 0  ;;  %v16850_v34 = vshrl.u32 %v16849_v47, 16 }
 0x686   : > { %16842 = vst [vmem:[#allocation219_spill] sm:$0xff] %v13536_v56  ;;  %v16847_v29 = vld [vmem:[#allocation298_spill] sm:$0xff]  ;;  %v14198_v27 = vsel %vm10036_vm5, %v16849_v47, 0 }
 0x687   : > { %v13539_v28 = vpack.c.b16 %v7495_v63, %v7494_v41  ;;  %v5102_v22 = vadd.f32 %v13544_v39, %v5070_v14  ;;  %16845 = vst [vmem:[#allocation217_spill] sm:$0xff] %v13552_v18  ;;  %v4146_v41 = vadd.f32 %v16847_v29, %v12984_v0  ;;  %v16853_v0 = vld [vmem:[#allocation46_spill] sm:$0xff] }
 0x688   : > { %v4730_v26 = vpop.f32.mrf.mxu2  ;;  %v16868_v56 = vld [vmem:[#allocation70_spill] sm:$0xff] }
 0x689   : > { %16843 = vst [vmem:[#allocation220_spill] sm:$0xff] %v13539_v28  ;;  %v4797_v55 = vadd.f32 %v4730_v26, %v4564_v5  ;;  %v13547_v42 = vpop.f32.mrf.mxu0  ;;  %v5134_v5 = vmax.f32 %v5102_v22, 0.0  ;;  %v5877_v26 = vrot.slane %v16850_v34, 1  ;;  %v16851_v22 = vshll.u32 %v16849_v47, 16 }
 0x68a   : > { %v4502_v12 = vpop.f32.mrf.mxu1  ;;  %8833 = vmatmul.msk.bf16.gmra.mxu3 %vm1432_vm11, %v13552_v18 }
 0x68b   : > { %v4934_v63 = vadd.f32 %v12963_v10, %v4797_v55  ;;  %v4566_v8 = vadd.f32 %v4502_v12, %v4426_v31  ;;  %v5166_v55 = vpack.c.bf16 %v5134_v5, %v5134_v5  ;;  %v5878_v31 = vrot.slane %v16851_v22, 2 }
 0x68d   : > { %v5071_v49 = vadd.f32 %v13302_v50, %v4934_v63  ;;  %8750 = vmatmul.msk.bf16.gmra.mxu2 %vm1432_vm11, %v4648_v37  ;;  %v13564_v14 = vpop.f32.mrf.mxu3  ;;  %v16852_v63 = vld [vmem:[#allocation149_spill] sm:$0xff]  ;;  %v7496_v5 = vunpack.c.l.b16 %v5166_v55 }
 0x68e   : > { %16848 = vst [vmem:[#allocation181_spill] sm:$0xff] %v13564_v14  ;;  %v4427_v12 = vadd.f32 %v16852_v63, %v4146_v41  ;;  %v16855_v41 = vld [vmem:[#allocation199_spill] sm:$0xff] }
 0x68f   : > { %v5103_v10 = vadd.f32 %v13544_v39, %v5071_v49  ;;  %v16854_v49 = vld [vmem:[#allocation214_spill] sm:$0xff]  ;;  %v4147_v34 = vadd.f32 %v16855_v41, %v12995_v23  ;;  %v16861_v41 = vld [vmem:[#allocation253_spill] sm:$0xff] }
 0x690   : > { %v4733_v32 = vpop.f32.mrf.mxu2  ;;  %v13578_v14 = vsel %vm13472_vm9, %v16854_v49, 0 }
 0x691   : > { %v5135_v54 = vmax.f32 %v5103_v10, 0.0  ;;  %v4798_v30 = vadd.f32 %v4733_v32, %v4565_v38  ;;  %v13571_v50 = vpop.f32.mrf.mxu0  ;;  %v5879_v32 = vor.u32 %v5878_v31, %v5877_v26  ;;  %v16858_v31 = vld [vmem:[#allocation242_spill] sm:$0xff] }
 0x692   : > { %v4505_v29 = vpop.f32.mrf.mxu1  ;;  %v4428_v23 = vadd.f32 %v16858_v31, %v4147_v34  ;;  %v16862_v34 = vld [vmem:[#allocation191_spill] sm:$0xff] }
 0x693   : > { %v5167_v21 = vpack.c.bf16 %v5135_v54, %v5135_v54  ;;  %v4935_v37 = vadd.f32 %v16853_v0, %v4798_v30  ;;  %v4567_v28 = vadd.f32 %v4505_v29, %v4427_v12  ;;  %v5880_v22 = vsel %vm5803_vm14, %v5875_v19, %v5879_v32  ;;  %v16857_v12 = vld [vmem:[#allocation96_spill] sm:$0xff]  ;;  %v16860_v29 = vld [vmem:[#allocation193_spill] sm:$0xff] }
 0x694   : > { %8839 = vmatmul.msk.bf16.gmra.mxu0 %vm1432_vm11, %v13578_v14 }
 0x695   : > { %v7497_v10 = vunpack.c.l.b16 %v5167_v21  ;;  %v5072_v38 = vadd.f32 %v13323_v17, %v4935_v37  ;;  %8735 = vmatmul.msk.bf16.gmra.mxu1 %vm1432_vm11, %v13288_v2  ;;  %v13587_v54 = vpop.f32.mrf.mxu3  ;;  %v4449_v21 = vpack.c.b16 %v16857_v12, %v16857_v12  ;;  %v13600_v2 = vsel %vm13153_vm4, %v5880_v22, 0  ;;  %v16864_v12 = vld [vmem:[#allocation123_spill] sm:$0xff] }
 0x696   : > { %16856 = vst [vmem:[#allocation126_spill] sm:$0xff] %v13587_v54  ;;  %v4148_v22 = vadd.f32 %v16862_v34, %v16861_v41  ;;  %v16865_v31 = vshrl.u32 %v16864_v12, 16 }
 0x697   : > { %v13589_v30 = vpack.c.b16 %v7497_v10, %v7496_v5  ;;  %v5104_v63 = vadd.f32 %v13544_v39, %v5072_v38  ;;  %16859 = vst [vmem:[#allocation269_spill] sm:$0xff] %v13600_v2  ;;  %v4450_v38 = vrot.slane %v4449_v21, 1  ;;  %v16867_v21 = vld [vmem:[#allocation38_spill] sm:$0xff] }
 0x698   : > { %v4735_v55 = vpop.f32.mrf.mxu2 }
 0x699   : > { %v4799_v17 = vadd.f32 %v4735_v55, %v4566_v8  ;;  %v13595_v26 = vpop.f32.mrf.mxu0  ;;  %v4649_v8 = vsel %vm9968_vm7, %v16860_v29, 0  ;;  %v5136_v5 = vmax.f32 %v5104_v63, 0.0  ;;  %v4452_v41 = vsel %vm3774_vm8, %v16868_v56, %v4450_v38 }
 0x69a   : > { %v4507_v37 = vpop.f32.mrf.mxu1  ;;  %8834 = vmatmul.msk.bf16.gmra.mxu3 %vm1432_vm11, %v13600_v2  ;;  %v4456_v56 = vsel %vm12588_vm15, %v4452_v41, 0 }
 0x69b   : > { %v4936_v0 = vadd.f32 %v12992_v20, %v4799_v17  ;;  %v4568_v19 = vadd.f32 %v4507_v37, %v4428_v23  ;;  %v5881_v23 = vrot.slane %v16865_v31, 1  ;;  %v16866_v37 = vshll.u32 %v16864_v12, 16 }
 0x69c   : > { %v5168_v63 = vpack.c.bf16 %v5136_v5, %v5136_v5  ;;  %v13628_v31 = vsel %vm13472_vm9, %v16870_v35, 0  ;;  %v16874_v35 = vld [vmem:[#allocation120_spill] sm:$0xff] }
 0x69d   : > { %v5073_v10 = vadd.f32 %v13340_v46, %v4936_v0  ;;  %8751 = vmatmul.msk.bf16.gmra.mxu2 %vm1432_vm11, %v4649_v8  ;;  %v13612_v55 = vpop.f32.mrf.mxu3  ;;  %v5882_v29 = vrot.slane %v16866_v37, 2  ;;  %v4429_v8 = vadd.f32 %v16867_v21, %v4148_v22  ;;  %v5833_v22 = vpack.c.b16 %v16874_v35, %v16874_v35  ;;  %v16877_v21 = vld [vmem:[#allocation22_spill] sm:$0xff] }
 0x69e   : > { %16863 = vst [vmem:[#allocation301_spill] sm:$0xff] %v13612_v55  ;;  %v16869_v55 = vld [vmem:[#allocation23_spill] sm:$0xff] }
 0x69f   : > { %v5105_v20 = vadd.f32 %v13544_v39, %v5073_v10  ;;  %v13630_v5 = vor.u32 %v5882_v29, %v5881_v23  ;;  %v16875_v23 = vld [vmem:[#allocation101_spill] sm:$0xff] }
 0x6a0   : > { %v4738_v17 = vpop.f32.mrf.mxu2  ;;  %v16876_v37 = vunpack.c.l.b16 %v16875_v23 }
 0x6a1   : > { %v5137_v54 = vmax.f32 %v5105_v20, 0.0  ;;  %v4800_v46 = vadd.f32 %v4738_v17, %v4567_v28  ;;  %v13619_v0 = vpop.f32.mrf.mxu0  ;;  %16871 = vst [vmem:[#allocation145_spill] sm:$0xff] %v13630_v5  ;;  %v7498_v28 = vunpack.c.l.b16 %v5168_v63 }
 0x6a2   : > { %v4510_v2 = vpop.f32.mrf.mxu1  ;;  %v5220_v4 = vpack.c.b16 %v16874_v35, %v16876_v37 }
 0x6a3   : > { %v5169_v34 = vpack.c.bf16 %v5137_v54, %v5137_v54  ;;  %v4937_v10 = vadd.f32 %v16869_v55, %v4800_v46  ;;  %v4569_v18 = vadd.f32 %v4510_v2, %v4429_v8  ;;  %v16872_v54 = vld [vmem:[#allocation134_spill] sm:$0xff]  ;;  %v5884_v55 = vsel %vm5803_vm14, %v5879_v32, %v13630_v5 }
 0x6a4   : > { %8840 = vmatmul.msk.bf16.gmra.mxu0 %vm1432_vm11, %v13628_v31  ;;  %v4149_v2 = vadd.f32 %v16872_v54, %v13022_v52  ;;  %v13657_v41 = vsel %vm13153_vm4, %v5884_v55, 0  ;;  %v5889_v32 = vshll.u32 %v5833_v22, 16  ;;  %v16880_v55 = vld [vmem:[#allocation28_spill] sm:$0xff] }
 0x6a5   : > { %v7499_v20 = vunpack.c.l.b16 %v5169_v34  ;;  %v5074_v17 = vadd.f32 %v13364_v24, %v4937_v10  ;;  %8736 = vmatmul.msk.bf16.gmra.mxu1 %vm1432_vm11, %v4456_v56  ;;  %v13640_v38 = vpop.f32.mrf.mxu3  ;;  %16878 = vst [vmem:[#allocation226_spill] sm:$0xff] %v13657_v41  ;;  %v5886_v34 = vshrl.u32 %v5833_v22, 16  ;;  %v5229_v56 = vshll.u32 %v5220_v4, 16  ;;  %v16881_v22 = vld [vmem:[#allocation83_spill] sm:$0xff] }
 0x6a6   : > { %16873 = vst [vmem:[#allocation229_spill] sm:$0xff] %v13640_v38  ;;  %v4430_v8 = vadd.f32 %v16877_v21, %v4149_v2  ;;  %v4150_v23 = vadd.f32 %v16881_v22, %v16880_v55 }
 0x6a7   : > { %v13646_v24 = vpack.c.b16 %v7499_v20, %v7498_v28  ;;  %v5106_v63 = vadd.f32 %v13544_v39, %v5074_v17  ;;  %v5226_v20 = vshrl.u32 %v5220_v4, 16  ;;  %v5888_v37 = vrot.slane %v5886_v34, 1 }
 0x6a8   : > { %v4740_v29 = vpop.f32.mrf.mxu2  ;;  %v5231_v21 = vrot.slane %v5229_v56, 3 }
 0x6a9   : > { %v4801_v52 = vadd.f32 %v4740_v29, %v4568_v19  ;;  %v13652_v46 = vpop.f32.mrf.mxu0  ;;  %v16879_v19 = vld [vmem:[#allocation245_spill] sm:$0xff]  ;;  %v5138_v2 = vmax.f32 %v5106_v63, 0.0  ;;  %v5891_v29 = vrot.slane %v5889_v32, 2  ;;  %v5228_v4 = vrot.slane %v5226_v20, 2  ;;  %v16885_v32 = vld [vmem:[#allocation152_spill] sm:$0xff] }
 0x6aa   : > { %v4512_v28 = vpop.f32.mrf.mxu1  ;;  %8835 = vmatmul.msk.bf16.gmra.mxu3 %vm1432_vm11, %v13657_v41  ;;  %v4650_v54 = vsel %vm9968_vm7, %v16879_v19, 0  ;;  %v16884_v41 = vld [vmem:[#allocation205_spill] sm:$0xff]  ;;  %v13681_v20 = vsel %vm13472_vm9, %v16885_v32, 0 }
 0x6ab   : > { %v4938_v10 = vadd.f32 %v13018_v3, %v4801_v52  ;;  %v4570_v17 = vadd.f32 %v4512_v28, %v4430_v8  ;;  %v5170_v28 = vpack.c.bf16 %v5138_v2, %v5138_v2  ;;  %v5892_v22 = vor.u32 %v5891_v29, %v5888_v37 }
 0x6ad   : > { %v5075_v35 = vadd.f32 %v13383_v15, %v4938_v10  ;;  %8752 = vmatmul.msk.bf16.gmra.mxu2 %vm1432_vm11, %v4650_v54  ;;  %v13669_v3 = vpop.f32.mrf.mxu3  ;;  %v16883_v15 = vld [vmem:[#allocation156_spill] sm:$0xff]  ;;  %v7500_v56 = vunpack.c.l.b16 %v5170_v28  ;;  %v16891_v28 = vld [vmem:[#allocation139_spill] sm:$0xff] }
 0x6ae   : > { %16882 = vst [vmem:[#allocation93_spill] sm:$0xff] %v13669_v3  ;;  %v4431_v10 = vadd.f32 %v16883_v15, %v4150_v23  ;;  %v13676_v3 = vor.u32 %v5231_v21, %v5228_v4  ;;  %v16888_v23 = vld [vmem:[#allocation212_spill] sm:$0xff]  ;;  %v16890_v4 = vld [vmem:[#allocation59_spill] sm:$0xff] }
 0x6af   : > { %v5107_v52 = vadd.f32 %v13544_v39, %v5075_v35  ;;  %v16887_v35 = vld [vmem:[#allocation165_spill] sm:$0xff] }
 0x6b0   : > { %v4743_v8 = vpop.f32.mrf.mxu2  ;;  %v4151_v37 = vadd.f32 %v16888_v23, %v16887_v35  ;;  %v16894_v35 = vld [vmem:[#allocation104_spill] sm:$0xff]  ;;  %v16895_v23 = vld [vmem:[#allocation195_spill] sm:$0xff] }
 0x6b1   : > { %v5139_v38 = vmax.f32 %v5107_v52, 0.0  ;;  %v4802_v19 = vadd.f32 %v4743_v8, %v4569_v18  ;;  %v13672_v63 = vpop.f32.mrf.mxu0  ;;  %v5893_v52 = vsel %vm5803_vm14, %v13630_v5, %v5892_v22  ;;  %v16893_v22 = vld [vmem:[#allocation166_spill] sm:$0xff] }
 0x6b2   : > { %v4515_v55 = vpop.f32.mrf.mxu1 }
 0x6b3   : > { %v5171_v54 = vpack.c.bf16 %v5139_v38, %v5139_v38  ;;  %v4939_v59 = vadd.f32 %v16884_v41, %v4802_v19  ;;  %v4571_v34 = vadd.f32 %v4515_v55, %v4431_v10  ;;  %v16886_v38 = vld [vmem:[#allocation124_spill] sm:$0xff]  ;;  %v13703_v19 = vsel %vm5224_vm1, %v13676_v3, %v16891_v28 }
 0x6b4   : > { %8841 = vmatmul.msk.bf16.gmra.mxu0 %vm1432_vm11, %v13681_v20  ;;  %v5513_v41 = vsel %vm9968_vm7, %v16886_v38, 0  ;;  %v16892_v10 = vld [vmem:[#allocation48_spill] sm:$0xff]  ;;  %v5943_v55 = vsel %vm13153_vm4, %v5893_v52, 0 }
 0x6b5   : > { %v7501_v2 = vunpack.c.l.b16 %v5171_v54  ;;  %v5076_v18 = vadd.f32 %v13408_v16, %v4939_v59  ;;  %8787 = vmatmul.msk.bf16.vlgmr.msra.gmra.mxu1 %vm1432_vm11, %v5513_v41  ;;  %v13692_v29 = vpop.f32.mrf.mxu3  ;;  %v4432_v54 = vadd.f32 %v16892_v10, %v4151_v37  ;;  %v4152_v37 = vadd.f32 %v16895_v23, %v16894_v35 }
 0x6b6   : > { %16889 = vst [vmem:[#allocation100_spill] sm:$0xff] %v13692_v29  ;;  %7166 = vmatpush.bf16.msra.mxu1 %v16890_v4  ;;  %v16899_v29 = vld [vmem:[#allocation251_spill] sm:$0xff] }
 0x6b7   : > { %v13697_v59 = vpack.c.b16 %v7501_v2, %v7500_v56  ;;  %v5108_v21 = vadd.f32 %v13544_v39, %v5076_v18  ;;  %v13729_v35 = vsel %vm13472_vm9, %v16899_v29, 0 }
 0x6b8   : > { %v4745_v16 = vpop.f32.mrf.mxu2 }
 0x6b9   : > { %v4803_v8 = vadd.f32 %v4745_v16, %v4570_v17  ;;  %v13705_v15 = vpop.f32.mrf.mxu0  ;;  %v5478_v17 = vsel %vm9968_vm7, %v13703_v19, 0  ;;  %v5140_v18 = vmax.f32 %v5108_v21, 0.0 }
 0x6ba   : > { %v4517_v56 = vpop.f32.mrf.mxu1  ;;  %8836 = vmatmul.msk.bf16.gmra.mxu3 %vm1432_vm11, %v5943_v55  ;;  %v16897_v55 = vld [vmem:[#allocation218_spill] sm:$0xff] }
 0x6bb   : > { %v4940_v32 = vadd.f32 %v16893_v22, %v4803_v8  ;;  %v4572_v2 = vadd.f32 %v4517_v56, %v4432_v54  ;;  %v5172_v8 = vpack.c.bf16 %v5140_v18, %v5140_v18  ;;  %v4433_v22 = vadd.f32 %v16897_v55, %v4152_v37  ;;  %v16898_v56 = vld [vmem:[#allocation36_spill] sm:$0xff] }
 0x6bd   : > { %v5077_v41 = vadd.f32 %v13433_v58, %v4940_v32  ;;  %8803 = vmatmul.msk.bf16.vlgmr.msrb.gmra.mxu2 %vm1432_vm11, %v5478_v17  ;;  %v13719_v4 = vpop.f32.mrf.mxu3  ;;  %v7502_v23 = vunpack.c.l.b16 %v5172_v8 }
 0x6be   : > { %16896 = vst [vmem:[#allocation151_spill] sm:$0xff] %v13719_v4  ;;  %v16906_v4 = vld [vmem:[#allocation105_spill] sm:$0xff] }
 0x6bf   : > { %v5109_v52 = vadd.f32 %v13544_v39, %v5077_v41 }
 0x6c0   : > { %v4748_v16 = vpop.f32.mrf.mxu2 }
 0x6c1   : > { %v5141_v28 = vmax.f32 %v5109_v52, 0.0  ;;  %v4804_v10 = vadd.f32 %v4748_v16, %v4571_v34  ;;  %v13722_v54 = vpop.f32.mrf.mxu0  ;;  %v16900_v34 = vld [vmem:[#allocation129_spill] sm:$0xff]  ;;  %v16901_v52 = vld [vmem:[#allocation31_spill] sm:$0xff] }
 0x6c2   : > { %v4520_v32 = vpop.f32.mrf.mxu1  ;;  %v5514_v37 = vsel %vm9968_vm7, %v16900_v34, 0  ;;  %v16902_v16 = vld [vmem:[#allocation179_spill] sm:$0xff]  ;;  %v16927_v34 = vld [vmem:[#allocation276_spill] sm:$0xff] }
 0x6c3   : > { %v5173_v21 = vpack.c.bf16 %v5141_v28, %v5141_v28  ;;  %v4941_v58 = vadd.f32 %v16898_v56, %v4804_v10  ;;  %v4573_v17 = vadd.f32 %v4520_v32, %v4433_v22  ;;  %v4153_v28 = vadd.f32 %v16902_v16, %v16901_v52 }
 0x6c4   : > { %8842 = vmatmul.msk.bf16.gmra.mxu0 %vm1432_vm11, %v13729_v35 }
 0x6c5   : > { %v7503_v41 = vunpack.c.l.b16 %v5173_v21  ;;  %v5078_v18 = vadd.f32 %v13466_v7, %v4941_v58  ;;  %8788 = vmatmul.msk.bf16.gmra.mxu1 %vm1432_vm11, %v5514_v37  ;;  %v13740_v10 = vpop.f32.mrf.mxu3  ;;  %v16904_v21 = vld [vmem:[#allocation197_spill] sm:$0xff]  ;;  %v16905_v58 = vld [vmem:[#allocation250_spill] sm:$0xff] }
 0x6c6   : > { %16903 = vst [vmem:[#allocation24_spill] sm:$0xff] %v13740_v10  ;;  %v4434_v56 = vadd.f32 %v16904_v21, %v4153_v28  ;;  %v6802_v32 = vsel %vm13472_vm9, %v16905_v58, 0  ;;  %v16908_v28 = vld [vmem:[#allocation170_spill] sm:$0xff] }
 0x6c7   : > { %v13742_v29 = vpack.c.b16 %v7503_v41, %v7502_v23  ;;  %v5110_v55 = vadd.f32 %v13544_v39, %v5078_v18  ;;  %v16907_v23 = vld [vmem:[#allocation142_spill] sm:$0xff] }
 0x6c8   : > { %v4750_v8 = vpop.f32.mrf.mxu2  ;;  %v5479_v41 = vsel %vm9968_vm7, %v16907_v23, 0 }
 0x6c9   : > { %v4805_v7 = vadd.f32 %v4750_v8, %v4572_v2  ;;  %v13745_v22 = vpop.f32.mrf.mxu0  ;;  %v5142_v18 = vmax.f32 %v5110_v55, 0.0  ;;  %v16909_v8 = vld [vmem:[#allocation108_spill] sm:$0xff] }
 0x6ca   : > { %v4522_v16 = vpop.f32.mrf.mxu1  ;;  %8885 = vmatmul.msk.bf16.vlgmr.msra.gmra.mxu3 %vm1432_vm11, %v6802_v32  ;;  %v4154_v21 = vadd.f32 %v16909_v8, %v16908_v28  ;;  %v13770_v28 = vsel %vm13472_vm9, %v16913_v51, 0 }
 0x6cb   : > { %v4942_v52 = vadd.f32 %v16906_v4, %v4805_v7  ;;  %v4574_v37 = vadd.f32 %v4522_v16, %v4434_v56  ;;  %v5174_v58 = vpack.c.bf16 %v5142_v18, %v5142_v18 }
 0x6cc   : > { %v4435_v5 = vadd.f32 %v16911_v6, %v4154_v21  ;;  %v16915_v21 = vld [vmem:[#allocation258_spill] sm:$0xff] }
 0x6cd   : > { %v5079_v2 = vadd.f32 %v13496_v44, %v4942_v52  ;;  %8804 = vmatmul.msk.bf16.gmra.mxu2 %vm1432_vm11, %v5479_v41  ;;  %v13760_v10 = vpop.f32.mrf.mxu3  ;;  %v7504_v8 = vunpack.c.l.b16 %v5174_v58 }
 0x6ce   : > { %16910 = vst [vmem:[#allocation256_spill] sm:$0xff] %v13760_v10  ;;  %v16925_v10 = vld [vmem:[#allocation47_spill] sm:$0xff] }
 0x6cf   : > { %v5111_v4 = vadd.f32 %v13544_v39, %v5079_v2 }
 0x6d0   : > { %v4753_v7 = vpop.f32.mrf.mxu2 }
 0x6d1   : > { %v5143_v32 = vmax.f32 %v5111_v4, 0.0  ;;  %v4806_v56 = vadd.f32 %v4753_v7, %v4573_v17  ;;  %v13763_v16 = vpop.f32.mrf.mxu0  ;;  %v16914_v17 = vld [vmem:[#allocation147_spill] sm:$0xff] }
 0x6d2   : > { %v4525_v52 = vpop.f32.mrf.mxu1  ;;  %v5515_v6 = vsel %vm9968_vm7, %v16914_v17, 0 }
 0x6d3   : > { %v5175_v55 = vpack.c.bf16 %v5143_v32, %v5143_v32  ;;  %v4943_v44 = vadd.f32 %v16912_v33, %v4806_v56  ;;  %v4575_v41 = vadd.f32 %v4525_v52, %v4435_v5  ;;  %v16916_v33 = vld [vmem:[#allocation306_spill] sm:$0xff] }
 0x6d4   : > { %8843 = vmatmul.msk.bf16.gmra.mxu0 %vm1432_vm11, %v13770_v28  ;;  %v4155_v4 = vadd.f32 %v16916_v33, %v16915_v21  ;;  %v16918_v32 = vld [vmem:[#allocation138_spill] sm:$0xff]  ;;  %v16920_v21 = vld [vmem:[#allocation32_spill] sm:$0xff]  ;;  %v16921_v33 = vld [vmem:[#allocation265_spill] sm:$0xff] }
 0x6d5   : > { %v7505_v2 = vunpack.c.l.b16 %v5175_v55  ;;  %v5080_v18 = vadd.f32 %v13520_v57, %v4943_v44  ;;  %8789 = vmatmul.msk.bf16.gmra.mxu1 %vm1432_vm11, %v5515_v6  ;;  %v13781_v5 = vpop.f32.mrf.mxu3  ;;  %v13789_v56 = vsel %vm5224_vm1, %v16918_v32, %v13454_v60  ;;  %v16919_v44 = vld [vmem:[#allocation95_spill] sm:$0xff]  ;;  %v6803_v6 = vsel %vm13472_vm9, %v16920_v21, 0  ;;  %v16923_v32 = vld [vmem:[#allocation221_spill] sm:$0xff] }
 0x6d6   : > { %16917 = vst [vmem:[#allocation66_spill] sm:$0xff] %v13781_v5  ;;  %v4436_v52 = vadd.f32 %v16919_v44, %v4155_v4  ;;  %v16922_v4 = vld [vmem:[#allocation178_spill] sm:$0xff] }
 0x6d7   : > { %v13783_v51 = vpack.c.b16 %v7505_v2, %v7504_v8  ;;  %v5112_v58 = vadd.f32 %v13544_v39, %v5080_v18  ;;  %v4156_v44 = vadd.f32 %v16923_v32, %v16922_v4  ;;  %v13816_v4 = vsel %vm13472_vm9, %v16927_v34, 0 }
 0x6d8   : > { %v4755_v7 = vpop.f32.mrf.mxu2 }
 0x6d9   : > { %v4807_v57 = vadd.f32 %v4755_v7, %v4574_v37  ;;  %v13791_v55 = vpop.f32.mrf.mxu0  ;;  %v5480_v37 = vsel %vm9968_vm7, %v13789_v56, 0  ;;  %v5144_v60 = vmax.f32 %v5112_v58, 0.0  ;;  %v4437_v17 = vadd.f32 %v16925_v10, %v4156_v44  ;;  %v16930_v44 = vld [vmem:[#allocation227_spill] sm:$0xff] }
 0x6da   : > { %v4527_v2 = vpop.f32.mrf.mxu1  ;;  %8886 = vmatmul.msk.bf16.gmra.mxu3 %vm1432_vm11, %v6803_v6 }
 0x6db   : > { %v4944_v8 = vadd.f32 %v16921_v33, %v4807_v57  ;;  %v4576_v18 = vadd.f32 %v4527_v2, %v4436_v52  ;;  %v5176_v33 = vpack.c.bf16 %v5144_v60, %v5144_v60 }
 0x6dd   : > { %v5081_v7 = vadd.f32 %v13547_v42, %v4944_v8  ;;  %8805 = vmatmul.msk.bf16.gmra.mxu2 %vm1432_vm11, %v5480_v37  ;;  %v13806_v5 = vpop.f32.mrf.mxu3  ;;  %v7506_v32 = vunpack.c.l.b16 %v5176_v33 }
 0x6de   : > { %16924 = vst [vmem:[#allocation41_spill] sm:$0xff] %v13806_v5 }
 0x6df   : > { %v5113_v57 = vadd.f32 %v13544_v39, %v5081_v7 }
 0x6e0   : > { %v4758_v21 = vpop.f32.mrf.mxu2 }
 0x6e1   : > { %v5145_v6 = vmax.f32 %v5113_v57, 0.0  ;;  %v4808_v52 = vadd.f32 %v4758_v21, %v4575_v41  ;;  %v13809_v2 = vpop.f32.mrf.mxu0  ;;  %v16928_v41 = vld [vmem:[#allocation236_spill] sm:$0xff] }
 0x6e2   : > { %v4530_v8 = vpop.f32.mrf.mxu1  ;;  %v5516_v10 = vsel %vm10036_vm5, %v16928_v41, 0  ;;  %v16936_v41 = vld [vmem:[#allocation243_spill] sm:$0xff] }
 0x6e3   : > { %v5177_v58 = vpack.c.bf16 %v5145_v6, %v5145_v6  ;;  %v4945_v42 = vadd.f32 %v16926_v43, %v4808_v52  ;;  %v4577_v37 = vadd.f32 %v4530_v8, %v4437_v17  ;;  %v16931_v43 = vld [vmem:[#allocation73_spill] sm:$0xff] }
 0x6e4   : > { %8844 = vmatmul.msk.bf16.gmra.mxu0 %vm1432_vm11, %v13816_v4  ;;  %v4157_v21 = vadd.f32 %v16931_v43, %v16930_v44  ;;  %v16935_v8 = vld [vmem:[#allocation249_spill] sm:$0xff] }
 0x6e5   : > { %v7507_v7 = vunpack.c.l.b16 %v5177_v58  ;;  %v5082_v60 = vadd.f32 %v13571_v50, %v4945_v42  ;;  %8790 = vmatmul.msk.bf16.gmra.mxu1 %vm1432_vm11, %v5516_v10  ;;  %v13827_v17 = vpop.f32.mrf.mxu3  ;;  %v16934_v58 = vld [vmem:[#allocation44_spill] sm:$0xff]  ;;  %v6804_v5 = vsel %vm13472_vm9, %v16935_v8, 0 }
 0x6e6   : > { %16932 = vst [vmem:[#allocation173_spill] sm:$0xff] %v13827_v17  ;;  %v4438_v42 = vadd.f32 %v16934_v58, %v4157_v21 }
 0x6e7   : > { %v13829_v34 = vpack.c.b16 %v7507_v7, %v7506_v32  ;;  %v5114_v6 = vadd.f32 %v13544_v39, %v5082_v60  ;;  %v16938_v60 = vld [vmem:[#allocation82_spill] sm:$0xff] }
 0x6e8   : > { %v4760_v33 = vpop.f32.mrf.mxu2 }
 0x6e9   : > { %16933 = vst [vmem:[#allocation184_spill] sm:$0xff] %v13829_v34  ;;  %v4809_v50 = vadd.f32 %v4760_v33, %v4576_v18  ;;  %v13832_v52 = vpop.f32.mrf.mxu0  ;;  %v5146_v32 = vmax.f32 %v5114_v6, 0.0  ;;  %v16937_v18 = vld [vmem:[#allocation52_spill] sm:$0xff]  ;;  %v16942_v34 = vld [vmem:[#allocation275_spill] sm:$0xff] }
 0x6ea   : > { %v4532_v43 = vpop.f32.mrf.mxu1  ;;  %8887 = vmatmul.msk.bf16.gmra.mxu3 %vm1432_vm11, %v6804_v5  ;;  %v4158_v33 = vadd.f32 %v16938_v60, %v16937_v18  ;;  %v16940_v5 = vld [vmem:[#allocation107_spill] sm:$0xff]  ;;  %v13855_v18 = vsel %vm13472_vm9, %v16942_v34, 0 }
 0x6eb   : > { %v4946_v44 = vadd.f32 %v16936_v41, %v4809_v50  ;;  %v4578_v10 = vadd.f32 %v4532_v43, %v4438_v42  ;;  %v5178_v17 = vpack.c.bf16 %v5146_v32, %v5146_v32 }
 0x6ec   : > { %v4439_v6 = vadd.f32 %v16940_v5, %v4158_v33 }
 0x6ed   : > { %v5083_v7 = vadd.f32 %v13595_v26, %v4946_v44  ;;  %8806 = vmatmul.msk.bf16.gmra.mxu2 %vm1432_vm11, %v13480_v11  ;;  %v13845_v21 = vpop.f32.mrf.mxu3  ;;  %v16941_v26 = vld [vmem:[#allocation187_spill] sm:$0xff]  ;;  %v7508_v60 = vunpack.c.l.b16 %v5178_v17 }
 0x6ee   : > { %16939 = vst [vmem:[#allocation168_spill] sm:$0xff] %v13845_v21  ;;  %v16950_v21 = vld [vmem:[#allocation17_spill] sm:$0xff] }
 0x6ef   : > { %v5115_v58 = vadd.f32 %v13544_v39, %v5083_v7 }
 0x6f0   : > { %v4763_v8 = vpop.f32.mrf.mxu2 }
 0x6f1   : > { %v5147_v41 = vmax.f32 %v5115_v58, 0.0  ;;  %v4810_v50 = vadd.f32 %v4763_v8, %v4577_v37  ;;  %v13848_v1 = vpop.f32.mrf.mxu0  ;;  %v16943_v37 = vld [vmem:[#allocation241_spill] sm:$0xff]  ;;  %v16944_v58 = vld [vmem:[#allocation158_spill] sm:$0xff] }
 0x6f2   : > { %v4535_v43 = vpop.f32.mrf.mxu1  ;;  %v5517_v33 = vsel %vm10036_vm5, %v16943_v37, 0  ;;  %v16945_v8 = vld [vmem:[#allocation118_spill] sm:$0xff] }
 0x6f3   : > { %v5179_v42 = vpack.c.bf16 %v5147_v41, %v5147_v41  ;;  %v4947_v44 = vadd.f32 %v16941_v26, %v4810_v50  ;;  %v4579_v11 = vadd.f32 %v4535_v43, %v4439_v6  ;;  %v4159_v41 = vadd.f32 %v16945_v8, %v16944_v58 }
 0x6f4   : > { %8845 = vmatmul.msk.bf16.gmra.mxu0 %vm1432_vm11, %v13855_v18 }
 0x6f5   : > { %v7509_v7 = vunpack.c.l.b16 %v5179_v42  ;;  %v5084_v32 = vadd.f32 %v13619_v0, %v4947_v44  ;;  %8791 = vmatmul.msk.bf16.gmra.mxu1 %vm1432_vm11, %v5517_v33  ;;  %v13866_v50 = vpop.f32.mrf.mxu3  ;;  %v16948_v42 = vld [vmem:[#allocation211_spill] sm:$0xff]  ;;  %v16949_v44 = vld [vmem:[#allocation162_spill] sm:$0xff] }
 0x6f6   : > { %16946 = vst [vmem:[#allocation169_spill] sm:$0xff] %v13866_v50  ;;  %v4440_v26 = vadd.f32 %v16948_v42, %v4159_v41  ;;  %v6805_v43 = vsel %vm13472_vm9, %v16949_v44, 0 }
 0x6f7   : > { %v13868_v34 = vpack.c.b16 %v7509_v7, %v7508_v60  ;;  %v5116_v5 = vadd.f32 %v13544_v39, %v5084_v32  ;;  %v16952_v32 = vld [vmem:[#allocation94_spill] sm:$0xff] }
 0x6f8   : > { %v4765_v17 = vpop.f32.mrf.mxu2 }
 0x6f9   : > { %v4811_v0 = vadd.f32 %v4765_v17, %v4578_v10  ;;  %v13871_v6 = vpop.f32.mrf.mxu0  ;;  %v5148_v60 = vmax.f32 %v5116_v5, 0.0  ;;  %v16951_v10 = vld [vmem:[#allocation29_spill] sm:$0xff] }
 0x6fa   : > { %16947 = vst [vmem:[#allocation203_spill] sm:$0xff] %v13871_v6  ;;  %v4537_v8 = vpop.f32.mrf.mxu1  ;;  %8888 = vmatmul.msk.bf16.gmra.mxu3 %vm1432_vm11, %v6805_v43  ;;  %v4160_v17 = vadd.f32 %v16952_v32, %v16951_v10  ;;  %v16956_v6 = vld [vmem:[#allocation286_spill] sm:$0xff] }
 0x6fb   : > { %v4948_v58 = vadd.f32 %v16950_v21, %v4811_v0  ;;  %v4580_v33 = vadd.f32 %v4537_v8, %v4440_v26  ;;  %v5180_v50 = vpack.c.bf16 %v5148_v60, %v5148_v60  ;;  %v16954_v26 = vld [vmem:[#allocation18_spill] sm:$0xff]  ;;  %v13894_v10 = vsel %vm13472_vm9, %v16956_v6, 0 }
 0x6fc   : > { %v4441_v5 = vadd.f32 %v16954_v26, %v4160_v17 }
 0x6fd   : > { %v5085_v7 = vadd.f32 %v13652_v46, %v4948_v58  ;;  %8807 = vmatmul.msk.bf16.gmra.mxu2 %vm1432_vm11, %v13527_v40  ;;  %v13884_v41 = vpop.f32.mrf.mxu3  ;;  %v16955_v46 = vld [vmem:[#allocation35_spill] sm:$0xff]  ;;  %v7510_v32 = vunpack.c.l.b16 %v5180_v50 }
 0x6fe   : > { %16953 = vst [vmem:[#allocation174_spill] sm:$0xff] %v13884_v41  ;;  %v16964_v41 = vld [vmem:[#allocation271_spill] sm:$0xff] }
 0x6ff   : > { %v5117_v42 = vadd.f32 %v13544_v39, %v5085_v7 }
 0x700   : > { %v4768_v44 = vpop.f32.mrf.mxu2 }
 0x701   : > { %v5149_v21 = vmax.f32 %v5117_v42, 0.0  ;;  %v4812_v0 = vadd.f32 %v4768_v44, %v4579_v11  ;;  %v13887_v37 = vpop.f32.mrf.mxu0  ;;  %v16957_v11 = vld [vmem:[#allocation246_spill] sm:$0xff]  ;;  %v16958_v42 = vld [vmem:[#allocation159_spill] sm:$0xff] }
 0x702   : > { %v4540_v8 = vpop.f32.mrf.mxu1  ;;  %v5518_v17 = vsel %vm10036_vm5, %v16957_v11, 0  ;;  %v16959_v44 = vld [vmem:[#allocation86_spill] sm:$0xff] }
 0x703   : > { %v5181_v43 = vpack.c.bf16 %v5149_v21, %v5149_v21  ;;  %v4949_v58 = vadd.f32 %v16955_v46, %v4812_v0  ;;  %v4581_v40 = vadd.f32 %v4540_v8, %v4441_v5  ;;  %v4161_v21 = vadd.f32 %v16959_v44, %v16958_v42 }
 0x704   : > { %8846 = vmatmul.msk.bf16.gmra.mxu0 %vm1432_vm11, %v13894_v10 }
 0x705   : > { %v7511_v7 = vunpack.c.l.b16 %v5181_v43  ;;  %v5086_v60 = vadd.f32 %v13672_v63, %v4949_v58  ;;  %8792 = vmatmul.msk.bf16.gmra.mxu1 %vm1432_vm11, %v5518_v17  ;;  %v13905_v0 = vpop.f32.mrf.mxu3  ;;  %v16962_v43 = vld [vmem:[#allocation213_spill] sm:$0xff]  ;;  %v16963_v58 = vld [vmem:[#allocation167_spill] sm:$0xff] }
 0x706   : > { %16960 = vst [vmem:[#allocation81_spill] sm:$0xff] %v13905_v0  ;;  %v4442_v46 = vadd.f32 %v16962_v43, %v4161_v21  ;;  %v6806_v8 = vsel %vm13472_vm9, %v16963_v58, 0 }
 0x707   : > { %v13907_v6 = vpack.c.b16 %v7511_v7, %v7510_v32  ;;  %v5118_v26 = vadd.f32 %v13544_v39, %v5086_v60  ;;  %v16966_v60 = vld [vmem:[#allocation15_spill] sm:$0xff] }
 0x708   : > { %v4770_v50 = vpop.f32.mrf.mxu2 }
 0x709   : > { %v4813_v63 = vadd.f32 %v4770_v50, %v4580_v33  ;;  %v13910_v5 = vpop.f32.mrf.mxu0  ;;  %v5150_v32 = vmax.f32 %v5118_v26, 0.0  ;;  %v16965_v33 = vld [vmem:[#allocation194_spill] sm:$0xff] }
 0x70a   : > { %16961 = vst [vmem:[#allocation284_spill] sm:$0xff] %v13910_v5  ;;  %v4542_v44 = vpop.f32.mrf.mxu1  ;;  %8889 = vmatmul.msk.bf16.gmra.mxu3 %vm1432_vm11, %v6806_v8  ;;  %v4162_v50 = vadd.f32 %v16966_v60, %v16965_v33  ;;  %v16970_v5 = vld [vmem:[#allocation189_spill] sm:$0xff] }
 0x70b   : > { %v4950_v42 = vadd.f32 %v16964_v41, %v4813_v63  ;;  %v4582_v17 = vadd.f32 %v4542_v44, %v4442_v46  ;;  %v5182_v0 = vpack.c.bf16 %v5150_v32, %v5150_v32  ;;  %v16968_v46 = vld [vmem:[#allocation26_spill] sm:$0xff]  ;;  %v13933_v33 = vsel %vm13472_vm9, %v16970_v5, 0 }
 0x70c   : > { %v4443_v26 = vadd.f32 %v16968_v46, %v4162_v50 }
 0x70d   : > { %v5087_v7 = vadd.f32 %v13705_v15, %v4950_v42  ;;  %8808 = vmatmul.msk.bf16.gmra.mxu2 %vm1432_vm11, %v13578_v14  ;;  %v13923_v21 = vpop.f32.mrf.mxu3  ;;  %v16969_v15 = vld [vmem:[#allocation157_spill] sm:$0xff]  ;;  %v7512_v60 = vunpack.c.l.b16 %v5182_v0 }
 0x70e   : > { %16967 = vst [vmem:[#allocation131_spill] sm:$0xff] %v13923_v21 }
 0x70f   : > { %v5119_v43 = vadd.f32 %v13544_v39, %v5087_v7 }
 0x710   : > { %v4773_v58 = vpop.f32.mrf.mxu2 }
 0x711   : > { %v5151_v41 = vmax.f32 %v5119_v43, 0.0  ;;  %v4814_v63 = vadd.f32 %v4773_v58, %v4581_v40  ;;  %v13926_v11 = vpop.f32.mrf.mxu0  ;;  %v16971_v40 = vld [vmem:[#allocation127_spill] sm:$0xff]  ;;  %v16972_v43 = vld [vmem:[#allocation232_spill] sm:$0xff] }
 0x712   : > { %v4545_v44 = vpop.f32.mrf.mxu1  ;;  %v13941_v50 = vsel %vm10036_vm5, %v16971_v40, 0  ;;  %v16973_v58 = vld [vmem:[#allocation132_spill] sm:$0xff] }
 0x713   : > { %v5183_v8 = vpack.c.bf16 %v5151_v41, %v5151_v41  ;;  %v4951_v42 = vadd.f32 %v16969_v15, %v4814_v63  ;;  %v4583_v14 = vadd.f32 %v4545_v44, %v4443_v26  ;;  %v4163_v41 = vadd.f32 %v16973_v58, %v16972_v43  ;;  %v16977_v40 = vld [vmem:[#allocation192_spill] sm:$0xff] }
 0x714   : > { %8847 = vmatmul.msk.bf16.gmra.mxu0 %vm1432_vm11, %v13933_v33 }
 0x715   : > { %v7513_v7 = vunpack.c.l.b16 %v5183_v8  ;;  %v5088_v32 = vadd.f32 %v13722_v54, %v4951_v42  ;;  %8793 = vmatmul.msk.bf16.gmra.mxu1 %vm1432_vm11, %v13941_v50  ;;  %v13947_v5 = vpop.f32.mrf.mxu3  ;;  %v16975_v8 = vld [vmem:[#allocation130_spill] sm:$0xff] }
 0x716   : > { %16974 = vst [vmem:[#allocation110_spill] sm:$0xff] %v13947_v5  ;;  %v4444_v15 = vadd.f32 %v16975_v8, %v4163_v41  ;;  %v16976_v42 = vld [vmem:[#allocation278_spill] sm:$0xff] }
 0x717   : > { %v13949_v0 = vpack.c.b16 %v7513_v7, %v7512_v60  ;;  %v5120_v54 = vadd.f32 %v13544_v39, %v5088_v32  ;;  %v6807_v44 = vsel %vm13472_vm9, %v16976_v42, 0 }
 0x718   : > { %v4775_v63 = vpop.f32.mrf.mxu2 }
 0x719   : > { %v4815_v46 = vadd.f32 %v4775_v63, %v4582_v17  ;;  %v13952_v26 = vpop.f32.mrf.mxu0  ;;  %v5152_v60 = vmax.f32 %v5120_v54, 0.0  ;;  %v16978_v17 = vld [vmem:[#allocation238_spill] sm:$0xff] }
 0x71a   : > { %v4547_v58 = vpop.f32.mrf.mxu1  ;;  %8890 = vmatmul.msk.bf16.gmra.mxu3 %vm1432_vm11, %v6807_v44  ;;  %v4164_v32 = vadd.f32 %v16978_v17, %v13280_v9 }
 0x71b   : > { %v4952_v43 = vadd.f32 %v16977_v40, %v4815_v46  ;;  %v4584_v5 = vadd.f32 %v4547_v58, %v4444_v15  ;;  %v5184_v42 = vpack.c.bf16 %v5152_v60, %v5152_v60  ;;  %v16980_v15 = vld [vmem:[#allocation112_spill] sm:$0xff] }
 0x71c   : > { %v4445_v54 = vadd.f32 %v16980_v15, %v4164_v32  ;;  %v16981_v58 = vld [vmem:[#allocation56_spill] sm:$0xff] }
 0x71d   : > { %v5089_v7 = vadd.f32 %v13745_v22, %v4952_v43  ;;  %8809 = vmatmul.msk.bf16.gmra.mxu2 %vm1432_vm11, %v13628_v31  ;;  %v13965_v41 = vpop.f32.mrf.mxu3  ;;  %v13975_v9 = vsel %vm13472_vm9, %v16981_v58, 0  ;;  %v7514_v17 = vunpack.c.l.b16 %v5184_v42 }
 0x71e   : > { %16979 = vst [vmem:[#allocation90_spill] sm:$0xff] %v13965_v41 }
 0x71f   : > { %v5121_v63 = vadd.f32 %v13544_v39, %v5089_v7 }
 0x720   : > { %v4778_v8 = vpop.f32.mrf.mxu2 }
 0x721   : > { %v5153_v46 = vmax.f32 %v5121_v63, 0.0  ;;  %v4816_v40 = vadd.f32 %v4778_v8, %v4583_v14  ;;  %v13968_v21 = vpop.f32.mrf.mxu0  ;;  %v16982_v14 = vld [vmem:[#allocation257_spill] sm:$0xff]  ;;  %v16984_v63 = vld [vmem:[#allocation230_spill] sm:$0xff] }
 0x722   : > { %v4550_v43 = vpop.f32.mrf.mxu1  ;;  %v13983_v32 = vsel %vm10036_vm5, %v16982_v14, 0  ;;  %v16988_v14 = vld [vmem:[#allocation290_spill] sm:$0xff] }
 0x723   : > { %v5185_v44 = vpack.c.bf16 %v5153_v46, %v5153_v46  ;;  %v4953_v22 = vadd.f32 %v13273_v45, %v4816_v40  ;;  %v4585_v31 = vadd.f32 %v4550_v43, %v4445_v54  ;;  %v16983_v45 = vld [vmem:[#allocation260_spill] sm:$0xff]  ;;  %v16987_v43 = vld [vmem:[#allocation183_spill] sm:$0xff] }
 0x724   : > { %8848 = vmatmul.msk.bf16.gmra.mxu0 %vm1432_vm11, %v13975_v9  ;;  %v4165_v8 = vadd.f32 %v16984_v63, %v16983_v45  ;;  %v6808_v58 = vsel %vm13472_vm9, %v16987_v43, 0 }
 0x725   : > { %v7515_v7 = vunpack.c.l.b16 %v5185_v44  ;;  %v5090_v60 = vadd.f32 %v13763_v16, %v4953_v22  ;;  %8794 = vmatmul.msk.bf16.gmra.mxu1 %vm1432_vm11, %v13983_v32  ;;  %v13989_v46 = vpop.f32.mrf.mxu3  ;;  %v16986_v44 = vld [vmem:[#allocation34_spill] sm:$0xff] }
 0x726   : > { %16985 = vst [vmem:[#allocation84_spill] sm:$0xff] %v13989_v46  ;;  %v4446_v22 = vadd.f32 %v16986_v44, %v4165_v8 }
 0x727   : > { %v13991_v42 = vpack.c.b16 %v7515_v7, %v7514_v17  ;;  %v5122_v16 = vadd.f32 %v13544_v39, %v5090_v60 }
 0x728   : > { %v4780_v40 = vpop.f32.mrf.mxu2 }
 0x729   : > { %v4817_v15 = vadd.f32 %v4780_v40, %v4584_v5  ;;  %v13994_v54 = vpop.f32.mrf.mxu0  ;;  %v5154_v17 = vmax.f32 %v5122_v16, 0.0  ;;  %v16990_v16 = vld [vmem:[#allocation76_spill] sm:$0xff] }
 0x72a   : > { %v4552_v63 = vpop.f32.mrf.mxu1  ;;  %8891 = vmatmul.msk.bf16.gmra.mxu3 %vm1432_vm11, %v6808_v58 }
 0x72b   : > { %v4954_v45 = vadd.f32 %v16988_v14, %v4817_v15  ;;  %v4586_v46 = vadd.f32 %v4552_v63, %v4446_v22  ;;  %v5186_v40 = vpack.c.bf16 %v5154_v17, %v5154_v17  ;;  %v16991_v63 = vld [vmem:[#allocation262_spill] sm:$0xff] }
 0x72d   : > { %v5091_v7 = vadd.f32 %v13791_v55, %v4954_v45  ;;  %8810 = vmatmul.msk.bf16.gmra.mxu2 %vm1432_vm11, %v13681_v20  ;;  %v14005_v5 = vpop.f32.mrf.mxu3  ;;  %v14014_v55 = vsel %vm13472_vm9, %v16990_v16, 0  ;;  %v7516_v20 = vunpack.c.l.b16 %v5186_v40  ;;  %v16993_v40 = vld [vmem:[#allocation63_spill] sm:$0xff] }
 0x72e   : > { %16989 = vst [vmem:[#allocation259_spill] sm:$0xff] %v14005_v5 }
 0x72f   : > { %v5123_v60 = vadd.f32 %v13544_v39, %v5091_v7 }
 0x730   : > { %v4783_v8 = vpop.f32.mrf.mxu2 }
 0x731   : > { %v5155_v44 = vmax.f32 %v5123_v60, 0.0  ;;  %v4818_v43 = vadd.f32 %v4783_v8, %v4585_v31  ;;  %v14008_v41 = vpop.f32.mrf.mxu0  ;;  %v14022_v31 = vsel %vm10036_vm5, %v16991_v63, 0 }
 0x732   : > { %v5586_v22 = vpop.f32.mrf.mxu1 }
 0x733   : > { %v5187_v15 = vpack.c.bf16 %v5155_v44, %v5155_v44  ;;  %v4955_v58 = vadd.f32 %v13317_v25, %v4818_v43  ;;  %v6809_v44 = vsel %vm13472_vm9, %v16993_v40, 0  ;;  %v16994_v43 = vld [vmem:[#allocation280_spill] sm:$0xff] }
 0x734   : > { %8849 = vmatmul.msk.bf16.gmra.mxu0 %vm1432_vm11, %v14014_v55 }
 0x735   : > { %v7517_v14 = vunpack.c.l.b16 %v5187_v15  ;;  %v5092_v45 = vadd.f32 %v13809_v2, %v4955_v58  ;;  %8795 = vmatmul.msk.bf16.gmra.mxu1 %vm1432_vm11, %v14022_v31  ;;  %v14026_v25 = vpop.f32.mrf.mxu3 }
 0x736   : > { %16992 = vst [vmem:[#allocation233_spill] sm:$0xff] %v14026_v25 }
 0x737   : > { %v14028_v17 = vpack.c.b16 %v7517_v14, %v7516_v20  ;;  %v5124_v60 = vadd.f32 %v13544_v39, %v5092_v45 }
 0x738   : > { %v4785_v7 = vpop.f32.mrf.mxu2 }
 0x739   : > { %v4819_v8 = vadd.f32 %v4785_v7, %v4586_v46  ;;  %v14031_v2 = vpop.f32.mrf.mxu0  ;;  %v5156_v16 = vmax.f32 %v5124_v60, 0.0 }
 0x73a   : > { %v5588_v58 = vpop.f32.mrf.mxu1  ;;  %8892 = vmatmul.msk.bf16.gmra.mxu3 %vm1432_vm11, %v6809_v44  ;;  %v16996_v44 = vld [vmem:[#allocation140_spill] sm:$0xff] }
 0x73b   : > { %v4956_v15 = vadd.f32 %v16994_v43, %v4819_v8  ;;  %v5188_v45 = vpack.c.bf16 %v5156_v16, %v5156_v16 }
 0x73d   : > { %v5093_v63 = vadd.f32 %v13832_v52, %v4956_v15  ;;  %8811 = vmatmul.msk.bf16.gmra.mxu2 %vm1432_vm11, %v13729_v35  ;;  %v14041_v20 = vpop.f32.mrf.mxu3  ;;  %v6128_v52 = vsel %vm13472_vm9, %v16996_v44, 0  ;;  %v7518_v60 = vunpack.c.l.b16 %v5188_v45  ;;  %v16997_v35 = vld [vmem:[#allocation270_spill] sm:$0xff] }
 0x73e   : > { %16995 = vst [vmem:[#allocation137_spill] sm:$0xff] %v14041_v20 }
 0x73f   : > { %v5125_v46 = vadd.f32 %v13544_v39, %v5093_v63  ;;  %v14055_v39 = vsel %vm10036_vm5, %v16997_v35, 0 }
 0x740   : > { %v5723_v14 = vpop.f32.mrf.mxu2 }
 0x741   : > { %v5157_v7 = vmax.f32 %v5125_v46, 0.0  ;;  %v14044_v25 = vadd.f32 %v5723_v14, %v5586_v22  ;;  %v14046_v8 = vpop.f32.mrf.mxu0  ;;  %v16999_v14 = vld [vmem:[#allocation176_spill] sm:$0xff] }
 0x742   : > { %v5591_v43 = vpop.f32.mrf.mxu1  ;;  %v6810_v45 = vsel %vm13472_vm9, %v16999_v14, 0 }
 0x743   : > { %v5189_v40 = vpack.c.bf16 %v5157_v7, %v5157_v7 }
 0x744   : > { %8850 = vmatmul.msk.bf16.gmra.mxu0 %vm1432_vm11, %v6128_v52 }
 0x745   : > { %v7519_v15 = vunpack.c.l.b16 %v5189_v40  ;;  %8796 = vmatmul.msk.bf16.gmra.mxu1 %vm1432_vm11, %v14055_v39  ;;  %v14059_v22 = vpop.f32.mrf.mxu3 }
 0x746   : > { %16998 = vst [vmem:[#allocation264_spill] sm:$0xff] %v14059_v22 }
 0x747   : > { %v14061_v16 = vpack.c.b16 %v7519_v15, %v7518_v60 }
 0x748   : > { %v5725_v63 = vpop.f32.mrf.mxu2 }
 0x749   : > { %v14063_v46 = vadd.f32 %v5725_v63, %v5588_v58  ;;  %v14069_v40 = vpop.f32.mrf.mxu0  ;;  %v17001_v58 = vld [vmem:[#allocation144_spill] sm:$0xff]  ;;  %v17002_v63 = vld [vmem:[#allocation279_spill] sm:$0xff] }
 0x74a   : > { %v5593_v7 = vpop.f32.mrf.mxu1  ;;  %8893 = vmatmul.msk.bf16.gmra.mxu3 %vm1432_vm11, %v6810_v45  ;;  %v6129_v35 = vsel %vm13472_vm9, %v17001_v58, 0  ;;  %v14084_v14 = vsel %vm10036_vm5, %v17002_v63, 0 }
 0x74d   : > { %8812 = vmatmul.msk.bf16.gmra.mxu2 %vm1432_vm11, %v13770_v28  ;;  %v14073_v44 = vpop.f32.mrf.mxu3 }
 0x74e   : > { %17000 = vst [vmem:[#allocation234_spill] sm:$0xff] %v14073_v44 }
 0x750   : > { %v5728_v52 = vpop.f32.mrf.mxu2 }
 0x751   : > { %v14075_v60 = vadd.f32 %v5728_v52, %v5591_v43  ;;  %v14090_v45 = vpop.f32.mrf.mxu0  ;;  %v17004_v43 = vld [vmem:[#allocation305_spill] sm:$0xff] }
 0x752   : > { %v5596_v15 = vpop.f32.mrf.mxu1  ;;  %v6791_v52 = vsel %vm5224_vm1, %v17004_v43, %v13676_v3  ;;  %v17006_v43 = vld [vmem:[#allocation153_spill] sm:$0xff] }
 0x754   : > { %8851 = vmatmul.msk.bf16.gmra.mxu0 %vm1432_vm11, %v6129_v35  ;;  %v6811_v35 = vsel %vm13472_vm9, %v6791_v52, 0 }
 0x755   : > { %8797 = vmatmul.msk.bf16.gmra.mxu1 %vm1432_vm11, %v14084_v14  ;;  %v14088_v28 = vpop.f32.mrf.mxu3 }
 0x756   : > { %17003 = vst [vmem:[#allocation272_spill] sm:$0xff] %v14088_v28 }
 0x758   : > { %v5730_v44 = vpop.f32.mrf.mxu2 }
 0x759   : > { %v14095_v58 = vadd.f32 %v5730_v44, %v5593_v7  ;;  %v14104_v20 = vpop.f32.mrf.mxu0  ;;  %v6130_v7 = vsel %vm13472_vm9, %v17006_v43, 0  ;;  %v14115_v44 = vsel %vm10036_vm5, %v16800_v13, 0  ;;  %v7616_v13 = vld [vmem:[%s15371_s5] sm:$0x3] }
 0x75a   : > { %v5598_v22 = vpop.f32.mrf.mxu1  ;;  %8894 = vmatmul.msk.bf16.gmra.mxu3 %vm1432_vm11, %v6811_v35 }
 0x75d   : > { %8813 = vmatmul.msk.bf16.gmra.mxu2 %vm1432_vm11, %v13816_v4  ;;  %v14102_v63 = vpop.f32.mrf.mxu3 }
 0x75e   : > { %17005 = vst [vmem:[#allocation116_spill] sm:$0xff] %v14102_v63 }
 0x760   : > { %v5733_v28 = vpop.f32.mrf.mxu2 }
 0x761   : > { %v14106_v5 = vadd.f32 %v5733_v28, %v5596_v15  ;;  %v6812_v28 = vsel %vm13472_vm9, %v13703_v19, 0  ;;  %v14126_v35 = vpop.f32.mrf.mxu0 }
 0x762   : > { %v5601_v3 = vpop.f32.mrf.mxu1 }
 0x764   : > { %8852 = vmatmul.msk.bf16.gmra.mxu0 %vm1432_vm11, %v6130_v7  ;;  %v7766_v7 = vsel %vm1481_vm6, %v7616_v13, 0 }
 0x765   : > { %8798 = vmatmul.msk.bf16.gmra.mxu1 %vm1432_vm11, %v14115_v44  ;;  %v14119_v4 = vpop.f32.mrf.mxu3  ;;  %8990 = vmatpush.bf16.msrb.mxu3 %v7766_v7 }
 0x766   : > { %17007 = vst [vmem:[#allocation281_spill] sm:$0xff] %v14119_v4  ;;  %7775 = vmatpush.bf16.msrb.mxu2 %v7766_v7 }
 0x768   : > { %v5735_v52 = vpop.f32.mrf.mxu2 }
 0x769   : > { %v14121_v15 = vadd.f32 %v5735_v52, %v5598_v22  ;;  %v14139_v63 = vpop.f32.mrf.mxu0 }
 0x76a   : > { %v5603_v43 = vpop.f32.mrf.mxu1  ;;  %8895 = vmatmul.msk.bf16.gmra.mxu3 %vm1432_vm11, %v6812_v28  ;;  %17009 = vst [vmem:[#allocation289_spill] sm:$0xff] %v14139_v63  ;;  %v14146_v28 = vsel %vm10036_vm5, %v16817_v62, 0 }
 0x76d   : > { %8814 = vmatmul.msk.bf16.gmra.mxu2 %vm1432_vm11, %v13855_v18  ;;  %v14135_v22 = vpop.f32.mrf.mxu3 }
 0x76e   : > { %17008 = vst [vmem:[#allocation204_spill] sm:$0xff] %v14135_v22 }
 0x770   : > { %v5738_v52 = vpop.f32.mrf.mxu2 }
 0x771   : > { %v14137_v19 = vadd.f32 %v5738_v52, %v5601_v3  ;;  %v6813_v3 = vsel %vm13472_vm9, %v16907_v23, 0  ;;  %v14171_v23 = vsel %vm10036_vm5, %v16835_v61, 0 }
 0x772   : > { %v5606_v4 = vpop.f32.mrf.mxu1 }
 0x774   : > { %8901 = vmatmul.msk.bf16.vlgmr.msra.gmra.mxu0 %vm1432_vm11, %v13941_v50  ;;  %v14162_v50 = vpop.f32.mrf.mxu0 }
 0x775   : > { %8799 = vmatmul.msk.bf16.gmra.mxu1 %vm1432_vm11, %v14146_v28  ;;  %v14150_v18 = vpop.f32.mrf.mxu3 }
 0x776   : > { %17010 = vst [vmem:[#allocation71_spill] sm:$0xff] %v14150_v18 }
 0x778   : > { %v5740_v13 = vpop.f32.mrf.mxu2 }
 0x779   : > { %v14152_v7 = vadd.f32 %v5740_v13, %v5603_v43 }
 0x77a   : > { %v5608_v52 = vpop.f32.mrf.mxu1  ;;  %8896 = vmatmul.msk.bf16.gmra.mxu3 %vm1432_vm11, %v6813_v3 }
 0x77c   : > { %v14177_v13 = vpop.f32.mrf.mxu0 }
 0x77d   : > { %8815 = vmatmul.msk.bf16.gmra.mxu2 %vm1432_vm11, %v13894_v10  ;;  %v14160_v62 = vpop.f32.mrf.mxu3  ;;  %17013 = vst [vmem:[#allocation296_spill] sm:$0xff] %v14177_v13 }
 0x77e   : > { %17011 = vst [vmem:[#allocation97_spill] sm:$0xff] %v14160_v62 }
 0x780   : > { %v5743_v22 = vpop.f32.mrf.mxu2 }
 0x781   : > { %v14164_v63 = vadd.f32 %v5743_v22, %v5606_v4  ;;  %v6814_v4 = vsel %vm13472_vm9, %v13789_v56, 0 }
 0x782   : > { %v5611_v18 = vpop.f32.mrf.mxu1 }
 0x784   : > { %8902 = vmatmul.msk.bf16.gmra.mxu0 %vm1432_vm11, %v13983_v32 }
 0x785   : > { %8800 = vmatmul.msk.bf16.gmra.mxu1 %vm1432_vm11, %v14171_v23  ;;  %v14175_v10 = vpop.f32.mrf.mxu3 }
 0x786   : > { %17012 = vst [vmem:[#allocation209_spill] sm:$0xff] %v14175_v10  ;;  %v14191_v10 = vpop.f32.mrf.mxu0 }
 0x788   : > { %v5745_v43 = vpop.f32.mrf.mxu2 }
 0x789   : > { %v14179_v3 = vadd.f32 %v5745_v43, %v5608_v52 }
 0x78a   : > { %v5613_v32 = vpop.f32.mrf.mxu1  ;;  %8897 = vmatmul.msk.bf16.gmra.mxu3 %vm1432_vm11, %v6814_v4 }
 0x78d   : > { %8816 = vmatmul.msk.bf16.gmra.mxu2 %vm1432_vm11, %v13933_v33  ;;  %v14187_v61 = vpop.f32.mrf.mxu3 }
 0x78e   : > { %17014 = vst [vmem:[#allocation79_spill] sm:$0xff] %v14187_v61 }
 0x790   : > { %v5748_v22 = vpop.f32.mrf.mxu2 }
 0x791   : > { %v14189_v62 = vadd.f32 %v5748_v22, %v5611_v18  ;;  %v6815_v18 = vsel %vm9968_vm7, %v13464_v53, 0  ;;  %v14223_v53 = vsel %vm10036_vm5, %v16864_v12, 0 }
 0x792   : > { %v5616_v13 = vpop.f32.mrf.mxu1 }
 0x794   : > { %8903 = vmatmul.msk.bf16.gmra.mxu0 %vm1432_vm11, %v14022_v31  ;;  %v14210_v31 = vpop.f32.mrf.mxu0 }
 0x795   : > { %8801 = vmatmul.msk.bf16.gmra.mxu1 %vm1432_vm11, %v14198_v27  ;;  %v14202_v56 = vpop.f32.mrf.mxu3 }
 0x796   : > { %17015 = vst [vmem:[#allocation215_spill] sm:$0xff] %v14202_v56 }
 0x798   : > { %v5750_v33 = vpop.f32.mrf.mxu2 }
 0x799   : > { %v14204_v52 = vadd.f32 %v5750_v33, %v5613_v32 }
 0x79a   : > { %v5618_v43 = vpop.f32.mrf.mxu1  ;;  %8898 = vmatmul.msk.bf16.gmra.mxu3 %vm1432_vm11, %v6815_v18 }
 0x79d   : > { %8817 = vmatmul.msk.bf16.gmra.mxu2 %vm1432_vm11, %v13975_v9  ;;  %v14214_v47 = vpop.f32.mrf.mxu3  ;;  %v14229_v9 = vpop.f32.mrf.mxu0 }
 0x79e   : > { %17016 = vst [vmem:[#allocation67_spill] sm:$0xff] %v14214_v47 }
 0x79f   : > { %17018 = vst [vmem:[#allocation51_spill] sm:$0xff] %v14229_v9 }
 0x7a0   : > { %v5753_v4 = vpop.f32.mrf.mxu2 }
 0x7a1   : > { %v14216_v22 = vadd.f32 %v5753_v4, %v5616_v13  ;;  %v6816_v13 = vsel %vm9968_vm7, %v16840_v48, 0 }
 0x7a2   : > { %v5621_v56 = vpop.f32.mrf.mxu1 }
 0x7a4   : > { %8904 = vmatmul.msk.bf16.gmra.mxu0 %vm1432_vm11, %v14055_v39 }
 0x7a5   : > { %8802 = vmatmul.msk.bf16.gmra.mxu1 %vm1432_vm11, %v14223_v53  ;;  %v14227_v32 = vpop.f32.mrf.mxu3  ;;  %v14241_v47 = vpop.f32.mrf.mxu0 }
 0x7a6   : > { %17017 = vst [vmem:[#allocation302_spill] sm:$0xff] %v14227_v32 }
 0x7a7   : > { %17020 = vst [vmem:[#allocation75_spill] sm:$0xff] %v14241_v47 }
 0x7a8   : > { %v5755_v33 = vpop.f32.mrf.mxu2 }
 0x7a9   : > { %v14231_v18 = vadd.f32 %v5755_v33, %v5618_v43  ;;  %v17021_v43 = vld [vmem:[#allocation235_spill] sm:$0xff]  ;;  %v17022_v33 = vld [vmem:[#allocation14_spill] sm:$0xff] }
 0x7aa   : > { %v5623_v39 = vpop.f32.mrf.mxu1  ;;  %8899 = vmatmul.msk.bf16.gmra.mxu3 %vm1432_vm11, %v6816_v13  ;;  %v17023_v48 = vpack.c.b16 %v17021_v43, %v17022_v33 }
 0x7ad   : > { %8818 = vmatmul.msk.bf16.gmra.mxu2 %vm1432_vm11, %v14014_v55  ;;  %v14239_v12 = vpop.f32.mrf.mxu3 }
 0x7ae   : > { %17019 = vst [vmem:[#allocation74_spill] sm:$0xff] %v14239_v12  ;;  %v6817_v12 = vsel %vm9968_vm7, %v16854_v49, 0  ;;  %v17029_v49 = vld [vmem:[#allocation240_spill] sm:$0xff] }
 0x7b0   : > { %v5758_v4 = vpop.f32.mrf.mxu2 }
 0x7b1   : > { %v14243_v32 = vadd.f32 %v5758_v4, %v5621_v56  ;;  %v14258_v56 = vpop.f32.mrf.mxu0 }
 0x7b2   : > { %v5626_v61 = vpop.f32.mrf.mxu1  ;;  %17025 = vst [vmem:[#allocation109_spill] sm:$0xff] %v14258_v56 }
 0x7b4   : > { %8905 = vmatmul.msk.bf16.gmra.mxu0 %vm1432_vm11, %v14084_v14  ;;  %v17026_v14 = vld [vmem:[#allocation40_spill] sm:$0xff] }
 0x7b5   : > { %8853 = vmatmul.msk.bf16.vlgmr.msrb.gmra.mxu1 %vm1432_vm11, %v17023_v48  ;;  %v14251_v13 = vpop.f32.mrf.mxu3 }
 0x7b6   : > { %17024 = vst [vmem:[#allocation175_spill] sm:$0xff] %v14251_v13 }
 0x7b8   : > { %v5760_v9 = vpop.f32.mrf.mxu2 }
 0x7b9   : > { %v14253_v55 = vadd.f32 %v5760_v9, %v5623_v39  ;;  %v14267_v9 = vpop.f32.mrf.mxu0  ;;  %v17030_v39 = vld [vmem:[#allocation19_spill] sm:$0xff] }
 0x7ba   : > { %v5628_v4 = vpop.f32.mrf.mxu1  ;;  %8900 = vmatmul.msk.bf16.gmra.mxu3 %vm1432_vm11, %v6817_v12  ;;  %17028 = vst [vmem:[#allocation177_spill] sm:$0xff] %v14267_v9  ;;  %v17031_v56 = vpack.c.b16 %v17029_v49, %v17030_v39 }
 0x7bd   : > { %8869 = vmatmul.msk.bf16.vlgmr.msra.gmra.mxu2 %vm1432_vm11, %v17026_v14  ;;  %v14263_v43 = vpop.f32.mrf.mxu3 }
 0x7be   : > { %17027 = vst [vmem:[#allocation171_spill] sm:$0xff] %v14263_v43 }
 0x7c0   : > { %v5763_v33 = vpop.f32.mrf.mxu2 }
 0x7c1   : > { %v14265_v48 = vadd.f32 %v5763_v33, %v5626_v61  ;;  %v17033_v61 = vld [vmem:[#allocation282_spill] sm:$0xff] }
 0x7c2   : > { %v5631_v13 = vpop.f32.mrf.mxu1 }
 0x7c4   : > { %8906 = vmatmul.msk.bf16.gmra.mxu0 %vm1432_vm11, %v14115_v44  ;;  %v14285_v44 = vpop.f32.mrf.mxu0 }
 0x7c5   : > { %8854 = vmatmul.msk.bf16.gmra.mxu1 %vm1432_vm11, %v17031_v56  ;;  %v14275_v12 = vpop.f32.mrf.mxu3  ;;  %17035 = vst [vmem:[#allocation53_spill] sm:$0xff] %v14285_v44 }
 0x7c6   : > { %17032 = vst [vmem:[#allocation99_spill] sm:$0xff] %v14275_v12 }
 0x7c8   : > { %v5765_v47 = vpop.f32.mrf.mxu2 }
 0x7c9   : > { %v14277_v14 = vadd.f32 %v5765_v47, %v5628_v4  ;;  %v17036_v47 = vld [vmem:[#allocation244_spill] sm:$0xff]  ;;  %v17037_v4 = vld [vmem:[#allocation21_spill] sm:$0xff] }
 0x7ca   : > { %v5633_v43 = vpop.f32.mrf.mxu1  ;;  %8953 = vmatmul.msk.bf16.vlgmr.msrb.gmra.mxu3 %vm1432_vm11, %v13589_v30  ;;  %v17038_v39 = vpack.c.b16 %v17036_v47, %v17037_v4 }
 0x7cd   : > { %8870 = vmatmul.msk.bf16.gmra.mxu2 %vm1432_vm11, %v17033_v61  ;;  %v14283_v33 = vpop.f32.mrf.mxu3  ;;  %v14297_v61 = vpop.f32.mrf.mxu0 }
 0x7ce   : > { %17034 = vst [vmem:[#allocation57_spill] sm:$0xff] %v14283_v33 }
 0x7cf   : > { %17040 = vst [vmem:[#allocation182_spill] sm:$0xff] %v14297_v61 }
 0x7d0   : > { %v5768_v9 = vpop.f32.mrf.mxu2 }
 0x7d1   : > { %v14287_v49 = vadd.f32 %v5768_v9, %v5631_v13  ;;  %v17041_v13 = vld [vmem:[#allocation43_spill] sm:$0xff] }
 0x7d2   : > { %v5636_v56 = vpop.f32.mrf.mxu1 }
 0x7d4   : > { %8907 = vmatmul.msk.bf16.gmra.mxu0 %vm1432_vm11, %v14146_v28 }
 0x7d5   : > { %8855 = vmatmul.msk.bf16.gmra.mxu1 %vm1432_vm11, %v17038_v39  ;;  %v14295_v30 = vpop.f32.mrf.mxu3  ;;  %v14309_v4 = vpop.f32.mrf.mxu0 }
 0x7d6   : > { %17039 = vst [vmem:[#allocation198_spill] sm:$0xff] %v14295_v30 }
 0x7d7   : > { %17043 = vst [vmem:[#allocation77_spill] sm:$0xff] %v14309_v4 }
 0x7d8   : > { %v5770_v12 = vpop.f32.mrf.mxu2 }
 0x7d9   : > { %v14299_v33 = vadd.f32 %v5770_v12, %v5633_v43  ;;  %v17044_v43 = vld [vmem:[#allocation92_spill] sm:$0xff]  ;;  %v17045_v12 = vld [vmem:[#allocation113_spill] sm:$0xff] }
 0x7da   : > { %v5638_v44 = vpop.f32.mrf.mxu1  ;;  %8954 = vmatmul.msk.bf16.gmra.mxu3 %vm1432_vm11, %v13646_v24  ;;  %v17046_v30 = vpack.c.b16 %v17044_v43, %v17045_v12 }
 0x7dd   : > { %8871 = vmatmul.msk.bf16.gmra.mxu2 %vm1432_vm11, %v17041_v13  ;;  %v14305_v28 = vpop.f32.mrf.mxu3 }
 0x7de   : > { %17042 = vst [vmem:[#allocation225_spill] sm:$0xff] %v14305_v28 }
 0x7e0   : > { %v5773_v9 = vpop.f32.mrf.mxu2 }
 0x7e1   : > { %v14307_v47 = vadd.f32 %v5773_v9, %v5636_v56  ;;  %v14323_v56 = vpop.f32.mrf.mxu0  ;;  %v17050_v9 = vld [vmem:[#allocation164_spill] sm:$0xff] }
 0x7e2   : > { %v5641_v39 = vpop.f32.mrf.mxu1  ;;  %17049 = vst [vmem:[#allocation117_spill] sm:$0xff] %v14323_v56 }
 0x7e4   : > { %8908 = vmatmul.msk.bf16.gmra.mxu0 %vm1432_vm11, %v14171_v23 }
 0x7e5   : > { %8856 = vmatmul.msk.bf16.gmra.mxu1 %vm1432_vm11, %v17046_v30  ;;  %v14317_v24 = vpop.f32.mrf.mxu3 }
 0x7e6   : > { %17047 = vst [vmem:[#allocation248_spill] sm:$0xff] %v14317_v24 }
 0x7e8   : > { %v5775_v61 = vpop.f32.mrf.mxu2 }
 0x7e9   : > { %v14319_v13 = vadd.f32 %v5775_v61, %v5638_v44  ;;  %v17053_v44 = vld [vmem:[#allocation255_spill] sm:$0xff]  ;;  %v14339_v24 = vpop.f32.mrf.mxu0 }
 0x7ea   : > { %v5643_v28 = vpop.f32.mrf.mxu1  ;;  %8955 = vmatmul.msk.bf16.gmra.mxu3 %vm1432_vm11, %v13697_v59  ;;  %v17054_v61 = vld [vmem:[#allocation27_spill] sm:$0xff]  ;;  %17057 = vst [vmem:[#allocation287_spill] sm:$0xff] %v14339_v24 }
 0x7eb   : > { %17048 = vst [vmem:[#allocation50_spill] sm:$0xff] %v14319_v13  ;;  %v17055_v12 = vpack.c.b16 %v17053_v44, %v17054_v61 }
 0x7ed   : > { %8872 = vmatmul.msk.bf16.gmra.mxu2 %vm1432_vm11, %v17050_v9  ;;  %v14327_v23 = vpop.f32.mrf.mxu3 }
 0x7ee   : > { %17051 = vst [vmem:[#allocation37_spill] sm:$0xff] %v14327_v23 }
 0x7f0   : > { %v5778_v4 = vpop.f32.mrf.mxu2 }
 0x7f1   : > { %v14329_v43 = vadd.f32 %v5778_v4, %v5641_v39  ;;  %v17059_v4 = vld [vmem:[#allocation228_spill] sm:$0xff]  ;;  %v14349_v44 = vpop.f32.mrf.mxu0 }
 0x7f2   : > { %v5646_v30 = vpop.f32.mrf.mxu1  ;;  %17061 = vst [vmem:[#allocation224_spill] sm:$0xff] %v14349_v44 }
 0x7f3   : > { %17052 = vst [vmem:[#allocation85_spill] sm:$0xff] %v14329_v43 }
 0x7f4   : > { %8909 = vmatmul.msk.bf16.gmra.mxu0 %vm1432_vm11, %v14198_v27 }
 0x7f5   : > { %8857 = vmatmul.msk.bf16.gmra.mxu1 %vm1432_vm11, %v17055_v12  ;;  %v14337_v59 = vpop.f32.mrf.mxu3 }
 0x7f6   : > { %17056 = vst [vmem:[#allocation293_spill] sm:$0xff] %v14337_v59 }
 0x7f8   : > { %v5780_v56 = vpop.f32.mrf.mxu2 }
 0x7f9   : > { %v14341_v13 = vadd.f32 %v5780_v56, %v5643_v28  ;;  %v17062_v28 = vld [vmem:[#allocation261_spill] sm:$0xff]  ;;  %v17063_v56 = vld [vmem:[#allocation30_spill] sm:$0xff] }
 0x7fa   : > { %v5648_v23 = vpop.f32.mrf.mxu1  ;;  %8956 = vmatmul.msk.bf16.gmra.mxu3 %vm1432_vm11, %v13742_v29  ;;  %v17064_v59 = vpack.c.b16 %v17062_v28, %v17063_v56  ;;  %v17072_v56 = vld [vmem:[#allocation268_spill] sm:$0xff] }
 0x7fb   : > { %17058 = vst [vmem:[#allocation231_spill] sm:$0xff] %v14341_v13 }
 0x7fd   : > { %8873 = vmatmul.msk.bf16.gmra.mxu2 %vm1432_vm11, %v17059_v4  ;;  %v14347_v27 = vpop.f32.mrf.mxu3 }
 0x7fe   : > { %17060 = vst [vmem:[#allocation143_spill] sm:$0xff] %v14347_v27  ;;  %v14363_v27 = vpop.f32.mrf.mxu0 }
 0x7ff   : > { %17067 = vst [vmem:[#allocation291_spill] sm:$0xff] %v14363_v27 }
 0x800   : > { %v5783_v39 = vpop.f32.mrf.mxu2 }
 0x801   : > { %v14351_v61 = vadd.f32 %v5783_v39, %v5646_v30  ;;  %v17068_v30 = vld [vmem:[#allocation274_spill] sm:$0xff] }
 0x802   : > { %v5651_v12 = vpop.f32.mrf.mxu1 }
 0x804   : > { %8910 = vmatmul.msk.bf16.gmra.mxu0 %vm1432_vm11, %v14223_v53 }
 0x805   : > { %8858 = vmatmul.msk.bf16.gmra.mxu1 %vm1432_vm11, %v17064_v59  ;;  %v14359_v29 = vpop.f32.mrf.mxu3 }
 0x806   : > { %17065 = vst [vmem:[#allocation252_spill] sm:$0xff] %v14359_v29  ;;  %v17073_v29 = vld [vmem:[#allocation33_spill] sm:$0xff] }
 0x808   : > { %v5785_v24 = vpop.f32.mrf.mxu2 }
 0x809   : > { %v14361_v13 = vadd.f32 %v5785_v24, %v5648_v23  ;;  %v6987_v24 = vsel %vm10036_vm5, %v16886_v38, 0  ;;  %v14376_v23 = vpop.f32.mrf.mxu0 }
 0x80a   : > { %v5653_v43 = vpop.f32.mrf.mxu1  ;;  %8957 = vmatmul.msk.bf16.gmra.mxu3 %vm1432_vm11, %v13783_v51  ;;  %17071 = vst [vmem:[#allocation186_spill] sm:$0xff] %v14376_v23  ;;  %v17074_v51 = vpack.c.b16 %v17072_v56, %v17073_v29 }
 0x80b   : > { %17066 = vst [vmem:[#allocation247_spill] sm:$0xff] %v14361_v13 }
 0x80d   : > { %8874 = vmatmul.msk.bf16.gmra.mxu2 %vm1432_vm11, %v17068_v30  ;;  %v14369_v53 = vpop.f32.mrf.mxu3 }
 0x80e   : > { %17069 = vst [vmem:[#allocation89_spill] sm:$0xff] %v14369_v53 }
 0x810   : > { %v5788_v39 = vpop.f32.mrf.mxu2 }
 0x811   : > { %v14371_v28 = vadd.f32 %v5788_v39, %v5651_v12  ;;  %v17077_v39 = vld [vmem:[#allocation184_spill] sm:$0xff] }
 0x812   : > { %v5656_v59 = vpop.f32.mrf.mxu1 }
 0x813   : > { %17070 = vst [vmem:[#allocation155_spill] sm:$0xff] %v14371_v28  ;;  %v17078_v28 = vld [vmem:[#allocation266_spill] sm:$0xff] }
 0x814   : > { %8911 = vmatmul.msk.bf16.gmra.mxu0 %vm1432_vm11, %v6987_v24  ;;  %v14393_v24 = vpop.f32.mrf.mxu0 }
 0x815   : > { %8859 = vmatmul.msk.bf16.gmra.mxu1 %vm1432_vm11, %v17074_v51  ;;  %v14383_v27 = vpop.f32.mrf.mxu3  ;;  %17080 = vst [vmem:[#allocation190_spill] sm:$0xff] %v14393_v24  ;;  %v17082_v51 = vld [vmem:[#allocation129_spill] sm:$0xff] }
 0x816   : > { %17075 = vst [vmem:[#allocation64_spill] sm:$0xff] %v14383_v27  ;;  %v17084_v27 = vld [vmem:[#allocation39_spill] sm:$0xff] }
 0x818   : > { %v5790_v53 = vpop.f32.mrf.mxu2 }
 0x819   : > { %v14385_v44 = vadd.f32 %v5790_v53, %v5653_v43  ;;  %v6988_v43 = vsel %vm10036_vm5, %v17082_v51, 0  ;;  %v17083_v53 = vld [vmem:[#allocation277_spill] sm:$0xff]  ;;  %v17090_v51 = vld [vmem:[#allocation202_spill] sm:$0xff] }
 0x81a   : > { %v5658_v12 = vpop.f32.mrf.mxu1  ;;  %8958 = vmatmul.msk.bf16.gmra.mxu3 %vm1432_vm11, %v17077_v39  ;;  %v17085_v39 = vpack.c.b16 %v17083_v53, %v17084_v27 }
 0x81b   : > { %17076 = vst [vmem:[#allocation294_spill] sm:$0xff] %v14385_v44 }
 0x81c   : > { %v14407_v13 = vpop.f32.mrf.mxu0 }
 0x81d   : > { %8875 = vmatmul.msk.bf16.gmra.mxu2 %vm1432_vm11, %v17078_v28  ;;  %v14391_v38 = vpop.f32.mrf.mxu3  ;;  %17087 = vst [vmem:[#allocation69_spill] sm:$0xff] %v14407_v13 }
 0x81e   : > { %17079 = vst [vmem:[#allocation239_spill] sm:$0xff] %v14391_v38 }
 0x820   : > { %v5793_v23 = vpop.f32.mrf.mxu2 }
 0x821   : > { %v14395_v29 = vadd.f32 %v5793_v23, %v5656_v59  ;;  %v17089_v23 = vld [vmem:[#allocation210_spill] sm:$0xff] }
 0x822   : > { %v5661_v56 = vpop.f32.mrf.mxu1 }
 0x823   : > { %17081 = vst [vmem:[#allocation80_spill] sm:$0xff] %v14395_v29  ;;  %v17093_v29 = vld [vmem:[#allocation200_spill] sm:$0xff] }
 0x824   : > { %8912 = vmatmul.msk.bf16.gmra.mxu0 %vm1432_vm11, %v6988_v43  ;;  %v6081_v43 = vadd.f32 %v17090_v51, %v14044_v25  ;;  %v14422_v13 = vpop.f32.mrf.mxu0  ;;  %v6082_v25 = vadd.f32 %v17093_v29, %v14063_v46  ;;  %v17094_v51 = vld [vmem:[#allocation285_spill] sm:$0xff]  ;;  %v17100_v46 = vld [vmem:[#allocation163_spill] sm:$0xff]  ;;  %v17101_v29 = vld [vmem:[#allocation154_spill] sm:$0xff] }
 0x825   : > { %8860 = vmatmul.msk.bf16.gmra.mxu1 %vm1432_vm11, %v17085_v39  ;;  %v14405_v44 = vpop.f32.mrf.mxu3 }
 0x826   : > { %17086 = vst [vmem:[#allocation25_spill] sm:$0xff] %v14405_v44  ;;  %v6229_v44 = vadd.f32 %v13848_v1, %v6081_v43 }
 0x828   : > { %v5795_v38 = vpop.f32.mrf.mxu2 }
 0x829   : > { %v14409_v24 = vadd.f32 %v5795_v38, %v5658_v12 }
 0x82a   : > { %v5663_v59 = vpop.f32.mrf.mxu1  ;;  %8959 = vmatmul.msk.bf16.gmra.mxu3 %vm1432_vm11, %v13868_v34 }
 0x82b   : > { %17088 = vst [vmem:[#allocation102_spill] sm:$0xff] %v14409_v24  ;;  %v17092_v24 = vld [vmem:[#allocation147_spill] sm:$0xff] }
 0x82c   : > { %v6989_v34 = vsel %vm10036_vm5, %v17092_v24, 0  ;;  %v14441_v24 = vpop.f32.mrf.mxu0 }
 0x82d   : > { %8876 = vmatmul.msk.bf16.gmra.mxu2 %vm1432_vm11, %v17089_v23  ;;  %v14417_v27 = vpop.f32.mrf.mxu3  ;;  %17099 = vst [vmem:[#allocation196_spill] sm:$0xff] %v14441_v24  ;;  %v17113_v24 = vld [vmem:[#allocation241_spill] sm:$0xff] }
 0x82e   : > { %17091 = vst [vmem:[#allocation88_spill] sm:$0xff] %v14417_v27  ;;  %v17095_v27 = vld [vmem:[#allocation42_spill] sm:$0xff] }
 0x82f   : > { %v17096_v23 = vpack.c.b16 %v17094_v51, %v17095_v27 }
 0x830   : > { %v5798_v53 = vpop.f32.mrf.mxu2 }
 0x831   : > { %v14419_v39 = vadd.f32 %v5798_v53, %v5661_v56 }
 0x832   : > { %v6430_v12 = vpop.f32.mrf.mxu1 }
 0x833   : > { %v6510_v38 = vadd.f32 %v6430_v12, %v6229_v44  ;;  %v17098_v44 = vld [vmem:[#allocation203_spill] sm:$0xff] }
 0x834   : > { %8913 = vmatmul.msk.bf16.gmra.mxu0 %vm1432_vm11, %v6989_v34  ;;  %v6230_v53 = vadd.f32 %v17098_v44, %v6082_v25  ;;  %v17103_v44 = vld [vmem:[#allocation236_spill] sm:$0xff] }
 0x835   : > { %8861 = vmatmul.msk.bf16.gmra.mxu1 %vm1432_vm11, %v17096_v23  ;;  %v14434_v56 = vpop.f32.mrf.mxu3  ;;  %v6083_v23 = vadd.f32 %v17101_v29, %v14075_v60  ;;  %v17106_v60 = vld [vmem:[#allocation49_spill] sm:$0xff] }
 0x836   : > { %17097 = vst [vmem:[#allocation223_spill] sm:$0xff] %v14434_v56  ;;  %v17105_v56 = vld [vmem:[#allocation292_spill] sm:$0xff] }
 0x837   : > { %v6231_v25 = vadd.f32 %v13887_v37, %v6083_v23  ;;  %v17107_v29 = vpack.c.b16 %v17105_v56, %v17106_v60  ;;  %v14464_v37 = vpop.f32.mrf.mxu0 }
 0x838   : > { %v5800_v1 = vpop.f32.mrf.mxu2  ;;  %17109 = vst [vmem:[#allocation161_spill] sm:$0xff] %v14464_v37 }
 0x839   : > { %v14436_v43 = vadd.f32 %v5800_v1, %v5663_v59 }
 0x83a   : > { %v6432_v12 = vpop.f32.mrf.mxu1  ;;  %8960 = vmatmul.msk.bf16.gmra.mxu3 %vm1432_vm11, %v13907_v6  ;;  %v6990_v6 = vsel %vm9968_vm7, %v17103_v44, 0 }
 0x83b   : > { %v6511_v57 = vadd.f32 %v6432_v12, %v6230_v53  ;;  %v17104_v53 = vld [vmem:[#allocation288_spill] sm:$0xff] }
 0x83c   : > { %v6084_v12 = vadd.f32 %v17104_v53, %v14095_v58  ;;  %v14474_v58 = vld [vmem:[%s15372_s6] ss:$0 sm:$0xff]  ;;  %v17112_v53 = vld [vmem:[#allocation208_spill] sm:$0xff] }
 0x83d   : > { %8877 = vmatmul.msk.bf16.gmra.mxu2 %vm1432_vm11, %v17100_v46  ;;  %v14447_v27 = vpop.f32.mrf.mxu3 }
 0x83e   : > { %17102 = vst [vmem:[#allocation300_spill] sm:$0xff] %v14447_v27 }
 0x840   : > { %v6580_v34 = vpop.f32.mrf.mxu2 }
 0x841   : > { %v14449_v59 = vadd.f32 %v6580_v34, %v6510_v38 }
 0x842   : > { %v6435_v51 = vpop.f32.mrf.mxu1 }
 0x843   : > { %v6512_v1 = vadd.f32 %v6435_v51, %v6231_v25  ;;  %v17110_v25 = vld [vmem:[#allocation284_spill] sm:$0xff] }
 0x844   : > { %8914 = vmatmul.msk.bf16.gmra.mxu0 %vm1432_vm11, %v6990_v6  ;;  %v6232_v51 = vadd.f32 %v17110_v25, %v6084_v12  ;;  %v17111_v6 = vld [vmem:[#allocation217_spill] sm:$0xff] }
 0x845   : > { %8862 = vmatmul.msk.bf16.gmra.mxu1 %vm1432_vm11, %v17107_v29  ;;  %v14462_v38 = vpop.f32.mrf.mxu3 }
 0x846   : > { %17108 = vst [vmem:[#allocation16_spill] sm:$0xff] %v14462_v38 }
 0x848   : > { %v6582_v23 = vpop.f32.mrf.mxu2 }
 0x849   : > { %v14466_v34 = vadd.f32 %v6582_v23, %v6511_v57  ;;  %v6085_v57 = vadd.f32 %v17112_v53, %v14106_v5  ;;  %v14481_v23 = vpop.f32.mrf.mxu0  ;;  %v6991_v5 = vsel %vm9968_vm7, %v17113_v24, 0 }
 0x84a   : > { %v6437_v44 = vpop.f32.mrf.mxu1  ;;  %8961 = vmatmul.msk.bf16.gmra.mxu3 %vm1432_vm11, %v13949_v0  ;;  %v9071_v0 = vld [vmem:[%s9356_s15 + $0x140] sm:$0xff] }
 0x84b   : > { %v6513_v56 = vadd.f32 %v6437_v44, %v6232_v51  ;;  %v6233_v27 = vadd.f32 %v13926_v11, %v6085_v57  ;;  %v17115_v11 = vld [vmem:[#allocation185_spill] sm:$0xff]  ;;  %v17116_v57 = vld [vmem:[#allocation54_spill] sm:$0xff] }
 0x84d   : > { %8878 = vmatmul.msk.bf16.gmra.mxu2 %vm1432_vm11, %v17111_v6  ;;  %v7877_v60 = vpop.f32.mrf.mxu3 }
 0x84e   : > { %v7878_v12 = vadd.f32 %v14474_v58, %v7877_v60  ;;  %v17117_v60 = vpack.c.b16 %v17115_v11, %v17116_v57  ;;  %v17119_v11 = vld [vmem:[#allocation269_spill] sm:$0xff]  ;;  %v17120_v57 = vld [vmem:[#allocation295_spill] sm:$0xff] }
 0x850   : > { %v6585_v29 = vpop.f32.mrf.mxu2  ;;  %v8057_v25 = vadd.f32 %v9071_v0, %v7878_v12 }
 0x851   : > { %v14484_v38 = vadd.f32 %v6585_v29, %v6512_v1  ;;  %v17114_v1 = vld [vmem:[#allocation45_spill] sm:$0xff]  ;;  %v9072_v29 = vld [vmem:[%s9356_s15 + $0x148] sm:$0xff] }
 0x852   : > { %v8153_v51 = vmax.f32 %v8057_v25, 0.0  ;;  %v6440_v44 = vpop.f32.mrf.mxu1  ;;  %v6086_v53 = vadd.f32 %v17114_v1, %v14121_v15 }
 0x853   : > { %v6514_v37 = vadd.f32 %v6440_v44, %v6233_v27  ;;  %v14508_v44 = vpop.f32.mrf.mxu0 }
 0x854   : > { %8249 = vst.msk [vmem:[%s14492_s12 + $0x140] sm:$0xff] %vm483_vm0, %v8153_v51  ;;  %8915 = vmatmul.msk.bf16.gmra.mxu0 %vm1432_vm11, %v6991_v5  ;;  %v6234_v51 = vadd.f32 %v13952_v26, %v6086_v53 }
 0x855   : > { %8863 = vmatmul.msk.bf16.gmra.mxu1 %vm1432_vm11, %v17117_v60  ;;  %v7879_v27 = vpop.f32.mrf.mxu3  ;;  %17118 = vst [vmem:[#allocation201_spill] sm:$0xff] %v14508_v44 }
 0x856   : > { %v7880_v24 = vadd.f32 %v14474_v58, %v7879_v27  ;;  %v9073_v27 = vld [vmem:[%s9356_s15 + $0x150] sm:$0xff] }
 0x858   : > { %v6587_v12 = vpop.f32.mrf.mxu2  ;;  %v8058_v0 = vadd.f32 %v9072_v29, %v7880_v24 }
 0x859   : > { %v14505_v25 = vadd.f32 %v6587_v12, %v6513_v56  ;;  %v6087_v56 = vadd.f32 %v17120_v57, %v14137_v19  ;;  %v17122_v19 = vld [vmem:[#allocation219_spill] sm:$0xff]  ;;  %v17123_v57 = vld [vmem:[#allocation60_spill] sm:$0xff] }
 0x85a   : > { %v8154_v5 = vmax.f32 %v8058_v0, 0.0  ;;  %v6442_v15 = vpop.f32.mrf.mxu1  ;;  %8962 = vmatmul.msk.bf16.gmra.mxu3 %vm1432_vm11, %v13991_v42 }
 0x85b   : > { %v6515_v1 = vadd.f32 %v6442_v15, %v6234_v51  ;;  %v6235_v42 = vadd.f32 %v13968_v21, %v6087_v56  ;;  %v14526_v44 = vpop.f32.mrf.mxu0 }
 0x85c   : > { %8250 = vst.msk [vmem:[%s14492_s12 + $0x148] sm:$0xff] %vm483_vm0, %v8154_v5  ;;  %v17121_v5 = vld [vmem:[#allocation246_spill] sm:$0xff] }
 0x85d   : > { %8879 = vmatmul.msk.bf16.gmra.mxu2 %vm1432_vm11, %v17119_v11  ;;  %v7882_v60 = vpop.f32.mrf.mxu3  ;;  %v6992_v15 = vsel %vm9968_vm7, %v17121_v5, 0 }
 0x85e   : > { %v7883_v26 = vadd.f32 %v14474_v58, %v7882_v60  ;;  %v17124_v60 = vld [vmem:[#allocation61_spill] sm:$0xff] }
 0x85f   : > { %v17125_v21 = vpack.c.b16 %v17123_v57, %v17124_v60 }
 0x860   : > { %v6590_v53 = vpop.f32.mrf.mxu2  ;;  %v8059_v24 = vadd.f32 %v9073_v27, %v7883_v26  ;;  %v9074_v27 = vld [vmem:[%s9356_s15 + $0x158] sm:$0xff] }
 0x861   : > { %v14520_v12 = vadd.f32 %v6590_v53, %v6514_v37  ;;  %v6088_v37 = vadd.f32 %v17122_v19, %v14152_v7  ;;  %v17127_v19 = vld [vmem:[#allocation181_spill] sm:$0xff] }
 0x862   : > { %v8155_v29 = vmax.f32 %v8059_v24, 0.0  ;;  %v6445_v0 = vpop.f32.mrf.mxu1  ;;  %v6089_v57 = vadd.f32 %v17127_v19, %v14164_v63 }
 0x863   : > { %v6516_v51 = vadd.f32 %v6445_v0, %v6235_v42 }
 0x864   : > { %8251 = vst.msk [vmem:[%s14492_s12 + $0x150] sm:$0xff] %vm483_vm0, %v8155_v29  ;;  %8916 = vmatmul.msk.bf16.gmra.mxu0 %vm1432_vm11, %v6992_v15  ;;  %v6236_v29 = vadd.f32 %v13994_v54, %v6088_v37  ;;  %v17126_v15 = vld [vmem:[#allocation226_spill] sm:$0xff] }
 0x865   : > { %8864 = vmatmul.msk.bf16.gmra.mxu1 %vm1432_vm11, %v17125_v21  ;;  %v7884_v56 = vpop.f32.mrf.mxu3  ;;  %v9075_v37 = vld [vmem:[%s9356_s15 + $0x160] sm:$0xff] }
 0x866   : > { %v7885_v26 = vadd.f32 %v14474_v58, %v7884_v56 }
 0x868   : > { %v6592_v53 = vpop.f32.mrf.mxu2  ;;  %v8060_v24 = vadd.f32 %v9074_v27, %v7885_v26 }
 0x869   : > { %v14539_v42 = vadd.f32 %v6592_v53, %v6515_v1 }
 0x86a   : > { %v8156_v0 = vmax.f32 %v8060_v24, 0.0  ;;  %v6447_v5 = vpop.f32.mrf.mxu1  ;;  %8963 = vmatmul.msk.bf16.gmra.mxu3 %vm1432_vm11, %v14028_v17  ;;  %v6237_v17 = vadd.f32 %v14008_v41, %v6089_v57  ;;  %v17128_v24 = vld [vmem:[#allocation126_spill] sm:$0xff] }
 0x86b   : > { %v6517_v7 = vadd.f32 %v6447_v5, %v6236_v29  ;;  %v6090_v63 = vadd.f32 %v17128_v24, %v14179_v3  ;;  %v17129_v29 = vld [vmem:[#allocation106_spill] sm:$0xff]  ;;  %v9103_v24 = vld [vmem:[%s9356_s15 + $0x38] sm:$0xff] }
 0x86c   : > { %8252 = vst.msk [vmem:[%s14492_s12 + $0x158] sm:$0xff] %vm483_vm0, %v8156_v0  ;;  %v17130_v0 = vld [vmem:[#allocation103_spill] sm:$0xff] }
 0x86d   : > { %8880 = vmatmul.msk.bf16.gmra.mxu2 %vm1432_vm11, %v17126_v15  ;;  %v7887_v60 = vpop.f32.mrf.mxu3  ;;  %v17131_v5 = vpack.c.b16 %v17129_v29, %v17130_v0  ;;  %v6238_v3 = vadd.f32 %v14031_v2, %v6090_v63 }
 0x86e   : > { %v7888_v1 = vadd.f32 %v14474_v58, %v7887_v60 }
 0x870   : > { %v6595_v54 = vpop.f32.mrf.mxu2  ;;  %v8061_v21 = vadd.f32 %v9075_v37, %v7888_v1  ;;  %v9076_v1 = vld [vmem:[%s9356_s15 + $0x168] sm:$0xff]  ;;  %v17133_v37 = vld [vmem:[#allocation145_spill] sm:$0xff] }
 0x871   : > { %v14552_v56 = vadd.f32 %v6595_v54, %v6516_v51  ;;  %v17132_v54 = vld [vmem:[#allocation136_spill] sm:$0xff] }
 0x872   : > { %v8157_v26 = vmax.f32 %v8061_v21, 0.0  ;;  %v6450_v53 = vpop.f32.mrf.mxu1  ;;  %v6542_v21 = vsel %vm5803_vm14, %v17133_v37, %v17132_v54  ;;  %v17136_v37 = vld [vmem:[#allocation229_spill] sm:$0xff] }
 0x873   : > { %v6518_v27 = vadd.f32 %v6450_v53, %v6237_v17  ;;  %v14575_v29 = vsel %vm13153_vm4, %v6542_v21, 0  ;;  %v17137_v21 = vld [vmem:[#allocation115_spill] sm:$0xff] }
 0x874   : > { %8253 = vst.msk [vmem:[%s14492_s12 + $0x160] sm:$0xff] %vm483_vm0, %v8157_v26 }
 0x875   : > { %8865 = vmatmul.msk.bf16.gmra.mxu1 %vm1432_vm11, %v17131_v5  ;;  %v7889_v19 = vpop.f32.mrf.mxu3 }
 0x876   : > { %v7890_v51 = vadd.f32 %v14474_v58, %v7889_v19 }
 0x878   : > { %v6597_v60 = vpop.f32.mrf.mxu2  ;;  %v8062_v41 = vadd.f32 %v9076_v1, %v7890_v51 }
 0x879   : > { %v14565_v57 = vadd.f32 %v6597_v60, %v6517_v7  ;;  %v17135_v7 = vld [vmem:[#allocation301_spill] sm:$0xff] }
 0x87a   : > { %v8158_v17 = vmax.f32 %v8062_v41, 0.0  ;;  %v6452_v26 = vpop.f32.mrf.mxu1  ;;  %8964 = vmatmul.msk.bf16.gmra.mxu3 %vm1432_vm11, %v14061_v16  ;;  %v6091_v0 = vadd.f32 %v17135_v7, %v14189_v62  ;;  %v9077_v16 = vld [vmem:[%s9356_s15 + $0x170] sm:$0xff]  ;;  %v6092_v62 = vadd.f32 %v17136_v37, %v14204_v52 }
 0x87b   : > { %v6519_v53 = vadd.f32 %v6452_v26, %v6238_v3  ;;  %v17138_v3 = vld [vmem:[#allocation114_spill] sm:$0xff] }
 0x87c   : > { %8254 = vst.msk [vmem:[%s14492_s12 + $0x168] sm:$0xff] %vm483_vm0, %v8158_v17  ;;  %v6239_v60 = vadd.f32 %v14046_v8, %v6091_v0  ;;  %v17139_v17 = vpack.c.b16 %v17137_v21, %v17138_v3  ;;  %v9078_v8 = vld [vmem:[%s9356_s15 + $0x178] sm:$0xff] }
 0x87d   : > { %8881 = vmatmul.msk.bf16.gmra.mxu2 %vm1432_vm11, %v14575_v29  ;;  %v7892_v2 = vpop.f32.mrf.mxu3 }
 0x87e   : > { %v7893_v63 = vadd.f32 %v14474_v58, %v7892_v2 }
 0x880   : > { %v6600_v5 = vpop.f32.mrf.mxu2  ;;  %v8063_v19 = vadd.f32 %v9077_v16, %v7893_v63  ;;  %v6240_v63 = vadd.f32 %v14069_v40, %v6092_v62  ;;  %v9079_v62 = vld [vmem:[%s9356_s15 + $0x180] sm:$0xff] }
 0x881   : > { %v14585_v51 = vadd.f32 %v6600_v5, %v6518_v27 }
 0x882   : > { %v8159_v1 = vmax.f32 %v8063_v19, 0.0  ;;  %v6455_v41 = vpop.f32.mrf.mxu1  ;;  %v17140_v19 = vld [vmem:[#allocation141_spill] sm:$0xff] }
 0x883   : > { %v6520_v54 = vadd.f32 %v6455_v41, %v6239_v60  ;;  %v14604_v60 = vsel %vm13153_vm4, %v17140_v19, 0 }
 0x884   : > { %8255 = vst.msk [vmem:[%s14492_s12 + $0x170] sm:$0xff] %vm483_vm0, %v8159_v1  ;;  %v17141_v1 = vld [vmem:[#allocation93_spill] sm:$0xff] }
 0x885   : > { %8866 = vmatmul.msk.bf16.gmra.mxu1 %vm1432_vm11, %v17139_v17  ;;  %v7894_v26 = vpop.f32.mrf.mxu3 }
 0x886   : > { %v7895_v27 = vadd.f32 %v14474_v58, %v7894_v26 }
 0x888   : > { %v6602_v7 = vpop.f32.mrf.mxu2  ;;  %v8064_v0 = vadd.f32 %v9078_v8, %v7895_v27  ;;  %v17142_v8 = vld [vmem:[#allocation100_spill] sm:$0xff] }
 0x889   : > { %v14598_v2 = vadd.f32 %v6602_v7, %v6519_v53  ;;  %v6093_v53 = vadd.f32 %v17141_v1, %v14216_v22  ;;  %v6094_v22 = vadd.f32 %v17142_v8, %v14231_v18  ;;  %v9081_v8 = vld [vmem:[%s9356_s15 + $0x190] sm:$0xff] }
 0x88a   : > { %v8160_v5 = vmax.f32 %v8064_v0, 0.0  ;;  %v6457_v16 = vpop.f32.mrf.mxu1  ;;  %v17143_v0 = vld [vmem:[#allocation128_spill] sm:$0xff] }
 0x88b   : > { %v6521_v52 = vadd.f32 %v6457_v16, %v6240_v63  ;;  %v6241_v17 = vadd.f32 %v14090_v45, %v6093_v53  ;;  %v17144_v63 = vld [vmem:[#allocation125_spill] sm:$0xff]  ;;  %v9080_v45 = vld [vmem:[%s9356_s15 + $0x188] sm:$0xff] }
 0x88c   : > { %8256 = vst.msk [vmem:[%s14492_s12 + $0x178] sm:$0xff] %vm483_vm0, %v8160_v5  ;;  %v17145_v5 = vpack.c.b16 %v17143_v0, %v17144_v63 }
 0x88d   : > { %8882 = vmatmul.msk.bf16.gmra.mxu2 %vm1432_vm11, %v14604_v60  ;;  %v7897_v41 = vpop.f32.mrf.mxu3 }
 0x88e   : > { %v7898_v40 = vadd.f32 %v14474_v58, %v7897_v41  ;;  %v6242_v41 = vadd.f32 %v14104_v20, %v6094_v22 }
 0x890   : > { %v6605_v37 = vpop.f32.mrf.mxu2  ;;  %v8065_v21 = vadd.f32 %v9079_v62, %v7898_v40  ;;  %v17146_v62 = vld [vmem:[#allocation119_spill] sm:$0xff] }
 0x891   : > { %v14614_v3 = vadd.f32 %v6605_v37, %v6520_v54 }
 0x892   : > { %v8161_v26 = vmax.f32 %v8065_v21, 0.0  ;;  %v6460_v27 = vpop.f32.mrf.mxu1  ;;  %v14633_v21 = vsel %vm13153_vm4, %v17146_v62, 0 }
 0x893   : > { %v6522_v7 = vadd.f32 %v6460_v27, %v6241_v17  ;;  %v17147_v17 = vld [vmem:[#allocation151_spill] sm:$0xff] }
 0x894   : > { %8257 = vst.msk [vmem:[%s14492_s12 + $0x180] sm:$0xff] %vm483_vm0, %v8161_v26 }
 0x895   : > { %8867 = vmatmul.msk.bf16.gmra.mxu1 %vm1432_vm11, %v17145_v5  ;;  %v7899_v16 = vpop.f32.mrf.mxu3 }
 0x896   : > { %v7900_v54 = vadd.f32 %v14474_v58, %v7899_v16 }
 0x898   : > { %v6607_v19 = vpop.f32.mrf.mxu2  ;;  %v8066_v1 = vadd.f32 %v9080_v45, %v7900_v54  ;;  %v17149_v45 = vld [vmem:[#allocation148_spill] sm:$0xff] }
 0x899   : > { %v14627_v53 = vadd.f32 %v6607_v19, %v6521_v52  ;;  %v6095_v52 = vadd.f32 %v17147_v17, %v14243_v32  ;;  %v17148_v19 = vld [vmem:[#allocation24_spill] sm:$0xff] }
 0x89a   : > { %v8162_v40 = vmax.f32 %v8066_v1, 0.0  ;;  %v6462_v37 = vpop.f32.mrf.mxu1  ;;  %v6096_v32 = vadd.f32 %v17148_v19, %v14253_v55  ;;  %v17150_v1 = vld [vmem:[#allocation146_spill] sm:$0xff] }
 0x89b   : > { %v6523_v18 = vadd.f32 %v6462_v37, %v6242_v41  ;;  %v6243_v63 = vadd.f32 %v14126_v35, %v6095_v52  ;;  %v17151_v41 = vpack.c.b16 %v17149_v45, %v17150_v1  ;;  %v9082_v35 = vld [vmem:[%s9356_s15 + $0x198] sm:$0xff] }
 0x89c   : > { %8258 = vst.msk [vmem:[%s14492_s12 + $0x188] sm:$0xff] %vm483_vm0, %v8162_v40  ;;  %v17152_v52 = vld [vmem:[#allocation289_spill] sm:$0xff] }
 0x89d   : > { %8883 = vmatmul.msk.bf16.gmra.mxu2 %vm1432_vm11, %v14633_v21  ;;  %v7902_v26 = vpop.f32.mrf.mxu3 }
 0x89e   : > { %v7903_v20 = vadd.f32 %v14474_v58, %v7902_v26  ;;  %v6244_v26 = vadd.f32 %v17152_v52, %v6096_v32  ;;  %v9083_v32 = vld [vmem:[%s9356_s15 + $0x1a0] sm:$0xff] }
 0x8a0   : > { %v6610_v27 = vpop.f32.mrf.mxu2  ;;  %v8067_v22 = vadd.f32 %v9081_v8, %v7903_v20  ;;  %v17153_v8 = vld [vmem:[#allocation237_spill] sm:$0xff] }
 0x8a1   : > { %v14643_v0 = vadd.f32 %v6610_v27, %v6522_v7 }
 0x8a2   : > { %v8163_v5 = vmax.f32 %v8067_v22, 0.0  ;;  %v6465_v16 = vpop.f32.mrf.mxu1  ;;  %v6558_v22 = vsel %vm13153_vm4, %v17153_v8, 0 }
 0x8a3   : > { %v6524_v54 = vadd.f32 %v6465_v16, %v6243_v63  ;;  %v17154_v63 = vld [vmem:[#allocation256_spill] sm:$0xff] }
 0x8a4   : > { %8259 = vst.msk [vmem:[%s14492_s12 + $0x190] sm:$0xff] %vm483_vm0, %v8163_v5  ;;  %v6097_v5 = vadd.f32 %v17154_v63, %v14265_v48 }
 0x8a5   : > { %8868 = vmatmul.msk.bf16.gmra.mxu1 %vm1432_vm11, %v17151_v41  ;;  %v7904_v40 = vpop.f32.mrf.mxu3 }
 0x8a6   : > { %v7905_v7 = vadd.f32 %v14474_v58, %v7904_v40  ;;  %v6245_v41 = vadd.f32 %v14162_v50, %v6097_v5 }
 0x8a8   : > { %v6612_v37 = vpop.f32.mrf.mxu2  ;;  %v8068_v62 = vadd.f32 %v9082_v35, %v7905_v7  ;;  %v17155_v35 = vld [vmem:[#allocation66_spill] sm:$0xff] }
 0x8a9   : > { %v14656_v17 = vadd.f32 %v6612_v37, %v6523_v18  ;;  %v6098_v48 = vadd.f32 %v17155_v35, %v14277_v14  ;;  %v17157_v14 = vld [vmem:[#allocation283_spill] sm:$0xff] }
 0x8aa   : > { %v8164_v20 = vmax.f32 %v8068_v62, 0.0  ;;  %v6467_v27 = vpop.f32.mrf.mxu1 }
 0x8ab   : > { %v6525_v55 = vadd.f32 %v6467_v27, %v6244_v26  ;;  %v9084_v26 = vld [vmem:[%s9356_s15 + $0x1a8] sm:$0xff]  ;;  %v17156_v27 = vld [vmem:[#allocation296_spill] sm:$0xff] }
 0x8ac   : > { %8260 = vst.msk [vmem:[%s14492_s12 + $0x198] sm:$0xff] %vm483_vm0, %v8164_v20  ;;  %v6246_v8 = vadd.f32 %v17156_v27, %v6098_v48 }
 0x8ad   : > { %8884 = vmatmul.msk.bf16.gmra.mxu2 %vm1432_vm11, %v6558_v22  ;;  %v7907_v16 = vpop.f32.mrf.mxu3 }
 0x8ae   : > { %v7908_v18 = vadd.f32 %v14474_v58, %v7907_v16 }
 0x8b0   : > { %v6615_v19 = vpop.f32.mrf.mxu2  ;;  %v8069_v45 = vadd.f32 %v9083_v32, %v7908_v18  ;;  %v9085_v32 = vld [vmem:[%s9356_s15 + $0x1b0] sm:$0xff] }
 0x8b1   : > { %v14669_v1 = vadd.f32 %v6615_v19, %v6524_v54 }
 0x8b2   : > { %v8165_v40 = vmax.f32 %v8069_v45, 0.0  ;;  %v6470_v7 = vpop.f32.mrf.mxu1 }
 0x8b3   : > { %v6526_v37 = vadd.f32 %v6470_v7, %v6245_v41 }
 0x8b4   : > { %8261 = vst.msk [vmem:[%s14492_s12 + $0x1a0] sm:$0xff] %vm483_vm0, %v8165_v40 }
 0x8b5   : > { %8917 = vmatmul.msk.bf16.vlgmr.msra.gmra.mxu1 %vm1432_vm11, %v17050_v9  ;;  %v7909_v62 = vpop.f32.mrf.mxu3  ;;  %v17158_v9 = vld [vmem:[#allocation41_spill] sm:$0xff] }
 0x8b6   : > { %v7910_v52 = vadd.f32 %v14474_v58, %v7909_v62  ;;  %v6099_v16 = vadd.f32 %v17158_v9, %v14287_v49  ;;  %v17159_v62 = vld [vmem:[#allocation173_spill] sm:$0xff] }
 0x8b7   : > { %v6100_v49 = vadd.f32 %v17159_v62, %v14299_v33  ;;  %v17160_v33 = vld [vmem:[#allocation188_spill] sm:$0xff]  ;;  %v17164_v62 = vld [vmem:[#allocation169_spill] sm:$0xff] }
 0x8b8   : > { %v6617_v54 = vpop.f32.mrf.mxu2  ;;  %v8070_v20 = vadd.f32 %v9084_v26, %v7910_v52  ;;  %v6247_v40 = vadd.f32 %v14191_v10, %v6099_v16  ;;  %v9086_v26 = vld [vmem:[%s9356_s15 + $0x1b8] sm:$0xff] }
 0x8b9   : > { %v14680_v50 = vadd.f32 %v6617_v54, %v6525_v55  ;;  %v6248_v27 = vadd.f32 %v14210_v31, %v6100_v49 }
 0x8ba   : > { %v8166_v22 = vmax.f32 %v8070_v20, 0.0  ;;  %v6472_v63 = vpop.f32.mrf.mxu1 }
 0x8bb   : > { %v6527_v5 = vadd.f32 %v6472_v63, %v6246_v8 }
 0x8bc   : > { %8262 = vst.msk [vmem:[%s14492_s12 + $0x1a8] sm:$0xff] %vm483_vm0, %v8166_v22 }
 0x8bd   : > { %8933 = vmatmul.msk.bf16.vlgmr.msrb.gmra.mxu2 %vm1432_vm11, %v17157_v14  ;;  %v7912_v18 = vpop.f32.mrf.mxu3 }
 0x8be   : > { %v7913_v19 = vadd.f32 %v14474_v58, %v7912_v18  ;;  %v9087_v18 = vld [vmem:[%s9356_s15 + $0x1c0] sm:$0xff] }
 0x8c0   : > { %v6620_v55 = vpop.f32.mrf.mxu2  ;;  %v8071_v45 = vadd.f32 %v9085_v32, %v7913_v19 }
 0x8c1   : > { %v14691_v41 = vadd.f32 %v6620_v55, %v6526_v37  ;;  %v17162_v55 = vld [vmem:[#allocation51_spill] sm:$0xff] }
 0x8c2   : > { %v8167_v7 = vmax.f32 %v8071_v45, 0.0  ;;  %v6475_v35 = vpop.f32.mrf.mxu1 }
 0x8c3   : > { %v6528_v48 = vadd.f32 %v6475_v35, %v6247_v40  ;;  %v17163_v35 = vld [vmem:[#allocation50_spill] sm:$0xff] }
 0x8c4   : > { %8263 = vst.msk [vmem:[%s14492_s12 + $0x1b0] sm:$0xff] %vm483_vm0, %v8167_v7 }
 0x8c5   : > { %8918 = vmatmul.msk.bf16.gmra.mxu1 %vm1432_vm11, %v17059_v4  ;;  %v7914_v52 = vpop.f32.mrf.mxu3  ;;  %v17161_v4 = vld [vmem:[#allocation168_spill] sm:$0xff] }
 0x8c6   : > { %v7915_v54 = vadd.f32 %v14474_v58, %v7914_v52  ;;  %v6101_v14 = vadd.f32 %v17161_v4, %v14307_v47  ;;  %v6102_v47 = vadd.f32 %v17164_v62, %v17163_v35  ;;  %v17166_v4 = vld [vmem:[#allocation58_spill] sm:$0xff] }
 0x8c8   : > { %v6622_v37 = vpop.f32.mrf.mxu2  ;;  %v8072_v20 = vadd.f32 %v9086_v26, %v7915_v54  ;;  %v6249_v32 = vadd.f32 %v17162_v55, %v6101_v14  ;;  %v9088_v54 = vld [vmem:[%s9356_s15 + $0x1c8] sm:$0xff]  ;;  %v17168_v14 = vld [vmem:[#allocation174_spill] sm:$0xff] }
 0x8c9   : > { %v14702_v10 = vadd.f32 %v6622_v37, %v6527_v5 }
 0x8ca   : > { %v8168_v8 = vmax.f32 %v8072_v20, 0.0  ;;  %v6477_v22 = vpop.f32.mrf.mxu1  ;;  %v17165_v20 = vld [vmem:[#allocation75_spill] sm:$0xff] }
 0x8cb   : > { %v6529_v63 = vadd.f32 %v6477_v22, %v6248_v27  ;;  %v6250_v27 = vadd.f32 %v17165_v20, %v6102_v47  ;;  %v17170_v47 = vld [vmem:[#allocation231_spill] sm:$0xff] }
 0x8cc   : > { %8264 = vst.msk [vmem:[%s14492_s12 + $0x1b8] sm:$0xff] %vm483_vm0, %v8168_v8 }
 0x8cd   : > { %8934 = vmatmul.msk.bf16.gmra.mxu2 %vm1432_vm11, %v17160_v33  ;;  %v7917_v9 = vpop.f32.mrf.mxu3 }
 0x8ce   : > { %v7918_v16 = vadd.f32 %v14474_v58, %v7917_v9 }
 0x8d0   : > { %v6625_v5 = vpop.f32.mrf.mxu2  ;;  %v8073_v19 = vadd.f32 %v9087_v18, %v7918_v16  ;;  %v9089_v18 = vld [vmem:[%s9356_s15 + $0x1d0] sm:$0xff] }
 0x8d1   : > { %v14713_v31 = vadd.f32 %v6625_v5, %v6528_v48 }
 0x8d2   : > { %v8169_v45 = vmax.f32 %v8073_v19, 0.0  ;;  %v6480_v40 = vpop.f32.mrf.mxu1 }
 0x8d3   : > { %v6530_v7 = vadd.f32 %v6480_v40, %v6249_v32  ;;  %v17169_v32 = vld [vmem:[#allocation109_spill] sm:$0xff] }
 0x8d4   : > { %8265 = vst.msk [vmem:[%s14492_s12 + $0x1c0] sm:$0xff] %vm483_vm0, %v8169_v45 }
 0x8d5   : > { %8919 = vmatmul.msk.bf16.gmra.mxu1 %vm1432_vm11, %v17068_v30  ;;  %v7919_v49 = vpop.f32.mrf.mxu3  ;;  %v17167_v30 = vld [vmem:[#allocation85_spill] sm:$0xff] }
 0x8d6   : > { %v7920_v52 = vadd.f32 %v14474_v58, %v7919_v49  ;;  %v6103_v9 = vadd.f32 %v17168_v14, %v17167_v30  ;;  %v17171_v49 = vld [vmem:[#allocation81_spill] sm:$0xff] }
 0x8d8   : > { %v6627_v48 = vpop.f32.mrf.mxu2  ;;  %v8074_v37 = vadd.f32 %v9088_v54, %v7920_v52  ;;  %v6251_v45 = vadd.f32 %v17169_v32, %v6103_v9  ;;  %v6104_v52 = vadd.f32 %v17171_v49, %v17170_v47  ;;  %v17173_v9 = vld [vmem:[#allocation297_spill] sm:$0xff] }
 0x8d9   : > { %v14724_v26 = vadd.f32 %v6627_v48, %v6529_v63 }
 0x8da   : > { %v8170_v8 = vmax.f32 %v8074_v37, 0.0  ;;  %v6482_v22 = vpop.f32.mrf.mxu1  ;;  %v9090_v37 = vld [vmem:[%s9356_s15 + $0x1d8] sm:$0xff] }
 0x8db   : > { %v6531_v33 = vadd.f32 %v6482_v22, %v6250_v27 }
 0x8dc   : > { %8266 = vst.msk [vmem:[%s14492_s12 + $0x1c8] sm:$0xff] %vm483_vm0, %v8170_v8  ;;  %v17172_v8 = vld [vmem:[#allocation177_spill] sm:$0xff] }
 0x8dd   : > { %8935 = vmatmul.msk.bf16.gmra.mxu2 %vm1432_vm11, %v17166_v4  ;;  %v7922_v16 = vpop.f32.mrf.mxu3  ;;  %v6252_v22 = vadd.f32 %v17172_v8, %v6104_v52  ;;  %v17176_v52 = vld [vmem:[#allocation247_spill] sm:$0xff] }
 0x8de   : > { %v7923_v5 = vadd.f32 %v14474_v58, %v7922_v16 }
 0x8e0   : > { %v6630_v63 = vpop.f32.mrf.mxu2  ;;  %v8075_v19 = vadd.f32 %v9089_v18, %v7923_v5  ;;  %v9091_v18 = vld [vmem:[%s9356_s15 + $0x1e0] sm:$0xff] }
 0x8e1   : > { %v14735_v55 = vadd.f32 %v6630_v63, %v6530_v7 }
 0x8e2   : > { %v8171_v40 = vmax.f32 %v8075_v19, 0.0  ;;  %v6485_v35 = vpop.f32.mrf.mxu1 }
 0x8e3   : > { %v6532_v62 = vadd.f32 %v6485_v35, %v6251_v45  ;;  %v17175_v45 = vld [vmem:[#allocation53_spill] sm:$0xff] }
 0x8e4   : > { %8267 = vst.msk [vmem:[%s14492_s12 + $0x1d0] sm:$0xff] %vm483_vm0, %v8171_v40 }
 0x8e5   : > { %8920 = vmatmul.msk.bf16.gmra.mxu1 %vm1432_vm11, %v17078_v28  ;;  %v7924_v48 = vpop.f32.mrf.mxu3  ;;  %v17174_v28 = vld [vmem:[#allocation131_spill] sm:$0xff] }
 0x8e6   : > { %v7925_v54 = vadd.f32 %v14474_v58, %v7924_v48  ;;  %v6105_v16 = vadd.f32 %v17174_v28, %v14351_v61  ;;  %v17177_v48 = vld [vmem:[#allocation110_spill] sm:$0xff] }
 0x8e7   : > { %v6106_v61 = vadd.f32 %v17177_v48, %v17176_v52  ;;  %v17183_v52 = vld [vmem:[#allocation77_spill] sm:$0xff] }
 0x8e8   : > { %v6632_v7 = vpop.f32.mrf.mxu2  ;;  %v8076_v20 = vadd.f32 %v9090_v37, %v7925_v54  ;;  %v6253_v40 = vadd.f32 %v17175_v45, %v6105_v16  ;;  %v17178_v54 = vld [vmem:[#allocation210_spill] sm:$0xff] }
 0x8e9   : > { %v14746_v27 = vadd.f32 %v6632_v7, %v6531_v33 }
 0x8ea   : > { %v8172_v4 = vmax.f32 %v8076_v20, 0.0  ;;  %v6487_v30 = vpop.f32.mrf.mxu1  ;;  %v9092_v20 = vld [vmem:[%s9356_s15 + $0x1e8] sm:$0xff] }
 0x8eb   : > { %v6533_v14 = vadd.f32 %v6487_v30, %v6252_v22 }
 0x8ec   : > { %8268 = vst.msk [vmem:[%s14492_s12 + $0x1d8] sm:$0xff] %vm483_vm0, %v8172_v4  ;;  %v17179_v4 = vld [vmem:[#allocation182_spill] sm:$0xff] }
 0x8ed   : > { %8936 = vmatmul.msk.bf16.gmra.mxu2 %vm1432_vm11, %v17173_v9  ;;  %v7927_v5 = vpop.f32.mrf.mxu3  ;;  %v6254_v30 = vadd.f32 %v17179_v4, %v6106_v61 }
 0x8ee   : > { %v7928_v63 = vadd.f32 %v14474_v58, %v7927_v5  ;;  %v17180_v5 = vld [vmem:[#allocation55_spill] sm:$0xff] }
 0x8f0   : > { %v6635_v33 = vpop.f32.mrf.mxu2  ;;  %v8077_v19 = vadd.f32 %v9091_v18, %v7928_v63  ;;  %v17181_v63 = vld [vmem:[#allocation155_spill] sm:$0xff] }
 0x8f1   : > { %v14757_v32 = vadd.f32 %v6635_v33, %v6532_v62  ;;  %v17182_v33 = vld [vmem:[#allocation90_spill] sm:$0xff] }
 0x8f2   : > { %v8173_v35 = vmax.f32 %v8077_v19, 0.0  ;;  %v6490_v47 = vpop.f32.mrf.mxu1  ;;  %v6107_v18 = vadd.f32 %v17182_v33, %v17181_v63 }
 0x8f3   : > { %v6534_v49 = vadd.f32 %v6490_v47, %v6253_v40  ;;  %v9093_v40 = vld [vmem:[%s9356_s15 + $0x1f0] sm:$0xff] }
 0x8f4   : > { %8269 = vst.msk [vmem:[%s14492_s12 + $0x1e0] sm:$0xff] %vm483_vm0, %v8173_v35  ;;  %v6255_v48 = vadd.f32 %v17183_v52, %v6107_v18 }
 0x8f5   : > { %8921 = vmatmul.msk.bf16.gmra.mxu1 %vm1432_vm11, %v17178_v54  ;;  %v7929_v7 = vpop.f32.mrf.mxu3 }
 0x8f6   : > { %v7930_v37 = vadd.f32 %v14474_v58, %v7929_v7 }
 0x8f8   : > { %v6637_v62 = vpop.f32.mrf.mxu2  ;;  %v8078_v8 = vadd.f32 %v9092_v20, %v7930_v37  ;;  %v17184_v37 = vld [vmem:[#allocation294_spill] sm:$0xff] }
 0x8f9   : > { %v14768_v22 = vadd.f32 %v6637_v62, %v6533_v14  ;;  %v17185_v62 = vld [vmem:[#allocation84_spill] sm:$0xff] }
 0x8fa   : > { %v8174_v9 = vmax.f32 %v8078_v8, 0.0  ;;  %v6492_v28 = vpop.f32.mrf.mxu1  ;;  %v6108_v20 = vadd.f32 %v17185_v62, %v17184_v37  ;;  %v17191_v37 = vld [vmem:[#allocation102_spill] sm:$0xff]  ;;  %v17192_v62 = vld [vmem:[#allocation233_spill] sm:$0xff] }
 0x8fb   : > { %v6535_v16 = vadd.f32 %v6492_v28, %v6254_v30 }
 0x8fc   : > { %8270 = vst.msk [vmem:[%s14492_s12 + $0x1e8] sm:$0xff] %vm483_vm0, %v8174_v9 }
 0x8fd   : > { %8937 = vmatmul.msk.bf16.gmra.mxu2 %vm1432_vm11, %v17180_v5  ;;  %v7932_v19 = vpop.f32.mrf.mxu3  ;;  %v17186_v5 = vld [vmem:[#allocation117_spill] sm:$0xff] }
 0x8fe   : > { %v7933_v45 = vadd.f32 %v14474_v58, %v7932_v19  ;;  %v6256_v63 = vadd.f32 %v17186_v5, %v6108_v20  ;;  %v6110_v20 = vadd.f32 %v17192_v62, %v17191_v37 }
 0x900   : > { %v6640_v14 = vpop.f32.mrf.mxu2  ;;  %v8079_v35 = vadd.f32 %v9093_v40, %v7933_v45  ;;  %v17187_v45 = vld [vmem:[#allocation299_spill] sm:$0xff] }
 0x901   : > { %v14779_v47 = vadd.f32 %v6640_v14, %v6534_v49  ;;  %v9094_v49 = vld [vmem:[%s9356_s15 + $0x1f8] sm:$0xff]  ;;  %v17188_v14 = vld [vmem:[#allocation80_spill] sm:$0xff] }
 0x902   : > { %v8175_v61 = vmax.f32 %v8079_v35, 0.0  ;;  %v6495_v54 = vpop.f32.mrf.mxu1 }
 0x903   : > { %v6536_v7 = vadd.f32 %v6495_v54, %v6255_v48  ;;  %v17190_v48 = vld [vmem:[#allocation287_spill] sm:$0xff] }
 0x904   : > { %8271 = vst.msk [vmem:[%s14492_s12 + $0x1f0] sm:$0xff] %vm483_vm0, %v8175_v61 }
 0x905   : > { %8922 = vmatmul.msk.bf16.gmra.mxu1 %vm1432_vm11, %v17100_v46  ;;  %v7934_v8 = vpop.f32.mrf.mxu3  ;;  %v17189_v46 = vld [vmem:[#allocation259_spill] sm:$0xff] }
 0x906   : > { %v7935_v4 = vadd.f32 %v14474_v58, %v7934_v8  ;;  %v6109_v40 = vadd.f32 %v17189_v46, %v17188_v14  ;;  %v17196_v14 = vld [vmem:[#allocation291_spill] sm:$0xff] }
 0x908   : > { %v6642_v30 = vpop.f32.mrf.mxu2  ;;  %v8080_v9 = vadd.f32 %v9094_v49, %v7935_v4  ;;  %v6257_v61 = vadd.f32 %v17190_v48, %v6109_v40 }
 0x909   : > { %v14790_v28 = vadd.f32 %v6642_v30, %v6535_v16  ;;  %v17193_v30 = vld [vmem:[#allocation224_spill] sm:$0xff] }
 0x90a   : > { %v8176_v33 = vmax.f32 %v8080_v9, 0.0  ;;  %v6497_v18 = vpop.f32.mrf.mxu1  ;;  %v6258_v49 = vadd.f32 %v17193_v30, %v6110_v20  ;;  %v17199_v20 = vld [vmem:[#allocation207_spill] sm:$0xff] }
 0x90b   : > { %v6537_v19 = vadd.f32 %v6497_v18, %v6256_v63  ;;  %v17194_v63 = vld [vmem:[#allocation62_spill] sm:$0xff] }
 0x90c   : > { %8272 = vst.msk [vmem:[%s14492_s12 + $0x1f8] sm:$0xff] %vm483_vm0, %v8176_v33 }
 0x90d   : > { %8938 = vmatmul.msk.bf16.gmra.mxu2 %vm1432_vm11, %v17187_v45 }
 0x910   : > { %v6645_v35 = vpop.f32.mrf.mxu2 }
 0x911   : > { %v14799_v52 = vadd.f32 %v6645_v35, %v6536_v7  ;;  %v17195_v7 = vld [vmem:[#allocation137_spill] sm:$0xff] }
 0x912   : > { %v6500_v16 = vpop.f32.mrf.mxu1  ;;  %v6111_v33 = vadd.f32 %v17195_v7, %v14419_v39 }
 0x913   : > { %v6538_v54 = vadd.f32 %v6500_v16, %v6257_v61  ;;  %v17198_v16 = vld [vmem:[#allocation186_spill] sm:$0xff] }
 0x914   : > { %v6259_v46 = vadd.f32 %v17196_v14, %v6111_v33  ;;  %v14837_v33 = vld [vmem:[%s15370_s4] ss:$0 sm:$0xff] }
 0x915   : > { %8923 = vmatmul.msk.bf16.gmra.mxu1 %vm1432_vm11, %v17111_v6 }
 0x918   : > { %v6647_v8 = vpop.f32.mrf.mxu2 }
 0x919   : > { %v14806_v4 = vadd.f32 %v6647_v8, %v6537_v19  ;;  %v17197_v19 = vld [vmem:[#allocation264_spill] sm:$0xff] }
 0x91a   : > { %v6502_v9 = vpop.f32.mrf.mxu1  ;;  %v6112_v35 = vadd.f32 %v17197_v19, %v14436_v43  ;;  %v17201_v43 = vld [vmem:[#allocation190_spill] sm:$0xff] }
 0x91b   : > { %v6539_v5 = vadd.f32 %v6502_v9, %v6258_v49 }
 0x91c   : > { %v6260_v37 = vadd.f32 %v17198_v16, %v6112_v35 }
 0x91d   : > { %8939 = vmatmul.msk.bf16.gmra.mxu2 %vm1432_vm11, %v17194_v63 }
 0x920   : > { %v6650_v18 = vpop.f32.mrf.mxu2 }
 0x921   : > { %v14813_v45 = vadd.f32 %v6650_v18, %v6538_v54  ;;  %v17200_v54 = vld [vmem:[#allocation234_spill] sm:$0xff] }
 0x922   : > { %v6505_v40 = vpop.f32.mrf.mxu1  ;;  %v6955_v8 = vadd.f32 %v17200_v54, %v14449_v59  ;;  %v14849_v54 = vpop.f32.mrf.mxu0 }
 0x923   : > { %v6540_v6 = vadd.f32 %v6505_v40, %v6259_v46  ;;  %v17203_v46 = vld [vmem:[#allocation69_spill] sm:$0xff] }
 0x924   : > { %v7100_v9 = vadd.f32 %v17201_v43, %v6955_v8  ;;  %v9096_v43 = vld [vmem:[%s9356_s15] sm:$0xff] }
 0x925   : > { %8924 = vmatmul.msk.bf16.gmra.mxu1 %vm1432_vm11, %v17119_v11 }
 0x928   : > { %v6652_v48 = vpop.f32.mrf.mxu2 }
 0x929   : > { %v14820_v61 = vadd.f32 %v6652_v48, %v6539_v5  ;;  %v17202_v5 = vld [vmem:[#allocation272_spill] sm:$0xff] }
 0x92a   : > { %v6507_v62 = vpop.f32.mrf.mxu1  ;;  %v6956_v7 = vadd.f32 %v17202_v5, %v14466_v34  ;;  %v17204_v34 = vld [vmem:[#allocation304_spill] sm:$0xff] }
 0x92b   : > { %v6541_v39 = vadd.f32 %v6507_v62, %v6260_v37 }
 0x92c   : > { %v7101_v40 = vadd.f32 %v17203_v46, %v6956_v7 }
 0x92d   : > { %8940 = vmatmul.msk.bf16.gmra.mxu2 %vm1432_vm11, %v17199_v20 }
 0x930   : > { %v6655_v30 = vpop.f32.mrf.mxu2 }
 0x931   : > { %v14827_v49 = vadd.f32 %v6655_v30, %v6540_v6 }
 0x932   : > { %v7168_v63 = vpop.f32.mrf.mxu1 }
 0x933   : > { %v7248_v11 = vadd.f32 %v7168_v63, %v7100_v9 }
 0x935   : > { %8925 = vmatmul.msk.bf16.gmra.mxu1 %vm1432_vm11, %v17126_v15  ;;  %v7280_v59 = vadd.f32 %v14837_v33, %v7248_v11  ;;  %v17205_v15 = vld [vmem:[#allocation116_spill] sm:$0xff] }
 0x936   : > { %v6957_v48 = vadd.f32 %v17205_v15, %v14484_v38 }
 0x937   : > { %v7312_v19 = vmax.f32 %v7280_v59, 0.0  ;;  %v17206_v59 = vld [vmem:[#allocation281_spill] sm:$0xff] }
 0x938   : > { %v6657_v18 = vpop.f32.mrf.mxu2  ;;  %v7102_v30 = vadd.f32 %v14422_v13, %v6957_v48  ;;  %v14864_v48 = vpop.f32.mrf.mxu0 }
 0x939   : > { %v14840_v14 = vadd.f32 %v6657_v18, %v6541_v39  ;;  %v7344_v37 = vpack.c.bf16 %v7312_v19, %v7312_v19  ;;  %v6958_v18 = vadd.f32 %v17206_v59, %v14505_v25  ;;  %v17207_v19 = vld [vmem:[#allocation196_spill] sm:$0xff] }
 0x93a   : > { %v7170_v6 = vpop.f32.mrf.mxu1 }
 0x93b   : > { %v7249_v35 = vadd.f32 %v7170_v6, %v7101_v40  ;;  %v7568_v11 = vunpack.c.l.b16 %v7344_v37 }
 0x93d   : > { %8941 = vmatmul.msk.bf16.gmra.mxu2 %vm1432_vm11, %v17204_v34  ;;  %v7281_v16 = vadd.f32 %v14837_v33, %v7249_v35  ;;  %v7103_v35 = vadd.f32 %v17207_v19, %v6958_v18  ;;  %v9097_v34 = vld [vmem:[%s9356_s15 + $0x8] sm:$0xff] }
 0x93e   : > { %v17211_v19 = vld [vmem:[#allocation71_spill] sm:$0xff] }
 0x93f   : > { %v7313_v62 = vmax.f32 %v7281_v16, 0.0 }
 0x940   : > { %v7777_v20 = vpop.f32.mrf.mxu2 }
 0x941   : > { %v7778_v39 = vadd.f32 %v14474_v58, %v7777_v20  ;;  %v7345_v8 = vpack.c.bf16 %v7313_v62, %v7313_v62  ;;  %v17208_v62 = vld [vmem:[#allocation216_spill] sm:$0xff] }
 0x942   : > { %v7173_v63 = vpop.f32.mrf.mxu1  ;;  %v17209_v20 = vld [vmem:[#allocation204_spill] sm:$0xff] }
 0x943   : > { %v8017_v9 = vadd.f32 %v9096_v43, %v7778_v39  ;;  %v7569_v5 = vunpack.c.l.b16 %v7345_v8  ;;  %v7250_v38 = vadd.f32 %v7173_v63, %v7102_v30  ;;  %v6959_v39 = vadd.f32 %v17209_v20, %v14520_v12 }
 0x945   : > { %v8113_v7 = vmax.f32 %v8017_v9, 0.0  ;;  %v7600_v46 = vpack.c.b16 %v7569_v5, %v7568_v11  ;;  %8926 = vmatmul.msk.bf16.gmra.mxu1 %vm1432_vm11, %v14575_v29  ;;  %v7282_v13 = vadd.f32 %v14837_v33, %v7250_v38  ;;  %v17210_v5 = vld [vmem:[#allocation161_spill] sm:$0xff] }
 0x946   : > { %v7104_v38 = vadd.f32 %v17210_v5, %v6959_v39 }
 0x947   : > { %8209 = vst.msk [vmem:[%s14492_s12] sm:$0xff] %vm483_vm0, %v8113_v7  ;;  %8965 = vmatmul.msk.bf16.gmra.mxu3 %vm1432_vm11, %v7600_v46  ;;  %v7314_v16 = vmax.f32 %v7282_v13, 0.0  ;;  %v9098_v7 = vld [vmem:[%s9356_s15 + $0x10] sm:$0xff] }
 0x948   : > { %v7779_v40 = vpop.f32.mrf.mxu2 }
 0x949   : > { %v7780_v6 = vadd.f32 %v14474_v58, %v7779_v40  ;;  %v7346_v30 = vpack.c.bf16 %v7314_v16, %v7314_v16 }
 0x94a   : > { %v7175_v25 = vpop.f32.mrf.mxu1 }
 0x94b   : > { %v8018_v15 = vadd.f32 %v9097_v34, %v7780_v6  ;;  %v7251_v29 = vadd.f32 %v7175_v25, %v7103_v35  ;;  %v7570_v46 = vunpack.c.l.b16 %v7346_v30  ;;  %v14876_v6 = vpop.f32.mrf.mxu0  ;;  %v6960_v35 = vadd.f32 %v17211_v19, %v14539_v42  ;;  %v17213_v30 = vld [vmem:[#allocation97_spill] sm:$0xff] }
 0x94d   : > { %v8114_v37 = vmax.f32 %v8018_v15, 0.0  ;;  %8942 = vmatmul.msk.bf16.gmra.mxu2 %vm1432_vm11, %v17208_v62  ;;  %v7283_v8 = vadd.f32 %v14837_v33, %v7251_v29  ;;  %v7105_v29 = vadd.f32 %v14481_v23, %v6960_v35 }
 0x94f   : > { %8210 = vst.msk [vmem:[%s14492_s12 + $0x8] sm:$0xff] %vm483_vm0, %v8114_v37  ;;  %v7315_v43 = vmax.f32 %v7283_v8, 0.0  ;;  %v9099_v37 = vld [vmem:[%s9356_s15 + $0x18] sm:$0xff] }
 0x950   : > { %v7782_v9 = vpop.f32.mrf.mxu2 }
 0x951   : > { %v7783_v63 = vadd.f32 %v14474_v58, %v7782_v9  ;;  %v7347_v11 = vpack.c.bf16 %v7315_v43, %v7315_v43  ;;  %v6961_v43 = vadd.f32 %v17213_v30, %v14552_v56  ;;  %v17216_v30 = vld [vmem:[#allocation78_spill] sm:$0xff] }
 0x952   : > { %v7178_v18 = vpop.f32.mrf.mxu1 }
 0x953   : > { %v8019_v59 = vadd.f32 %v9098_v7, %v7783_v63  ;;  %v7571_v13 = vunpack.c.l.b16 %v7347_v11  ;;  %v7252_v12 = vadd.f32 %v7178_v18, %v7104_v38  ;;  %v14896_v63 = vpop.f32.mrf.mxu0 }
 0x955   : > { %v8115_v40 = vmax.f32 %v8019_v59, 0.0  ;;  %v7601_v34 = vpack.c.b16 %v7571_v13, %v7570_v46  ;;  %8927 = vmatmul.msk.bf16.gmra.mxu1 %vm1432_vm11, %v14604_v60  ;;  %v7284_v15 = vadd.f32 %v14837_v33, %v7252_v12  ;;  %v17212_v60 = vld [vmem:[#allocation91_spill] sm:$0xff]  ;;  %v17214_v59 = vld [vmem:[#allocation201_spill] sm:$0xff]  ;;  %v9100_v46 = vld [vmem:[%s9356_s15 + $0x20] sm:$0xff] }
 0x956   : > { %v7106_v18 = vadd.f32 %v17214_v59, %v6961_v43  ;;  %v17217_v43 = vld [vmem:[#allocation79_spill] sm:$0xff] }
 0x957   : > { %8211 = vst.msk [vmem:[%s14492_s12 + $0x10] sm:$0xff] %vm483_vm0, %v8115_v40  ;;  %8966 = vmatmul.msk.bf16.gmra.mxu3 %vm1432_vm11, %v7601_v34  ;;  %v7316_v20 = vmax.f32 %v7284_v15, 0.0  ;;  %v17215_v34 = vld [vmem:[#allocation209_spill] sm:$0xff] }
 0x958   : > { %v7784_v25 = vpop.f32.mrf.mxu2  ;;  %v6962_v15 = vadd.f32 %v17215_v34, %v14565_v57 }
 0x959   : > { %v7785_v16 = vadd.f32 %v14474_v58, %v7784_v25  ;;  %v7348_v23 = vpack.c.bf16 %v7316_v20, %v7316_v20  ;;  %v9101_v20 = vld [vmem:[%s9356_s15 + $0x28] sm:$0xff] }
 0x95a   : > { %v7180_v42 = vpop.f32.mrf.mxu1 }
 0x95b   : > { %v8020_v62 = vadd.f32 %v9099_v37, %v7785_v16  ;;  %v7253_v39 = vadd.f32 %v7180_v42, %v7105_v29  ;;  %v7572_v56 = vunpack.c.l.b16 %v7348_v23  ;;  %v7107_v42 = vadd.f32 %v14526_v44, %v6962_v15  ;;  %v17219_v15 = vld [vmem:[#allocation215_spill] sm:$0xff] }
 0x95d   : > { %v8116_v8 = vmax.f32 %v8020_v62, 0.0  ;;  %8943 = vmatmul.msk.bf16.gmra.mxu2 %vm1432_vm11, %v17212_v60  ;;  %v7285_v9 = vadd.f32 %v14837_v33, %v7253_v39  ;;  %v14910_v62 = vpop.f32.mrf.mxu0 }
 0x95f   : > { %8212 = vst.msk [vmem:[%s14492_s12 + $0x18] sm:$0xff] %vm483_vm0, %v8116_v8  ;;  %v7317_v11 = vmax.f32 %v7285_v9, 0.0  ;;  %v6963_v9 = vadd.f32 %v17217_v43, %v14585_v51 }
 0x960   : > { %v7787_v5 = vpop.f32.mrf.mxu2 }
 0x961   : > { %v7788_v38 = vadd.f32 %v14474_v58, %v7787_v5  ;;  %v7349_v7 = vpack.c.bf16 %v7317_v11, %v7317_v11  ;;  %v7108_v59 = vadd.f32 %v14849_v54, %v6963_v9 }
 0x962   : > { %v7183_v12 = vpop.f32.mrf.mxu1 }
 0x963   : > { %v8021_v13 = vadd.f32 %v9100_v46, %v7788_v38  ;;  %v7573_v40 = vunpack.c.l.b16 %v7349_v7  ;;  %v7254_v19 = vadd.f32 %v7183_v12, %v7106_v18  ;;  %v9102_v18 = vld [vmem:[%s9356_s15 + $0x30] sm:$0xff] }
 0x965   : > { %v8117_v35 = vmax.f32 %v8021_v13, 0.0  ;;  %v7602_v25 = vpack.c.b16 %v7573_v40, %v7572_v56  ;;  %8928 = vmatmul.msk.bf16.gmra.mxu1 %vm1432_vm11, %v14633_v21  ;;  %v7286_v16 = vadd.f32 %v14837_v33, %v7254_v19  ;;  %v14924_v12 = vpop.f32.mrf.mxu0 }
 0x967   : > { %8213 = vst.msk [vmem:[%s14492_s12 + $0x20] sm:$0xff] %vm483_vm0, %v8117_v35  ;;  %8967 = vmatmul.msk.bf16.gmra.mxu3 %vm1432_vm11, %v7602_v25  ;;  %v7318_v8 = vmax.f32 %v7286_v16, 0.0  ;;  %v17218_v35 = vld [vmem:[#allocation87_spill] sm:$0xff]  ;;  %v6964_v25 = vadd.f32 %v17219_v15, %v14598_v2 }
 0x968   : > { %v7789_v29 = vpop.f32.mrf.mxu2  ;;  %v7143_v34 = vsel %vm13153_vm4, %v17218_v35, 0 }
 0x969   : > { %v7790_v37 = vadd.f32 %v14474_v58, %v7789_v29  ;;  %v7350_v11 = vpack.c.bf16 %v7318_v8, %v7318_v8 }
 0x96a   : > { %v7185_v39 = vpop.f32.mrf.mxu1 }
 0x96b   : > { %v8022_v57 = vadd.f32 %v9101_v20, %v7790_v37  ;;  %v7255_v21 = vadd.f32 %v7185_v39, %v7107_v42  ;;  %v7574_v51 = vunpack.c.l.b16 %v7350_v11  ;;  %v7109_v42 = vadd.f32 %v14864_v48, %v6964_v25 }
 0x96d   : > { %v8118_v60 = vmax.f32 %v8022_v57, 0.0  ;;  %8944 = vmatmul.msk.bf16.gmra.mxu2 %vm1432_vm11, %v17216_v30  ;;  %v7287_v23 = vadd.f32 %v14837_v33, %v7255_v21  ;;  %v17220_v21 = vld [vmem:[#allocation72_spill] sm:$0xff]  ;;  %v17221_v30 = vld [vmem:[#allocation67_spill] sm:$0xff] }
 0x96e   : > { %v6965_v43 = vadd.f32 %v17221_v30, %v14614_v3  ;;  %v14976_v30 = vld [vmem:[%s15372_s6] ss:$0 sm:$0xff] }
 0x96f   : > { %8214 = vst.msk [vmem:[%s14492_s12 + $0x28] sm:$0xff] %vm483_vm0, %v8118_v60  ;;  %v7319_v5 = vmax.f32 %v7287_v23, 0.0  ;;  %v14941_v60 = vpop.f32.mrf.mxu0 }
 0x970   : > { %v7792_v44 = vpop.f32.mrf.mxu2 }
 0x971   : > { %v7793_v38 = vadd.f32 %v14474_v58, %v7792_v44  ;;  %v7351_v7 = vpack.c.bf16 %v7319_v5, %v7319_v5 }
 0x972   : > { %v7188_v13 = vpop.f32.mrf.mxu1 }
 0x973   : > { %v8023_v46 = vadd.f32 %v9102_v18, %v7793_v38  ;;  %v7575_v56 = vunpack.c.l.b16 %v7351_v7  ;;  %v7256_v40 = vadd.f32 %v7188_v13, %v7108_v59  ;;  %v7110_v38 = vadd.f32 %v14876_v6, %v6965_v43  ;;  %v9104_v7 = vld [vmem:[%s9356_s15 + $0x40] sm:$0xff] }
 0x975   : > { %v8119_v19 = vmax.f32 %v8023_v46, 0.0  ;;  %v7603_v16 = vpack.c.b16 %v7575_v56, %v7574_v51  ;;  %8929 = vmatmul.msk.bf16.gmra.mxu1 %vm1432_vm11, %v7143_v34  ;;  %v7288_v54 = vadd.f32 %v14837_v33, %v7256_v40  ;;  %v17222_v56 = vld [vmem:[#allocation273_spill] sm:$0xff] }
 0x976   : > { %v7144_v40 = vsel %vm9968_vm7, %v17222_v56, 0 }
 0x977   : > { %8215 = vst.msk [vmem:[%s14492_s12 + $0x30] sm:$0xff] %vm483_vm0, %v8119_v19  ;;  %8968 = vmatmul.msk.bf16.gmra.mxu3 %vm1432_vm11, %v7603_v16  ;;  %v7320_v2 = vmax.f32 %v7288_v54, 0.0  ;;  %v17223_v19 = vld [vmem:[#allocation302_spill] sm:$0xff]  ;;  %v14959_v6 = vpop.f32.mrf.mxu0 }
 0x978   : > { %v7794_v29 = vpop.f32.mrf.mxu2  ;;  %v6966_v35 = vadd.f32 %v17223_v19, %v14627_v53 }
 0x979   : > { %v7795_v37 = vadd.f32 %v14474_v58, %v7794_v29  ;;  %v7352_v48 = vpack.c.bf16 %v7320_v2, %v7320_v2  ;;  %v9105_v29 = vld [vmem:[%s9356_s15 + $0x48] sm:$0xff]  ;;  %v17225_v2 = vld [vmem:[#allocation74_spill] sm:$0xff] }
 0x97a   : > { %v7190_v57 = vpop.f32.mrf.mxu1  ;;  %v7111_v54 = vadd.f32 %v14896_v63, %v6966_v35  ;;  %v9108_v35 = vld [vmem:[%s9356_s15 + $0x58] sm:$0xff] }
 0x97b   : > { %v8024_v20 = vadd.f32 %v9103_v24, %v7795_v37  ;;  %v7257_v39 = vadd.f32 %v7190_v57, %v7109_v42  ;;  %v7576_v46 = vunpack.c.l.b16 %v7352_v48  ;;  %v17224_v57 = vld [vmem:[#allocation206_spill] sm:$0xff] }
 0x97d   : > { %v8120_v8 = vmax.f32 %v8024_v20, 0.0  ;;  %8945 = vmatmul.msk.bf16.gmra.mxu2 %vm1432_vm11, %v17220_v21  ;;  %v7289_v9 = vadd.f32 %v14837_v33, %v7257_v39  ;;  %v6967_v39 = vadd.f32 %v17225_v2, %v14643_v0 }
 0x97f   : > { %8216 = vst.msk [vmem:[%s14492_s12 + $0x38] sm:$0xff] %vm483_vm0, %v8120_v8  ;;  %v7321_v23 = vmax.f32 %v7289_v9, 0.0  ;;  %v14979_v9 = vpop.f32.mrf.mxu0  ;;  %v7112_v0 = vadd.f32 %v14910_v62, %v6967_v39 }
 0x980   : > { %v7797_v11 = vpop.f32.mrf.mxu2 }
 0x981   : > { %v7798_v5 = vadd.f32 %v14474_v58, %v7797_v11  ;;  %v7353_v44 = vpack.c.bf16 %v7321_v23, %v7321_v23  ;;  %v9107_v23 = vld [vmem:[%s9356_s15 + $0x50] sm:$0xff] }
 0x982   : > { %v7193_v18 = vpop.f32.mrf.mxu1 }
 0x983   : > { %v8025_v59 = vadd.f32 %v9104_v7, %v7798_v5  ;;  %v7577_v13 = vunpack.c.l.b16 %v7353_v44  ;;  %v7258_v3 = vadd.f32 %v7193_v18, %v7110_v38  ;;  %v17226_v18 = vld [vmem:[#allocation122_spill] sm:$0xff] }
 0x985   : > { %v8121_v51 = vmax.f32 %v8025_v59, 0.0  ;;  %v7604_v34 = vpack.c.b16 %v7577_v13, %v7576_v46  ;;  %8930 = vmatmul.msk.bf16.gmra.mxu1 %vm1432_vm11, %v7144_v40  ;;  %v7290_v15 = vadd.f32 %v14837_v33, %v7258_v3  ;;  %v7145_v46 = vsel %vm9968_vm7, %v17226_v18, 0  ;;  %v17227_v13 = vld [vmem:[#allocation175_spill] sm:$0xff] }
 0x986   : > { %v6968_v3 = vadd.f32 %v17227_v13, %v14656_v17  ;;  %v9110_v18 = vld [vmem:[%s9356_s15 + $0x68] sm:$0xff] }
 0x987   : > { %8217 = vst.msk [vmem:[%s14492_s12 + $0x40] sm:$0xff] %vm483_vm0, %v8121_v51  ;;  %8969 = vmatmul.msk.bf16.gmra.mxu3 %vm1432_vm11, %v7604_v34  ;;  %v7322_v42 = vmax.f32 %v7290_v15, 0.0  ;;  %v14996_v17 = vpop.f32.mrf.mxu0 }
 0x988   : > { %v7799_v25 = vpop.f32.mrf.mxu2  ;;  %v7113_v19 = vadd.f32 %v14924_v12, %v6968_v3 }
 0x989   : > { %v7800_v16 = vadd.f32 %v14474_v58, %v7799_v25  ;;  %v7354_v58 = vpack.c.bf16 %v7322_v42, %v7322_v42 }
 0x98a   : > { %v7195_v53 = vpop.f32.mrf.mxu1 }
 0x98b   : > { %v8026_v37 = vadd.f32 %v9105_v29, %v7800_v16  ;;  %v7259_v24 = vadd.f32 %v7195_v53, %v7111_v54  ;;  %v7578_v44 = vunpack.c.l.b16 %v7354_v58  ;;  %v17228_v29 = vld [vmem:[#allocation133_spill] sm:$0xff] }
 0x98d   : > { %v8122_v20 = vmax.f32 %v8026_v37, 0.0  ;;  %8946 = vmatmul.msk.bf16.gmra.mxu2 %vm1432_vm11, %v17224_v57  ;;  %v7291_v8 = vadd.f32 %v14837_v33, %v7259_v24  ;;  %v17229_v37 = vld [vmem:[#allocation171_spill] sm:$0xff] }
 0x98e   : > { %v6969_v53 = vadd.f32 %v17229_v37, %v14669_v1 }
 0x98f   : > { %8218 = vst.msk [vmem:[%s14492_s12 + $0x48] sm:$0xff] %vm483_vm0, %v8122_v20  ;;  %v7323_v21 = vmax.f32 %v7291_v8, 0.0  ;;  %v9109_v8 = vld [vmem:[%s9356_s15 + $0x60] sm:$0xff] }
 0x990   : > { %v7802_v63 = vpop.f32.mrf.mxu2  ;;  %v7114_v39 = vadd.f32 %v14941_v60, %v6969_v53 }
 0x991   : > { %v7803_v43 = vadd.f32 %v14976_v30, %v7802_v63  ;;  %v7355_v48 = vpack.c.bf16 %v7323_v21, %v7323_v21 }
 0x992   : > { %v7198_v5 = vpop.f32.mrf.mxu1 }
 0x993   : > { %v8027_v11 = vadd.f32 %v9107_v23, %v7803_v43  ;;  %v7579_v38 = vunpack.c.l.b16 %v7355_v48  ;;  %v7260_v7 = vadd.f32 %v7198_v5, %v7112_v0  ;;  %v17230_v0 = vld [vmem:[#allocation135_spill] sm:$0xff] }
 0x994   : > { %v7146_v23 = vsel %vm9968_vm7, %v17230_v0, 0  ;;  %v17231_v5 = vld [vmem:[#allocation99_spill] sm:$0xff] }
 0x995   : > { %v8123_v59 = vmax.f32 %v8027_v11, 0.0  ;;  %v7605_v51 = vpack.c.b16 %v7579_v38, %v7578_v44  ;;  %8931 = vmatmul.msk.bf16.gmra.mxu1 %vm1432_vm11, %v7145_v46  ;;  %v7292_v62 = vadd.f32 %v14837_v33, %v7260_v7  ;;  %v7065_v11 = vpop.f32.mrf.mxu0  ;;  %v6970_v44 = vadd.f32 %v17231_v5, %v14680_v50  ;;  %v17236_v5 = vld [vmem:[#allocation225_spill] sm:$0xff] }
 0x997   : > { %8219 = vst.msk [vmem:[%s14492_s12 + $0x50] sm:$0xff] %vm483_vm0, %v8123_v59  ;;  %8970 = vmatmul.msk.bf16.gmra.mxu3 %vm1432_vm11, %v7605_v51  ;;  %v7324_v25 = vmax.f32 %v7292_v62, 0.0  ;;  %v7115_v36 = vadd.f32 %v14959_v6, %v6970_v44  ;;  %v17232_v62 = vld [vmem:[#allocation20_spill] sm:$0xff]  ;;  %v6973_v44 = vadd.f32 %v17236_v5, %v14713_v31 }
 0x998   : > { %v7804_v56 = vpop.f32.mrf.mxu2 }
 0x999   : > { %v7805_v40 = vadd.f32 %v14976_v30, %v7804_v56  ;;  %v7356_v12 = vpack.c.bf16 %v7324_v25, %v7324_v25  ;;  %v17233_v56 = vld [vmem:[#allocation57_spill] sm:$0xff] }
 0x99a   : > { %v7200_v15 = vpop.f32.mrf.mxu1 }
 0x99b   : > { %v8028_v34 = vadd.f32 %v9108_v35, %v7805_v40  ;;  %v7261_v16 = vadd.f32 %v7200_v15, %v7113_v19  ;;  %v7580_v63 = vunpack.c.l.b16 %v7356_v12  ;;  %v6971_v40 = vadd.f32 %v17233_v56, %v14691_v41 }
 0x99d   : > { %v8124_v54 = vmax.f32 %v8028_v34, 0.0  ;;  %8947 = vmatmul.msk.bf16.gmra.mxu2 %vm1432_vm11, %v17228_v29  ;;  %v7293_v42 = vadd.f32 %v14837_v33, %v7261_v16  ;;  %v7067_v35 = vpop.f32.mrf.mxu0  ;;  %v9111_v29 = vld [vmem:[%s9356_s15 + $0x70] sm:$0xff] }
 0x99f   : > { %8220 = vst.msk [vmem:[%s14492_s12 + $0x58] sm:$0xff] %vm483_vm0, %v8124_v54  ;;  %v7325_v24 = vmax.f32 %v7293_v42, 0.0  ;;  %v7116_v54 = vadd.f32 %v14979_v9, %v6971_v40  ;;  %v17237_v40 = vld [vmem:[#allocation248_spill] sm:$0xff] }
 0x9a0   : > { %v7807_v20 = vpop.f32.mrf.mxu2 }
 0x9a1   : > { %v7808_v57 = vadd.f32 %v14976_v30, %v7807_v20  ;;  %v7357_v2 = vpack.c.bf16 %v7325_v24, %v7325_v24  ;;  %v17234_v20 = vld [vmem:[#allocation198_spill] sm:$0xff] }
 0x9a2   : > { %v7203_v21 = vpop.f32.mrf.mxu1 }
 0x9a3   : > { %v8029_v58 = vadd.f32 %v9109_v8, %v7808_v57  ;;  %v7581_v43 = vunpack.c.l.b16 %v7357_v2  ;;  %v7262_v1 = vadd.f32 %v7203_v21, %v7114_v39  ;;  %v6972_v57 = vadd.f32 %v17234_v20, %v14702_v10  ;;  %v17239_v20 = vld [vmem:[#allocation37_spill] sm:$0xff] }
 0x9a5   : > { %v8125_v48 = vmax.f32 %v8029_v58, 0.0  ;;  %v7606_v38 = vpack.c.b16 %v7581_v43, %v7580_v63  ;;  %8932 = vmatmul.msk.bf16.gmra.mxu1 %vm1432_vm11, %v7146_v23  ;;  %v7294_v60 = vadd.f32 %v14837_v33, %v7262_v1  ;;  %v7070_v58 = vpop.f32.mrf.mxu0  ;;  %v7117_v21 = vadd.f32 %v14996_v17, %v6972_v57  ;;  %v9112_v63 = vld [vmem:[%s9356_s15 + $0x78] sm:$0xff]  ;;  %v17235_v23 = vld [vmem:[#allocation254_spill] sm:$0xff] }
 0x9a6   : > { %v6975_v57 = vadd.f32 %v17239_v20, %v14735_v55 }
 0x9a7   : > { %8221 = vst.msk [vmem:[%s14492_s12 + $0x60] sm:$0xff] %vm483_vm0, %v8125_v48  ;;  %8971 = vmatmul.msk.bf16.gmra.mxu3 %vm1432_vm11, %v7606_v38  ;;  %v7326_v50 = vmax.f32 %v7294_v60, 0.0 }
 0x9a8   : > { %v7809_v7 = vpop.f32.mrf.mxu2 }
 0x9a9   : > { %v7810_v59 = vadd.f32 %v14976_v30, %v7809_v7  ;;  %v7358_v6 = vpack.c.bf16 %v7326_v50, %v7326_v50 }
 0x9aa   : > { %v7205_v13 = vpop.f32.mrf.mxu1 }
 0x9ab   : > { %v8030_v46 = vadd.f32 %v9110_v18, %v7810_v59  ;;  %v7263_v3 = vadd.f32 %v7205_v13, %v7115_v36  ;;  %v7582_v42 = vunpack.c.l.b16 %v7358_v6  ;;  %v7118_v18 = vadd.f32 %v7065_v11, %v6973_v44 }
 0x9ad   : > { %v8126_v51 = vmax.f32 %v8030_v46, 0.0  ;;  %8948 = vmatmul.msk.bf16.gmra.mxu2 %vm1432_vm11, %v17232_v62  ;;  %v7295_v19 = vadd.f32 %v14837_v33, %v7263_v3  ;;  %v9113_v46 = vld [vmem:[%s9356_s15 + $0x80] sm:$0xff]  ;;  %v7072_v3 = vpop.f32.mrf.mxu0 }
 0x9af   : > { %8222 = vst.msk [vmem:[%s14492_s12 + $0x68] sm:$0xff] %vm483_vm0, %v8126_v51  ;;  %v7327_v34 = vmax.f32 %v7295_v19, 0.0  ;;  %v6974_v19 = vadd.f32 %v17237_v40, %v14724_v26 }
 0x9b0   : > { %v7812_v15 = vpop.f32.mrf.mxu2 }
 0x9b1   : > { %v7813_v25 = vadd.f32 %v14976_v30, %v7812_v15  ;;  %v7359_v16 = vpack.c.bf16 %v7327_v34, %v7327_v34 }
 0x9b2   : > { %v7208_v53 = vpop.f32.mrf.mxu1 }
 0x9b3   : > { %v8031_v37 = vadd.f32 %v9111_v29, %v7813_v25  ;;  %v7583_v41 = vunpack.c.l.b16 %v7359_v16  ;;  %v7264_v12 = vadd.f32 %v7208_v53, %v7116_v54  ;;  %v7119_v25 = vadd.f32 %v7067_v35, %v6974_v19  ;;  %v9114_v16 = vld [vmem:[%s9356_s15 + $0x88] sm:$0xff] }
 0x9b5   : > { %v8127_v24 = vmax.f32 %v8031_v37, 0.0  ;;  %v7607_v2 = vpack.c.b16 %v7583_v41, %v7582_v42  ;;  %v7296_v39 = vadd.f32 %v14837_v33, %v7264_v12  ;;  %v17238_v12 = vld [vmem:[#allocation111_spill] sm:$0xff] }
 0x9b7   : > { %8223 = vst.msk [vmem:[%s14492_s12 + $0x70] sm:$0xff] %vm483_vm0, %v8127_v24  ;;  %8972 = vmatmul.msk.bf16.gmra.mxu3 %vm1432_vm11, %v7607_v2  ;;  %v7328_v48 = vmax.f32 %v7296_v39, 0.0  ;;  %v7075_v24 = vpop.f32.mrf.mxu0  ;;  %v9115_v2 = vld [vmem:[%s9356_s15 + $0x200] sm:$0xff] }
 0x9b8   : > { %v7814_v8 = vpop.f32.mrf.mxu2 }
 0x9b9   : > { %v7815_v9 = vadd.f32 %v14976_v30, %v7814_v8  ;;  %v7360_v60 = vpack.c.bf16 %v7328_v48, %v7328_v48  ;;  %v7120_v48 = vadd.f32 %v7070_v58, %v6975_v57 }
 0x9ba   : > { %v7210_v1 = vpop.f32.mrf.mxu1 }
 0x9bb   : > { %v8032_v43 = vadd.f32 %v9112_v63, %v7815_v9  ;;  %v7265_v10 = vadd.f32 %v7210_v1, %v7117_v21  ;;  %v7584_v51 = vunpack.c.l.b16 %v7360_v60 }
 0x9bd   : > { %v8128_v0 = vmax.f32 %v8032_v43, 0.0  ;;  %8949 = vmatmul.msk.bf16.gmra.mxu2 %vm1432_vm11, %v17235_v23  ;;  %v7297_v38 = vadd.f32 %v14837_v33, %v7265_v10  ;;  %v9116_v10 = vld [vmem:[%s9356_s15 + $0x90] sm:$0xff] }
 0x9bf   : > { %8224 = vst.msk [vmem:[%s14492_s12 + $0x78] sm:$0xff] %vm483_vm0, %v8128_v0  ;;  %v7329_v17 = vmax.f32 %v7297_v38, 0.0  ;;  %v7077_v58 = vpop.f32.mrf.mxu0 }
 0x9c0   : > { %v7817_v7 = vpop.f32.mrf.mxu2 }
 0x9c1   : > { %v7818_v59 = vadd.f32 %v14976_v30, %v7817_v7  ;;  %v7361_v36 = vpack.c.bf16 %v7329_v17, %v7329_v17  ;;  %v17240_v7 = vld [vmem:[#allocation293_spill] sm:$0xff] }
 0x9c2   : > { %v7213_v50 = vpop.f32.mrf.mxu1 }
 0x9c3   : > { %v8033_v13 = vadd.f32 %v9113_v46, %v7818_v59  ;;  %v7585_v62 = vunpack.c.l.b16 %v7361_v36  ;;  %v7266_v31 = vadd.f32 %v7213_v50, %v7118_v18  ;;  %v6976_v59 = vadd.f32 %v17240_v7, %v14746_v27  ;;  %v9117_v18 = vld [vmem:[%s9356_s15 + $0x208] sm:$0xff]  ;;  %v9118_v27 = vld [vmem:[%s9356_s15 + $0x98] sm:$0xff] }
 0x9c5   : > { %v8129_v56 = vmax.f32 %v8033_v13, 0.0  ;;  %v7608_v6 = vpack.c.b16 %v7585_v62, %v7584_v51  ;;  %v7298_v34 = vadd.f32 %v14837_v33, %v7266_v31  ;;  %v7121_v31 = vadd.f32 %v7072_v3, %v6976_v59  ;;  %v9119_v3 = vld [vmem:[%s9356_s15 + $0x210] sm:$0xff] }
 0x9c7   : > { %8225 = vst.msk [vmem:[%s14492_s12 + $0x80] sm:$0xff] %vm483_vm0, %v8129_v56  ;;  %8973 = vmatmul.msk.bf16.gmra.mxu3 %vm1432_vm11, %v7608_v6  ;;  %v7330_v53 = vmax.f32 %v7298_v34, 0.0  ;;  %v7080_v20 = vpop.f32.mrf.mxu0 }
 0x9c8   : > { %v7819_v15 = vpop.f32.mrf.mxu2 }
 0x9c9   : > { %v7820_v11 = vadd.f32 %v14976_v30, %v7819_v15  ;;  %v7362_v8 = vpack.c.bf16 %v7330_v53, %v7330_v53 }
 0x9ca   : > { %v7215_v29 = vpop.f32.mrf.mxu1  ;;  %v7937_v37 = vpop.f32.mrf.mxu3 }
 0x9cb   : > { %v8034_v54 = vadd.f32 %v9114_v16, %v7820_v11  ;;  %v7267_v42 = vadd.f32 %v7215_v29, %v7119_v25  ;;  %v7938_v26 = vadd.f32 %v14976_v30, %v7937_v37  ;;  %v7586_v5 = vunpack.c.l.b16 %v7362_v8  ;;  %v17241_v25 = vld [vmem:[#allocation121_spill] sm:$0xff]  ;;  %v17242_v16 = vld [vmem:[#allocation143_spill] sm:$0xff] }
 0x9cd   : > { %v8130_v41 = vmax.f32 %v8034_v54, 0.0  ;;  %8950 = vmatmul.msk.bf16.gmra.mxu2 %vm1432_vm11, %v17238_v12  ;;  %v7299_v35 = vadd.f32 %v14837_v33, %v7267_v42  ;;  %v8081_v39 = vadd.f32 %v9115_v2, %v7938_v26  ;;  %v6977_v54 = vadd.f32 %v17242_v16, %v14757_v32  ;;  %v9120_v32 = vld [vmem:[%s9356_s15 + $0xa0] sm:$0xff]  ;;  %v9124_v16 = vld [vmem:[%s9356_s15 + $0xb0] sm:$0xff] }
 0x9cf   : > { %8226 = vst.msk [vmem:[%s14492_s12 + $0x88] sm:$0xff] %vm483_vm0, %v8130_v41  ;;  %v7331_v9 = vmax.f32 %v7299_v35, 0.0  ;;  %v8177_v21 = vmax.f32 %v8081_v39, 0.0  ;;  %v7122_v35 = vadd.f32 %v7075_v24, %v6977_v54 }
 0x9d0   : > { %v7822_v63 = vpop.f32.mrf.mxu2 }
 0x9d1   : > { %v7823_v43 = vadd.f32 %v14976_v30, %v7822_v63  ;;  %v7363_v1 = vpack.c.bf16 %v7331_v9, %v7331_v9  ;;  %8273 = vst.msk [vmem:[%s14492_s12 + $0x200] sm:$0xff] %vm483_vm0, %v8177_v21 }
 0x9d2   : > { %v7218_v0 = vpop.f32.mrf.mxu1  ;;  %v7939_v23 = vpop.f32.mrf.mxu3 }
 0x9d3   : > { %v8035_v55 = vadd.f32 %v9116_v10, %v7823_v43  ;;  %v7587_v44 = vunpack.c.l.b16 %v7363_v1  ;;  %v7268_v38 = vadd.f32 %v7218_v0, %v7120_v48  ;;  %v7940_v60 = vadd.f32 %v14976_v30, %v7939_v23  ;;  %v17243_v48 = vld [vmem:[#allocation252_spill] sm:$0xff]  ;;  %v9121_v0 = vld [vmem:[%s9356_s15 + $0x218] sm:$0xff] }
 0x9d4   : > { %v6978_v10 = vadd.f32 %v17243_v48, %v14768_v22 }
 0x9d5   : > { %v8131_v17 = vmax.f32 %v8035_v55, 0.0  ;;  %v7609_v36 = vpack.c.b16 %v7587_v44, %v7586_v5  ;;  %v8082_v46 = vadd.f32 %v9117_v18, %v7940_v60  ;;  %v7300_v13 = vadd.f32 %v14837_v33, %v7268_v38 }
 0x9d6   : > { %v7123_v60 = vadd.f32 %v7077_v58, %v6978_v10 }
 0x9d7   : > { %8227 = vst.msk [vmem:[%s14492_s12 + $0x90] sm:$0xff] %vm483_vm0, %v8131_v17  ;;  %v8178_v50 = vmax.f32 %v8082_v46, 0.0  ;;  %8974 = vmatmul.msk.bf16.gmra.mxu3 %vm1432_vm11, %v7609_v36  ;;  %v7332_v6 = vmax.f32 %v7300_v13, 0.0  ;;  %v9122_v17 = vld [vmem:[%s9356_s15 + $0xa8] sm:$0xff]  ;;  %v7082_v36 = vpop.f32.mrf.mxu0 }
 0x9d8   : > { %v7824_v51 = vpop.f32.mrf.mxu2 }
 0x9d9   : > { %v7825_v62 = vadd.f32 %v14976_v30, %v7824_v51  ;;  %8274 = vst.msk [vmem:[%s14492_s12 + $0x208] sm:$0xff] %vm483_vm0, %v8178_v50  ;;  %v7364_v53 = vpack.c.bf16 %v7332_v6, %v7332_v6  ;;  %v17244_v51 = vld [vmem:[#allocation220_spill] sm:$0xff] }
 0x9da   : > { %v7220_v40 = vpop.f32.mrf.mxu1  ;;  %v7942_v19 = vpop.f32.mrf.mxu3 }
 0x9db   : > { %v8036_v56 = vadd.f32 %v9118_v27, %v7825_v62  ;;  %v7269_v34 = vadd.f32 %v7220_v40, %v7121_v31  ;;  %v7943_v15 = vadd.f32 %v14976_v30, %v7942_v19  ;;  %v7588_v9 = vunpack.c.l.b16 %v7364_v53  ;;  %v17245_v62 = vld [vmem:[#allocation89_spill] sm:$0xff]  ;;  %v9123_v27 = vld [vmem:[%s9356_s15 + $0x220] sm:$0xff] }
 0x9dc   : > { %v6979_v31 = vadd.f32 %v17245_v62, %v14779_v47 }
 0x9dd   : > { %v8132_v11 = vmax.f32 %v8036_v56, 0.0  ;;  %8951 = vmatmul.msk.bf16.gmra.mxu2 %vm1432_vm11, %v17241_v25  ;;  %v7301_v29 = vadd.f32 %v14837_v33, %v7269_v34  ;;  %v8083_v37 = vadd.f32 %v9119_v3, %v7943_v15 }
 0x9de   : > { %v7124_v25 = vadd.f32 %v7080_v20, %v6979_v31 }
 0x9df   : > { %8228 = vst.msk [vmem:[%s14492_s12 + $0x98] sm:$0xff] %vm483_vm0, %v8132_v11  ;;  %v7333_v42 = vmax.f32 %v7301_v29, 0.0  ;;  %v8179_v26 = vmax.f32 %v8083_v37, 0.0 }
 0x9e0   : > { %v7827_v41 = vpop.f32.mrf.mxu2 }
 0x9e1   : > { %v7828_v12 = vadd.f32 %v14976_v30, %v7827_v41  ;;  %v7365_v57 = vpack.c.bf16 %v7333_v42, %v7333_v42  ;;  %8275 = vst.msk [vmem:[%s14492_s12 + $0x210] sm:$0xff] %vm483_vm0, %v8179_v26  ;;  %v7085_v41 = vpop.f32.mrf.mxu0 }
 0x9e2   : > { %v7223_v39 = vpop.f32.mrf.mxu1  ;;  %v7944_v8 = vpop.f32.mrf.mxu3 }
 0x9e3   : > { %v8037_v2 = vadd.f32 %v9120_v32, %v7828_v12  ;;  %v7589_v21 = vunpack.c.l.b16 %v7365_v57  ;;  %v7270_v63 = vadd.f32 %v7223_v39, %v7122_v35  ;;  %v7945_v43 = vadd.f32 %v14976_v30, %v7944_v8  ;;  %v17246_v12 = vld [vmem:[#allocation64_spill] sm:$0xff]  ;;  %v9125_v32 = vld [vmem:[%s9356_s15 + $0x228] sm:$0xff] }
 0x9e4   : > { %v6980_v57 = vadd.f32 %v17246_v12, %v14790_v28 }
 0x9e5   : > { %v8133_v1 = vmax.f32 %v8037_v2, 0.0  ;;  %v7610_v55 = vpack.c.b16 %v7589_v21, %v7588_v9  ;;  %v8084_v23 = vadd.f32 %v9121_v0, %v7945_v43  ;;  %v7302_v24 = vadd.f32 %v14837_v33, %v7270_v63  ;;  %v9126_v63 = vld [vmem:[%s9356_s15 + $0xb8] sm:$0xff] }
 0x9e6   : > { %v7125_v21 = vadd.f32 %v7082_v36, %v6980_v57  ;;  %v17249_v57 = vld [vmem:[#allocation88_spill] sm:$0xff] }
 0x9e7   : > { %8229 = vst.msk [vmem:[%s14492_s12 + $0xa0] sm:$0xff] %vm483_vm0, %v8133_v1  ;;  %v8180_v5 = vmax.f32 %v8084_v23, 0.0  ;;  %8975 = vmatmul.msk.bf16.gmra.mxu3 %vm1432_vm11, %v7610_v55  ;;  %v7334_v18 = vmax.f32 %v7302_v24, 0.0  ;;  %v17247_v23 = vld [vmem:[#allocation239_spill] sm:$0xff] }
 0x9e8   : > { %v7829_v44 = vpop.f32.mrf.mxu2  ;;  %v6981_v24 = vadd.f32 %v17247_v23, %v14799_v52  ;;  %v9128_v52 = vld [vmem:[%s9356_s15 + $0xc0] sm:$0xff] }
 0x9e9   : > { %v7830_v38 = vadd.f32 %v14976_v30, %v7829_v44  ;;  %8276 = vst.msk [vmem:[%s14492_s12 + $0x218] sm:$0xff] %vm483_vm0, %v8180_v5  ;;  %v7366_v40 = vpack.c.bf16 %v7334_v18, %v7334_v18  ;;  %v9127_v44 = vld [vmem:[%s9356_s15 + $0x230] sm:$0xff] }
 0x9ea   : > { %v7225_v7 = vpop.f32.mrf.mxu1  ;;  %v7947_v59 = vpop.f32.mrf.mxu3 }
 0x9eb   : > { %v8038_v22 = vadd.f32 %v9122_v17, %v7830_v38  ;;  %v7271_v46 = vadd.f32 %v7225_v7, %v7123_v60  ;;  %v7948_v13 = vadd.f32 %v14976_v30, %v7947_v59  ;;  %v7590_v3 = vunpack.c.l.b16 %v7366_v40  ;;  %v7087_v60 = vpop.f32.mrf.mxu0  ;;  %v17248_v40 = vld [vmem:[#allocation25_spill] sm:$0xff] }
 0x9ed   : > { %v8134_v50 = vmax.f32 %v8038_v22, 0.0  ;;  %8952 = vmatmul.msk.bf16.gmra.mxu2 %vm1432_vm11, %v17244_v51  ;;  %v7303_v58 = vadd.f32 %v14837_v33, %v7271_v46  ;;  %v8085_v56 = vadd.f32 %v9123_v27, %v7948_v13  ;;  %v7126_v46 = vadd.f32 %v7085_v41, %v6981_v24 }
 0x9ef   : > { %8230 = vst.msk [vmem:[%s14492_s12 + $0xa8] sm:$0xff] %vm483_vm0, %v8134_v50  ;;  %v7335_v19 = vmax.f32 %v7303_v58, 0.0  ;;  %v8181_v6 = vmax.f32 %v8085_v56, 0.0 }
 0x9f0   : > { %v7832_v34 = vpop.f32.mrf.mxu2 }
 0x9f1   : > { %v7833_v15 = vadd.f32 %v14976_v30, %v7832_v34  ;;  %v7367_v11 = vpack.c.bf16 %v7335_v19, %v7335_v19  ;;  %8277 = vst.msk [vmem:[%s14492_s12 + $0x220] sm:$0xff] %vm483_vm0, %v8181_v6  ;;  %v6982_v19 = vadd.f32 %v17248_v40, %v14806_v4  ;;  %v9129_v34 = vld [vmem:[%s9356_s15 + $0x238] sm:$0xff]  ;;  %v9130_v4 = vld [vmem:[%s9356_s15 + $0xc8] sm:$0xff] }
 0x9f2   : > { %v7228_v54 = vpop.f32.mrf.mxu1  ;;  %v7949_v29 = vpop.f32.mrf.mxu3 }
 0x9f3   : > { %v8039_v47 = vadd.f32 %v9124_v16, %v7833_v15  ;;  %v7591_v37 = vunpack.c.l.b16 %v7367_v11  ;;  %v7272_v53 = vadd.f32 %v7228_v54, %v7124_v25  ;;  %v7950_v42 = vadd.f32 %v14976_v30, %v7949_v29  ;;  %v7090_v54 = vpop.f32.mrf.mxu0 }
 0x9f4   : > { %v7127_v29 = vadd.f32 %v7087_v60, %v6982_v19 }
 0x9f5   : > { %v8135_v26 = vmax.f32 %v8039_v47, 0.0  ;;  %v7611_v35 = vpack.c.b16 %v7591_v37, %v7590_v3  ;;  %v8086_v2 = vadd.f32 %v9125_v32, %v7950_v42  ;;  %v7304_v20 = vadd.f32 %v14837_v33, %v7272_v53 }
 0x9f7   : > { %8231 = vst.msk [vmem:[%s14492_s12 + $0xb0] sm:$0xff] %vm483_vm0, %v8135_v26  ;;  %v8182_v39 = vmax.f32 %v8086_v2, 0.0  ;;  %8976 = vmatmul.msk.bf16.gmra.mxu3 %vm1432_vm11, %v7611_v35  ;;  %v7336_v48 = vmax.f32 %v7304_v20, 0.0  ;;  %v6983_v35 = vadd.f32 %v17249_v57, %v14813_v45  ;;  %v9131_v2 = vld [vmem:[%s9356_s15 + $0x240] sm:$0xff]  ;;  %v17252_v57 = vld [vmem:[#allocation16_spill] sm:$0xff] }
 0x9f8   : > { %v7834_v8 = vpop.f32.mrf.mxu2 }
 0x9f9   : > { %v7835_v9 = vadd.f32 %v14976_v30, %v7834_v8  ;;  %8278 = vst.msk [vmem:[%s14492_s12 + $0x228] sm:$0xff] %vm483_vm0, %v8182_v39  ;;  %v7368_v17 = vpack.c.bf16 %v7336_v48, %v7336_v48 }
 0x9fa   : > { %v7230_v43 = vpop.f32.mrf.mxu1  ;;  %v7952_v1 = vpop.f32.mrf.mxu3 }
 0x9fb   : > { %v8040_v28 = vadd.f32 %v9126_v63, %v7835_v9  ;;  %v7273_v10 = vadd.f32 %v7230_v43, %v7125_v21  ;;  %v7953_v55 = vadd.f32 %v14976_v30, %v7952_v1  ;;  %v7592_v62 = vunpack.c.l.b16 %v7368_v17  ;;  %v9132_v1 = vld [vmem:[%s9356_s15 + $0xd0] sm:$0xff] }
 0x9fc   : > { %v7128_v43 = vadd.f32 %v7090_v54, %v6983_v35  ;;  %v6986_v35 = vadd.f32 %v17252_v57, %v14840_v14 }
 0x9fd   : > { %v8136_v0 = vmax.f32 %v8040_v28, 0.0  ;;  %v7305_v5 = vadd.f32 %v14837_v33, %v7273_v10  ;;  %v8087_v38 = vadd.f32 %v9127_v44, %v7953_v55 }
 0x9ff   : > { %8232 = vst.msk [vmem:[%s14492_s12 + $0xb8] sm:$0xff] %vm483_vm0, %v8136_v0  ;;  %v7337_v22 = vmax.f32 %v7305_v5, 0.0  ;;  %v8183_v7 = vmax.f32 %v8087_v38, 0.0  ;;  %v7092_v5 = vpop.f32.mrf.mxu0  ;;  %v17250_v38 = vld [vmem:[#allocation223_spill] sm:$0xff] }
 0xa00   : > { %v7837_v59 = vpop.f32.mrf.mxu2  ;;  %v6984_v60 = vadd.f32 %v17250_v38, %v14820_v61 }
 0xa01   : > { %v7838_v36 = vadd.f32 %v14976_v30, %v7837_v59  ;;  %v7369_v18 = vpack.c.bf16 %v7337_v22, %v7337_v22  ;;  %8279 = vst.msk [vmem:[%s14492_s12 + $0x230] sm:$0xff] %vm483_vm0, %v8183_v7  ;;  %v9133_v22 = vld [vmem:[%s9356_s15 + $0x248] sm:$0xff] }
 0xa02   : > { %v7233_v50 = vpop.f32.mrf.mxu1  ;;  %v7954_v51 = vpop.f32.mrf.mxu3 }
 0xa03   : > { %v8041_v13 = vadd.f32 %v9128_v52, %v7838_v36  ;;  %v7593_v31 = vunpack.c.l.b16 %v7369_v18  ;;  %v7274_v58 = vadd.f32 %v7233_v50, %v7126_v46  ;;  %v7955_v27 = vadd.f32 %v14976_v30, %v7954_v51 }
 0xa04   : > { %v7129_v52 = vadd.f32 %v7092_v5, %v6984_v60  ;;  %v9140_v5 = vld [vmem:[%s9356_s15 + $0x260] sm:$0xff] }
 0xa05   : > { %v8137_v56 = vmax.f32 %v8041_v13, 0.0  ;;  %v7612_v6 = vpack.c.b16 %v7593_v31, %v7592_v62  ;;  %v8088_v15 = vadd.f32 %v9129_v34, %v7955_v27  ;;  %v7306_v11 = vadd.f32 %v14837_v33, %v7274_v58  ;;  %v9134_v13 = vld [vmem:[%s9356_s15 + $0xd8] sm:$0xff] }
 0xa07   : > { %8233 = vst.msk [vmem:[%s14492_s12 + $0xc0] sm:$0xff] %vm483_vm0, %v8137_v56  ;;  %v8184_v25 = vmax.f32 %v8088_v15, 0.0  ;;  %8977 = vmatmul.msk.bf16.gmra.mxu3 %vm1432_vm11, %v7612_v6  ;;  %v7338_v42 = vmax.f32 %v7306_v11, 0.0  ;;  %v17251_v56 = vld [vmem:[#allocation300_spill] sm:$0xff]  ;;  %v7095_v15 = vpop.f32.mrf.mxu0 }
 0xa08   : > { %v7839_v16 = vpop.f32.mrf.mxu2  ;;  %v6985_v40 = vadd.f32 %v17251_v56, %v14827_v49  ;;  %v9135_v6 = vld [vmem:[%s9356_s15 + $0x250] sm:$0xff]  ;;  %v9136_v49 = vld [vmem:[%s9356_s15 + $0xe0] sm:$0xff] }
 0xa09   : > { %v7840_v47 = vadd.f32 %v14976_v30, %v7839_v16  ;;  %8280 = vst.msk [vmem:[%s14492_s12 + $0x238] sm:$0xff] %vm483_vm0, %v8184_v25  ;;  %v7370_v39 = vpack.c.bf16 %v7338_v42, %v7338_v42 }
 0xa0a   : > { %v7235_v37 = vpop.f32.mrf.mxu1  ;;  %v7957_v53 = vpop.f32.mrf.mxu3 }
 0xa0b   : > { %v8042_v3 = vadd.f32 %v9130_v4, %v7840_v47  ;;  %v7275_v26 = vadd.f32 %v7235_v37, %v7127_v29  ;;  %v7958_v41 = vadd.f32 %v14976_v30, %v7957_v53  ;;  %v7594_v55 = vunpack.c.l.b16 %v7370_v39  ;;  %v9138_v39 = vld [vmem:[%s15370_s4] ss:$0 sm:$0xff] }
 0xa0c   : > { %v7130_v4 = vadd.f32 %v7095_v15, %v6985_v40  ;;  %v9143_v40 = vld [vmem:[%s9356_s15 + $0xf8] sm:$0xff] }
 0xa0d   : > { %v8138_v12 = vmax.f32 %v8042_v3, 0.0  ;;  %v7307_v32 = vadd.f32 %v14837_v33, %v7275_v26  ;;  %v8089_v20 = vadd.f32 %v9131_v2, %v7958_v41  ;;  %v9137_v2 = vld [vmem:[%s9356_s15 + $0x258] sm:$0xff] }
 0xa0f   : > { %8234 = vst.msk [vmem:[%s14492_s12 + $0xc8] sm:$0xff] %vm483_vm0, %v8138_v12  ;;  %v7339_v8 = vmax.f32 %v7307_v32, 0.0  ;;  %v8185_v9 = vmax.f32 %v8089_v20, 0.0 }
 0xa10   : > { %v7842_v21 = vpop.f32.mrf.mxu2 }
 0xa11   : > { %v7843_v63 = vadd.f32 %v14976_v30, %v7842_v21  ;;  %v7371_v28 = vpack.c.bf16 %v7339_v8, %v7339_v8  ;;  %8281 = vst.msk [vmem:[%s14492_s12 + $0x240] sm:$0xff] %vm483_vm0, %v8185_v9 }
 0xa12   : > { %v7238_v48 = vpop.f32.mrf.mxu1  ;;  %v7959_v10 = vpop.f32.mrf.mxu3 }
 0xa13   : > { %v8043_v45 = vadd.f32 %v9132_v1, %v7843_v63  ;;  %v7595_v0 = vunpack.c.l.b16 %v7371_v28  ;;  %v7276_v23 = vadd.f32 %v7238_v48, %v7128_v43  ;;  %v7960_v24 = vadd.f32 %v14976_v30, %v7959_v10  ;;  %v7097_v63 = vpop.f32.mrf.mxu0  ;;  %v9139_v43 = vld [vmem:[%s9356_s15 + $0xe8] sm:$0xff] }
 0xa14   : > { %v7131_v14 = vadd.f32 %v7097_v63, %v6986_v35  ;;  %v9149_v63 = vld [vmem:[%s9356_s15 + $0x110] sm:$0xff] }
 0xa15   : > { %v8139_v44 = vmax.f32 %v8043_v45, 0.0  ;;  %v7613_v17 = vpack.c.b16 %v7595_v0, %v7594_v55  ;;  %v8090_v7 = vadd.f32 %v9133_v22, %v7960_v24  ;;  %v7308_v59 = vadd.f32 %v14837_v33, %v7276_v23 }
 0xa17   : > { %8235 = vst.msk [vmem:[%s14492_s12 + $0xd0] sm:$0xff] %vm483_vm0, %v8139_v44  ;;  %v8186_v36 = vmax.f32 %v8090_v7, 0.0  ;;  %8978 = vmatmul.msk.bf16.gmra.mxu3 %vm1432_vm11, %v7613_v17  ;;  %v7340_v62 = vmax.f32 %v7308_v59, 0.0 }
 0xa18   : > { %v7844_v18 = vpop.f32.mrf.mxu2 }
 0xa19   : > { %v7845_v46 = vadd.f32 %v14976_v30, %v7844_v18  ;;  %8282 = vst.msk [vmem:[%s14492_s12 + $0x248] sm:$0xff] %vm483_vm0, %v8186_v36  ;;  %v7372_v11 = vpack.c.bf16 %v7340_v62, %v7340_v62  ;;  %v9141_v36 = vld [vmem:[%s9356_s15 + $0xf0] sm:$0xff]  ;;  %v9142_v62 = vld [vmem:[%s9356_s15 + $0x268] sm:$0xff] }
 0xa1a   : > { %v7240_v50 = vpop.f32.mrf.mxu1  ;;  %v7962_v51 = vpop.f32.mrf.mxu3 }
 0xa1b   : > { %v8044_v61 = vadd.f32 %v9134_v13, %v7845_v46  ;;  %v7277_v31 = vadd.f32 %v7240_v50, %v7129_v52  ;;  %v7963_v58 = vadd.f32 %v14976_v30, %v7962_v51  ;;  %v7596_v53 = vunpack.c.l.b16 %v7372_v11  ;;  %v9144_v11 = vld [vmem:[%s9356_s15 + $0x270] sm:$0xff] }
 0xa1d   : > { %v8140_v27 = vmax.f32 %v8044_v61, 0.0  ;;  %v7309_v19 = vadd.f32 %v14837_v33, %v7277_v31  ;;  %v8091_v34 = vadd.f32 %v9135_v6, %v7963_v58 }
 0xa1f   : > { %8236 = vst.msk [vmem:[%s14492_s12 + $0xd8] sm:$0xff] %vm483_vm0, %v8140_v27  ;;  %v7341_v25 = vmax.f32 %v7309_v19, 0.0  ;;  %v8187_v16 = vmax.f32 %v8091_v34, 0.0 }
 0xa20   : > { %v7847_v47 = vpop.f32.mrf.mxu2 }
 0xa21   : > { %v7848_v54 = vadd.f32 %v14976_v30, %v7847_v47  ;;  %v7373_v29 = vpack.c.bf16 %v7341_v25, %v7341_v25  ;;  %8283 = vst.msk [vmem:[%s14492_s12 + $0x250] sm:$0xff] %vm483_vm0, %v8187_v16 }
 0xa22   : > { %v7243_v33 = vpop.f32.mrf.mxu1  ;;  %v7964_v37 = vpop.f32.mrf.mxu3 }
 0xa23   : > { %v8045_v3 = vadd.f32 %v9136_v49, %v7848_v54  ;;  %v7597_v42 = vunpack.c.l.b16 %v7373_v29  ;;  %v7278_v26 = vadd.f32 %v7243_v33, %v7130_v4  ;;  %v7965_v41 = vadd.f32 %v14976_v30, %v7964_v37  ;;  %v9145_v29 = vld [vmem:[%s9356_s15 + $0x100] sm:$0xff]  ;;  %v9146_v37 = vld [vmem:[%s9356_s15 + $0x278] sm:$0xff] }
 0xa25   : > { %v8141_v12 = vmax.f32 %v8045_v3, 0.0  ;;  %v7614_v32 = vpack.c.b16 %v7597_v42, %v7596_v53  ;;  %v8092_v20 = vadd.f32 %v9137_v2, %v7965_v41  ;;  %v7310_v8 = vadd.f32 %v9138_v39, %v7278_v26 }
 0xa27   : > { %8237 = vst.msk [vmem:[%s14492_s12 + $0xe0] sm:$0xff] %vm483_vm0, %v8141_v12  ;;  %v8188_v9 = vmax.f32 %v8092_v20, 0.0  ;;  %8979 = vmatmul.msk.bf16.gmra.mxu3 %vm1432_vm11, %v7614_v32  ;;  %v7342_v10 = vmax.f32 %v7310_v8, 0.0  ;;  %v9147_v12 = vld [vmem:[%s9356_s15 + $0x108] sm:$0xff]  ;;  %v9148_v20 = vld [vmem:[%s9356_s15 + $0x280] sm:$0xff] }
 0xa28   : > { %v7849_v21 = vpop.f32.mrf.mxu2 }
 0xa29   : > { %v7850_v28 = vadd.f32 %v14976_v30, %v7849_v21  ;;  %8284 = vst.msk [vmem:[%s14492_s12 + $0x258] sm:$0xff] %vm483_vm0, %v8188_v9  ;;  %v7374_v38 = vpack.c.bf16 %v7342_v10, %v7342_v10 }
 0xa2a   : > { %v7245_v45 = vpop.f32.mrf.mxu1  ;;  %v7967_v48 = vpop.f32.mrf.mxu3 }
 0xa2b   : > { %v8046_v1 = vadd.f32 %v9139_v43, %v7850_v28  ;;  %v7279_v55 = vadd.f32 %v7245_v45, %v7131_v14  ;;  %v7968_v0 = vadd.f32 %v14976_v30, %v7967_v48  ;;  %v7598_v52 = vunpack.c.l.b16 %v7374_v38  ;;  %v9150_v45 = vld [vmem:[%s9356_s15 + $0x288] sm:$0xff] }
 0xa2d   : > { %v8142_v23 = vmax.f32 %v8046_v1, 0.0  ;;  %v7311_v24 = vadd.f32 %v9138_v39, %v7279_v55  ;;  %v8093_v44 = vadd.f32 %v9140_v5, %v7968_v0 }
 0xa2f   : > { %8238 = vst.msk [vmem:[%s14492_s12 + $0xe8] sm:$0xff] %vm483_vm0, %v8142_v23  ;;  %v7343_v60 = vmax.f32 %v7311_v24, 0.0  ;;  %v8189_v17 = vmax.f32 %v8093_v44, 0.0  ;;  %v9151_v23 = vld [vmem:[%s9356_s15 + $0x118] sm:$0xff] }
 0xa30   : > { %v7852_v22 = vpop.f32.mrf.mxu2 }
 0xa31   : > { %v7853_v7 = vadd.f32 %v14976_v30, %v7852_v22  ;;  %v7375_v59 = vpack.c.bf16 %v7343_v60, %v7343_v60  ;;  %8285 = vst.msk [vmem:[%s14492_s12 + $0x260] sm:$0xff] %vm483_vm0, %v8189_v17  ;;  %v9152_v60 = vld [vmem:[%s9356_s15 + $0x290] sm:$0xff] }
 0xa32   : > { %v7969_v46 = vpop.f32.mrf.mxu3 }
 0xa33   : > { %v8047_v18 = vadd.f32 %v9141_v36, %v7853_v7  ;;  %v7599_v13 = vunpack.c.l.b16 %v7375_v59  ;;  %v7970_v61 = vadd.f32 %v14976_v30, %v7969_v46  ;;  %v9153_v36 = vld [vmem:[%s9356_s15 + $0x120] sm:$0xff] }
 0xa35   : > { %v8143_v50 = vmax.f32 %v8047_v18, 0.0  ;;  %v7615_v51 = vpack.c.b16 %v7599_v13, %v7598_v52  ;;  %v8094_v31 = vadd.f32 %v9142_v62, %v7970_v61  ;;  %v9154_v61 = vld [vmem:[%s9356_s15 + $0x298] sm:$0xff] }
 0xa37   : > { %8239 = vst.msk [vmem:[%s14492_s12 + $0xf0] sm:$0xff] %vm483_vm0, %v8143_v50  ;;  %v8190_v58 = vmax.f32 %v8094_v31, 0.0  ;;  %8980 = vmatmul.msk.bf16.gmra.mxu3 %vm1432_vm11, %v7615_v51 }
 0xa38   : > { %v7854_v27 = vpop.f32.mrf.mxu2 }
 0xa39   : > { %v7855_v56 = vadd.f32 %v14976_v30, %v7854_v27  ;;  %8286 = vst.msk [vmem:[%s14492_s12 + $0x268] sm:$0xff] %vm483_vm0, %v8190_v58  ;;  %v9155_v58 = vld [vmem:[%s9356_s15 + $0x128] sm:$0xff] }
 0xa3a   : > { %v7972_v6 = vpop.f32.mrf.mxu3 }
 0xa3b   : > { %v8048_v19 = vadd.f32 %v9143_v40, %v7855_v56  ;;  %v7973_v34 = vadd.f32 %v14976_v30, %v7972_v6  ;;  %v9156_v6 = vld [vmem:[%s9356_s15 + $0x2a0] sm:$0xff] }
 0xa3d   : > { %v8144_v15 = vmax.f32 %v8048_v19, 0.0  ;;  %v8095_v25 = vadd.f32 %v9144_v11, %v7973_v34 }
 0xa3f   : > { %8240 = vst.msk [vmem:[%s14492_s12 + $0xf8] sm:$0xff] %vm483_vm0, %v8144_v15  ;;  %v8191_v16 = vmax.f32 %v8095_v25, 0.0 }
 0xa40   : > { %v7857_v47 = vpop.f32.mrf.mxu2 }
 0xa41   : > { %v7858_v54 = vadd.f32 %v14976_v30, %v7857_v47  ;;  %8287 = vst.msk [vmem:[%s14492_s12 + $0x270] sm:$0xff] %vm483_vm0, %v8191_v16  ;;  %v9157_v16 = vld [vmem:[%s9356_s15 + $0x130] sm:$0xff] }
 0xa42   : > { %v7974_v49 = vpop.f32.mrf.mxu3 }
 0xa43   : > { %v8049_v4 = vadd.f32 %v9145_v29, %v7858_v54  ;;  %v7975_v3 = vadd.f32 %v14976_v30, %v7974_v49  ;;  %v9158_v49 = vld [vmem:[%s9356_s15 + $0x2a8] sm:$0xff] }
 0xa45   : > { %v8145_v33 = vmax.f32 %v8049_v4, 0.0  ;;  %v8096_v53 = vadd.f32 %v9146_v37, %v7975_v3 }
 0xa47   : > { %8241 = vst.msk [vmem:[%s14492_s12 + $0x100] sm:$0xff] %vm483_vm0, %v8145_v33  ;;  %v8192_v42 = vmax.f32 %v8096_v53, 0.0 }
 0xa48   : > { %v7859_v26 = vpop.f32.mrf.mxu2 }
 0xa49   : > { %v7860_v41 = vadd.f32 %v14976_v30, %v7859_v26  ;;  %8288 = vst.msk [vmem:[%s14492_s12 + $0x278] sm:$0xff] %vm483_vm0, %v8192_v42  ;;  %v9159_v42 = vld [vmem:[%s9356_s15 + $0x138] sm:$0xff] }
 0xa4a   : > { %v7977_v35 = vpop.f32.mrf.mxu3 }
 0xa4b   : > { %v8050_v57 = vadd.f32 %v9147_v12, %v7860_v41  ;;  %v7978_v32 = vadd.f32 %v14976_v30, %v7977_v35  ;;  %v9160_v35 = vld [vmem:[%s9356_s15 + $0x2b0] sm:$0xff] }
 0xa4d   : > { %v8146_v2 = vmax.f32 %v8050_v57, 0.0  ;;  %v8097_v39 = vadd.f32 %v9148_v20, %v7978_v32 }
 0xa4f   : > { %8242 = vst.msk [vmem:[%s14492_s12 + $0x108] sm:$0xff] %vm483_vm0, %v8146_v2  ;;  %v8193_v8 = vmax.f32 %v8097_v39, 0.0 }
 0xa50   : > { %v7862_v9 = vpop.f32.mrf.mxu2 }
 0xa51   : > { %v7863_v21 = vadd.f32 %v14976_v30, %v7862_v9  ;;  %8289 = vst.msk [vmem:[%s14492_s12 + $0x280] sm:$0xff] %vm483_vm0, %v8193_v8  ;;  %v9161_v8 = vld [vmem:[%s9356_s15 + $0x2b8] sm:$0xff] }
 0xa52   : > { %v7979_v14 = vpop.f32.mrf.mxu3 }
 0xa53   : > { %v8051_v28 = vadd.f32 %v9149_v63, %v7863_v21  ;;  %v7980_v43 = vadd.f32 %v14976_v30, %v7979_v14  ;;  %v9162_v14 = vld [vmem:[%s9356_s15 + $0x2c0] sm:$0xff] }
 0xa55   : > { %v8147_v1 = vmax.f32 %v8051_v28, 0.0  ;;  %v8098_v48 = vadd.f32 %v9150_v45, %v7980_v43 }
 0xa57   : > { %8243 = vst.msk [vmem:[%s14492_s12 + $0x110] sm:$0xff] %vm483_vm0, %v8147_v1  ;;  %v8194_v10 = vmax.f32 %v8098_v48, 0.0 }
 0xa58   : > { %v7864_v55 = vpop.f32.mrf.mxu2 }
 0xa59   : > { %v7865_v0 = vadd.f32 %v14976_v30, %v7864_v55  ;;  %8290 = vst.msk [vmem:[%s14492_s12 + $0x288] sm:$0xff] %vm483_vm0, %v8194_v10  ;;  %v9163_v10 = vld [vmem:[%s9356_s15 + $0x2c8] sm:$0xff] }
 0xa5a   : > { %v7982_v5 = vpop.f32.mrf.mxu3 }
 0xa5b   : > { %v8052_v24 = vadd.f32 %v9151_v23, %v7865_v0  ;;  %v7983_v44 = vadd.f32 %v14976_v30, %v7982_v5  ;;  %v9164_v5 = vld [vmem:[%s9356_s15 + $0x2d0] sm:$0xff] }
 0xa5d   : > { %v8148_v38 = vmax.f32 %v8052_v24, 0.0  ;;  %v8099_v17 = vadd.f32 %v9152_v60, %v7983_v44 }
 0xa5f   : > { %8244 = vst.msk [vmem:[%s14492_s12 + $0x118] sm:$0xff] %vm483_vm0, %v8148_v38  ;;  %v8195_v22 = vmax.f32 %v8099_v17, 0.0 }
 0xa60   : > { %v7867_v7 = vpop.f32.mrf.mxu2 }
 0xa61   : > { %v7868_v59 = vadd.f32 %v14976_v30, %v7867_v7  ;;  %8291 = vst.msk [vmem:[%s14492_s12 + $0x290] sm:$0xff] %vm483_vm0, %v8195_v22  ;;  %v9165_v22 = vld [vmem:[%s9356_s15 + $0x2d8] sm:$0xff] }
 0xa62   : > { %v7984_v46 = vpop.f32.mrf.mxu3 }
 0xa63   : > { %v8053_v18 = vadd.f32 %v9153_v36, %v7868_v59  ;;  %v7985_v52 = vadd.f32 %v14976_v30, %v7984_v46  ;;  %v9166_v46 = vld [vmem:[%s9356_s15 + $0x2e0] sm:$0xff] }
 0xa65   : > { %v8149_v13 = vmax.f32 %v8053_v18, 0.0  ;;  %v8100_v50 = vadd.f32 %v9154_v61, %v7985_v52 }
 0xa67   : > { %8245 = vst.msk [vmem:[%s14492_s12 + $0x120] sm:$0xff] %vm483_vm0, %v8149_v13  ;;  %v8196_v51 = vmax.f32 %v8100_v50, 0.0 }
 0xa68   : > { %v7869_v62 = vpop.f32.mrf.mxu2 }
 0xa69   : > { %v7870_v31 = vadd.f32 %v14976_v30, %v7869_v62  ;;  %8292 = vst.msk [vmem:[%s14492_s12 + $0x298] sm:$0xff] %vm483_vm0, %v8196_v51  ;;  %v9167_v51 = vld [vmem:[%s9356_s15 + $0x2e8] sm:$0xff] }
 0xa6a   : > { %v7987_v56 = vpop.f32.mrf.mxu3 }
 0xa6b   : > { %v8054_v27 = vadd.f32 %v9155_v58, %v7870_v31  ;;  %v7988_v40 = vadd.f32 %v14976_v30, %v7987_v56  ;;  %v9168_v56 = vld [vmem:[%s9356_s15 + $0x2f0] sm:$0xff] }
 0xa6d   : > { %v8150_v19 = vmax.f32 %v8054_v27, 0.0  ;;  %v8101_v34 = vadd.f32 %v9156_v6, %v7988_v40 }
 0xa6f   : > { %8246 = vst.msk [vmem:[%s14492_s12 + $0x128] sm:$0xff] %vm483_vm0, %v8150_v19  ;;  %v8197_v15 = vmax.f32 %v8101_v34, 0.0  ;;  %v9169_v34 = vld [vmem:[%s15372_s6] ss:$0 sm:$0xff] }
 0xa70   : > { %v7872_v11 = vpop.f32.mrf.mxu2 }
 0xa71   : > { %v7873_v25 = vadd.f32 %v14976_v30, %v7872_v11  ;;  %8293 = vst.msk [vmem:[%s14492_s12 + $0x2a0] sm:$0xff] %vm483_vm0, %v8197_v15  ;;  %v9170_v11 = vld [vmem:[%s9356_s15 + $0x2f8] sm:$0xff] }
 0xa72   : > { %v7989_v54 = vpop.f32.mrf.mxu3 }
 0xa73   : > { %v8055_v47 = vadd.f32 %v9157_v16, %v7873_v25  ;;  %v7990_v29 = vadd.f32 %v14976_v30, %v7989_v54 }
 0xa75   : > { %v8151_v4 = vmax.f32 %v8055_v47, 0.0  ;;  %v8102_v3 = vadd.f32 %v9158_v49, %v7990_v29 }
 0xa77   : > { %8247 = vst.msk [vmem:[%s14492_s12 + $0x130] sm:$0xff] %vm483_vm0, %v8151_v4  ;;  %v8198_v33 = vmax.f32 %v8102_v3, 0.0 }
 0xa78   : > { %v7874_v37 = vpop.f32.mrf.mxu2 }
 0xa79   : > { %v7875_v53 = vadd.f32 %v14976_v30, %v7874_v37  ;;  %8294 = vst.msk [vmem:[%s14492_s12 + $0x2a8] sm:$0xff] %vm483_vm0, %v8198_v33 }
 0xa7a   : > { %v7992_v41 = vpop.f32.mrf.mxu3 }
 0xa7b   : > { %v8056_v26 = vadd.f32 %v9159_v42, %v7875_v53  ;;  %v7993_v12 = vadd.f32 %v14976_v30, %v7992_v41 }
 0xa7d   : > { %v8152_v57 = vmax.f32 %v8056_v26, 0.0  ;;  %v8103_v32 = vadd.f32 %v9160_v35, %v7993_v12 }
 0xa7f   : > { %8248 = vst.msk [vmem:[%s14492_s12 + $0x138] sm:$0xff] %vm483_vm0, %v8152_v57  ;;  %v8199_v2 = vmax.f32 %v8103_v32, 0.0 }
 0xa81   : > { %8295 = vst.msk [vmem:[%s14492_s12 + $0x2b0] sm:$0xff] %vm483_vm0, %v8199_v2 }
 0xa82   : > { %v7994_v20 = vpop.f32.mrf.mxu3 }
 0xa83   : > { %v7995_v39 = vadd.f32 %v14976_v30, %v7994_v20 }
 0xa85   : > { %v8104_v9 = vadd.f32 %v9161_v8, %v7995_v39 }
 0xa87   : > { %v8200_v21 = vmax.f32 %v8104_v9, 0.0 }
 0xa89   : > { %8296 = vst.msk [vmem:[%s14492_s12 + $0x2b8] sm:$0xff] %vm483_vm0, %v8200_v21 }
 0xa8a   : > { %v7997_v63 = vpop.f32.mrf.mxu3 }
 0xa8b   : > { %v7998_v28 = vadd.f32 %v14976_v30, %v7997_v63 }
 0xa8d   : > { %v8105_v43 = vadd.f32 %v9162_v14, %v7998_v28 }
 0xa8f   : > { %v8201_v1 = vmax.f32 %v8105_v43, 0.0 }
 0xa91   : > { %8297 = vst.msk [vmem:[%s14492_s12 + $0x2c0] sm:$0xff] %vm483_vm0, %v8201_v1 }
 0xa92   : > { %v7999_v45 = vpop.f32.mrf.mxu3 }
 0xa93   : > { %v8000_v48 = vadd.f32 %v14976_v30, %v7999_v45 }
 0xa95   : > { %v8106_v55 = vadd.f32 %v9163_v10, %v8000_v48 }
 0xa97   : > { %v8202_v0 = vmax.f32 %v8106_v55, 0.0 }
 0xa99   : > { %8298 = vst.msk [vmem:[%s14492_s12 + $0x2c8] sm:$0xff] %vm483_vm0, %v8202_v0 }
 0xa9a   : > { %v8002_v23 = vpop.f32.mrf.mxu3 }
 0xa9b   : > { %v8003_v24 = vadd.f32 %v14976_v30, %v8002_v23 }
 0xa9d   : > { %v8107_v44 = vadd.f32 %v9164_v5, %v8003_v24 }
 0xa9f   : > { %v8203_v38 = vmax.f32 %v8107_v44, 0.0 }
 0xaa1   : > { %8299 = vst.msk [vmem:[%s14492_s12 + $0x2d0] sm:$0xff] %vm483_vm0, %v8203_v38 }
 0xaa2   : > { %v8004_v60 = vpop.f32.mrf.mxu3 }
 0xaa3   : > { %v8005_v17 = vadd.f32 %v14976_v30, %v8004_v60 }
 0xaa5   : > { %v8108_v7 = vadd.f32 %v9165_v22, %v8005_v17 }
 0xaa7   : > { %v8204_v59 = vmax.f32 %v8108_v7, 0.0 }
 0xaa9   : > { %8300 = vst.msk [vmem:[%s14492_s12 + $0x2d8] sm:$0xff] %vm483_vm0, %v8204_v59 }
 0xaaa   : > { %v8007_v36 = vpop.f32.mrf.mxu3 }
 0xaab   : > { %v8008_v18 = vadd.f32 %v14976_v30, %v8007_v36 }
 0xaad   : > { %v8109_v52 = vadd.f32 %v9166_v46, %v8008_v18 }
 0xaaf   : > { %v8205_v13 = vmax.f32 %v8109_v52, 0.0 }
 0xab1   : > { %8301 = vst.msk [vmem:[%s14492_s12 + $0x2e0] sm:$0xff] %vm483_vm0, %v8205_v13 }
 0xab2   : > { %v8009_v61 = vpop.f32.mrf.mxu3 }
 0xab3   : > { %v8010_v50 = vadd.f32 %v14976_v30, %v8009_v61 }
 0xab5   : > { %v8110_v62 = vadd.f32 %v9167_v51, %v8010_v50 }
 0xab7   : > { %v8206_v31 = vmax.f32 %v8110_v62, 0.0 }
 0xab9   : > { %8302 = vst.msk [vmem:[%s14492_s12 + $0x2e8] sm:$0xff] %vm483_vm0, %v8206_v31 }
 0xaba   : > { %v8012_v58 = vpop.f32.mrf.mxu3 }
 0xabb   : > { %v8013_v27 = vadd.f32 %v14976_v30, %v8012_v58 }
 0xabd   : > { %v8111_v40 = vadd.f32 %v9168_v56, %v8013_v27 }
 0xabf   : > { %v8207_v19 = vmax.f32 %v8111_v40, 0.0 }
 0xac1   : > { %8303 = vst.msk [vmem:[%s14492_s12 + $0x2f0] sm:$0xff] %vm483_vm0, %v8207_v19 }
 0xac2   : > { %v8014_v6 = vpop.f32.mrf.mxu3 }
 0xac3   : > { %v8015_v15 = vadd.f32 %v9169_v34, %v8014_v6 }
 0xac5   : > { %v8112_v25 = vadd.f32 %v9170_v11, %v8015_v15 }
 0xac7   : > { %v8208_v16 = vmax.f32 %v8112_v25, 0.0 }
 0xac9   : > { %8304 = vst.msk [vmem:[%s14492_s12 + $0x2f8] sm:$0xff] %vm483_vm0, %v8208_v16 }
 0xaca   : > { %s8987_s9 = sshll.u32 %s9288_s28, 8  ;;  %s8328_s11 = sshll.u32 %s14492_s12, 4  ;;  %s8329_s11 = int_to_ptr.vmem [resolvable:$true] %s8328_s11 }
 0xacb   : > { %s8317_s29 = scalar_lea.hbm %s15373_s7, %s8987_s9  ;;  %s9220_s18 = smov 4096  }
 0xacc   : > { %s8330_s15 = sshll.u32 %s8317_s29, 4  ;;  %9002 = sst [smem:[#allocation9]] (%p9315_p9), %s9220_s18  ;;  %s8331_s15 = int_to_ptr.hbm [resolvable:$true] %s8330_s15 }
 0xacd   : > { %s9221_s10 = smov 8192   ;;  %s9222_s16 = smov 32  }
 0xace   : > { %9003 = sst [smem:[#allocation9 + $0x1]] (%p9315_p9), %s9221_s10  ;;  %s9223_s28 = smov 128  }
 0xacf   : > { %9004 = sst [smem:[#allocation9 + $0x2]] (%p9315_p9), %s9222_s16  ;;  %s9224_s12 = smov 8  }
 0xad0   : > { %9005 = sst [smem:[#allocation9 + $0x3]] (%p9315_p9), %s9223_s28  ;;  %s9225_s19 = smov [#allocation8]  }
 0xad1   : > { %9006 = sst [smem:[#allocation9 + $0x4]] (%p9315_p9), %s9223_s28  ;;  %s9226_s17 = smov 0  }
 0xad2   : > { %9007 = sst [smem:[#allocation9 + $0x5]] (%p9315_p9), %s9224_s12 }
 0xad3   : > { %9008 = dma.general (%p9315_p9), %s8329_s11, 12288, %s8331_s15, %s8306_s23, %s9225_s19, [#allocation9], %s9226_s17, 0  }
 0xad4 PF: > { %s8358_s20 = sand.u32 1, %s9197_s24   ;;  %p9011_p1 = pnand %p8419_p11, %p9319_p10 }
 0xad5   : > { %s8359_s22 = scalar_lea.sflag [#allocation4], %s8358_s20 }
 0xad6   : > { %p9012_p2 = pneg %p9011_p1 }
 0xad8   : > { %9192 = dma.done.wait (%p9012_p2), %s8359_s22, 12288  }
 0xad9   : > { %9194 = vsyncadd (%p9012_p2), %s8359_s22, 4294955008  ;;  %s17253_s9 = sld [smem:[#allocation13_spill]]  ;;  %p20_p3 = scmp.ge.s32.totalorder %s9292_s30, 4  }
 0xada   : > { %s17254_s24 = smov %s9201_s25  ;;  %s17255_s25 = smov %s9205_s26 }
 0xadb   : > { %s17257_s27 = smov %s9292_s30  ;;  %22 = sbr.rel (!%p20_p3) target bundleno = 5 (0x5), region = 111 }
 0xadf   : > { %s17256_s26 = smov %s17253_s9 }
 0xae0   :  { %8365 = vsyncpa [#allocation3], 1 }
 0xae1   :  { %8367 = vsyncpa [#allocation3 + $0x1], 1 }
 0xae2   :  { %8368 = vsyncpa [#allocation4], 1 }
 0xae3   :  { %8370 = vsyncpa [#allocation4 + $0x1], 1 }

</bundles_post_ra>
